<compile_context>
chip_gen: v7x
topology: tpu7x:2x2x1
jax: 0.10.0
libtpu: 0.0.40
codegen_flags: <defaults>
</compile_context>

<pallas_src>
import math

import jax
import jax.numpy as jnp
from jax.experimental import pallas as pl
from jax.experimental.pallas import tpu as pltpu

HEADS = 2
LANE = 128


def _round_up(v, m):
    return ((v + m - 1) // m) * m


def _gae_kernel(edata_ref, dstrow_ref, wt_ref, bt_ref, we_ref, sel_ref, proj_ref,
                out_ref, num_ref, den_ref, m_ref):
    j = pl.program_id(0)                       # edge tile ("arbitrary" reduction axis)
    n_tiles = pl.num_programs(0)

    n_pad = proj_ref.shape[0]
    hcp = out_ref.shape[1]
    t_e = edata_ref.shape[0]

    @pl.when(j == 0)
    def _init():
        num_ref[...] = jnp.zeros(num_ref.shape, num_ref.dtype)
        den_ref[...] = jnp.zeros(den_ref.shape, den_ref.dtype)
        m_ref[...] = jnp.full(m_ref.shape, -1e30, m_ref.dtype)

    # ---- packed per-edge stream: [src, dst, rel_t, 0...] as f32 (ids exact < 2^24) ----
    edata = edata_ref[...]                                    # [tE, 8] f32
    src = edata[:, 0:1].astype(jnp.int32)                     # [tE, 1]
    dst = edata[:, 1:2].astype(jnp.int32)                     # [tE, 1]
    rel_t = edata[:, 2:3]                                     # [tE, 1] f32
    dst_row = dstrow_ref[...]                                 # [1, tE] int32 (lane layout)

    # ---- time encoding: cos(Linear(1, Dt)) -> edge embedding (EUP cos overlaps MXU) ----
    te = jnp.cos(rel_t * wt_ref[...] + bt_ref[...])           # [tE, Dtp] f32
    e_emb = jnp.dot(te.astype(jnp.bfloat16), we_ref[...],
                    preferred_element_type=jnp.float32)       # [tE, HCp] f32

    # ---- one-hot gather/scatter tiles rebuilt in-kernel from the index vectors ----
    col = jax.lax.broadcasted_iota(jnp.int32, (t_e, n_pad), 1)
    src_oh = (col == src).astype(jnp.bfloat16)                # [tE, N]   gather by src
    dst_oh = (col == dst).astype(jnp.bfloat16)                # [tE, N]   gather by dst
    row = jax.lax.broadcasted_iota(jnp.int32, (n_pad, t_e), 0)
    dstT = (row == dst_row).astype(jnp.bfloat16)              # [N, tE]   scatter by dst
    # padded edges have dst = -1 -> all-zero dst_oh rows / dstT columns -> no contribution.

    # ---- per-edge gathers as bf16 one-hot matmuls with f32 accumulation ----
    q_dst = jnp.dot(dst_oh, proj_ref[:, 0:hcp],
                    preferred_element_type=jnp.float32)       # [tE, HCp]
    kv = jnp.dot(src_oh, proj_ref[:, hcp:3 * hcp],
                 preferred_element_type=jnp.float32)          # [tE, 2*HCp]
    key_j = kv[:, 0:hcp] + e_emb
    val_j = kv[:, hcp:2 * hcp] + e_emb

    # ---- per-head logits (sum over each head's C lanes, replicated back across them)
    #      via one small f32 matmul with the precomputed block-selector (scale baked in) ----
    alpha = jnp.dot(q_dst * key_j, sel_ref[...],
                    preferred_element_type=jnp.float32)       # [tE, HCp] f32

    # ---- mask padded edges so they never influence the running max ----
    alpha = jnp.where(dst >= 0, alpha, -1e30)

    # ---- online segment softmax across edge tiles (per-head running max) ----
    m_old = m_ref[...]                                        # [1, HCp]
    m_new = jnp.maximum(m_old, jnp.max(alpha, axis=0, keepdims=True))
    corr = jnp.exp(m_old - m_new)                             # [1, HCp]
    p = jnp.exp(alpha - m_new)                                # [tE, HCp] f32
    # dropout(p=0.1) on the attention coefficients is identity in eval mode.
    num_ref[...] = num_ref[...] * corr + jnp.dot(
        dstT, (p * val_j).astype(jnp.bfloat16), preferred_element_type=jnp.float32)
    den_ref[...] = den_ref[...] * corr + jnp.dot(
        dstT, p.astype(jnp.bfloat16), preferred_element_type=jnp.float32)
    m_ref[...] = m_new

    # ---- last edge tile: normalize, single lane-dense store ----
    @pl.when(j == n_tiles - 1)
    def _finalize():
        inv = pl.reciprocal(den_ref[...] + 1e-16, approx=True)
        out_ref[...] = (num_ref[...] * inv).astype(out_ref.dtype)


def graph_attention_embedding(x, last_update, edge_index, t, msg, params, *, tile_e=512):
    """TGN GraphAttentionEmbedding forward (eval mode) via a tiled Pallas TPU kernel."""
    del msg  # "Nomsg" variant: msg_dim = 0, edge_attr is the time encoding only.
    assert tile_e % 128 == 0
    n, _ = x.shape
    e = edge_index.shape[1]
    hc = params["wq"].shape[1]
    dt = params["wt"].shape[1]
    assert hc % HEADS == 0
    c = hc // HEADS
    hcp = _round_up(hc, LANE)
    dtp = _round_up(dt, LANE)
    n_pad = _round_up(max(n, 8), 8)
    e_pad = _round_up(max(e, 1), tile_e)

    xf = x.astype(jnp.float32)

    # ---- XLA pre-pass: fused q|k|v projection computed ONCE, lane-padded, bf16 ----
    def pad_w(w):
        return jnp.pad(w.astype(jnp.float32), ((0, 0), (0, hcp - hc)))

    def pad_b(b):
        return jnp.pad(b.astype(jnp.float32), ((0, 0), (0, hcp - hc)))

    w_qkv = jnp.concatenate([pad_w(params["wq"]), pad_w(params["wk"]),
                             pad_w(params["wv"])], axis=1)            # [Din, 3*HCp]
    b_qkv = jnp.concatenate([pad_b(params["bq"]), pad_b(params["bk"]),
                             pad_b(params["bv"])], axis=1)            # [1, 3*HCp]
    proj = xf @ w_qkv + b_qkv                                         # [N, 3*HCp] f32
    proj = jnp.pad(proj, ((0, n_pad - n), (0, 0))).astype(jnp.bfloat16)

    # Skip connection in f32 outside the kernel (exact, and shrinks the resident buffer).
    skip = xf @ params["ws"].astype(jnp.float32) + params["bs"].astype(jnp.float32)

    # ---- per-edge streams (packed) + padding (padded edges: dst = -1 -> masked out) ----
    src = edge_index[0].astype(jnp.int32)
    dst = edge_index[1].astype(jnp.int32)
    rel_t = last_update[src].astype(jnp.float32) - t.astype(jnp.float32)       # [E]
    pad_e = e_pad - e
    src_p = jnp.concatenate([src, jnp.zeros((pad_e,), jnp.int32)])
    dst_p = jnp.concatenate([dst, jnp.full((pad_e,), -1, jnp.int32)])
    relt_p = jnp.concatenate([rel_t, jnp.zeros((pad_e,), jnp.float32)])
    edata = jnp.stack(
        [src_p.astype(jnp.float32), dst_p.astype(jnp.float32), relt_p]
        + [jnp.zeros((e_pad,), jnp.float32)] * 5, axis=1)                      # [E, 8] f32
    dst_row = dst_p.reshape(1, e_pad)                                          # [1, E] int32

    # ---- time-encoder / edge weights, zero-padded to 128 lanes ----
    wt = jnp.pad(params["wt"].astype(jnp.float32), ((0, 0), (0, dtp - dt)))    # [1, Dtp]
    bt = jnp.pad(params["bt"].astype(jnp.float32), ((0, 0), (0, dtp - dt)))    # [1, Dtp]
    we = jnp.pad(params["we"].astype(jnp.float32),
                 ((0, dtp - dt), (0, hcp - hc))).astype(jnp.bfloat16)          # [Dtp, HCp]
    # padded te lanes are cos(0)=1 but hit zero rows of we -> no effect.

    # Per-head block selector with the 1/sqrt(C) scale baked in (precomputed, hoisted).
    r = jnp.arange(hcp)
    sel = jnp.where((r[:, None] // c == r[None, :] // c)
                    & (r[:, None] < hc) & (r[None, :] < hc),
                    1.0 / math.sqrt(c), 0.0).astype(jnp.float32)               # [HCp, HCp]

    grid = (e_pad // tile_e,)
    out = pl.pallas_call(
        _gae_kernel,
        out_shape=jax.ShapeDtypeStruct((n_pad, hcp), jnp.float32),
        grid_spec=pltpu.PrefetchScalarGridSpec(
            num_scalar_prefetch=0,
            grid=grid,
            in_specs=[
                pl.BlockSpec((tile_e, 8), lambda j: (j, 0)),       # packed src|dst|rel_t
                pl.BlockSpec((1, tile_e), lambda j: (0, j)),       # dst ids (lane layout)
                pl.BlockSpec((1, dtp), lambda j: (0, 0)),          # time-enc W
                pl.BlockSpec((1, dtp), lambda j: (0, 0)),          # time-enc b
                pl.BlockSpec((dtp, hcp), lambda j: (0, 0)),        # lin_edge W
                pl.BlockSpec((hcp, hcp), lambda j: (0, 0)),        # head block-selector
                pl.BlockSpec((n_pad, 3 * hcp), lambda j: (0, 0)),  # fused q|k|v (resident)
            ],
            out_specs=pl.BlockSpec((n_pad, hcp), lambda j: (0, 0)),
            scratch_shapes=[
                pltpu.VMEM((n_pad, hcp), jnp.float32),   # softmax numerator accumulator
                pltpu.VMEM((n_pad, hcp), jnp.float32),   # softmax denominator accumulator
                pltpu.VMEM((1, hcp), jnp.float32),       # running per-head max
            ],
        ),
        compiler_params=pltpu.CompilerParams(
            dimension_semantics=("arbitrary",),
            # small for these shapes; re-derive for production N (v7x: 64 MiB physical).
            vmem_limit_bytes=32 * 1024 * 1024),
    )(edata, dst_row, wt, bt, we, sel, proj)

    return out[:n, :hc] + skip


def reference(x, last_update, edge_index, t, params):
    """Pure-JAX f32 reference matching PyG TransformerConv (eval mode)."""
    src, dst = edge_index[0], edge_index[1]
    N = x.shape[0]
    E = src.shape[0]
    rel_t = (last_update[src] - t).astype(x.dtype)
    te = jnp.cos(rel_t[:, None] * params["wt"] + params["bt"])
    e_emb = te @ params["we"]
    q = x @ params["wq"] + params["bq"]
    k = x @ params["wk"] + params["bk"]
    v = x @ params["wv"] + params["bv"]
    skip = x @ params["ws"] + params["bs"]
    HC = q.shape[-1]
    C = HC // HEADS
    key_j = (k[src] + e_emb).reshape(E, HEADS, C)
    val_j = (v[src] + e_emb).reshape(E, HEADS, C)
    q_dst = q[dst].reshape(E, HEADS, C)
    alpha = (q_dst * key_j).sum(-1) / math.sqrt(C)                      # [E, H]
    m = jax.ops.segment_max(alpha, dst, num_segments=N)                 # [N, H]
    m = jnp.where(jnp.isfinite(m), m, 0.0)
    p = jnp.exp(alpha - m[dst])
    s = jax.ops.segment_sum(p, dst, num_segments=N) + 1e-16
    a = p / s[dst]
    agg = jax.ops.segment_sum((a[..., None] * val_j).reshape(E, HC), dst,
                              num_segments=N)
    return agg + skip


if __name__ == "__main__":
    key = jax.random.PRNGKey(0)
    N, DIN, OUT, TIME_DIM, E = 64, 32, 32, 32, 600   # heads=2, per-head C = OUT//2
    HC = OUT
    ks = jax.random.split(key, 16)

    x = jax.random.normal(ks[0], (N, DIN), jnp.float32)
    last_update = jax.random.randint(ks[1], (N,), 0, 100).astype(jnp.float32)
    t = jax.random.randint(ks[2], (E,), 0, 100).astype(jnp.float32)
    edge_index = jax.random.randint(ks[3], (2, E), 0, N, dtype=jnp.int32)
    msg = jnp.zeros((E, 0), jnp.float32)             # msg_dim = 0 ("Nomsg" variant)

    sc = 0.1
    params = dict(
        wt=sc * jax.random.normal(ks[4], (1, TIME_DIM), jnp.float32),
        bt=sc * jax.random.normal(ks[5], (1, TIME_DIM), jnp.float32),
        we=sc * jax.random.normal(ks[6], (TIME_DIM, HC), jnp.float32),   # lin_edge (no bias)
        wq=sc * jax.random.normal(ks[7], (DIN, HC), jnp.float32),
        bq=sc * jax.random.normal(ks[8], (1, HC), jnp.float32),
        wk=sc * jax.random.normal(ks[9], (DIN, HC), jnp.float32),
        bk=sc * jax.random.normal(ks[10], (1, HC), jnp.float32),
        wv=sc * jax.random.normal(ks[11], (DIN, HC), jnp.float32),
        bv=sc * jax.random.normal(ks[12], (1, HC), jnp.float32),
        ws=sc * jax.random.normal(ks[13], (DIN, HC), jnp.float32),       # lin_skip
        bs=sc * jax.random.normal(ks[14], (1, HC), jnp.float32),
    )

    # tile_e=256 -> 3 edge tiles (with padded/masked edges), exercising the online softmax.
    out = graph_attention_embedding(x, last_update, edge_index, t, msg, params, tile_e=256)
    out = jax.block_until_ready(out)

    ref = reference(x, last_update, edge_index, t, params)
    assert out.shape == (N, OUT) and out.dtype == jnp.float32
    max_err = float(jnp.max(jnp.abs(out - ref)))
    assert jnp.allclose(out, ref, rtol=2e-2, atol=3e-2), (
        f"mismatch vs reference (max abs err {max_err})")
    print("KERNEL_OK")
</pallas_src>

<mosaic_0001>
module attributes {stable_mosaic.version = 11 : i64} {
  func.func @_gae_kernel(%arg0: i32, %arg1: memref<256x8xf32, #tpu.memory_space<vmem>>, %arg2: memref<1x256xi32, #tpu.memory_space<vmem>>, %arg3: memref<1x128xf32, #tpu.memory_space<vmem>>, %arg4: memref<1x128xf32, #tpu.memory_space<vmem>>, %arg5: memref<128x128xbf16, #tpu.memory_space<vmem>>, %arg6: memref<128x128xf32, #tpu.memory_space<vmem>>, %arg7: memref<64x384xbf16, #tpu.memory_space<vmem>>, %arg8: memref<64x128xf32, #tpu.memory_space<vmem>>, %arg9: memref<64x128xf32, #tpu.memory_space<vmem>>, %arg10: memref<64x128xf32, #tpu.memory_space<vmem>>, %arg11: memref<1x128xf32, #tpu.memory_space<vmem>>) attributes {dimension_semantics = [#tpu.dimension_semantics<arbitrary>], iteration_bounds = array<i64: 3>, scalar_prefetch = 0 : i64, scratch_operands = 3 : i64, tpu.core_type = #tpu.core_type<tc>, window_params = [{transform_indices = @transform_0, window_bounds = array<i64: 256, 8>}, {transform_indices = @transform_1, window_bounds = array<i64: 1, 256>}, {pipeline_mode = #tpu.pipeline_mode<synchronous>, transform_indices = @transform_2, window_bounds = array<i64: 1, 128>}, {pipeline_mode = #tpu.pipeline_mode<synchronous>, transform_indices = @transform_3, window_bounds = array<i64: 1, 128>}, {pipeline_mode = #tpu.pipeline_mode<synchronous>, transform_indices = @transform_4, window_bounds = array<i64: 128, 128>}, {pipeline_mode = #tpu.pipeline_mode<synchronous>, transform_indices = @transform_5, window_bounds = array<i64: 128, 128>}, {pipeline_mode = #tpu.pipeline_mode<synchronous>, transform_indices = @transform_6, window_bounds = array<i64: 64, 384>}, {pipeline_mode = #tpu.pipeline_mode<synchronous>, transform_indices = @transform_7, window_bounds = array<i64: 64, 128>}]} {
    %c0_i32 = arith.constant 0 : i32
    %0 = arith.cmpi eq, %arg0, %c0_i32 : i32
    %1 = arith.extui %0 : i1 to i32
    %c0_i32_0 = arith.constant 0 : i32
    %2 = arith.cmpi ne, %1, %c0_i32_0 : i32
    scf.if %2 {
      %cst_36 = arith.constant 0.000000e+00 : f32
      %83 = vector.broadcast %cst_36 : f32 to vector<64x128xf32>
      %c0_37 = arith.constant 0 : index
      %c0_38 = arith.constant 0 : index
      %84 = vector.load %arg9[%c0_37, %c0_38] : memref<64x128xf32, #tpu.memory_space<vmem>>, vector<64x128xf32>
      tpu.vector_store %arg9[%c0_37, %c0_38], %83 {strides = array<i32>} : memref<64x128xf32, #tpu.memory_space<vmem>>, vector<64x128xf32>,
      %cst_39 = arith.constant 0.000000e+00 : f32
      %85 = vector.broadcast %cst_39 : f32 to vector<64x128xf32>
      %c0_40 = arith.constant 0 : index
      %c0_41 = arith.constant 0 : index
      %86 = vector.load %arg10[%c0_40, %c0_41] : memref<64x128xf32, #tpu.memory_space<vmem>>, vector<64x128xf32>
      tpu.vector_store %arg10[%c0_40, %c0_41], %85 {strides = array<i32>} : memref<64x128xf32, #tpu.memory_space<vmem>>, vector<64x128xf32>,
      %cst_42 = arith.constant -1.000000e+30 : f32
      %87 = vector.broadcast %cst_42 : f32 to vector<1x128xf32>
      %c0_43 = arith.constant 0 : index
      %c0_44 = arith.constant 0 : index
      %88 = vector.load %arg11[%c0_43, %c0_44] : memref<1x128xf32, #tpu.memory_space<vmem>>, vector<1x128xf32>
      tpu.vector_store %arg11[%c0_43, %c0_44], %87 {strides = array<i32>} : memref<1x128xf32, #tpu.memory_space<vmem>>, vector<1x128xf32>,
    } else {
    }
    %c0 = arith.constant 0 : index
    %c0_1 = arith.constant 0 : index
    %3 = vector.load %arg1[%c0, %c0_1] : memref<256x8xf32, #tpu.memory_space<vmem>>, vector<256x8xf32>
    %4 = vector.extract_strided_slice %3 {offsets = [0, 0], sizes = [256, 1], strides = [1, 1]} : vector<256x8xf32> to vector<256x1xf32>
    %5 = arith.fptosi %4 : vector<256x1xf32> to vector<256x1xi32>
    %6 = vector.extract_strided_slice %3 {offsets = [0, 1], sizes = [256, 1], strides = [1, 1]} : vector<256x8xf32> to vector<256x1xf32>
    %7 = arith.fptosi %6 : vector<256x1xf32> to vector<256x1xi32>
    %8 = vector.extract_strided_slice %3 {offsets = [0, 2], sizes = [256, 1], strides = [1, 1]} : vector<256x8xf32> to vector<256x1xf32>
    %c0_2 = arith.constant 0 : index
    %c0_3 = arith.constant 0 : index
    %9 = vector.load %arg2[%c0_2, %c0_3] : memref<1x256xi32, #tpu.memory_space<vmem>>, vector<1x256xi32>
    %c0_4 = arith.constant 0 : index
    %c0_5 = arith.constant 0 : index
    %10 = vector.load %arg3[%c0_4, %c0_5] : memref<1x128xf32, #tpu.memory_space<vmem>>, vector<1x128xf32>
    %11 = vector.broadcast %8 : vector<256x1xf32> to vector<256x128xf32>
    %12 = vector.broadcast %10 : vector<1x128xf32> to vector<256x128xf32>
    %13 = arith.mulf %11, %12 : vector<256x128xf32>
    %c0_6 = arith.constant 0 : index
    %c0_7 = arith.constant 0 : index
    %14 = vector.load %arg4[%c0_6, %c0_7] : memref<1x128xf32, #tpu.memory_space<vmem>>, vector<1x128xf32>
    %15 = vector.broadcast %14 : vector<1x128xf32> to vector<256x128xf32>
    %16 = arith.addf %13, %15 : vector<256x128xf32>
    %17 = math.cos %16 : vector<256x128xf32>
    %18 = arith.truncf %17 : vector<256x128xf32> to vector<256x128xbf16>
    %c0_8 = arith.constant 0 : index
    %c0_9 = arith.constant 0 : index
    %19 = vector.load %arg5[%c0_8, %c0_9] : memref<128x128xbf16, #tpu.memory_space<vmem>>, vector<128x128xbf16>
    %cst = arith.constant dense<0.000000e+00> : vector<256x128xf32>
    %20 = tpu.matmul %18, %19, %cst {dimension_numbers = #tpu.dot_dimension_numbers<[1], [0], [0], [1], [0, 0, 1, 1], [], []>} : vector<256x128xbf16>, vector<128x128xbf16>, vector<256x128xf32> -> vector<256x128xf32>
    %21 = tpu.iota {dimensions = array<i32: 1>} : vector<256x64xi32>
    %22 = vector.broadcast %5 : vector<256x1xi32> to vector<256x64xi32>
    %23 = arith.cmpi eq, %21, %22 : vector<256x64xi32>
    %24 = arith.extui %23 : vector<256x64xi1> to vector<256x64xi32>
    %25 = arith.sitofp %24 : vector<256x64xi32> to vector<256x64xf32>
    %26 = arith.truncf %25 : vector<256x64xf32> to vector<256x64xbf16>
    %27 = vector.broadcast %7 : vector<256x1xi32> to vector<256x64xi32>
    %28 = arith.cmpi eq, %21, %27 : vector<256x64xi32>
    %29 = arith.extui %28 : vector<256x64xi1> to vector<256x64xi32>
    %30 = arith.sitofp %29 : vector<256x64xi32> to vector<256x64xf32>
    %31 = arith.truncf %30 : vector<256x64xf32> to vector<256x64xbf16>
    %32 = tpu.iota {dimensions = array<i32: 0>} : vector<64x256xi32>
    %33 = vector.broadcast %9 : vector<1x256xi32> to vector<64x256xi32>
    %34 = arith.cmpi eq, %32, %33 : vector<64x256xi32>
    %35 = arith.extui %34 : vector<64x256xi1> to vector<64x256xi32>
    %36 = arith.sitofp %35 : vector<64x256xi32> to vector<64x256xf32>
    %37 = arith.truncf %36 : vector<64x256xf32> to vector<64x256xbf16>
    %c0_10 = arith.constant 0 : index
    %c0_11 = arith.constant 0 : index
    %38 = vector.load %arg7[%c0_10, %c0_11] : memref<64x384xbf16, #tpu.memory_space<vmem>>, vector<64x128xbf16>
    %cst_12 = arith.constant dense<0.000000e+00> : vector<256x128xf32>
    %39 = tpu.matmul %31, %38, %cst_12 {dimension_numbers = #tpu.dot_dimension_numbers<[1], [0], [0], [1], [0, 0, 1, 1], [], []>} : vector<256x64xbf16>, vector<64x128xbf16>, vector<256x128xf32> -> vector<256x128xf32>
    %c0_13 = arith.constant 0 : index
    %c128 = arith.constant 128 : index
    %40 = vector.load %arg7[%c0_13, %c128] : memref<64x384xbf16, #tpu.memory_space<vmem>>, vector<64x256xbf16>
    %cst_14 = arith.constant dense<0.000000e+00> : vector<256x256xf32>
    %41 = tpu.matmul %26, %40, %cst_14 {dimension_numbers = #tpu.dot_dimension_numbers<[1], [0], [0], [1], [0, 0, 1, 1], [], []>} : vector<256x64xbf16>, vector<64x256xbf16>, vector<256x256xf32> -> vector<256x256xf32>
    %42 = vector.extract_strided_slice %41 {offsets = [0, 0], sizes = [256, 128], strides = [1, 1]} : vector<256x256xf32> to vector<256x128xf32>
    %43 = arith.addf %42, %20 : vector<256x128xf32>
    %44 = vector.extract_strided_slice %41 {offsets = [0, 128], sizes = [256, 128], strides = [1, 1]} : vector<256x256xf32> to vector<256x128xf32>
    %45 = arith.addf %44, %20 : vector<256x128xf32>
    %46 = arith.mulf %39, %43 : vector<256x128xf32>
    %c0_15 = arith.constant 0 : index
    %c0_16 = arith.constant 0 : index
    %47 = vector.load %arg6[%c0_15, %c0_16] : memref<128x128xf32, #tpu.memory_space<vmem>>, vector<128x128xf32>
    %cst_17 = arith.constant dense<0.000000e+00> : vector<256x128xf32>
    %48 = tpu.matmul %46, %47, %cst_17 {dimension_numbers = #tpu.dot_dimension_numbers<[1], [0], [0], [1], [0, 0, 1, 1], [], []>} : vector<256x128xf32>, vector<128x128xf32>, vector<256x128xf32> -> vector<256x128xf32>
    %c0_i32_18 = arith.constant 0 : i32
    %49 = vector.broadcast %c0_i32_18 : i32 to vector<256x1xi32>
    %50 = arith.cmpi sge, %7, %49 : vector<256x1xi32>
    %cst_19 = arith.constant -1.000000e+30 : f32
    %51 = vector.shape_cast %50 : vector<256x1xi1> to vector<256x1xi1>
    %52 = vector.broadcast %51 : vector<256x1xi1> to vector<256x128xi1>
    %53 = vector.broadcast %cst_19 : f32 to vector<256x128xf32>
    %54 = arith.select %52, %48, %53 : vector<256x128xi1>, vector<256x128xf32>
    %c0_20 = arith.constant 0 : index
    %c0_21 = arith.constant 0 : index
    %55 = vector.load %arg11[%c0_20, %c0_21] : memref<1x128xf32, #tpu.memory_space<vmem>>, vector<1x128xf32>
    %cst_22 = arith.constant dense<0xFF800000> : vector<128xf32>
    %56 = vector.multi_reduction <maximumf>, %54, %cst_22 [0] : vector<256x128xf32> to vector<128xf32>
    %57 = vector.shape_cast %56 : vector<128xf32> to vector<1x128xf32>
    %58 = arith.maximumf %55, %57 : vector<1x128xf32>
    %59 = arith.subf %55, %58 : vector<1x128xf32>
    %60 = math.exp %59 : vector<1x128xf32>
    %61 = vector.broadcast %58 : vector<1x128xf32> to vector<256x128xf32>
    %62 = arith.subf %54, %61 : vector<256x128xf32>
    %63 = math.exp %62 : vector<256x128xf32>
    %c0_23 = arith.constant 0 : index
    %c0_24 = arith.constant 0 : index
    %64 = vector.load %arg9[%c0_23, %c0_24] : memref<64x128xf32, #tpu.memory_space<vmem>>, vector<64x128xf32>
    %65 = vector.broadcast %60 : vector<1x128xf32> to vector<64x128xf32>
    %66 = arith.mulf %64, %65 : vector<64x128xf32>
    %67 = arith.mulf %63, %45 : vector<256x128xf32>
    %68 = arith.truncf %67 : vector<256x128xf32> to vector<256x128xbf16>
    %cst_25 = arith.constant dense<0.000000e+00> : vector<64x128xf32>
    %69 = tpu.matmul %37, %68, %cst_25 {dimension_numbers = #tpu.dot_dimension_numbers<[1], [0], [0], [1], [0, 0, 1, 1], [], []>} : vector<64x256xbf16>, vector<256x128xbf16>, vector<64x128xf32> -> vector<64x128xf32>
    %70 = arith.addf %66, %69 : vector<64x128xf32>
    %c0_26 = arith.constant 0 : index
    %c0_27 = arith.constant 0 : index
    %71 = vector.load %arg9[%c0_26, %c0_27] : memref<64x128xf32, #tpu.memory_space<vmem>>, vector<64x128xf32>
    tpu.vector_store %arg9[%c0_26, %c0_27], %70 {strides = array<i32>} : memref<64x128xf32, #tpu.memory_space<vmem>>, vector<64x128xf32>,
    %c0_28 = arith.constant 0 : index
    %c0_29 = arith.constant 0 : index
    %72 = vector.load %arg10[%c0_28, %c0_29] : memref<64x128xf32, #tpu.memory_space<vmem>>, vector<64x128xf32>
    %73 = vector.broadcast %60 : vector<1x128xf32> to vector<64x128xf32>
    %74 = arith.mulf %72, %73 : vector<64x128xf32>
    %75 = arith.truncf %63 : vector<256x128xf32> to vector<256x128xbf16>
    %cst_30 = arith.constant dense<0.000000e+00> : vector<64x128xf32>
    %76 = tpu.matmul %37, %75, %cst_30 {dimension_numbers = #tpu.dot_dimension_numbers<[1], [0], [0], [1], [0, 0, 1, 1], [], []>} : vector<64x256xbf16>, vector<256x128xbf16>, vector<64x128xf32> -> vector<64x128xf32>
    %77 = arith.addf %74, %76 : vector<64x128xf32>
    %c0_31 = arith.constant 0 : index
    %c0_32 = arith.constant 0 : index
    %78 = vector.load %arg10[%c0_31, %c0_32] : memref<64x128xf32, #tpu.memory_space<vmem>>, vector<64x128xf32>
    tpu.vector_store %arg10[%c0_31, %c0_32], %77 {strides = array<i32>} : memref<64x128xf32, #tpu.memory_space<vmem>>, vector<64x128xf32>,
    %c0_33 = arith.constant 0 : index
    %c0_34 = arith.constant 0 : index
    %79 = vector.load %arg11[%c0_33, %c0_34] : memref<1x128xf32, #tpu.memory_space<vmem>>, vector<1x128xf32>
    tpu.vector_store %arg11[%c0_33, %c0_34], %58 {strides = array<i32>} : memref<1x128xf32, #tpu.memory_space<vmem>>, vector<1x128xf32>,
    %c2_i32 = arith.constant 2 : i32
    %80 = arith.cmpi eq, %arg0, %c2_i32 : i32
    %81 = arith.extui %80 : i1 to i32
    %c0_i32_35 = arith.constant 0 : i32
    %82 = arith.cmpi ne, %81, %c0_i32_35 : i32
    scf.if %82 {
      %c0_36 = arith.constant 0 : index
      %c0_37 = arith.constant 0 : index
      %83 = vector.load %arg10[%c0_36, %c0_37] : memref<64x128xf32, #tpu.memory_space<vmem>>, vector<64x128xf32>
      %cst_38 = arith.constant 1.000000e-16 : f32
      %84 = vector.broadcast %cst_38 : f32 to vector<64x128xf32>
      %85 = arith.addf %83, %84 : vector<64x128xf32>
      %86 = tpu.reciprocal %85 {approx = true} : vector<64x128xf32> -> vector<64x128xf32>
      %c0_39 = arith.constant 0 : index
      %c0_40 = arith.constant 0 : index
      %87 = vector.load %arg9[%c0_39, %c0_40] : memref<64x128xf32, #tpu.memory_space<vmem>>, vector<64x128xf32>
      %88 = arith.mulf %87, %86 : vector<64x128xf32>
      %c0_41 = arith.constant 0 : index
      %c0_42 = arith.constant 0 : index
      %89 = vector.load %arg8[%c0_41, %c0_42] : memref<64x128xf32, #tpu.memory_space<vmem>>, vector<64x128xf32>
      tpu.vector_store %arg8[%c0_41, %c0_42], %88 {strides = array<i32>} : memref<64x128xf32, #tpu.memory_space<vmem>>, vector<64x128xf32>,
    } else {
    }
    return
  }
  func.func @transform_0(%arg0: i32) -> (i32, i32) {
    %c0_i32 = arith.constant 0 : i32
    %c0_i32_0 = arith.constant 0 : i32
    return %arg0, %c0_i32 : i32, i32
  }
  func.func @transform_1(%arg0: i32) -> (i32, i32) {
    %c0_i32 = arith.constant 0 : i32
    %c0_i32_0 = arith.constant 0 : i32
    return %c0_i32, %arg0 : i32, i32
  }
  func.func @transform_2(%arg0: i32) -> (i32, i32) {
    %c0_i32 = arith.constant 0 : i32
    %c0_i32_0 = arith.constant 0 : i32
    %c0_i32_1 = arith.constant 0 : i32
    return %c0_i32, %c0_i32_0 : i32, i32
  }
  func.func @transform_3(%arg0: i32) -> (i32, i32) {
    %c0_i32 = arith.constant 0 : i32
    %c0_i32_0 = arith.constant 0 : i32
    %c0_i32_1 = arith.constant 0 : i32
    return %c0_i32, %c0_i32_0 : i32, i32
  }
  func.func @transform_4(%arg0: i32) -> (i32, i32) {
    %c0_i32 = arith.constant 0 : i32
    %c0_i32_0 = arith.constant 0 : i32
    %c0_i32_1 = arith.constant 0 : i32
    return %c0_i32, %c0_i32_0 : i32, i32
  }
  func.func @transform_5(%arg0: i32) -> (i32, i32) {
    %c0_i32 = arith.constant 0 : i32
    %c0_i32_0 = arith.constant 0 : i32
    %c0_i32_1 = arith.constant 0 : i32
    return %c0_i32, %c0_i32_0 : i32, i32
  }
  func.func @transform_6(%arg0: i32) -> (i32, i32) {
    %c0_i32 = arith.constant 0 : i32
    %c0_i32_0 = arith.constant 0 : i32
    %c0_i32_1 = arith.constant 0 : i32
    return %c0_i32, %c0_i32_0 : i32, i32
  }
  func.func @transform_7(%arg0: i32) -> (i32, i32) {
    %c0_i32 = arith.constant 0 : i32
    %c0_i32_0 = arith.constant 0 : i32
    %c0_i32_1 = arith.constant 0 : i32
    return %c0_i32, %c0_i32_0 : i32, i32
  }
}

</mosaic_0001>

<bundles_post_ra>
// kernel: tpu_custom_call.1
= control target key start
LH: loop header
LB: loop body
LE: loop exit
PB: predicated region body
PF: predicated region fallthrough
CT: control target
= control target key end

     0   :  { %12 = vsyncpa [#allocation6], 0  ;;  %s7532_s24 = smov 0   ;;  %s13028_s0 = inlined_call_operand.vmem [shape: f32[768,8], index: 0, kind: input, shape index: {}]   ;;  %s13029_s1 = inlined_call_operand.vmem [shape: s32[1,768], index: 1, kind: input, shape index: {}]   ;;  %s13030_s2 = inlined_call_operand.vmem [shape: f32[1,128], index: 2, kind: input, shape index: {}]   ;;  %s13031_s3 = inlined_call_operand.vmem [shape: f32[1,128], index: 3, kind: input, shape index: {}]   ;;  %s13032_s4 = inlined_call_operand.vmem [shape: bf16[128,128], index: 4, kind: input, shape index: {}]   ;;  %s13033_s5 = inlined_call_operand.vmem [shape: f32[128,128], index: 5, kind: input, shape index: {}]   ;;  %s13034_s6 = inlined_call_operand.vmem [shape: bf16[64,384], index: 6, kind: input, shape index: {}]   ;;  %s13035_s7 = inlined_call_operand.hbm [shape: f32[64,128], index: 7, kind: output, shape index: {}]  }
   0x1 LB: > { %s7538_s25 = sadd.s32 4294967295, %s7474_s24   ;;  %p6252_p0 = scmp.ge.s32.totalorder %s7474_s24, 1  ;;  %s7474_s24 = sphi %s7532_s24, %s18_s24  }
   0x2   : > { %p244_p1 = scmp.lt.s32.totalorder %s7474_s24, 4 }
   0x4   : > { %p245_p2 = pnand %p6252_p0, %p244_p1 }
   0x6   : > { %248 = sbr.rel (%p245_p2) target bundleno = 1931 (0x78b), region = 48 }
   0xd   : > { %s6253_s26 = sshll.u32 %s7538_s25, 5  ;;  %s6255_s27 = sshll.u32 %s7538_s25, 1 }
   0xe   : > { %p276_p3 = scmp.lt.s32.totalorder %s6253_s26, 95  ;;  %p282_p4 = scmp.lt.s32.totalorder %s6255_s27, 5 }
   0xf   : > { %p6256_p5 = scmp.ne.s32.totalorder %s7538_s25, 0 }
  0x10   : > { %s13931_s26 = smov (!%p276_p3, %s6253_s26), 95  ;;  %s13933_s27 = smov (!%p282_p4, %s6255_s27), 5 }
  0x11   : > { %s6254_s28 = sshll.u32 %s13931_s26, 3  ;;  %s284_s11 = scalar_lea.vmem %s13029_s1, %s13933_s27  ;;  %v7476_v0 = vmov (!%p6256_p5), 0.0   ;;  %v7477_v1 = vmov (!%p6256_p5), -1e+30  }
  0x12   : > { %s7549_s8 = scalar_lea.vmem %s13028_s0, %s6254_s28  ;;  %290 = sbr.rel (%p6256_p5) target bundleno = 27 (0x1b), region = 52  ;;  %291 = vst [vmem:[#allocation2] sm:$0xff] (!%p6256_p5), %v7476_v0  ;;  %292 = vst [vmem:[#allocation2 + $0x8] sm:$0xff] (!%p6256_p5), %v7476_v0 }
  0x13   : > { %293 = vst [vmem:[#allocation2 + $0x10] sm:$0xff] (!%p6256_p5), %v7476_v0  ;;  %294 = vst [vmem:[#allocation2 + $0x18] sm:$0xff] (!%p6256_p5), %v7476_v0 }
  0x14   : > { %295 = vst [vmem:[#allocation2 + $0x20] sm:$0xff] (!%p6256_p5), %v7476_v0  ;;  %296 = vst [vmem:[#allocation2 + $0x28] sm:$0xff] (!%p6256_p5), %v7476_v0 }
  0x15   : > { %297 = vst [vmem:[#allocation2 + $0x30] sm:$0xff] (!%p6256_p5), %v7476_v0  ;;  %298 = vst [vmem:[#allocation2 + $0x38] sm:$0xff] (!%p6256_p5), %v7476_v0 }
  0x16   : > { %299 = vst [vmem:[#allocation3] sm:$0xff] (!%p6256_p5), %v7476_v0  ;;  %300 = vst [vmem:[#allocation3 + $0x8] sm:$0xff] (!%p6256_p5), %v7476_v0 }
  0x17   : > { %301 = vst [vmem:[#allocation3 + $0x10] sm:$0xff] (!%p6256_p5), %v7476_v0  ;;  %302 = vst [vmem:[#allocation3 + $0x18] sm:$0xff] (!%p6256_p5), %v7476_v0 }
  0x18   : > { %303 = vst [vmem:[#allocation3 + $0x20] sm:$0xff] (!%p6256_p5), %v7476_v0  ;;  %304 = vst [vmem:[#allocation3 + $0x28] sm:$0xff] (!%p6256_p5), %v7476_v0 }
  0x19   : > { %305 = vst [vmem:[#allocation3 + $0x30] sm:$0xff] %v7476_v0  ;;  %306 = vst [vmem:[#allocation3 + $0x38] sm:$0xff] %v7476_v0 }
  0x1a   : > { %307 = vst [vmem:[#allocation4] sm:$0x1] %v7477_v1 }
  0x1b PF: > { %v7557_v2 = vld [vmem:[%s7549_s8 + $0x10] sm:$0xff]  ;;  %v7560_v3 = vld [vmem:[%s7549_s8] sm:$0xff]  ;;  %v7563_v4 = vld [vmem:[%s7549_s8 + $0x18] sm:$0xff]  ;;  %v13043_v5 = vmov 1   ;;  %vm4671_vm4 = vcmask 523264   ;;  %p6551_p6 = scmp.ne.s32.totalorder %s7538_s25, 2 }
  0x1c   : > { %7167 = vset.pattern.permute.xlu1 %v13043_v5  ;;  %7166 = vset.pattern.permute.xlu0 %v13043_v5  ;;  %v6948_v6 = vtrunc.f32 %v7557_v2  ;;  %v6944_v7 = vtrunc.f32 %v7560_v3  ;;  %v6950_v8 = vtrunc.f32 %v7563_v4  ;;  %v7571_v9 = vld [vmem:[%s7549_s8 + $0x8] sm:$0xff]  ;;  %v7578_v12 = vld [vmem:[%s7549_s8 + $0x20] sm:$0xff]  ;;  %v7593_v19 = vld [vmem:[%s7549_s8 + $0x38] sm:$0xff] }
  0x1d   : > { %v6946_v10 = vtrunc.f32 %v7571_v9  ;;  %v7575_v11 = vld [vmem:[%s7549_s8 + $0x28] sm:$0xff]  ;;  %v6952_v18 = vtrunc.f32 %v7578_v12  ;;  %v7596_v20 = vld [vmem:[%s7549_s8 + $0x30] sm:$0xff]  ;;  %v6958_v23 = vtrunc.f32 %v7593_v19  ;;  %v7610_v26 = vld [vmem:[%s7549_s8 + $0x40] sm:$0xff] }
  0x1e   : > { %v7580_v13 = vcvt.f32.s32 %v6948_v6  ;;  %v7582_v14 = vcvt.f32.s32 %v6944_v7  ;;  %v7586_v15 = vcvt.f32.s32 %v6950_v8  ;;  %v6954_v17 = vtrunc.f32 %v7575_v11  ;;  %v7607_v25 = vld [vmem:[%s7549_s8 + $0x48] sm:$0xff]  ;;  %v7616_v28 = vld [vmem:[%s7549_s8 + $0x58] sm:$0xff]  ;;  %v7630_v34 = vld [vmem:[%s7549_s8 + $0x50] sm:$0xff] }
  0x1f   : > { %v7588_v16 = vcvt.f32.s32 %v6946_v10  ;;  %v7602_v22 = vcvt.f32.s32 %v6952_v18  ;;  %v6956_v24 = vtrunc.f32 %v7596_v20  ;;  %v7196_v27 = vld [vmem:[%s13034_s6] ss:$12 sps:$4 sm:$0xff]   ;;  %v7197_v29 = vld [vmem:[%s13034_s6 + $0x18] ss:$12 sps:$4 sm:$0xff]   ;;  %v7623_v30 = vcvt.f32.s32 %v6958_v23  ;;  %v7198_v35 = vld [vmem:[%s13034_s6 + $0x30] ss:$12 sps:$4 sm:$0xff]  }
  0x20   : > { %13300 = vst [vmem:[#allocation8_spill] sm:$0xff] %v7580_v13  ;;  %13301 = vst [vmem:[#allocation9_spill] sm:$0xff] %v7582_v14  ;;  %4365 = vperm.xlu1 %7167, %v7580_v13   ;;  %4359 = vperm.xlu0 %7166, %v7582_v14   ;;  %v7600_v21 = vcvt.f32.s32 %v6954_v17  ;;  %v6962_v32 = vtrunc.f32 %v7607_v25  ;;  %v6960_v33 = vtrunc.f32 %v7610_v26  ;;  %v7636_v36 = vld [vmem:[%s7549_s8 + $0x68] sm:$0xff]  ;;  %v6966_v39 = vtrunc.f32 %v7616_v28  ;;  %v7647_v41 = vld [vmem:[%s7549_s8 + $0x60] sm:$0xff] }
  0x21   : > { %13302 = vst [vmem:[#allocation10_spill] sm:$0xff] %v7586_v15  ;;  %13303 = vst [vmem:[#allocation11_spill] sm:$0xff] %v7588_v16  ;;  %v7625_v31 = vcvt.f32.s32 %v6956_v24  ;;  %6776 = vmatprep.subr.bf16.mxu1 %v7196_v27  ;;  %v6964_v40 = vtrunc.f32 %v7630_v34  ;;  %v7199_v42 = vld [vmem:[%s13034_s6 + $0x48] ss:$12 sps:$4 sm:$0xff]   ;;  %v7653_v43 = vld [vmem:[%s7549_s8 + $0x78] sm:$0xff]  ;;  %v6970_v47 = vtrunc.f32 %v7636_v36  ;;  %v6968_v48 = vtrunc.f32 %v7647_v41 }
  0x22   : > { %13304 = vst [vmem:[#allocation12_spill] sm:$0xff] %v7600_v21  ;;  %13305 = vst [vmem:[#allocation13_spill] sm:$0xff] %v7602_v22  ;;  %6777 = vmatpush3.bf16.msra.mxu1 %v7196_v27  ;;  %v7640_v37 = vcvt.f32.s32 %v6962_v32  ;;  %v7642_v38 = vcvt.f32.s32 %v6960_v33  ;;  %v7656_v44 = vld [vmem:[%s7549_s8 + $0x70] sm:$0xff]  ;;  %v7660_v45 = vcvt.f32.s32 %v6966_v39  ;;  %v6974_v51 = vtrunc.f32 %v7653_v43  ;;  %v7675_v53 = vld [vmem:[%s7549_s8 + $0x88] sm:$0xff] }
  0x23   : > { %13306 = vst [vmem:[#allocation14_spill] sm:$0xff] %v7623_v30  ;;  %13307 = vst [vmem:[#allocation15_spill] sm:$0xff] %v7625_v31  ;;  %6778 = vmatprep.subr.bf16.mxu1 %v7197_v29  ;;  %v7662_v46 = vcvt.f32.s32 %v6964_v40  ;;  %v7668_v49 = vcvt.f32.s32 %v6970_v47  ;;  %v7670_v50 = vcvt.f32.s32 %v6968_v48  ;;  %v6972_v52 = vtrunc.f32 %v7656_v44  ;;  %v7678_v54 = vld [vmem:[%s7549_s8 + $0x80] sm:$0xff]  ;;  %v7689_v59 = vld [vmem:[%s7549_s8 + $0x98] sm:$0xff] }
  0x24   : > { %4368 = vperm.xlu1 %7167, %v7586_v15   ;;  %4362 = vperm.xlu0 %7166, %v7588_v16   ;;  %13308 = vst [vmem:[#allocation16_spill] sm:$0xff] %v7640_v37  ;;  %13309 = vst [vmem:[#allocation17_spill] sm:$0xff] %v7642_v38  ;;  %v7682_v55 = vcvt.f32.s32 %v6974_v51  ;;  %v6978_v57 = vtrunc.f32 %v7675_v53  ;;  %v6976_v58 = vtrunc.f32 %v7678_v54  ;;  %v7692_v60 = vld [vmem:[%s7549_s8 + $0x90] sm:$0xff]  ;;  %v6982_v63 = vtrunc.f32 %v7689_v59  ;;  %v7703_v1 = vld [vmem:[%s7549_s8 + $0xa8] sm:$0xff] }
  0x25   : > { %13310 = vst [vmem:[#allocation18_spill] sm:$0xff] %v7660_v45  ;;  %13311 = vst [vmem:[#allocation19_spill] sm:$0xff] %v7662_v46  ;;  %v7684_v56 = vcvt.f32.s32 %v6972_v52  ;;  %v6980_v0 = vtrunc.f32 %v7692_v60  ;;  %v7706_v6 = vld [vmem:[%s7549_s8 + $0xa0] sm:$0xff]  ;;  %v6986_v10 = vtrunc.f32 %v7703_v1  ;;  %v7717_v18 = vld [vmem:[%s7549_s8 + $0xb8] sm:$0xff] }
  0x26   : > { %6779 = vmatpush3.bf16.msra.mxu1 %v7197_v29  ;;  %13312 = vst [vmem:[#allocation20_spill] sm:$0xff] %v7668_v49  ;;  %13313 = vst [vmem:[#allocation21_spill] sm:$0xff] %v7670_v50  ;;  %v7696_v61 = vcvt.f32.s32 %v6978_v57  ;;  %v7698_v62 = vcvt.f32.s32 %v6976_v58  ;;  %v7710_v7 = vcvt.f32.s32 %v6982_v63  ;;  %v6984_v17 = vtrunc.f32 %v7706_v6  ;;  %v7727_v29 = vld [vmem:[%s7549_s8 + $0xc0] sm:$0xff]  ;;  %v7730_v32 = vld [vmem:[%s7549_s8 + $0xb0] sm:$0xff] }
  0x27   : > { %6780 = vmatprep.subr.bf16.mxu1 %v7198_v35  ;;  %13314 = vst [vmem:[#allocation22_spill] sm:$0xff] %v7682_v55  ;;  %13315 = vst [vmem:[#allocation23_spill] sm:$0xff] %v7684_v56  ;;  %v7712_v8 = vcvt.f32.s32 %v6980_v0  ;;  %v7721_v23 = vcvt.f32.s32 %v6986_v10  ;;  %v6990_v27 = vtrunc.f32 %v7717_v18  ;;  %v7738_v39 = vld [vmem:[%s7549_s8 + $0xd8] sm:$0xff]  ;;  %v6988_v40 = vtrunc.f32 %v7730_v32  ;;  %v336_v51 = vld [vmem:[%s7549_s8 + $0xe0] sm:$0xff] }
  0x28   : > { %4374 = vperm.xlu1 %7167, %v7600_v21   ;;  %4371 = vperm.xlu0 %7166, %v7602_v22   ;;  %13316 = vst [vmem:[#allocation24_spill] sm:$0xff] %v7696_v61  ;;  %13317 = vst [vmem:[#allocation25_spill] sm:$0xff] %v7698_v62  ;;  %v7723_v24 = vcvt.f32.s32 %v6984_v17  ;;  %v6998_v48 = vtrunc.f32 %v7738_v39  ;;  %v7000_v58 = vtrunc.f32 %v336_v51  ;;  %v7755_v63 = vld [vmem:[%s7549_s8 + $0xf8] sm:$0xff]  ;;  %v7763_v10 = vld [vmem:[%s7549_s8 + $0xc8] sm:$0xff] }
  0x29   : > { %13318 = vst [vmem:[#allocation26_spill] sm:$0xff] %v7710_v7  ;;  %13319 = vst [vmem:[#allocation27_spill] sm:$0xff] %v7712_v8  ;;  %v7734_v33 = vcvt.f32.s32 %v6990_v27  ;;  %v7748_v52 = vcvt.f32.s32 %v6988_v40  ;;  %v6994_v27 = vtrunc.f32 %v7763_v10  ;;  %v7777_v40 = vld [vmem:[%s7549_s8 + $0xd0] sm:$0xff] }
  0x2a   : > { %6781 = vmatpush3.bf16.msra.mxu1 %v7198_v35  ;;  %13320 = vst [vmem:[#allocation28_spill] sm:$0xff] %v7721_v23  ;;  %13321 = vst [vmem:[#allocation29_spill] sm:$0xff] %v7723_v24  ;;  %v6992_v35 = vtrunc.f32 %v7727_v29  ;;  %v7751_v57 = vcvt.f32.s32 %v6998_v48  ;;  %v7759_v0 = vcvt.f32.s32 %v7000_v58  ;;  %v13038_v48 = vmov 0  }
  0x2b   : > { %6782 = vmatprep.subr.bf16.mxu1 %v7199_v42  ;;  %13322 = vst [vmem:[#allocation30_spill] sm:$0xff] %v7734_v33  ;;  %13324 = vst [vmem:[#allocation32_spill] sm:$0xff] %v7748_v52 }
  0x2c   : > { %4380 = vperm.xlu1 %7167, %v7623_v30   ;;  %4377 = vperm.xlu0 %7166, %v7625_v31   ;;  %v7743_v47 = vcvt.f32.s32 %v6992_v35  ;;  %13325 = vst [vmem:[#allocation33_spill] sm:$0xff] %v7751_v57  ;;  %13326 = vst [vmem:[#allocation34_spill] sm:$0xff] %v7759_v0  ;;  %v7773_v35 = vcvt.f32.s32 %v6994_v27 }
  0x2e   : > { %6783 = vmatpush3.bf16.msra.mxu1 %v7199_v42  ;;  %v7479_v42 = vmov 2   ;;  %13323 = vst [vmem:[#allocation31_spill] sm:$0xff] %v7743_v47  ;;  %13328 = vst [vmem:[#allocation36_spill] sm:$0xff] %v7773_v35 }
  0x30   : > { %4386 = vperm.xlu1 %7167, %v7640_v37   ;;  %4383 = vperm.xlu0 %7166, %v7642_v38  }
  0x34   : > { %4392 = vperm.xlu1 %7167, %v7660_v45   ;;  %4389 = vperm.xlu0 %7166, %v7662_v46  }
  0x38   : > { %4398 = vperm.xlu1 %7167, %v7668_v49   ;;  %4395 = vperm.xlu0 %7166, %v7670_v50  }
  0x3c   : > { %4404 = vperm.xlu1 %7167, %v7682_v55   ;;  %4401 = vperm.xlu0 %7166, %v7684_v56  }
  0x40   : > { %4410 = vperm.xlu1 %7167, %v7696_v61   ;;  %4407 = vperm.xlu0 %7166, %v7698_v62  }
  0x44   : > { %4416 = vperm.xlu1 %7167, %v7710_v7   ;;  %4413 = vperm.xlu0 %7166, %v7712_v8  }
  0x48   : > { %4422 = vperm.xlu1 %7167, %v7721_v23   ;;  %4419 = vperm.xlu0 %7166, %v7723_v24  }
  0x4c   : > { %7168 = vset.pattern.permute.xlu1 %v7479_v42  ;;  %4428 = vperm.xlu0 %7166, %v7734_v33  }
  0x4d   : > { %381 = vperm.xlu1 %7168, %v7571_v9   ;;  %v7006_v9 = vtrunc.f32 %v7755_v63 }
  0x4f   : > { %v7768_v17 = vcvt.f32.s32 %v7006_v9 }
  0x50   : > { %4431 = vperm.xlu0 %7166, %v7743_v47  }
  0x51   : > { %7169 = vset.pattern.permute.xlu1 %v13043_v5  ;;  %13327 = vst [vmem:[#allocation35_spill] sm:$0xff] %v7768_v17 }
  0x52   : > { %4425 = vperm.xlu1 %7169, %v7748_v52  }
  0x54   : > { %4440 = vperm.xlu0 %7166, %v7751_v57  }
  0x56   : > { %7170 = vset.pattern.permute.xlu1 %v7479_v42 }
  0x57   : > { %386 = vperm.xlu1 %7170, %v7557_v2   ;;  %v6996_v2 = vtrunc.f32 %v7777_v40 }
  0x58   : > { %4443 = vperm.xlu0 %7166, %v7759_v0  }
  0x5b   : > { %391 = vperm.xlu1 %7170, %v7563_v4   ;;  %v7786_v4 = vcvt.f32.s32 %v6996_v2 }
  0x5c   : > { %4452 = vperm.xlu0 %7166, %v7768_v17  }
  0x5d   : > { %13329 = vst [vmem:[#allocation37_spill] sm:$0xff] %v7786_v4 }
  0x5f   : > { %7171 = vset.pattern.permute.xlu1 %v13043_v5 }
  0x60   : > { %4434 = vperm.xlu1 %7171, %v7773_v35   ;;  %7178 = vset.pattern.permute.xlu0 %v7479_v42 }
  0x61   : > { %376 = vperm.xlu0 %7178, %v7560_v3   ;;  %v7793_v3 = vld [vmem:[%s7549_s8 + $0xe8] sm:$0xff] }
  0x64   : > { %7172 = vset.pattern.permute.xlu1 %v7479_v42 }
  0x65   : > { %401 = vperm.xlu1 %7172, %v7575_v11   ;;  %396 = vperm.xlu0 %7178, %v7578_v12   ;;  %v7002_v11 = vtrunc.f32 %v7793_v3 }
  0x67   : > { %v7800_v12 = vcvt.f32.s32 %v7002_v11 }
  0x69   : > { %7173 = vset.pattern.permute.xlu1 %v13043_v5  ;;  %416 = vperm.xlu0 %7178, %v7610_v26   ;;  %13330 = vst [vmem:[#allocation38_spill] sm:$0xff] %v7800_v12  ;;  %v7806_v26 = vld [vmem:[%s7549_s8 + $0xf0] sm:$0xff] }
  0x6a   : > { %4437 = vperm.xlu1 %7173, %v7786_v4  }
  0x6d   : > { %436 = vperm.xlu0 %7178, %v7647_v41  }
  0x6e   : > { %7174 = vset.pattern.permute.xlu1 %v7479_v42 }
  0x6f   : > { %406 = vperm.xlu1 %7174, %v7596_v20   ;;  %v7004_v20 = vtrunc.f32 %v7806_v26 }
  0x71   : > { %456 = vperm.xlu0 %7178, %v7678_v54   ;;  %v13040_v54 = vmov 0.0  }
  0x73   : > { %411 = vperm.xlu1 %7174, %v7593_v19   ;;  %v7814_v19 = vcvt.f32.s32 %v7004_v20 }
  0x75   : > { %7182 = vset.pattern.permute.xlu0 %v13038_v48  ;;  %13331 = vst [vmem:[#allocation39_spill] sm:$0xff] %v7814_v19 }
  0x76   : > { %4154 = vperm.xlu0 %7182, %v7588_v16  }
  0x77   : > { %7175 = vset.pattern.permute.xlu1 %v13043_v5 }
  0x78   : > { %4446 = vperm.xlu1 %7175, %v7800_v12  }
  0x7a   : > { %4160 = vperm.xlu0 %7182, %v7586_v15  }
  0x7c   : > { %7176 = vset.pattern.permute.xlu1 %v7479_v42 }
  0x7d   : > { %421 = vperm.xlu1 %7176, %v7607_v25   ;;  %v13036_v25 = vlaneseq }
  0x7e   : > { %4166 = vperm.xlu0 %7182, %v7600_v21  }
  0x81   : > { %7177 = vset.pattern.permute.xlu1 %v13043_v5 }
  0x82   : > { %4449 = vperm.xlu1 %7177, %v7814_v19   ;;  %4172 = vperm.xlu0 %7182, %v7623_v30  }
  0x86   : > { %7179 = vset.pattern.permute.xlu1 %v7479_v42  ;;  %7188 = vset.pattern.permute.xlu0 %v7479_v42 }
  0x87   : > { %426 = vperm.xlu1 %7179, %v7630_v34   ;;  %476 = vperm.xlu0 %7188, %v7706_v6  }
  0x8b   : > { %431 = vperm.xlu1 %7179, %v7616_v28   ;;  %496 = vperm.xlu0 %7188, %v7727_v29   ;;  %v7836_v28 = vand.u32 127, %v13036_v25 }
  0x8f   : > { %441 = vperm.xlu1 %7179, %v7636_v36   ;;  %516 = vperm.xlu0 %7188, %v336_v51  }
  0x93   : > { %7180 = vset.pattern.permute.xlu1 %v13038_v48  ;;  %7191 = vset.pattern.permute.xlu0 %v13038_v48 }
  0x94   : > { %4151 = vperm.xlu1 %7180, %v7582_v14   ;;  %4178 = vperm.xlu0 %7191, %v7640_v37  }
  0x98   : > { %7181 = vset.pattern.permute.xlu1 %v7479_v42  ;;  %4181 = vperm.xlu0 %7191, %v7662_v46  }
  0x99   : > { %446 = vperm.xlu1 %7181, %v7656_v44  }
  0x9c   : > { %4187 = vperm.xlu0 %7191, %v7670_v50  }
  0x9d   : > { %451 = vperm.xlu1 %7181, %v7653_v43  }
  0x9f   : > { %v4366_v34 = vpop.permute.xlu1 %4365  ;;  %v4360_v36 = vpop.permute.xlu0 %4359 }
  0xa0   : > { %vm4454_vm0 = vcmp.eq.s32.totalorder %v7836_v28, %v4360_v36  ;;  %4193 = vperm.xlu0 %7191, %v7684_v56   ;;  %vm4456_vm1 = vcmp.eq.s32.totalorder %v7836_v28, %v4366_v34 }
  0xa1   : > { %461 = vperm.xlu1 %7181, %v7675_v53   ;;  %v6427_v6 = vsel %vm4454_vm0, 1.0, %v13040_v54  ;;  %v6429_v43 = vsel %vm4456_vm1, 1.0, %v13040_v54 }
  0xa3   : > { %v4369_v41 = vpop.permute.xlu1 %4368  ;;  %v4363_v44 = vpop.permute.xlu0 %4362 }
  0xa4   : > { %vm4457_vm2 = vcmp.eq.s32.totalorder %v7836_v28, %v4369_v41  ;;  %vm4455_vm3 = vcmp.eq.s32.totalorder %v7836_v28, %v4363_v44  ;;  %4199 = vperm.xlu0 %7191, %v7698_v62  }
  0xa5   : > { %v6430_v29 = vsel %vm4457_vm2, 1.0, %v13040_v54  ;;  %7183 = vset.pattern.permute.xlu1 %v13038_v48  ;;  %v6428_v53 = vsel %vm4455_vm3, 1.0, %v13040_v54 }
  0xa6   : > { %v4551_v51 = vpack.c.bf16 %v6430_v29, %v6429_v43  ;;  %4157 = vperm.xlu1 %7183, %v7580_v13   ;;  %v4550_v58 = vpack.c.bf16 %v6428_v53, %v6427_v6 }
  0xa7   : > { %v4375_v9 = vpop.permute.xlu1 %4374  ;;  %v4372_v27 = vpop.permute.xlu0 %4371 }
  0xa8   : > { %vm4459_vm5 = vcmp.eq.s32.totalorder %v7836_v28, %v4375_v9  ;;  %vm4458_vm6 = vcmp.eq.s32.totalorder %v7836_v28, %v4372_v27  ;;  %6784 = vmatprep.mubr.msk.bf16.mxu1 %vm4671_vm4, %v4550_v58  ;;  %4205 = vperm.xlu0 %7191, %v7712_v8   ;;  %v13066_v8 = vmov 1326507024  }
  0xa9   : > { %v6432_v2 = vsel %vm4459_vm5, 1.0, %v13040_v54  ;;  %v6431_v11 = vsel %vm4458_vm6, 1.0, %v13040_v54  ;;  %6785 = vmatmul.mubr.msk.bf16.vlgmr.msra.gmra.mrb[0].mxu1 %vm4671_vm4, %v4551_v51 }
  0xaa   : > { %v4552_v20 = vpack.c.bf16 %v6432_v2, %v6431_v11  ;;  %7184 = vset.pattern.permute.xlu1 %v7479_v42 }
  0xab   : > { %v4381_v34 = vpop.permute.xlu1 %4380  ;;  %466 = vperm.xlu1 %7184, %v7692_v60   ;;  %v4378_v36 = vpop.permute.xlu0 %4377 }
  0xac   : > { %vm4461_vm7 = vcmp.eq.s32.totalorder %v7836_v28, %v4381_v34  ;;  %vm4460_vm8 = vcmp.eq.s32.totalorder %v7836_v28, %v4378_v36  ;;  %6788 = vmatprep.mubr.msk.bf16.mxu1 %vm4671_vm4, %v4552_v20  ;;  %4211 = vperm.xlu0 %7191, %v7723_v24  }
  0xad   : > { %v6434_v41 = vsel %vm4461_vm7, 1.0, %v13040_v54  ;;  %v6433_v44 = vsel %vm4460_vm8, 1.0, %v13040_v54 }
  0xae   : > { %v4553_v6 = vpack.c.bf16 %v6434_v41, %v6433_v44 }
  0xaf   : > { %v4387_v43 = vpop.permute.xlu1 %4386  ;;  %471 = vperm.xlu1 %7184, %v7689_v59   ;;  %v4384_v29 = vpop.permute.xlu0 %4383 }
  0xb0   : > { %vm4463_vm9 = vcmp.eq.s32.totalorder %v7836_v28, %v4387_v43  ;;  %vm4462_vm10 = vcmp.eq.s32.totalorder %v7836_v28, %v4384_v29  ;;  %4217 = vperm.xlu0 %7191, %v7748_v52  }
  0xb1   : > { %v6436_v60 = vsel %vm4463_vm9, 1.0, %v13040_v54  ;;  %v6435_v53 = vsel %vm4462_vm10, 1.0, %v13040_v54  ;;  %6789 = vmatmul.mubr.msk.bf16.gmra.mrb[4].mxu1 %vm4671_vm4, %v4553_v6 }
  0xb2   : > { %v4554_v51 = vpack.c.bf16 %v6436_v60, %v6435_v53 }
  0xb3   : > { %v4393_v58 = vpop.permute.xlu1 %4392  ;;  %481 = vperm.xlu1 %7184, %v7703_v1   ;;  %v4390_v9 = vpop.permute.xlu0 %4389 }
  0xb4   : > { %vm4465_vm11 = vcmp.eq.s32.totalorder %v7836_v28, %v4393_v58  ;;  %vm4464_vm12 = vcmp.eq.s32.totalorder %v7836_v28, %v4390_v9  ;;  %6792 = vmatprep.mubr.msk.bf16.mxu1 %vm4671_vm4, %v4554_v51  ;;  %4223 = vperm.xlu0 %7191, %v7743_v47  }
  0xb5   : > { %v6438_v59 = vsel %vm4465_vm11, 1.0, %v13040_v54  ;;  %v6437_v27 = vsel %vm4464_vm12, 1.0, %v13040_v54 }
  0xb6   : > { %v4555_v2 = vpack.c.bf16 %v6438_v59, %v6437_v27 }
  0xb7   : > { %v4399_v11 = vpop.permute.xlu1 %4398  ;;  %7185 = vset.pattern.permute.xlu1 %v13038_v48  ;;  %v4396_v20 = vpop.permute.xlu0 %4395 }
  0xb8   : > { %vm4467_vm13 = vcmp.eq.s32.totalorder %v7836_v28, %v4399_v11  ;;  %vm4466_vm14 = vcmp.eq.s32.totalorder %v7836_v28, %v4396_v20  ;;  %4163 = vperm.xlu1 %7185, %v7602_v22   ;;  %4229 = vperm.xlu0 %7191, %v7786_v4  }
  0xb9   : > { %v6440_v1 = vsel %vm4467_vm13, 1.0, %v13040_v54  ;;  %v6439_v34 = vsel %vm4466_vm14, 1.0, %v13040_v54  ;;  %6793 = vmatmul.mubr.msk.bf16.gmra.mrb[8].mxu1 %vm4671_vm4, %v4555_v2 }
  0xba   : > { %v4556_v36 = vpack.c.bf16 %v6440_v1, %v6439_v34 }
  0xbb   : > { %v4405_v41 = vpop.permute.xlu1 %4404  ;;  %v4402_v44 = vpop.permute.xlu0 %4401 }
  0xbc   : > { %vm4469_vm15 = vcmp.eq.s32.totalorder %v7836_v28, %v4405_v41  ;;  %vm4468_vm0 = vcmp.eq.s32.totalorder %v7836_v28, %v4402_v44  ;;  %7186 = vset.pattern.permute.xlu1 %v7479_v42  ;;  %6796 = vmatprep.mubr.msk.bf16.mxu1 %vm4671_vm4, %v4556_v36 }
  0xbd   : > { %v6442_v6 = vsel %vm4469_vm15, 1.0, %v13040_v54  ;;  %v6441_v43 = vsel %vm4468_vm0, 1.0, %v13040_v54  ;;  %486 = vperm.xlu1 %7186, %v7730_v32   ;;  %4235 = vperm.xlu0 %7191, %v7759_v0  }
  0xbe   : > { %v4557_v29 = vpack.c.bf16 %v6442_v6, %v6441_v43 }
  0xbf   : > { %v4411_v60 = vpop.permute.xlu1 %4410  ;;  %v4408_v53 = vpop.permute.xlu0 %4407 }
  0xc0   : > { %vm4471_vm1 = vcmp.eq.s32.totalorder %v7836_v28, %v4411_v60  ;;  %vm4470_vm2 = vcmp.eq.s32.totalorder %v7836_v28, %v4408_v53 }
  0xc1   : > { %v6444_v51 = vsel %vm4471_vm1, 1.0, %v13040_v54  ;;  %v6443_v58 = vsel %vm4470_vm2, 1.0, %v13040_v54  ;;  %491 = vperm.xlu1 %7186, %v7717_v18   ;;  %6797 = vmatmul.mubr.msk.bf16.gmra.mrb[12].mxu1 %vm4671_vm4, %v4557_v29 }
  0xc2   : > { %v4558_v9 = vpack.c.bf16 %v6444_v51, %v6443_v58  ;;  %4241 = vperm.xlu0 %7191, %v7814_v19   ;;  %v13055_v19 = vmov 683565275  }
  0xc3   : > { %v4417_v32 = vpop.permute.xlu1 %4416  ;;  %v4414_v59 = vpop.permute.xlu0 %4413 }
  0xc4   : > { %vm4473_vm3 = vcmp.eq.s32.totalorder %v7836_v28, %v4417_v32  ;;  %vm4472_vm5 = vcmp.eq.s32.totalorder %v7836_v28, %v4414_v59  ;;  %6800 = vmatprep.mubr.msk.bf16.mxu1 %vm4671_vm4, %v4558_v9  ;;  %v7200_v32 = vld [vmem:[%s13034_s6 + $0x4] ss:$12 sps:$4 sm:$0xff]  }
  0xc5   : > { %v6446_v27 = vsel %vm4473_vm3, 1.0, %v13040_v54  ;;  %v6445_v2 = vsel %vm4472_vm5, 1.0, %v13040_v54  ;;  %501 = vperm.xlu1 %7186, %v7763_v10  }
  0xc6   : > { %v4559_v18 = vpack.c.bf16 %v6446_v27, %v6445_v2  ;;  %7194 = vset.pattern.permute.xlu0 %v13043_v5 }
  0xc7   : > { %v4423_v11 = vpop.permute.xlu1 %4422  ;;  %v4420_v20 = vpop.permute.xlu0 %4419 }
  0xc8   : > { %vm4475_vm6 = vcmp.eq.s32.totalorder %v7836_v28, %v4423_v11  ;;  %vm4474_vm7 = vcmp.eq.s32.totalorder %v7836_v28, %v4420_v20 }
  0xc9   : > { %v6448_v1 = vsel %vm4475_vm6, 1.0, %v13040_v54  ;;  %v6447_v34 = vsel %vm4474_vm7, 1.0, %v13040_v54  ;;  %7187 = vset.pattern.permute.xlu1 %v13038_v48  ;;  %6801 = vmatmul.mubr.msk.bf16.gmra.mrb[16].mxu1 %vm4671_vm4, %v4559_v18  ;;  %v7948_v18 = vld [vmem:[%s13030_s2] ss:$0 sm:$0xff] }
  0xca   : > { %v4560_v36 = vpack.c.bf16 %v6448_v1, %v6447_v34  ;;  %4169 = vperm.xlu1 %7187, %v7625_v31  }
  0xcb   : > { %v4429_v10 = vpop.permute.xlu0 %4428 }
  0xcc   : > { %v382_v41 = vpop.permute.xlu1 %381  ;;  %6804 = vmatprep.mubr.msk.bf16.mxu1 %vm4671_vm4, %v4560_v36  ;;  %vm4477_vm8 = vcmp.eq.s32.totalorder %v7836_v28, %v4429_v10 }
  0xcd   : > { %v6450_v6 = vsel %vm4477_vm8, 1.0, %v13040_v54  ;;  %v541_v1 = vmul.f32 %v7948_v18, %v382_v41 }
  0xce   : > { %7189 = vset.pattern.permute.xlu1 %v7479_v42 }
  0xcf   : > { %506 = vperm.xlu1 %7189, %v7777_v40   ;;  %v4432_v44 = vpop.permute.xlu0 %4431 }
  0xd0   : > { %vm4478_vm10 = vcmp.eq.s32.totalorder %v7836_v28, %v4432_v44 }
  0xd1   : > { %v4426_v43 = vpop.permute.xlu1 %4425 }
  0xd2   : > { %vm4476_vm9 = vcmp.eq.s32.totalorder %v7836_v28, %v4426_v43 }
  0xd3   : > { %v6449_v29 = vsel %vm4476_vm9, 1.0, %v13040_v54  ;;  %511 = vperm.xlu1 %7189, %v7738_v39   ;;  %v4441_v60 = vpop.permute.xlu0 %4440  ;;  %v7202_v39 = vld [vmem:[%s13034_s6 + $0x8] ss:$12 sps:$4 sm:$0xff]  }
  0xd4   : > { %v4561_v53 = vpack.c.bf16 %v6450_v6, %v6449_v29  ;;  %4977 = vmatprep.subr.bf16.mxu1 %v7202_v39  ;;  %vm4481_vm12 = vcmp.eq.s32.totalorder %v7836_v28, %v4441_v60 }
  0xd5   : > { %4978 = vmatpush1.bf16.msra.mxu1 %v7200_v32 }
  0xd6   : > { %v387_v51 = vpop.permute.xlu1 %386  ;;  %6805 = vmatmul.mubr.msk.bf16.gmra.mrb[20].mxu1 %vm4671_vm4, %v4561_v53 }
  0xd7   : > { %521 = vperm.xlu1 %7189, %v7793_v3   ;;  %v7927_v58 = vpop.permute.xlu0 %4443  ;;  %v6451_v3 = vsel %vm4478_vm10, 1.0, %v13040_v54  ;;  %v542_v34 = vmul.f32 %v7948_v18, %v387_v51 }
  0xda   : > { %v392_v40 = vpop.permute.xlu1 %391 }
  0xdb   : > { %7190 = vset.pattern.permute.xlu1 %v13038_v48  ;;  %v7930_v9 = vpop.permute.xlu0 %4452  ;;  %v543_v53 = vmul.f32 %v7948_v18, %v392_v40 }
  0xdc   : > { %4175 = vperm.xlu1 %7190, %v7642_v38  }
  0xdf   : > { %v4435_v59 = vpop.permute.xlu1 %4434 }
  0xe0   : > { %vm4479_vm11 = vcmp.eq.s32.totalorder %v7836_v28, %v4435_v59  ;;  %7192 = vset.pattern.permute.xlu1 %v7479_v42  ;;  %v377_v27 = vpop.permute.xlu0 %376  ;;  %v7957_v42 = vld [vmem:[%s13031_s3] ss:$0 sm:$0xff] }
  0xe1   : > { %v6452_v2 = vsel %vm4479_vm11, 1.0, %v13040_v54  ;;  %526 = vperm.xlu1 %7192, %v7806_v26   ;;  %v7963_v10 = vadd.f32 %v7957_v42, %v541_v1  ;;  %v7966_v44 = vadd.f32 %v7957_v42, %v542_v34  ;;  %v7987_v40 = vadd.f32 %v7957_v42, %v543_v53 }
  0xe2   : > { %v4562_v11 = vpack.c.bf16 %v6452_v2, %v6451_v3 }
  0xe3   : > { %13332 = vst [vmem:[#allocation40_spill] sm:$0xff] %v7963_v10  ;;  %13333 = vst [vmem:[#allocation41_spill] sm:$0xff] %v7966_v44  ;;  %v717_v43 = vand.u32 2139095040, %v7963_v10  ;;  %v820_v29 = vand.u32 2139095040, %v7966_v44 }
  0xe4   : > { %6808 = vmatprep.mubr.msk.bf16.mxu1 %vm4671_vm4, %v4562_v11  ;;  %v397_v20 = vpop.permute.xlu0 %396  ;;  %v7960_v36 = vpop.permute.xlu1 %401  ;;  %13336 = vst [vmem:[#allocation44_spill] sm:$0xff] %v7987_v40 }
  0xe5   : > { %531 = vperm.xlu1 %7192, %v7755_v63   ;;  %v544_v26 = vmul.f32 %v7948_v18, %v397_v20  ;;  %v718_v2 = vshrl.u32 %v717_v43, 23  ;;  %v821_v11 = vshrl.u32 %v820_v29, 23  ;;  %v6454_v20 = vsel %vm4481_vm12, 1.0, %v13040_v54 }
  0xe7   : > { %v7970_v63 = vadd.f32 %v7957_v42, %v544_v26  ;;  %v6263_v43 = vadd.s32 4294967169, %v718_v2  ;;  %v6267_v29 = vadd.s32 4294967169, %v821_v11 }
  0xe8   : > { %v417_v41 = vpop.permute.xlu0 %416 }
  0xe9   : > { %7193 = vset.pattern.permute.xlu1 %v13038_v48  ;;  %13334 = vst [vmem:[#allocation42_spill] sm:$0xff] %v7970_v63  ;;  %v548_v6 = vmul.f32 %v7948_v18, %v417_v41  ;;  %v13037_v51 = vand.u32 2147483647, %v7970_v63  ;;  %v1026_v39 = vand.u32 2139095040, %v7970_v63  ;;  %v4438_v32 = vpop.permute.xlu1 %4437  ;;  %v8002_v48 = vadd.s32 1, %v6263_v43 }
  0xea   : > { %4184 = vperm.xlu1 %7193, %v7660_v45   ;;  %vm4480_vm13 = vcmp.eq.s32.totalorder %v7836_v28, %v4438_v32  ;;  %v923_v32 = vand.u32 2139095040, %v7987_v40 }
  0xeb   : > { %v1027_v3 = vshrl.u32 %v1026_v39, 23  ;;  %v7982_v59 = vadd.f32 %v7957_v42, %v548_v6  ;;  %v1030_v34 = vand.u32 8388607, %v13037_v51  ;;  %v6453_v6 = vsel %vm4480_vm13, 1.0, %v13040_v54 }
  0xec   : > { %v4563_v39 = vpack.c.bf16 %v6454_v20, %v6453_v6  ;;  %v437_v25 = vpop.permute.xlu0 %436  ;;  %v8005_v6 = vadd.s32 1, %v6267_v29  ;;  %vm725_vm7 = vcmp.gt.s32.totalorder %v8002_v48, 0 }
  0xed   : > { %13335 = vst [vmem:[#allocation43_spill] sm:$0xff] %v7982_v59  ;;  %v6275_v1 = vadd.s32 4294967169, %v1027_v3  ;;  %v13042_v60 = vand.u32 2147483647, %v7982_v59  ;;  %v1438_v41 = vand.u32 2139095040, %v7982_v59  ;;  %v1031_v53 = vor.u32 8388608, %v1030_v34 }
  0xee   : > { %4190 = vperm.xlu1 %7193, %v7668_v49   ;;  %6809 = vmatmul.mubr.msk.bf16.gmra.mrb[24].mxu1 %vm4671_vm4, %v4563_v39  ;;  %v552_v20 = vmul.f32 %v7948_v18, %v437_v25  ;;  %v924_v34 = vshrl.u32 %v923_v32, 23  ;;  %v13053_v39 = vmov 2475754826   ;;  %v13060_v25 = vmov 2131351028  }
  0xef   : > { %v1033_v26 = vadd.s32 1, %v6275_v1  ;;  %v1439_v3 = vshrl.u32 %v1438_v41, 23  ;;  %v7999_v51 = vand.u32 8388607, %v13042_v60  ;;  %v540_v41 = vmul.f32 %v7948_v18, %v377_v27 }
  0xf0   : > { %v8008_v54 = vshll.u32 %v1031_v53, 8  ;;  %v13058_v32 = vmov 2102212464   ;;  %v13062_v53 = vmov 920167782   ;;  %v8020_v52 = vadd.f32 %v7957_v42, %v552_v20 }
  0xf1   : > { %vm1034_vm14 = vcmp.gt.s32.totalorder %v1033_v26, 0  ;;  %v6291_v11 = vadd.s32 4294967169, %v1439_v3  ;;  %v1443_v43 = vor.u32 8388608, %v7999_v51  ;;  %vm828_vm8 = vcmp.gt.s32.totalorder %v8005_v6, 0 }
  0xf2   : > { %4196 = vperm.xlu1 %7193, %v7682_v55   ;;  %v1035_v1 = vsel %vm1034_vm14, %v1033_v26, 0  ;;  %13337 = vst [vmem:[#allocation45_spill] sm:$0xff] %v8020_v52 }
  0xf3   : > { %v1037_v2 = vand.u32 31, %v1035_v1  ;;  %v1036_v60 = vshrl.u32 %v1035_v1, 5  ;;  %v1445_v47 = vadd.s32 1, %v6291_v11 }
  0xf5   : > { %v1038_v5 = vsub.s32 32, %v1037_v2  ;;  %v1040_v26 = vshll.u32 %v13055_v19, %v1037_v2  ;;  %v1043_v3 = vshll.u32 %v13053_v39, %v1037_v2  ;;  %v1046_v29 = vshll.u32 %v13060_v25, %v1037_v2 }
  0xf6   : > { %4202 = vperm.xlu1 %7193, %v7696_v61   ;;  %v1049_v27 = vshll.u32 %v13058_v32, %v1037_v2  ;;  %v1052_v0 = vshll.u32 %v13062_v53, %v1037_v2  ;;  %vm1055_vm15 = vcmp.lt.s32.totalorder %v1036_v60, 1  ;;  %vm1056_vm0 = vcmp.lt.s32.totalorder %v1036_v60, 2 }
  0xf7   : > { %v1039_v1 = vshrl.u32 %v13055_v19, %v1038_v5  ;;  %v1041_v4 = vshrl.u32 %v13053_v39, %v1038_v5  ;;  %v1044_v51 = vshrl.u32 %v13060_v25, %v1038_v5  ;;  %v1047_v24 = vshrl.u32 %v13058_v32, %v1038_v5 }
  0xf8   : > { %v1053_v61 = vshrl.u32 %v13066_v8, %v1038_v5  ;;  %vm1057_vm1 = vcmp.lt.s32.totalorder %v1036_v60, 3  ;;  %vm1058_vm2 = vcmp.lt.s32.totalorder %v1036_v60, 4  ;;  %vm1446_vm3 = vcmp.gt.s32.totalorder %v1445_v47, 0 }
  0xf9   : > { %v1042_v2 = vor.u32 %v1041_v4, %v1040_v26  ;;  %v1045_v39 = vor.u32 %v1044_v51, %v1043_v3  ;;  %v1048_v11 = vor.u32 %v1047_v24, %v1046_v29  ;;  %v1850_v32 = vand.u32 2139095040, %v8020_v52 }
  0xfa   : > { %4208 = vperm.xlu1 %7193, %v7710_v7   ;;  %v1050_v7 = vshrl.u32 %v13062_v53, %v1038_v5  ;;  %v1054_v20 = vor.u32 %v1053_v61, %v1052_v0  ;;  %v1447_v3 = vsel %vm1446_vm3, %v1445_v47, 0  ;;  %v8036_v29 = vadd.s32 4294967169, %v924_v34 }
  0xfb   : > { %v1059_v62 = vsel %vm1055_vm15, %v1039_v1, %v1042_v2  ;;  %v1060_v25 = vsel %vm1058_vm2, %v1048_v11, 2102212464  ;;  %v1063_v53 = vsel %vm1055_vm15, %v1042_v2, %v1045_v39  ;;  %v1067_v56 = vsel %vm1055_vm15, %v1045_v39, %v1048_v11 }
  0xfc   : > { %v1051_v19 = vor.u32 %v1050_v7, %v1049_v27  ;;  %v1061_v5 = vsel %vm1057_vm1, %v1045_v39, %v1060_v25  ;;  %v1068_v26 = vsel %vm1058_vm2, %v1054_v20, 1326507024  ;;  %v8034_v0 = vshrl.u32 %v1447_v3, 5 }
  0xfd   : > { %v1062_v7 = vsel %vm1056_vm0, %v1059_v62, %v1061_v5  ;;  %v8048_v62 = vadd.f32 %v7957_v42, %v540_v41  ;;  %v1449_v34 = vand.u32 31, %v1447_v3  ;;  %v8060_v39 = vshll.u32 %v1443_v43, 8 }
  0xfe   : > { %4214 = vperm.xlu1 %7193, %v7721_v23   ;;  %v1064_v55 = vsel %vm1058_vm2, %v1051_v19, 920167782  ;;  %v1069_v24 = vsel %vm1057_vm1, %v1051_v19, %v1068_v26  ;;  %v1078_v60 = vmul.u32 %v8008_v54, %v1062_v7  ;;  %vm1467_vm5 = vcmp.lt.s32.totalorder %v8034_v0, 1 }
  0xff   : > { %v1065_v4 = vsel %vm1057_vm1, %v1048_v11, %v1064_v55  ;;  %v1070_v27 = vsel %vm1056_vm0, %v1067_v56, %v1069_v24  ;;  %v7205_v55 = vld [vmem:[%s13034_s6 + $0x20] ss:$12 sps:$4 sm:$0xff]   ;;  %13338 = vst [vmem:[#allocation46_spill] sm:$0xff] %v8048_v62  ;;  %v7203_v56 = vld [vmem:[%s13034_s6 + $0x1c] ss:$12 sps:$4 sm:$0xff]   ;;  %v1851_v25 = vshrl.u32 %v1850_v32, 23  ;;  %vm4482_vm3 = vcmp.eq.s32.totalorder %v7836_v28, %v7927_v58 }
 0x100   : > { %v1066_v61 = vsel %vm1056_vm0, %v1063_v53, %v1065_v4  ;;  %v8051_v47 = vmul.u32.u64.low %v8008_v54, %v1070_v27  ;;  %v8052_v19 = vmul.u32.u64.high %v8008_v54, %v1070_v27, %v8051_v47  ;;  %4979 = vmatprep.subr.bf16.mxu1 %v7205_v55  ;;  %v1450_v41 = vsub.s32 32, %v1449_v34 }
 0x101   : > { %v8040_v1 = vmul.u32.u64.low %v8008_v54, %v1066_v61  ;;  %v8041_v51 = vmul.u32.u64.high %v8008_v54, %v1066_v61, %v8040_v1  ;;  %v13339_v53 = vmov 683565275   ;;  %v13340_v11 = vmov 2475754826   ;;  %4980 = vmatpush1.bf16.msra.mxu1 %v7203_v56 }
 0x102   : > { %4220 = vperm.xlu1 %7193, %v7734_v33   ;;  %v1452_v2 = vshll.u32 %v13339_v53, %v1449_v34  ;;  %v1455_v20 = vshll.u32 %v13340_v11, %v1449_v34  ;;  %vm1469_vm6 = vcmp.lt.s32.totalorder %v8034_v0, 3  ;;  %v13341_v4 = vmov 2131351028  }
 0x103   : > { %v1081_v5 = vadd.s32 1, %v8041_v51  ;;  %v1458_v54 = vshll.u32 %v13341_v4, %v1449_v34  ;;  %v13342_v26 = vmov 2102212464   ;;  %v6307_v43 = vadd.s32 4294967169, %v1851_v25 }
 0x104   : > { %v1461_v3 = vshll.u32 %v13342_v26, %v1449_v34  ;;  %vm1080_vm9 = vc.u32 %v8052_v19, %v8040_v1  ;;  %v1451_v32 = vshrl.u32 %v13339_v53, %v1450_v41  ;;  %v1453_v7 = vshrl.u32 %v13340_v11, %v1450_v41 }
 0x105   : > { %v13343_v61 = vmov 920167782   ;;  %v1082_v27 = vsel %vm1080_vm9, %v1081_v5, %v8041_v51  ;;  %v1456_v55 = vshrl.u32 %v13341_v4, %v1450_v41  ;;  %v1459_v47 = vshrl.u32 %v13342_v26, %v1450_v41 }
 0x106   : > { %4226 = vperm.xlu1 %7193, %v7773_v35   ;;  %v1464_v24 = vshll.u32 %v13343_v61, %v1449_v34  ;;  %v1462_v56 = vshrl.u32 %v13343_v61, %v1450_v41  ;;  %v1083_v25 = vadd.s32 %v1082_v27, %v1078_v60  ;;  %v1454_v8 = vor.u32 %v1453_v7, %v1452_v2 }
 0x107   : > { %v13344_v35 = vmov 1326507024   ;;  %vm1470_vm10 = vcmp.lt.s32.totalorder %v8034_v0, 4  ;;  %v1457_v23 = vor.u32 %v1456_v55, %v1455_v20  ;;  %v1460_v49 = vor.u32 %v1459_v47, %v1458_v54 }
 0x108   : > { %v1465_v33 = vshrl.u32 %v13344_v35, %v1450_v41  ;;  %v1463_v50 = vor.u32 %v1462_v56, %v1461_v3  ;;  %v1857_v34 = vadd.s32 1, %v6307_v43  ;;  %v1084_v45 = vadd.s32 536870912, %v1083_v25 }
 0x109   : > { %vm1468_vm11 = vcmp.lt.s32.totalorder %v8034_v0, 2  ;;  %v1471_v51 = vsel %vm1467_vm5, %v1451_v32, %v1454_v8  ;;  %v1472_v60 = vsel %vm1470_vm10, %v1460_v49, 2102212464  ;;  %v1475_v41 = vsel %vm1467_vm5, %v1454_v8, %v1457_v23 }
 0x10a   : > { %4232 = vperm.xlu1 %7193, %v7751_v57   ;;  %v1466_v57 = vor.u32 %v1465_v33, %v1464_v24  ;;  %v1476_v2 = vsel %vm1470_vm10, %v1463_v50, 920167782  ;;  %v1479_v20 = vsel %vm1467_vm5, %v1457_v23, %v1460_v49  ;;  %v545_v33 = vmul.f32 %v7948_v18, %v7960_v36 }
 0x10b   : > { %v1473_v5 = vsel %vm1469_vm6, %v1457_v23, %v1472_v60  ;;  %v1477_v54 = vsel %vm1469_vm6, %v1460_v49, %v1476_v2  ;;  %v13075_v32 = vand.u32 2147483647, %v8020_v52  ;;  %vm1858_vm12 = vcmp.gt.s32.totalorder %v1857_v34, 0 }
 0x10c   : > { %v1480_v3 = vsel %vm1470_vm10, %v1466_v57, 1326507024  ;;  %v1478_v8 = vsel %vm1468_vm11, %v1475_v41, %v1477_v54  ;;  %v1474_v36 = vsel %vm1468_vm11, %v1471_v51, %v1473_v5  ;;  %v8117_v57 = vshrl.u32 %v1084_v45, 30 }
 0x10d   : > { %v1481_v43 = vsel %vm1469_vm6, %v1463_v50, %v1480_v3  ;;  %v8112_v49 = vmul.u32.u64.low %v8060_v39, %v1478_v8  ;;  %v8113_v7 = vmul.u32.u64.high %v8060_v39, %v1478_v8, %v8112_v49  ;;  %v1859_v27 = vsel %vm1858_vm12, %v1857_v34, 0 }
 0x10e   : > { %4238 = vperm.xlu1 %7193, %v7800_v12   ;;  %v1482_v23 = vsel %vm1468_vm11, %v1479_v20, %v1481_v43  ;;  %13345 = vst [vmem:[#allocation47_spill] sm:$0xff] %v8117_v57  ;;  %v8126_v55 = vsel %vm725_vm7, %v8002_v48, 0  ;;  %v1861_v0 = vand.u32 31, %v1859_v27  ;;  %v8131_v47 = vsel %vm828_vm8, %v8005_v6, 0 }
 0x10f   : > { %v8120_v50 = vmul.u32.u64.low %v8060_v39, %v1482_v23  ;;  %v8121_v24 = vmul.u32.u64.high %v8060_v39, %v1482_v23, %v8120_v50  ;;  %v930_v56 = vadd.s32 1, %v8036_v29  ;;  %v614_v45 = vand.u32 2139095040, %v8048_v62 }
 0x110   : > { %v1490_v51 = vmul.u32 %v8060_v39, %v1474_v36  ;;  %v8137_v60 = vadd.f32 %v7957_v42, %v545_v33  ;;  %v1493_v34 = vadd.s32 1, %v8113_v7  ;;  %v1854_v48 = vand.u32 8388607, %v13075_v32 }
 0x111   : > { %v1862_v41 = vsub.s32 32, %v1861_v0  ;;  %v13347_v2 = vmov 1   ;;  %v1086_v6 = vshll.u32 %v8117_v57, 30  ;;  %vm1492_vm13 = vc.u32 %v8121_v24, %v8112_v49 }
 0x112   : > { %4244 = vperm.xlu1 %7193, %v7768_v17   ;;  %13346 = vst [vmem:[#allocation48_spill] sm:$0xff] %v8137_v60  ;;  %v1864_v29 = vshll.u32 %v13339_v53, %v1861_v0  ;;  %v1867_v39 = vshll.u32 %v13340_v11, %v1861_v0  ;;  %v1494_v20 = vsel %vm1492_vm13, %v1493_v34, %v8113_v7  ;;  %v1860_v33 = vshrl.u32 %v1859_v27, 5 }
 0x113   : > { %v1865_v5 = vshrl.u32 %v13340_v11, %v1862_v41  ;;  %v1870_v54 = vshll.u32 %v13341_v4, %v1861_v0  ;;  %v8151_v3 = vadd.s32 %v1494_v20, %v1490_v51  ;;  %v1868_v8 = vshrl.u32 %v13341_v4, %v1862_v41 }
 0x114   : > { %v1871_v43 = vshrl.u32 %v13342_v26, %v1862_v41  ;;  %v1873_v36 = vshll.u32 %v13342_v26, %v1861_v0  ;;  %v1129_v23 = vand.u32 2139095040, %v8137_v60  ;;  %v1855_v50 = vor.u32 8388608, %v1854_v48  ;;  %v457_v48 = vpop.permute.xlu0 %456 }
 0x115   : > { %v1876_v7 = vshll.u32 %v13343_v61, %v1861_v0  ;;  %v8159_v27 = vsub.s32 %v1083_v25, %v1086_v6  ;;  %v1866_v34 = vor.u32 %v1865_v5, %v1864_v29  ;;  %v1869_v32 = vor.u32 %v1868_v8, %v1867_v39 }
 0x116   : > { %7195 = vset.pattern.permute.xlu1 %v13347_v2  ;;  %v1874_v2 = vshrl.u32 %v13343_v61, %v1862_v41  ;;  %v1877_v51 = vshrl.u32 %v13344_v35, %v1862_v41  ;;  %v1863_v20 = vshrl.u32 %v13339_v53, %v1862_v41  ;;  %v1872_v17 = vor.u32 %v1871_v43, %v1870_v54 }
 0x117   : > { %vm1879_vm14 = vcmp.lt.s32.totalorder %v1860_v33, 1  ;;  %vm931_vm15 = vcmp.gt.s32.totalorder %v930_v56, 0  ;;  %v1496_v46 = vadd.s32 536870912, %v8151_v3  ;;  %vm1882_vm0 = vcmp.lt.s32.totalorder %v1860_v33, 4 }
 0x118   : > { %v1875_v12 = vor.u32 %v1874_v2, %v1873_v36  ;;  %v1878_v37 = vor.u32 %v1877_v51, %v1876_v7  ;;  %v615_v38 = vshrl.u32 %v614_v45, 23  ;;  %v1130_v31 = vshrl.u32 %v1129_v23, 23  ;;  %v8284_v57 = vpop.permute.xlu0 %4154 }
 0x119   : > { %vm1881_vm1 = vcmp.lt.s32.totalorder %v1860_v33, 3  ;;  %v1884_v25 = vsel %vm1882_vm0, %v1872_v17, 2102212464  ;;  %vm1880_vm2 = vcmp.lt.s32.totalorder %v1860_v33, 2  ;;  %v1887_v0 = vsel %vm1879_vm14, %v1866_v34, %v1869_v32 }
 0x11a   : > { %v1888_v6 = vsel %vm1882_vm0, %v1875_v12, 920167782  ;;  %v1895_v41 = vshll.u32 %v1855_v50, 8  ;;  %v1089_v29 = vsub.s32 0, %v8159_v27  ;;  %v1883_v39 = vsel %vm1879_vm14, %v1863_v20, %v1866_v34  ;;  %v407_v34 = vpop.permute.xlu1 %406 }
 0x11b   : > { %v1885_v5 = vsel %vm1881_vm1, %v1869_v32, %v1884_v25  ;;  %v556_v54 = vmul.f32 %v7948_v18, %v457_v48  ;;  %v8171_v8 = vshrl.u32 %v1496_v46, 30  ;;  %v1889_v45 = vsel %vm1881_vm1, %v1872_v17, %v1888_v6 }
 0x11c   : > { %v1891_v43 = vsel %vm1879_vm14, %v1869_v32, %v1872_v17  ;;  %v1892_v36 = vsel %vm1882_vm0, %v1878_v37, 1326507024  ;;  %v8177_v23 = vand.u32 31, %v8131_v47  ;;  %v932_v50 = vsel %vm931_vm15, %v930_v56, 0 }
 0x11d   : > { %13348 = vst [vmem:[#allocation49_spill] sm:$0xff] %v8171_v8  ;;  %v1890_v2 = vsel %vm1880_vm2, %v1887_v0, %v1889_v45  ;;  %v1893_v7 = vsel %vm1881_vm1, %v1875_v12, %v1892_v36  ;;  %v1886_v51 = vsel %vm1880_vm2, %v1883_v39, %v1885_v5  ;;  %v6259_v17 = vadd.s32 4294967169, %v615_v38 }
 0x11e   : > { %13349 = vst [vmem:[#allocation50_spill] sm:$0xff] %v8177_v23  ;;  %v1894_v46 = vsel %vm1880_vm2, %v1891_v43, %v1893_v7  ;;  %v8184_v20 = vmul.u32.u64.low %v1895_v41, %v1890_v2  ;;  %v8185_v48 = vmul.u32.u64.high %v1895_v41, %v1890_v2, %v8184_v20  ;;  %v6279_v37 = vadd.s32 4294967169, %v1130_v31 }
 0x11f   : > { %v8188_v32 = vmul.u32.u64.low %v1895_v41, %v1894_v46  ;;  %v8189_v25 = vmul.u32.u64.high %v1895_v41, %v1894_v46, %v8188_v32  ;;  %v6276_v56 = vmin.u32 %v1089_v29, %v8159_v27  ;;  %v1498_v12 = vshll.u32 %v8171_v8, 30 }
 0x120   : > { %v8196_v0 = vadd.f32 %v7957_v42, %v556_v54  ;;  %v8199_v33 = vsub.s32 32, %v8177_v23  ;;  %v1902_v6 = vmul.u32 %v1895_v41, %v1886_v51  ;;  %v8202_v38 = vand.u32 31, %v8126_v55  ;;  %v8212_v54 = vpop.permute.xlu1 %411 }
 0x121   : > { %v8204_v31 = vand.u32 31, %v932_v50  ;;  %v1905_v39 = vadd.s32 1, %v8185_v48  ;;  %v13354_v5 = vmov 0.0   ;;  %v621_v29 = vadd.s32 1, %v6259_v17 }
 0x122   : > { %13350 = vst [vmem:[#allocation51_spill] sm:$0xff] %v8196_v0  ;;  %13351 = vst [vmem:[#allocation52_spill] sm:$0xff] %v8199_v33  ;;  %v8208_v58 = vsel %vm4482_vm3, 1.0, %v13354_v5  ;;  %v1136_v45 = vadd.s32 1, %v6279_v37  ;;  %vm1904_vm5 = vc.u32 %v8189_v25, %v8184_v20  ;;  %v1091_v43 = vclz %v6276_v56 }
 0x123   : > { %13352 = vst [vmem:[#allocation53_spill] sm:$0xff] %v8202_v38  ;;  %13353 = vst [vmem:[#allocation54_spill] sm:$0xff] %v8204_v31  ;;  %v8215_v41 = vsub.s32 %v8151_v3, %v1498_v12  ;;  %v1906_v36 = vsel %vm1904_vm5, %v1905_v39, %v8185_v48  ;;  %v2262_v2 = vand.u32 2139095040, %v8196_v0  ;;  %v8220_v7 = vshrl.u32 %v8126_v55, 5 }
 0x124   : > { %v844_v51 = vshrl.u32 %v13343_v61, %v8199_v33  ;;  %vm4485_vm6 = vcmp.eq.s32.totalorder %v7836_v28, %v7930_v9  ;;  %v8226_v46 = vadd.s32 %v1906_v36, %v1902_v6  ;;  %v8229_v17 = vsub.s32 32, %v8202_v38  ;;  %v4447_v22 = vpop.permute.xlu1 %4446 }
 0x125   : > { %13355 = vst [vmem:[#allocation55_spill] sm:$0xff] %v8220_v7  ;;  %v8232_v3 = vshrl.u32 %v8131_v47, 5  ;;  %v8235_v48 = vsub.s32 32, %v8204_v31  ;;  %v2263_v37 = vshrl.u32 %v2262_v2, 23  ;;  %v843_v55 = vshll.u32 %v13342_v26, %v8177_v23 }
 0x126   : > { %13356 = vst [vmem:[#allocation56_spill] sm:$0xff] %v8229_v17  ;;  %v846_v32 = vshll.u32 %v13343_v61, %v8177_v23  ;;  %vm1137_vm7 = vcmp.gt.s32.totalorder %v1136_v45, 0  ;;  %v1908_v56 = vadd.s32 536870912, %v8226_v46  ;;  %vm622_vm8 = vcmp.gt.s32.totalorder %v621_v29, 0 }
 0x127   : > { %13357 = vst [vmem:[#allocation57_spill] sm:$0xff] %v8232_v3  ;;  %13358 = vst [vmem:[#allocation58_spill] sm:$0xff] %v8235_v48  ;;  %v6277_v12 = vadd.s32 4294967294, %v1091_v43  ;;  %v1501_v6 = vsub.s32 0, %v8215_v41  ;;  %v546_v47 = vmul.f32 %v7948_v18, %v407_v34  ;;  %v8244_v39 = vor.u32 %v844_v51, %v843_v55 }
 0x128   : > { %v847_v36 = vshrl.u32 %v13344_v35, %v8199_v33  ;;  %v8248_v2 = vshrl.u32 %v932_v50, 5  ;;  %v6323_v30 = vadd.s32 4294967169, %v2263_v37  ;;  %v946_v21 = vshll.u32 %v13342_v26, %v8204_v31  ;;  %v7208_v37 = vld [vmem:[%s13034_s6 + $0x38] ss:$12 sps:$4 sm:$0xff]   ;;  %v8382_v44 = vpop.permute.xlu1 %421 }
 0x129   : > { %13359 = vst [vmem:[#allocation59_spill] sm:$0xff] %v8244_v39  ;;  %v947_v13 = vshrl.u32 %v13343_v61, %v8235_v48  ;;  %v950_v43 = vshrl.u32 %v13344_v35, %v8235_v48  ;;  %v1138_v15 = vsel %vm1137_vm7, %v1136_v45, 0  ;;  %v949_v34 = vshll.u32 %v13343_v61, %v8204_v31  ;;  %v7206_v45 = vld [vmem:[%s13034_s6 + $0x34] ss:$12 sps:$4 sm:$0xff]   ;;  %4981 = vmatprep.subr.bf16.mxu1 %v7208_v37 }
 0x12a   : > { %13360 = vst [vmem:[#allocation60_spill] sm:$0xff] %v8248_v2  ;;  %v623_v51 = vsel %vm622_vm8, %v621_v29, 0  ;;  %v8258_v55 = vshrl.u32 %v1908_v56, 30  ;;  %v2269_v50 = vadd.s32 1, %v6323_v30  ;;  %vm6278_vm9 = vcmp.lt.s32.totalorder %v6277_v12, 0  ;;  %4982 = vmatpush1.bf16.msra.mxu1 %v7206_v45 }
 0x12b   : > { %v6292_v14 = vmin.u32 %v1501_v6, %v8215_v41  ;;  %v8265_v16 = vadd.f32 %v7957_v42, %v546_v47  ;;  %vm4483_vm10 = vcmp.eq.s32.totalorder %v7836_v28, %v4447_v22  ;;  %v848_v29 = vor.u32 %v847_v36, %v846_v32 }
 0x12c   : > { %13361 = vst [vmem:[#allocation61_spill] sm:$0xff] %v8258_v55  ;;  %v8275_v30 = vsel %vm4485_vm6, 1.0, %v13354_v5  ;;  %v8277_v56 = vand.u32 31, %v1138_v15  ;;  %vm2270_vm11 = vcmp.gt.s32.totalorder %v2269_v50, 0  ;;  %vm852_vm12 = vcmp.lt.s32.totalorder %v8232_v3, 4 }
 0x12d   : > { %13362 = vst [vmem:[#allocation62_spill] sm:$0xff] %v8265_v16  ;;  %v8280_v6 = vor.u32 %v947_v13, %v946_v21  ;;  %v951_v47 = vor.u32 %v950_v43, %v949_v34  ;;  %v8282_v8 = vand.u32 31, %v623_v51  ;;  %v8287_v32 = vsel %vm6278_vm9, 0, %v6277_v12  ;;  %v7211_v13 = vld [vmem:[%s13034_s6 + $0x50] ss:$12 sps:$4 sm:$0xff]  }
 0x12e   : > { %13363 = vst [vmem:[#allocation63_spill] sm:$0xff] %v8277_v56  ;;  %v1910_v9 = vshll.u32 %v8258_v55, 30  ;;  %v2271_v36 = vsel %vm2270_vm11, %v2269_v50, 0  ;;  %v6456_v37 = vsel %vm4483_vm10, 1.0, %v13354_v5  ;;  %v8299_v21 = vsel %vm852_vm12, %v8244_v39, 920167782  ;;  %4983 = vmatprep.subr.bf16.mxu1 %v7211_v13 }
 0x12f   : > { %13364 = vst [vmem:[#allocation64_spill] sm:$0xff] %v8280_v6  ;;  %13365 = vst [vmem:[#allocation65_spill] sm:$0xff] %v8282_v8  ;;  %vm955_vm13 = vcmp.lt.s32.totalorder %v8248_v2, 4  ;;  %v1503_v12 = vclz %v6292_v14  ;;  %v1232_v43 = vand.u32 2139095040, %v8265_v16  ;;  %v7209_v34 = vld [vmem:[%s13034_s6 + $0x4c] ss:$12 sps:$4 sm:$0xff]   ;;  %v4564_v55 = vpack.c.bf16 %v6456_v37, %v8208_v58 }
 0x130   : > { %13366 = vst [vmem:[#allocation66_spill] sm:$0xff] %v8299_v21  ;;  %v8308_v22 = vsel %vm852_vm12, %v848_v29, 1326507024  ;;  %v8311_v50 = vsub.s32 32, %v8277_v56  ;;  %v2273_v45 = vand.u32 31, %v2271_v36  ;;  %v8323_v60 = vshrl.u32 %v623_v51, 5  ;;  %4984 = vmatpush1.bf16.msra.mxu1 %v7209_v34 }
 0x131   : > { %13367 = vst [vmem:[#allocation67_spill] sm:$0xff] %v8308_v22  ;;  %v8317_v14 = vsel %vm955_vm13, %v8280_v6, 920167782  ;;  %v8321_v16 = vsel %vm955_vm13, %v951_v47, 1326507024  ;;  %v1099_v29 = vsub.s32 4294967266, %v8287_v32  ;;  %v8332_v58 = vsub.s32 %v8226_v46, %v1910_v9  ;;  %6812 = vmatprep.mubr.msk.bf16.mxu1 %vm4671_vm4, %v4564_v55 }
 0x132   : > { %13368 = vst [vmem:[#allocation68_spill] sm:$0xff] %v8311_v50  ;;  %13369 = vst [vmem:[#allocation69_spill] sm:$0xff] %v8317_v14  ;;  %v8327_v31 = vsub.s32 32, %v8282_v8  ;;  %v8329_v48 = vshrl.u32 %v1138_v15, 5  ;;  %v8334_v37 = vsub.s32 32, %v2273_v45  ;;  %v7212_v51 = vld [vmem:[%s13032_s4] sm:$0xff]   ;;  %v1152_v47 = vshll.u32 %v13342_v26, %v8277_v56  ;;  %v8346_v14 = vpop.permute.xlu0 %4160 }
 0x133   : > { %13370 = vst [vmem:[#allocation70_spill] sm:$0xff] %v8321_v16  ;;  %13371 = vst [vmem:[#allocation71_spill] sm:$0xff] %v8323_v60  ;;  %v8344_v13 = vshll.u32 %v13343_v61, %v8277_v56  ;;  %v6293_v15 = vadd.s32 4294967294, %v1503_v12  ;;  %v1233_v34 = vshrl.u32 %v1232_v43, 23  ;;  %v1153_v46 = vshrl.u32 %v13343_v61, %v8311_v50  ;;  %6728 = vmatprep.subr.bf16.mxu0 %v7212_v51 }
 0x134   : > { %13372 = vst [vmem:[#allocation72_spill] sm:$0xff] %v8327_v31  ;;  %13373 = vst [vmem:[#allocation73_spill] sm:$0xff] %v8329_v48  ;;  %v1079_v55 = vadd.s32 %v8040_v1, %v8052_v19  ;;  %v1095_v9 = vsub.s32 32, %v8287_v32  ;;  %v547_v6 = vmul.f32 %v7948_v18, %v8212_v54  ;;  %v1100_v16 = vadd.s32 127, %v1099_v29  ;;  %6729 = vmatpush3.bf16.msra.mxu0 %v7212_v51 }
 0x135   : > { %v2285_v12 = vshll.u32 %v13342_v26, %v2273_v45  ;;  %v2286_v43 = vshrl.u32 %v13343_v61, %v8334_v37  ;;  %v1913_v2 = vsub.s32 0, %v8332_v58  ;;  %v8360_v40 = vshrl.u32 %v2271_v36, 5 }
 0x136   : > { %v2288_v1 = vshll.u32 %v13343_v61, %v2273_v45  ;;  %v2289_v19 = vshrl.u32 %v13344_v35, %v8334_v37  ;;  %vm6294_vm14 = vcmp.lt.s32.totalorder %v6293_v15, 0  ;;  %v6283_v54 = vadd.s32 4294967169, %v1233_v34  ;;  %v8384_v7 = vpop.permute.xlu0 %4166 }
 0x137   : > { %v2276_v29 = vshll.u32 %v13339_v53, %v2273_v45  ;;  %v2279_v56 = vshll.u32 %v13340_v11, %v2273_v45  ;;  %v2277_v21 = vshrl.u32 %v13340_v11, %v8334_v37  ;;  %v2280_v51 = vshrl.u32 %v13341_v4, %v8334_v37 }
 0x138   : > { %v2282_v36 = vshll.u32 %v13341_v4, %v2273_v45  ;;  %v2283_v39 = vshrl.u32 %v13342_v26, %v8334_v37  ;;  %v8376_v22 = vshrl.u32 %v13344_v35, %v8311_v50  ;;  %v1096_v34 = vshll.u32 %v8159_v27, %v8287_v32 }
 0x139   : > { %v13374_v3 = vand.u32 2147483647, %v8196_v0  ;;  %v2287_v33 = vor.u32 %v2286_v43, %v2285_v12  ;;  %v8386_v38 = vsel %vm6294_vm14, 0, %v6293_v15  ;;  %v6308_v45 = vmin.u32 %v1913_v2, %v8332_v58 }
 0x13a   : > { %v2290_v17 = vor.u32 %v2289_v19, %v2288_v1  ;;  %vm2294_vm15 = vcmp.lt.s32.totalorder %v8360_v40, 4  ;;  %v1097_v50 = vshrl.u32 %v1079_v55, %v1095_v9  ;;  %v1101_v10 = vshll.u32 %v1100_v16, 23  ;;  %v4450_v55 = vpop.permute.xlu1 %4449  ;;  %v8409_v9 = vpop.permute.xlu0 %4172 }
 0x13b   : > { %v2266_v23 = vand.u32 8388607, %v13374_v3  ;;  %v1239_v60 = vadd.s32 1, %v6283_v54  ;;  %v8391_v27 = vadd.f32 %v7957_v42, %v547_v6  ;;  %v8393_v32 = vor.u32 %v1153_v46, %v1152_v47 }
 0x13c   : > { %v8395_v3 = vor.u32 %v2277_v21, %v2276_v29  ;;  %v8397_v12 = vor.u32 %v2280_v51, %v2279_v56  ;;  %v2284_v43 = vor.u32 %v2283_v39, %v2282_v36  ;;  %v1511_v15 = vsub.s32 4294967266, %v8386_v38  ;;  %v7213_v51 = vld [vmem:[%s13032_s4 + $0x8] sm:$0xff]  }
 0x13d   : > { %13375 = vst [vmem:[#allocation74_spill] sm:$0xff] %v8391_v27  ;;  %13376 = vst [vmem:[#allocation75_spill] sm:$0xff] %v8393_v32  ;;  %vm2291_vm0 = vcmp.lt.s32.totalorder %v8360_v40, 1  ;;  %vm2293_vm1 = vcmp.lt.s32.totalorder %v8360_v40, 3  ;;  %v2300_v16 = vsel %vm2294_vm15, %v2287_v33, 920167782  ;;  %v1491_v2 = vadd.s32 %v8112_v49, %v8121_v24  ;;  %6730 = vmatprep.subr.bf16.mxu0 %v7213_v51 }
 0x13e   : > { %v1915_v6 = vclz %v6308_v45  ;;  %v2267_v47 = vor.u32 8388608, %v2266_v23  ;;  %v2304_v21 = vsel %vm2294_vm15, %v2290_v17, 1326507024  ;;  %v1098_v56 = vor.u32 %v1097_v50, %v1096_v34  ;;  %6731 = vmatpush3.bf16.msra.mxu0 %v7213_v51 }
 0x13f   : > { %v1102_v46 = vor.u32 4788187, %v1101_v10  ;;  %vm1240_vm2 = vcmp.gt.s32.totalorder %v1239_v60, 0  ;;  %v1335_v39 = vand.u32 2139095040, %v8391_v27  ;;  %v1507_v1 = vsub.s32 32, %v8386_v38 }
 0x140   : > { %vm2292_vm3 = vcmp.lt.s32.totalorder %v8360_v40, 2  ;;  %v2299_v49 = vsel %vm2291_vm0, %v8395_v3, %v8397_v12  ;;  %v2301_v24 = vsel %vm2293_vm1, %v2284_v43, %v2300_v16  ;;  %vm1161_vm5 = vcmp.lt.s32.totalorder %v8329_v48, 4 }
 0x141   : > { %v1512_v10 = vadd.s32 127, %v1511_v15  ;;  %v2303_v23 = vsel %vm2291_vm0, %v8397_v12, %v2284_v43  ;;  %v2305_v17 = vsel %vm2293_vm1, %v2287_v33, %v2304_v21  ;;  %v1157_v50 = vor.u32 %v8376_v22, %v8344_v13  ;;  %v427_v21 = vpop.permute.xlu1 %426 }
 0x142   : > { %v6309_v19 = vadd.s32 4294967294, %v1915_v6  ;;  %v1241_v54 = vsel %vm1240_vm2, %v1239_v60, 0  ;;  %v8427_v29 = vshll.u32 %v2267_v47, 8  ;;  %v8435_v36 = vsel %vm1161_vm5, %v8393_v32, 920167782 }
 0x143   : > { %13377 = vst [vmem:[#allocation76_spill] sm:$0xff] %v8435_v36  ;;  %v1103_v34 = vand.u32 2147483647, %v1102_v46  ;;  %v1105_v45 = vcvt.s32.f32 %v1098_v56  ;;  %v2302_v33 = vsel %vm2292_vm3, %v2299_v49, %v2301_v24  ;;  %v1508_v22 = vshll.u32 %v8215_v41, %v8386_v38  ;;  %v477_v56 = vpop.permute.xlu0 %476 }
 0x144   : > { %v1509_v60 = vshrl.u32 %v1491_v2, %v1507_v1  ;;  %v2306_v13 = vsel %vm2292_vm3, %v2303_v23, %v2305_v17  ;;  %v1336_v15 = vshrl.u32 %v1335_v39, 23  ;;  %v1513_v16 = vshll.u32 %v1512_v10, 23 }
 0x145   : > { %v8443_v6 = vand.u32 31, %v1241_v54  ;;  %v2275_v47 = vshrl.u32 %v13339_v53, %v8334_v37  ;;  %vm4484_vm6 = vcmp.eq.s32.totalorder %v7836_v28, %v4450_v55  ;;  %vm6310_vm7 = vcmp.lt.s32.totalorder %v6309_v19, 0  ;;  %v432_v40 = vpop.permute.xlu1 %431 }
 0x146   : > { %v8449_v38 = vmul.u32.u64.low %v8427_v29, %v2302_v33  ;;  %v8450_v41 = vmul.u32.u64.high %v8427_v29, %v2302_v33, %v8449_v38  ;;  %v6457_v2 = vsel %vm4484_vm6, 1.0, %v13354_v5  ;;  %v2296_v46 = vsel %vm2294_vm15, %v2284_v43, 2102212464 }
 0x147   : > { %13378 = vst [vmem:[#allocation77_spill] sm:$0xff] %v8443_v6  ;;  %v8457_v39 = vmul.u32.u64.low %v8427_v29, %v2306_v13  ;;  %v8458_v1 = vmul.u32.u64.high %v8427_v29, %v2306_v13, %v8457_v39  ;;  %v4565_v37 = vpack.c.bf16 %v8275_v30, %v6457_v2  ;;  %v6287_v55 = vadd.s32 4294967169, %v1336_v15 }
 0x148   : > { %vm4247_vm8 = vcmp.eq.s32.totalorder %v7836_v28, %v8284_v57  ;;  %v550_v49 = vmul.f32 %v7948_v18, %v427_v21  ;;  %v560_v24 = vmul.f32 %v7948_v18, %v477_v56  ;;  %v8465_v10 = vmul.f32 %v1105_v45, %v1103_v34 }
 0x149   : > { %v1510_v23 = vor.u32 %v1509_v60, %v1508_v22  ;;  %v8467_v17 = vsel %vm6310_vm7, 0, %v6309_v19  ;;  %v8469_v43 = vshrl.u32 %v1241_v54, 5  ;;  %6813 = vmatmul.mubr.msk.bf16.gmra.mrb[28].mxu1 %vm4671_vm4, %v4565_v37  ;;  %v8473_v51 = vsub.s32 32, %v8443_v6 }
 0x14a   : > { %v2295_v30 = vsel %vm2291_vm0, %v2275_v47, %v8395_v3  ;;  %v2297_v33 = vsel %vm2293_vm1, %v8397_v12, %v2296_v46  ;;  %v8482_v34 = vadd.f32 %v7957_v42, %v550_v49  ;;  %v13382_v19 = vmov 0  }
 0x14b   : > { %13379 = vst [vmem:[#allocation78_spill] sm:$0xff] %v8469_v43  ;;  %13380 = vst [vmem:[#allocation79_spill] sm:$0xff] %v8473_v51  ;;  %5009 = vmatprep.mubr.bf16.mxu1 %v13382_v19  ;;  %v8487_v54 = vsel %vm1161_vm5, %v1157_v50, 1326507024  ;;  %v1514_v45 = vor.u32 4788187, %v1513_v16  ;;  %v8496_v3 = vadd.f32 %v7957_v42, %v560_v24  ;;  %v1903_v12 = vadd.s32 %v8184_v20, %v8189_v25 }
 0x14c   : > { %13381 = vst [vmem:[#allocation80_spill] sm:$0xff] %v8482_v34  ;;  %13383 = vst [vmem:[#allocation81_spill] sm:$0xff] %v8487_v54  ;;  %v8493_v22 = vsel %vm4247_vm8, 1.0, %v13354_v5  ;;  %vm1025_vm9 = vcmp.lt.s32.totalorder %v7970_v63, 0  ;;  %v1923_v60 = vsub.s32 4294967266, %v8467_v17  ;;  %v1342_v13 = vadd.s32 1, %v6287_v55 }
 0x14d   : > { %13384 = vst [vmem:[#allocation82_spill] sm:$0xff] %v8496_v3  ;;  %v1644_v50 = vand.u32 2139095040, %v8482_v34  ;;  %v1107_v15 = vxor.u32 2147483648, %v8465_v10  ;;  %v1255_v57 = vshll.u32 %v13342_v26, %v8443_v6  ;;  %v1258_v16 = vshll.u32 %v13343_v61, %v8443_v6 }
 0x14e   : > { %v2298_v47 = vsel %vm2292_vm3, %v2295_v30, %v2297_v33  ;;  %v1517_v21 = vcvt.s32.f32 %v1510_v23  ;;  %v1256_v20 = vshrl.u32 %v13343_v61, %v8473_v51  ;;  %vm1264_vm10 = vcmp.lt.s32.totalorder %v8469_v43, 4 }
 0x14f   : > { %v2317_v25 = vadd.s32 1, %v8450_v41  ;;  %v1645_v56 = vshrl.u32 %v1644_v50, 23  ;;  %v1515_v2 = vand.u32 2147483647, %v1514_v45  ;;  %v1259_v46 = vshrl.u32 %v13344_v35, %v8473_v51 }
 0x150   : > { %vm2316_vm11 = vc.u32 %v8458_v1, %v8449_v38  ;;  %v2674_v39 = vand.u32 2139095040, %v8496_v3  ;;  %v1919_v37 = vsub.s32 32, %v8467_v17  ;;  %v1924_v55 = vadd.s32 127, %v1923_v60 }
 0x151   : > { %v2314_v49 = vmul.u32 %v8427_v29, %v2298_v47  ;;  %vm1343_vm14 = vcmp.gt.s32.totalorder %v1342_v13, 0  ;;  %v549_v24 = vmul.f32 %v7948_v18, %v8382_v44  ;;  %v6299_v30 = vadd.s32 4294967169, %v1645_v56 }
 0x152   : > { %v2675_v33 = vshrl.u32 %v2674_v39, 23  ;;  %v8524_v45 = vor.u32 %v1256_v20, %v1255_v57  ;;  %v2318_v50 = vsel %vm2316_vm11, %v2317_v25, %v8450_v41  ;;  %v13135_v27 = vand.u32 2147483647, %v8496_v3 }
 0x153   : > { %v551_v6 = vmul.f32 %v7948_v18, %v432_v40  ;;  %v8529_v51 = vmul.f32 %v1517_v21, %v1515_v2  ;;  %v1260_v60 = vor.u32 %v1259_v46, %v1258_v16  ;;  %v1651_v29 = vadd.s32 1, %v6299_v30 }
 0x154   : > { %13385 = vst [vmem:[#allocation83_spill] sm:$0xff] %v8524_v45  ;;  %v6339_v47 = vadd.s32 4294967169, %v2675_v33  ;;  %v1920_v44 = vshll.u32 %v8332_v58, %v8467_v17  ;;  %v1921_v32 = vshrl.u32 %v1903_v12, %v1919_v37  ;;  %v1925_v23 = vshll.u32 %v1924_v55, 23 }
 0x155   : > { %v8534_v56 = vsel %vm1343_vm14, %v1342_v13, 0  ;;  %v8536_v57 = vadd.s32 %v2318_v50, %v2314_v49  ;;  %v8539_v41 = vadd.f32 %v7957_v42, %v549_v24  ;;  %v13387_v18 = vand.u32 2147483647, %v8482_v34 }
 0x156   : > { %vm1652_vm15 = vcmp.gt.s32.totalorder %v1651_v29, 0  ;;  %v8545_v20 = vand.u32 8388607, %v13135_v27  ;;  %v2681_v58 = vadd.s32 1, %v6339_v47  ;;  %v8548_v17 = vadd.f32 %v7957_v42, %v551_v6  ;;  %v7214_v42 = vld [vmem:[%s13032_s4 + $0x10] sm:$0xff]  }
 0x157   : > { %13386 = vst [vmem:[#allocation84_spill] sm:$0xff] %v8539_v41  ;;  %v1648_v21 = vand.u32 8388607, %v13387_v18  ;;  %v1653_v16 = vsel %vm1652_vm15, %v1651_v29, 0  ;;  %v8553_v12 = vsel %vm1025_vm9, %v1107_v15, %v8465_v10  ;;  %v8558_v13 = vsel %vm1264_vm10, %v8524_v45, 920167782  ;;  %6732 = vmatprep.subr.bf16.mxu0 %v7214_v42 }
 0x158   : > { %13388 = vst [vmem:[#allocation85_spill] sm:$0xff] %v8548_v17  ;;  %13389 = vst [vmem:[#allocation86_spill] sm:$0xff] %v8553_v12  ;;  %v8562_v25 = vsel %vm1264_vm10, %v1260_v60, 1326507024  ;;  %v1655_v2 = vand.u32 31, %v1653_v16  ;;  %v8568_v46 = vor.u32 %v1921_v32, %v1920_v44  ;;  %v8573_v15 = vand.u32 31, %v8534_v56  ;;  %6733 = vmatpush3.bf16.msra.mxu0 %v7214_v42 }
 0x159   : > { %13390 = vst [vmem:[#allocation87_spill] sm:$0xff] %v8558_v13  ;;  %13391 = vst [vmem:[#allocation88_spill] sm:$0xff] %v8562_v25  ;;  %v8570_v10 = vor.u32 4788187, %v1925_v23  ;;  %v2320_v39 = vadd.s32 536870912, %v8536_v57  ;;  %v1541_v40 = vand.u32 2139095040, %v8539_v41 }
 0x15a   : > { %13392 = vst [vmem:[#allocation89_spill] sm:$0xff] %v8573_v15  ;;  %v1649_v37 = vor.u32 8388608, %v1648_v21  ;;  %v1656_v55 = vsub.s32 32, %v1655_v2  ;;  %v1654_v49 = vshrl.u32 %v1653_v16, 5  ;;  %v2679_v24 = vor.u32 8388608, %v8545_v20 }
 0x15b   : > { %vm2682_vm0 = vcmp.gt.s32.totalorder %v2681_v58, 0  ;;  %v1747_v30 = vand.u32 2139095040, %v8548_v17  ;;  %v1658_v32 = vshll.u32 %v13339_v53, %v1655_v2  ;;  %v1661_v33 = vshll.u32 %v13340_v11, %v1655_v2 }
 0x15c   : > { %v1659_v23 = vshrl.u32 %v13340_v11, %v1656_v55  ;;  %v1664_v50 = vshll.u32 %v13341_v4, %v1655_v2  ;;  %v1662_v60 = vshrl.u32 %v13341_v4, %v1656_v55  ;;  %v1665_v29 = vshrl.u32 %v13342_v26, %v1656_v55 }
 0x15d   : > { %v1667_v47 = vshll.u32 %v13342_v26, %v1655_v2  ;;  %v1668_v44 = vshrl.u32 %v13343_v61, %v1656_v55  ;;  %v1670_v21 = vshll.u32 %v13343_v61, %v1655_v2  ;;  %v1671_v16 = vshrl.u32 %v13344_v35, %v1656_v55 }
 0x15e   : > { %v1660_v18 = vor.u32 %v1659_v23, %v1658_v32  ;;  %v1689_v20 = vshll.u32 %v1649_v37, 8  ;;  %v1657_v42 = vshrl.u32 %v13339_v53, %v1656_v55  ;;  %v1663_v27 = vor.u32 %v1662_v60, %v1661_v33  ;;  %v497_v33 = vpop.permute.xlu0 %496 }
 0x15f   : > { %v1666_v6 = vor.u32 %v1665_v29, %v1664_v50  ;;  %v1669_v41 = vor.u32 %v1668_v44, %v1667_v47  ;;  %v1672_v45 = vor.u32 %v1671_v16, %v1670_v21  ;;  %vm1673_vm1 = vcmp.lt.s32.totalorder %v1654_v49, 1 }
 0x160   : > { %v2683_v25 = vsel %vm2682_vm0, %v2681_v58, 0  ;;  %v1748_v13 = vshrl.u32 %v1747_v30, 23  ;;  %vm1674_vm2 = vcmp.lt.s32.totalorder %v1654_v49, 2  ;;  %vm1676_vm3 = vcmp.lt.s32.totalorder %v1654_v49, 4 }
 0x161   : > { %v1677_v43 = vsel %vm1673_vm1, %v1657_v42, %v1660_v18  ;;  %v1681_v54 = vsel %vm1673_vm1, %v1660_v18, %v1663_v27  ;;  %vm1675_vm6 = vcmp.lt.s32.totalorder %v1654_v49, 3  ;;  %v1678_v32 = vsel %vm1676_vm3, %v1666_v6, 2102212464 }
 0x162   : > { %v1682_v2 = vsel %vm1676_vm3, %v1669_v41, 920167782  ;;  %v1685_v23 = vsel %vm1673_vm1, %v1663_v27, %v1666_v6  ;;  %v1679_v12 = vsel %vm1675_vm6, %v1663_v27, %v1678_v32  ;;  %v1686_v36 = vsel %vm1676_vm3, %v1672_v45, 1326507024 }
 0x163   : > { %v1683_v37 = vsel %vm1675_vm6, %v1666_v6, %v1682_v2  ;;  %v8591_v55 = vshrl.u32 %v2683_v25, 5  ;;  %v8593_v50 = vshrl.u32 %v1541_v40, 23  ;;  %v1680_v60 = vsel %vm1674_vm2, %v1677_v43, %v1679_v12  ;;  %v8610_v40 = vld [vmem:[%s13030_s2] ss:$0 sm:$0xff] }
 0x164   : > { %v1684_v58 = vsel %vm1674_vm2, %v1681_v54, %v1683_v37  ;;  %v1687_v30 = vsel %vm1675_vm6, %v1669_v41, %v1686_v36  ;;  %v8597_v29 = vshrl.u32 %v2320_v39, 30  ;;  %v2685_v6 = vand.u32 31, %v2683_v25  ;;  %v7215_v37 = vld [vmem:[%s13032_s4 + $0x18] sm:$0xff]  }
 0x165   : > { %v1688_v47 = vsel %vm1674_vm2, %v1685_v23, %v1687_v30  ;;  %v8600_v44 = vmul.u32.u64.low %v1689_v20, %v1684_v58  ;;  %v8601_v18 = vmul.u32.u64.high %v1689_v20, %v1684_v58, %v8600_v44  ;;  %v8613_v43 = vmul.f32 %v8610_v40, %v497_v33  ;;  %6734 = vmatprep.subr.bf16.mxu0 %v7215_v37 }
 0x166   : > { %13393 = vst [vmem:[#allocation90_spill] sm:$0xff] %v8597_v29  ;;  %v8604_v27 = vmul.u32.u64.low %v1689_v20, %v1688_v47  ;;  %v8605_v45 = vmul.u32.u64.high %v1689_v20, %v1688_v47, %v8604_v27  ;;  %v1696_v36 = vmul.u32 %v1689_v20, %v1680_v60  ;;  %vm2703_vm7 = vcmp.lt.s32.totalorder %v8591_v55, 1  ;;  %6735 = vmatpush3.bf16.msra.mxu0 %v7215_v37 }
 0x167   : > { %v8616_v54 = vshll.u32 %v2679_v24, 8  ;;  %v6303_v41 = vadd.s32 4294967169, %v1748_v13  ;;  %v2686_v12 = vsub.s32 32, %v2685_v6  ;;  %v2688_v39 = vshll.u32 %v13339_v53, %v2685_v6 }
 0x168   : > { %vm2704_vm8 = vcmp.lt.s32.totalorder %v8591_v55, 2  ;;  %vm2706_vm11 = vcmp.lt.s32.totalorder %v8591_v55, 4  ;;  %vm13228_vm14 = vcmp.lt.s32.totalorder %v7982_v59, 0  ;;  %v1699_v25 = vadd.s32 1, %v8601_v18 }
 0x169   : > { %v2691_v49 = vshll.u32 %v13340_v11, %v2685_v6  ;;  %v2694_v21 = vshll.u32 %v13341_v4, %v2685_v6  ;;  %v2697_v16 = vshll.u32 %v13342_v26, %v2685_v6  ;;  %vm1698_vm15 = vc.u32 %v8605_v45, %v8600_v44 }
 0x16a   : > { %v2687_v13 = vshrl.u32 %v13339_v53, %v2686_v12  ;;  %v2689_v24 = vshrl.u32 %v13340_v11, %v2686_v12  ;;  %v2700_v20 = vshll.u32 %v13343_v61, %v2685_v6  ;;  %v1700_v42 = vsel %vm1698_vm15, %v1699_v25, %v8601_v18 }
 0x16b   : > { %v2692_v32 = vshrl.u32 %v13341_v4, %v2686_v12  ;;  %v2695_v2 = vshrl.u32 %v13342_v26, %v2686_v12  ;;  %v2698_v23 = vshrl.u32 %v13343_v61, %v2686_v12  ;;  %v1701_v33 = vadd.s32 %v1700_v42, %v1696_v36 }
 0x16c   : > { %v2690_v60 = vor.u32 %v2689_v24, %v2688_v39  ;;  %v2701_v58 = vshrl.u32 %v13344_v35, %v2686_v12  ;;  %v1754_v30 = vadd.s32 1, %v6303_v41  ;;  %vm2705_vm0 = vcmp.lt.s32.totalorder %v8591_v55, 3 }
 0x16d   : > { %v2693_v47 = vor.u32 %v2692_v32, %v2691_v49  ;;  %v2696_v27 = vor.u32 %v2695_v2, %v2694_v21  ;;  %v2699_v6 = vor.u32 %v2698_v23, %v2697_v16  ;;  %v1702_v18 = vadd.s32 536870912, %v1701_v33  ;;  %v7216_v49 = vld [vmem:[%s13032_s4 + $0x20] sm:$0xff]  }
 0x16e   : > { %v2702_v25 = vor.u32 %v2701_v58, %v2700_v20  ;;  %v2707_v48 = vsel %vm2703_vm7, %v2687_v13, %v2690_v60  ;;  %vm1755_vm1 = vcmp.gt.s32.totalorder %v1754_v30, 0  ;;  %v2322_v20 = vshll.u32 %v8597_v29, 30  ;;  %6736 = vmatprep.subr.bf16.mxu0 %v7216_v49 }
 0x16f   : > { %v2708_v36 = vsel %vm2706_vm11, %v2696_v27, 2102212464  ;;  %v2711_v12 = vsel %vm2703_vm7, %v2690_v60, %v2693_v47  ;;  %v2712_v41 = vsel %vm2706_vm11, %v2699_v6, 920167782  ;;  %v2715_v39 = vsel %vm2703_vm7, %v2693_v47, %v2696_v27  ;;  %6737 = vmatpush3.bf16.msra.mxu0 %v7216_v49 }
 0x170   : > { %v8653_v21 = vshrl.u32 %v1702_v18, 30  ;;  %v2709_v16 = vsel %vm2705_vm0, %v2693_v47, %v2708_v36  ;;  %v2713_v13 = vsel %vm2705_vm0, %v2696_v27, %v2712_v41  ;;  %v2716_v24 = vsel %vm2706_vm11, %v2702_v25, 1326507024 }
 0x171   : > { %v2714_v42 = vsel %vm2704_vm8, %v2711_v12, %v2713_v13  ;;  %v2717_v32 = vsel %vm2705_vm0, %v2699_v6, %v2716_v24  ;;  %v1756_v2 = vsel %vm1755_vm1, %v1754_v30, 0  ;;  %v2710_v23 = vsel %vm2704_vm8, %v2707_v48, %v2709_v16 }
 0x172   : > { %13394 = vst [vmem:[#allocation91_spill] sm:$0xff] %v8653_v21  ;;  %v2718_v37 = vsel %vm2704_vm8, %v2715_v39, %v2717_v32  ;;  %v8671_v60 = vmul.u32.u64.low %v8616_v54, %v2714_v42  ;;  %v8672_v58 = vmul.u32.u64.high %v8616_v54, %v2714_v42, %v8671_v60  ;;  %v1704_v47 = vshll.u32 %v8653_v21, 30 }
 0x173   : > { %v8677_v27 = vmul.u32.u64.low %v8616_v54, %v2718_v37  ;;  %v8678_v18 = vmul.u32.u64.high %v8616_v54, %v2718_v37, %v8677_v27  ;;  %v13143_v30 = vand.u32 2147483647, %v8548_v17  ;;  %v13395_v48 = vxor.u32 2147483648, %v8529_v51 }
 0x174   : > { %v1929_v6 = vcvt.s32.f32 %v8568_v46  ;;  %v8690_v25 = vshrl.u32 %v8534_v56, 5  ;;  %v1758_v36 = vand.u32 31, %v1756_v2  ;;  %v1927_v12 = vand.u32 2147483647, %v8570_v10  ;;  %v8707_v56 = vld [vmem:[%s13031_s3] ss:$0 sm:$0xff] }
 0x175   : > { %v8686_v55 = vsel %vm13228_vm14, %v13395_v48, %v8529_v51  ;;  %v8694_v41 = vsub.s32 32, %v8573_v15  ;;  %v6295_v39 = vadd.s32 4294967169, %v8593_v50  ;;  %v2726_v49 = vmul.u32 %v8616_v54, %v2710_v23 }
 0x176   : > { %13396 = vst [vmem:[#allocation92_spill] sm:$0xff] %v8686_v55  ;;  %13397 = vst [vmem:[#allocation93_spill] sm:$0xff] %v8690_v25  ;;  %v8699_v16 = vsub.s32 %v8536_v57, %v2322_v20  ;;  %v2729_v51 = vadd.s32 1, %v8672_v58  ;;  %v8702_v13 = vsub.s32 32, %v1758_v36  ;;  %v8711_v46 = vadd.f32 %v8707_v56, %v8613_v43 }
 0x177   : > { %13398 = vst [vmem:[#allocation94_spill] sm:$0xff] %v8694_v41  ;;  %v8713_v10 = vsub.s32 %v1701_v33, %v1704_v47  ;;  %vm2728_vm2 = vc.u32 %v8678_v18, %v8671_v60  ;;  %v1751_v57 = vand.u32 8388607, %v13143_v30  ;;  %v8719_v50 = vshrl.u32 %v1756_v2, 5 }
 0x178   : > { %13399 = vst [vmem:[#allocation95_spill] sm:$0xff] %v8711_v46  ;;  %v2730_v54 = vsel %vm2728_vm2, %v2729_v51, %v8672_v58  ;;  %v1761_v24 = vshll.u32 %v13339_v53, %v1758_v36  ;;  %v1762_v20 = vshrl.u32 %v13340_v11, %v8702_v13  ;;  %v1764_v43 = vshll.u32 %v13340_v11, %v1758_v36 }
 0x179   : > { %v8726_v42 = vadd.s32 %v2730_v54, %v2726_v49  ;;  %v1765_v33 = vshrl.u32 %v13341_v4, %v8702_v13  ;;  %v1767_v32 = vshll.u32 %v13341_v4, %v1758_v36  ;;  %v1768_v2 = vshrl.u32 %v13342_v26, %v8702_v13 }
 0x17a   : > { %v2325_v23 = vsub.s32 0, %v8699_v16  ;;  %v8734_v37 = vor.u32 %v1762_v20, %v1761_v24  ;;  %v1770_v58 = vshll.u32 %v13342_v26, %v1758_v36  ;;  %v1771_v47 = vshrl.u32 %v13343_v61, %v8702_v13 }
 0x17b   : > { %vm4249_vm3 = vcmp.eq.s32.totalorder %v7836_v28, %v8346_v14  ;;  %vm4251_vm6 = vcmp.eq.s32.totalorder %v7836_v28, %v8384_v7  ;;  %v8743_v27 = vor.u32 %v1765_v33, %v1764_v43  ;;  %v1769_v48 = vor.u32 %v1768_v2, %v1767_v32 }
 0x17c   : > { %v1773_v49 = vshll.u32 %v13343_v61, %v1758_v36  ;;  %v1774_v51 = vshrl.u32 %v13344_v35, %v8702_v13  ;;  %v1707_v54 = vsub.s32 0, %v8713_v10  ;;  %v2732_v24 = vadd.s32 536870912, %v8726_v42 }
 0x17d   : > { %v1772_v20 = vor.u32 %v1771_v47, %v1770_v58  ;;  %vm1776_vm7 = vcmp.lt.s32.totalorder %v8719_v50, 1  ;;  %v1752_v30 = vor.u32 8388608, %v1751_v57  ;;  %vm1779_vm8 = vcmp.lt.s32.totalorder %v8719_v50, 4 }
 0x17e   : > { %v1775_v29 = vor.u32 %v1774_v51, %v1773_v49  ;;  %v1784_v43 = vsel %vm1776_vm7, %v8734_v37, %v8743_v27  ;;  %vm13186_vm11 = vcmp.lt.s32.totalorder %v8020_v52, 0  ;;  %v6324_v36 = vmin.u32 %v2325_v23, %v8699_v16 }
 0x17f   : > { %v1548_v33 = vadd.s32 1, %v6295_v39  ;;  %vm1778_vm15 = vcmp.lt.s32.totalorder %v8719_v50, 3  ;;  %v1785_v32 = vsel %vm1779_vm8, %v1772_v20, 920167782  ;;  %v1358_v57 = vshll.u32 %v13342_v26, %v8573_v15 }
 0x180   : > { %vm1777_vm0 = vcmp.lt.s32.totalorder %v8719_v50, 2  ;;  %v1786_v2 = vsel %vm1778_vm15, %v1769_v48, %v1785_v32  ;;  %v3086_v58 = vand.u32 2139095040, %v8711_v46  ;;  %v6300_v47 = vmin.u32 %v1707_v54, %v8713_v10 }
 0x181   : > { %v8768_v49 = vshrl.u32 %v2732_v24, 30  ;;  %v1787_v39 = vsel %vm1777_vm0, %v1784_v43, %v1786_v2  ;;  %v1788_v23 = vsel %vm1776_vm7, %v8743_v27, %v1769_v48  ;;  %v1930_v51 = vmul.f32 %v1929_v6, %v1927_v12  ;;  %v7217_v6 = vld [vmem:[%s13032_s4 + $0x28] sm:$0xff]  }
 0x182   : > { %v1361_v21 = vshll.u32 %v13343_v61, %v8573_v15  ;;  %v1789_v32 = vsel %vm1779_vm8, %v1775_v29, 1326507024  ;;  %v8779_v55 = vshll.u32 %v1752_v30, 8  ;;  %v2327_v59 = vclz %v6324_v36  ;;  %6738 = vmatprep.subr.bf16.mxu0 %v7217_v6 }
 0x183   : > { %13400 = vst [vmem:[#allocation96_spill] sm:$0xff] %v8768_v49  ;;  %v1359_v54 = vshrl.u32 %v13343_v61, %v8694_v41  ;;  %vm1549_vm1 = vcmp.gt.s32.totalorder %v1548_v33, 0  ;;  %v1790_v24 = vsel %vm1778_vm15, %v1772_v20, %v1789_v32  ;;  %v3087_v30 = vshrl.u32 %v3086_v58, 23  ;;  %v442_v20 = vpop.permute.xlu1 %441  ;;  %6739 = vmatpush3.bf16.msra.mxu0 %v7217_v6 }
 0x184   : > { %v1791_v12 = vsel %vm1777_vm0, %v1788_v23, %v1790_v24  ;;  %v8791_v43 = vmul.u32.u64.low %v8779_v55, %v1787_v39  ;;  %v8792_v29 = vmul.u32.u64.high %v8779_v55, %v1787_v39, %v8791_v43  ;;  %v1709_v36 = vclz %v6300_v47 }
 0x185   : > { %v2734_v2 = vshll.u32 %v8768_v49, 30  ;;  %v8797_v15 = vmul.u32.u64.low %v8779_v55, %v1791_v12  ;;  %v8798_v63 = vmul.u32.u64.high %v8779_v55, %v1791_v12, %v8797_v15  ;;  %v1931_v32 = vxor.u32 2147483648, %v1930_v51 }
 0x186   : > { %v1362_v31 = vshrl.u32 %v13344_v35, %v8694_v41  ;;  %v1550_v23 = vsel %vm1549_vm1, %v1548_v33, 0  ;;  %v6355_v24 = vadd.s32 4294967169, %v3087_v30  ;;  %v8804_v39 = vadd.s32 %v8449_v38, %v8458_v1 }
 0x187   : > { %vm1367_vm2 = vcmp.lt.s32.totalorder %v8690_v25, 4  ;;  %v8811_v15 = vsel %vm4249_vm3, 1.0, %v13354_v5  ;;  %v8817_v58 = vsel %vm4251_vm6, 1.0, %v13354_v5  ;;  %v6325_v33 = vadd.s32 4294967294, %v2327_v59 }
 0x188   : > { %13401 = vst [vmem:[#allocation97_spill] sm:$0xff] %v8811_v15  ;;  %13402 = vst [vmem:[#allocation98_spill] sm:$0xff] %v8817_v58  ;;  %v1781_v47 = vsel %vm1779_vm8, %v1769_v48, 2102212464  ;;  %v3093_v38 = vadd.s32 1, %v6355_v24  ;;  %v553_v1 = vmul.f32 %v8610_v40, %v442_v20  ;;  %v8822_v6 = vand.u32 31, %v1550_v23 }
 0x189   : > { %v6301_v12 = vadd.s32 4294967294, %v1709_v36  ;;  %v8825_v14 = vsub.s32 %v8726_v42, %v2734_v2  ;;  %v1760_v30 = vshrl.u32 %v13339_v53, %v8702_v13  ;;  %v8831_v7 = vsel %vm13186_vm11, %v1931_v32, %v1930_v51 }
 0x18a   : > { %13403 = vst [vmem:[#allocation99_spill] sm:$0xff] %v8822_v6  ;;  %13404 = vst [vmem:[#allocation100_spill] sm:$0xff] %v8831_v7  ;;  %v8833_v59 = vor.u32 %v1359_v54, %v1358_v57  ;;  %v1363_v49 = vor.u32 %v1362_v31, %v1361_v21  ;;  %vm3094_vm3 = vcmp.gt.s32.totalorder %v3093_v38, 0  ;;  %vm4253_vm6 = vcmp.eq.s32.totalorder %v7836_v28, %v8409_v9  ;;  %v517_v31 = vpop.permute.xlu0 %516 }
 0x18b   : > { %v1780_v48 = vsel %vm1776_vm7, %v1760_v30, %v8734_v37  ;;  %v1782_v42 = vsel %vm1778_vm15, %v8743_v27, %v1781_v47  ;;  %v3095_v13 = vsel %vm3094_vm3, %v3093_v38, 0  ;;  %vm6326_vm8 = vcmp.lt.s32.totalorder %v6325_v33, 0 }
 0x18c   : > { %13405 = vst [vmem:[#allocation101_spill] sm:$0xff] %v8833_v59  ;;  %v1802_v51 = vadd.s32 1, %v8792_v29  ;;  %v3097_v36 = vand.u32 31, %v3095_v13  ;;  %v8845_v57 = vadd.f32 %v8707_v56, %v553_v1  ;;  %v8848_v21 = vsub.s32 32, %v8822_v6 }
 0x18d   : > { %vm6302_vm1 = vcmp.lt.s32.totalorder %v6301_v12, 0  ;;  %v2737_v9 = vsub.s32 0, %v8825_v14  ;;  %vm1801_vm7 = vc.u32 %v8798_v63, %v8791_v43  ;;  %v8856_v37 = vsel %vm1367_vm2, %v8833_v59, 920167782 }
 0x18e   : > { %13406 = vst [vmem:[#allocation102_spill] sm:$0xff] %v8845_v57  ;;  %13407 = vst [vmem:[#allocation103_spill] sm:$0xff] %v8848_v21  ;;  %v8860_v27 = vsel %vm1367_vm2, %v1363_v49, 1326507024  ;;  %v8863_v54 = vsel %vm4253_vm6, 1.0, %v13354_v5  ;;  %v1783_v2 = vsel %vm1777_vm0, %v1780_v48, %v1782_v42  ;;  %v8867_v20 = vsel %vm6326_vm8, 0, %v6325_v33 }
 0x18f   : > { %13408 = vst [vmem:[#allocation104_spill] sm:$0xff] %v8856_v37  ;;  %13409 = vst [vmem:[#allocation105_spill] sm:$0xff] %v8860_v27  ;;  %v8869_v32 = vshrl.u32 %v1550_v23, 5  ;;  %v8871_v24 = vsub.s32 32, %v3097_v36  ;;  %v8874_v47 = vmul.f32 %v8610_v40, %v517_v31  ;;  %v8878_v38 = vshll.u32 %v13342_v26, %v8822_v6 }
 0x190   : > { %13410 = vst [vmem:[#allocation106_spill] sm:$0xff] %v8863_v54  ;;  %v8880_v49 = vsel %vm6302_vm1, 0, %v6301_v12  ;;  %v1803_v1 = vsel %vm1801_vm7, %v1802_v51, %v8792_v29  ;;  %v1953_v50 = vand.u32 2139095040, %v8845_v57  ;;  %v8886_v33 = vshrl.u32 %v13343_v61, %v8848_v21  ;;  %v7218_v51 = vld [vmem:[%s13032_s4 + $0x30] sm:$0xff]  }
 0x191   : > { %13411 = vst [vmem:[#allocation107_spill] sm:$0xff] %v8869_v32  ;;  %v8890_v23 = vshll.u32 %v13343_v61, %v8822_v6  ;;  %v6340_v30 = vmin.u32 %v2737_v9, %v8825_v14  ;;  %v1799_v48 = vmul.u32 %v8779_v55, %v1783_v2  ;;  %v2331_v42 = vsub.s32 32, %v8867_v20  ;;  %6740 = vmatprep.subr.bf16.mxu0 %v7218_v51 }
 0x192   : > { %v2335_v12 = vsub.s32 4294967266, %v8867_v20  ;;  %v8898_v29 = vshrl.u32 %v13344_v35, %v8848_v21  ;;  %v1717_v31 = vsub.s32 4294967266, %v8880_v49  ;;  %v3109_v52 = vshll.u32 %v13342_v26, %v3097_v36  ;;  %6741 = vmatpush3.bf16.msra.mxu0 %v7218_v51 }
 0x193   : > { %v8902_v7 = vadd.s32 %v1803_v1, %v1799_v48  ;;  %v3110_v9 = vshrl.u32 %v13343_v61, %v8871_v24  ;;  %v8907_v55 = vshrl.u32 %v3095_v13, 5  ;;  %v3112_v2 = vshll.u32 %v13343_v61, %v3097_v36 }
 0x194   : > { %v3113_v6 = vshrl.u32 %v13344_v35, %v8871_v24  ;;  %v1954_v21 = vshrl.u32 %v1953_v50, 23  ;;  %v2739_v37 = vclz %v6340_v30  ;;  %v3100_v1 = vshll.u32 %v13339_v53, %v3097_v36 }
 0x195   : > { %v3103_v48 = vshll.u32 %v13340_v11, %v3097_v36  ;;  %v3101_v13 = vshrl.u32 %v13340_v11, %v8871_v24  ;;  %v3104_v27 = vshrl.u32 %v13341_v4, %v8871_v24  ;;  %v3106_v25 = vshll.u32 %v13341_v4, %v3097_v36 }
 0x196   : > { %v3107_v50 = vshrl.u32 %v13342_v26, %v8871_v24  ;;  %v2332_v30 = vshll.u32 %v8699_v16, %v8867_v20  ;;  %v2336_v41 = vadd.s32 127, %v2335_v12  ;;  %v1805_v54 = vadd.s32 536870912, %v8902_v7 }
 0x197   : > { %v3111_v8 = vor.u32 %v3110_v9, %v3109_v52  ;;  %v13412_v59 = vand.u32 2147483647, %v8711_v46  ;;  %v3114_v17 = vor.u32 %v3113_v6, %v3112_v2  ;;  %vm3118_vm15 = vcmp.lt.s32.totalorder %v8907_v55, 4 }
 0x198   : > { %v6311_v3 = vadd.s32 4294967169, %v1954_v21  ;;  %v1697_v36 = vadd.s32 %v8600_v44, %v8605_v45  ;;  %v1713_v58 = vsub.s32 32, %v8880_v49  ;;  %v1718_v15 = vadd.s32 127, %v1717_v31 }
 0x199   : > { %v3090_v62 = vand.u32 8388607, %v13412_v59  ;;  %v6341_v34 = vadd.s32 4294967294, %v2739_v37  ;;  %v3102_v16 = vor.u32 %v3101_v13, %v3100_v1  ;;  %v3105_v20 = vor.u32 %v3104_v27, %v3103_v48 }
 0x19a   : > { %v3108_v12 = vor.u32 %v3107_v50, %v3106_v25  ;;  %v13413_v52 = vand.u32 2147483647, %v8845_v57  ;;  %v8936_v9 = vshrl.u32 %v1805_v54, 30  ;;  %vm3115_vm0 = vcmp.lt.s32.totalorder %v8907_v55, 1 }
 0x19b   : > { %vm3117_vm3 = vcmp.lt.s32.totalorder %v8907_v55, 3  ;;  %v3124_v6 = vsel %vm3118_vm15, %v3111_v8, 920167782  ;;  %v2333_v44 = vshrl.u32 %v8804_v39, %v2331_v42  ;;  %v3091_v45 = vor.u32 8388608, %v3090_v62 }
 0x19c   : > { %v1957_v51 = vand.u32 8388607, %v13413_v52  ;;  %13414 = vst [vmem:[#allocation108_spill] sm:$0xff] %v8936_v9  ;;  %v3128_v59 = vsel %vm3118_vm15, %v3114_v17, 1326507024  ;;  %v1960_v21 = vadd.s32 1, %v6311_v3  ;;  %v1715_v37 = vshrl.u32 %v1697_v36, %v1713_v58 }
 0x19d   : > { %v2337_v25 = vshll.u32 %v2336_v41, 23  ;;  %v1719_v27 = vshll.u32 %v1718_v15, 23  ;;  %vm6342_vm6 = vcmp.lt.s32.totalorder %v6341_v34, 0  ;;  %vm3116_vm8 = vcmp.lt.s32.totalorder %v8907_v55, 2 }
 0x19e   : > { %v3123_v54 = vsel %vm3115_vm0, %v3102_v16, %v3105_v20  ;;  %v3125_v31 = vsel %vm3117_vm3, %v3108_v12, %v3124_v6  ;;  %vm1961_vm1 = vcmp.gt.s32.totalorder %v1960_v21, 0  ;;  %v1807_v39 = vshll.u32 %v8936_v9, 30 }
 0x19f   : > { %v3127_v62 = vsel %vm3115_vm0, %v3105_v20, %v3108_v12  ;;  %v3129_v3 = vsel %vm3117_vm3, %v3111_v8, %v3128_v59  ;;  %v1958_v17 = vor.u32 8388608, %v1957_v51  ;;  %v1714_v41 = vshll.u32 %v8713_v10, %v8880_v49 }
 0x1a0   : > { %v8957_v15 = vsel %vm6342_vm6, 0, %v6341_v34  ;;  %v8959_v58 = vshll.u32 %v3091_v45, 8  ;;  %v1962_v42 = vsel %vm1961_vm1, %v1960_v21, 0  ;;  %v8961_v2 = vor.u32 %v2333_v44, %v2332_v30 }
 0x1a1   : > { %v8963_v1 = vor.u32 4788187, %v2337_v25  ;;  %v8967_v48 = vadd.s32 %v8671_v60, %v8678_v18  ;;  %v3126_v8 = vsel %vm3116_vm8, %v3123_v54, %v3125_v31  ;;  %v8971_v13 = vor.u32 %v1715_v37, %v1714_v41  ;;  %v4152_v31 = vpop.permute.xlu1 %4151  ;;  %v7219_v41 = vld [vmem:[%s13032_s4 + $0x38] sm:$0xff]  }
 0x1a2   : > { %v8973_v50 = vor.u32 4788187, %v1719_v27  ;;  %v3130_v34 = vsel %vm3116_vm8, %v3127_v62, %v3129_v3  ;;  %v1964_v10 = vand.u32 31, %v1962_v42  ;;  %v2747_v49 = vsub.s32 4294967266, %v8957_v15  ;;  %6742 = vmatprep.subr.bf16.mxu0 %v7219_v41 }
 0x1a3   : > { %v8979_v30 = vsub.s32 %v8902_v7, %v1807_v39  ;;  %v3099_v60 = vshrl.u32 %v13339_v53, %v8871_v24  ;;  %v8983_v18 = vshll.u32 %v1958_v17, 8  ;;  %v3120_v36 = vsel %vm3118_vm15, %v3108_v12, 2102212464  ;;  %6743 = vmatpush3.bf16.msra.mxu0 %v7219_v41 }
 0x1a4   : > { %v8988_v52 = vmul.u32.u64.low %v8959_v58, %v3126_v8  ;;  %v8989_v51 = vmul.u32.u64.high %v8959_v58, %v3126_v8, %v8988_v52  ;;  %v8992_v6 = vsub.s32 32, %v1964_v10  ;;  %v8998_v7 = vshrl.u32 %v1962_v42, 5 }
 0x1a5   : > { %v8995_v44 = vmul.u32.u64.low %v8959_v58, %v3130_v34  ;;  %v8996_v45 = vmul.u32.u64.high %v8959_v58, %v3130_v34, %v8995_v44  ;;  %v9002_v24 = vadd.f32 %v8707_v56, %v8874_v47  ;;  %v1967_v59 = vshll.u32 %v13339_v53, %v1964_v10 }
 0x1a6   : > { %v1968_v12 = vshrl.u32 %v13340_v11, %v8992_v6  ;;  %v1970_v21 = vshll.u32 %v13340_v11, %v1964_v10  ;;  %v1971_v25 = vshrl.u32 %v13341_v4, %v8992_v6  ;;  %v1973_v37 = vshll.u32 %v13341_v4, %v1964_v10 }
 0x1a7   : > { %13415 = vst [vmem:[#allocation109_spill] sm:$0xff] %v9002_v24  ;;  %v1974_v27 = vshrl.u32 %v13342_v26, %v8992_v6  ;;  %v1976_v54 = vshll.u32 %v13342_v26, %v1964_v10  ;;  %v1977_v47 = vshrl.u32 %v13343_v61, %v8992_v6  ;;  %v1979_v3 = vshll.u32 %v13343_v61, %v1964_v10 }
 0x1a8   : > { %v9016_v39 = vor.u32 %v1968_v12, %v1967_v59  ;;  %v9018_v62 = vor.u32 %v1971_v25, %v1970_v21  ;;  %v1980_v17 = vshrl.u32 %v13344_v35, %v8992_v6  ;;  %v3119_v42 = vsel %vm3115_vm0, %v3099_v60, %v3102_v16 }
 0x1a9   : > { %v3121_v8 = vsel %vm3117_vm3, %v3105_v20, %v3120_v36  ;;  %v1975_v34 = vor.u32 %v1974_v27, %v1973_v37  ;;  %v1978_v44 = vor.u32 %v1977_v47, %v1976_v54  ;;  %vm1982_vm7 = vcmp.lt.s32.totalorder %v8998_v7, 1  ;;  %v447_v27 = vpop.permute.xlu1 %446 }
 0x1aa   : > { %v1981_v59 = vor.u32 %v1980_v17, %v1979_v3  ;;  %vm1985_vm15 = vcmp.lt.s32.totalorder %v8998_v7, 4  ;;  %vm4246_vm6 = vcmp.eq.s32.totalorder %v7836_v28, %v4152_v31  ;;  %vm1984_vm1 = vcmp.lt.s32.totalorder %v8998_v7, 3 }
 0x1ab   : > { %v1990_v16 = vsel %vm1982_vm7, %v9016_v39, %v9018_v62  ;;  %v1991_v20 = vsel %vm1985_vm15, %v1978_v44, 920167782  ;;  %v3498_v10 = vand.u32 2139095040, %v9002_v24  ;;  %v3122_v60 = vsel %vm3116_vm8, %v3119_v42, %v3121_v8 }
 0x1ac   : > { %vm1983_vm0 = vcmp.lt.s32.totalorder %v8998_v7, 2  ;;  %v1992_v36 = vsel %vm1984_vm1, %v1975_v34, %v1991_v20  ;;  %v1994_v12 = vsel %vm1982_vm7, %v9018_v62, %v1975_v34  ;;  %v3141_v21 = vadd.s32 1, %v8989_v51 }
 0x1ad   : > { %v1993_v25 = vsel %vm1983_vm0, %v1990_v16, %v1992_v36  ;;  %v1995_v37 = vsel %vm1985_vm15, %v1981_v59, 1326507024  ;;  %v6395_v55 = vsel %vm4246_vm6, 1.0, %v13354_v5  ;;  %vm13227_vm3 = vcmp.lt.s32.totalorder %v8869_v32, 4 }
 0x1ae   : > { %v2743_v54 = vsub.s32 32, %v8957_v15  ;;  %v1810_v47 = vsub.s32 0, %v8979_v30  ;;  %vm3140_vm8 = vc.u32 %v8996_v45, %v8988_v52  ;;  %v1996_v31 = vsel %vm1984_vm1, %v1978_v44, %v1995_v37 }
 0x1af   : > { %v2748_v3 = vadd.s32 127, %v2747_v49  ;;  %v3138_v17 = vmul.u32 %v8959_v58, %v3122_v60  ;;  %v1997_v41 = vsel %vm1983_vm0, %v1994_v12, %v1996_v31  ;;  %v3499_v42 = vshrl.u32 %v3498_v10, 23 }
 0x1b0   : > { %v9066_v8 = vmul.u32.u64.low %v8983_v18, %v1993_v25  ;;  %v9067_v59 = vmul.u32.u64.high %v8983_v18, %v1993_v25, %v9066_v8  ;;  %v4342_v16 = vpack.c.bf16 %v8493_v22, %v6395_v55  ;;  %v554_v20 = vmul.f32 %v8610_v40, %v447_v27 }
 0x1b1   : > { %v3142_v36 = vsel %vm3140_vm8, %v3141_v21, %v8989_v51  ;;  %v9074_v44 = vmul.u32.u64.low %v8983_v18, %v1997_v41  ;;  %v9075_v49 = vmul.u32.u64.high %v8983_v18, %v1997_v41, %v9074_v44  ;;  %v6371_v58 = vadd.s32 4294967169, %v3499_v42 }
 0x1b2   : > { %v2339_v60 = vand.u32 2147483647, %v8963_v1  ;;  %v9080_v10 = vor.u32 %v8886_v33, %v8878_v38  ;;  %v1569_v12 = vor.u32 %v8898_v29, %v8890_v23  ;;  %v6304_v22 = vmin.u32 %v1810_v47, %v8979_v30  ;;  %6503 = vmatmul.mubr.msk.bf16.vlgmr.msra.gmra.mrb[32].mxu1 %vm4671_vm4, %v4342_v16 }
 0x1b3   : > { %v2341_v51 = vcvt.s32.f32 %v8961_v2  ;;  %v1721_v21 = vand.u32 2147483647, %v8973_v50  ;;  %v1987_v25 = vsel %vm1985_vm15, %v1975_v34, 2102212464  ;;  %v3505_v37 = vadd.s32 1, %v6371_v58  ;;  %5019 = vmatprep.mubr.bf16.mxu1 %v13382_v19 }
 0x1b4   : > { %13416 = vst [vmem:[#allocation110_spill] sm:$0xff] %v9080_v10  ;;  %v2744_v38 = vshll.u32 %v8825_v14, %v8957_v15  ;;  %v2745_v33 = vshrl.u32 %v8967_v48, %v2743_v54  ;;  %v9094_v23 = vadd.s32 %v3142_v36, %v3138_v17  ;;  %v1966_v29 = vshrl.u32 %v13339_v53, %v8992_v6 }
 0x1b5   : > { %v1723_v2 = vcvt.s32.f32 %v8971_v13  ;;  %v2749_v1 = vshll.u32 %v2748_v3, 23  ;;  %vm3506_vm6 = vcmp.gt.s32.totalorder %v3505_v37, 0  ;;  %v9100_v50 = vadd.f32 %v8707_v56, %v554_v20 }
 0x1b6   : > { %v1812_v34 = vclz %v6304_v22  ;;  %v1986_v55 = vsel %vm1982_vm7, %v1966_v29, %v9016_v39  ;;  %v1988_v14 = vsel %vm1984_vm1, %v9018_v62, %v1987_v25  ;;  %v13178_v15 = vand.u32 2147483647, %v9002_v24 }
 0x1b7   : > { %13417 = vst [vmem:[#allocation111_spill] sm:$0xff] %v9100_v50  ;;  %v9109_v48 = vmul.f32 %v2341_v51, %v2339_v60  ;;  %v9114_v13 = vsel %vm13227_vm3, %v9080_v10, 920167782  ;;  %v9118_v6 = vsel %vm13227_vm3, %v1569_v12, 1326507024  ;;  %v3507_v27 = vsel %vm3506_vm6, %v3505_v37, 0 }
 0x1b8   : > { %13418 = vst [vmem:[#allocation112_spill] sm:$0xff] %v9114_v13  ;;  %13419 = vst [vmem:[#allocation113_spill] sm:$0xff] %v9118_v6  ;;  %v9120_v54 = vmul.f32 %v1723_v2, %v1721_v21  ;;  %v9122_v39 = vor.u32 %v2745_v33, %v2744_v38  ;;  %v3144_v62 = vadd.s32 536870912, %v9094_v23  ;;  %v2008_v47 = vadd.s32 1, %v9067_v59 }
 0x1b9   : > { %v1989_v31 = vsel %vm1983_vm0, %v1986_v55, %v1988_v14  ;;  %vm2007_vm7 = vc.u32 %v9075_v49, %v9066_v8  ;;  %v3509_v3 = vand.u32 31, %v3507_v27  ;;  %v2056_v17 = vand.u32 2139095040, %v9100_v50 }
 0x1ba   : > { %v9131_v41 = vor.u32 4788187, %v2749_v1  ;;  %v6305_v42 = vadd.s32 4294967294, %v1812_v34  ;;  %v3502_v16 = vand.u32 8388607, %v13178_v15  ;;  %v9135_v20 = vshrl.u32 %v3507_v27, 5 }
 0x1bb   : > { %v3510_v36 = vsub.s32 32, %v3509_v3  ;;  %v3512_v44 = vshll.u32 %v13339_v53, %v3509_v3  ;;  %v3515_v7 = vshll.u32 %v13340_v11, %v3509_v3  ;;  %v3518_v58 = vshll.u32 %v13341_v4, %v3509_v3 }
 0x1bc   : > { %v9140_v60 = vshrl.u32 %v3144_v62, 30  ;;  %v2005_v12 = vmul.u32 %v8983_v18, %v1989_v31  ;;  %v2009_v22 = vsel %vm2007_vm7, %v2008_v47, %v9067_v59  ;;  %v3521_v51 = vshll.u32 %v13342_v26, %v3509_v3  ;;  %v452_v62 = vpop.permute.xlu1 %451 }
 0x1bd   : > { %v3513_v21 = vshrl.u32 %v13340_v11, %v3510_v36  ;;  %v3516_v25 = vshrl.u32 %v13341_v4, %v3510_v36  ;;  %v3519_v37 = vshrl.u32 %v13342_v26, %v3510_v36  ;;  %v2057_v38 = vshrl.u32 %v2056_v17, 23 }
 0x1be   : > { %13420 = vst [vmem:[#allocation114_spill] sm:$0xff] %v9140_v60  ;;  %v3503_v33 = vor.u32 8388608, %v3502_v16  ;;  %v3522_v29 = vshrl.u32 %v13343_v61, %v3510_v36  ;;  %v3524_v2 = vshll.u32 %v13343_v61, %v3509_v3  ;;  %vm3527_vm15 = vcmp.lt.s32.totalorder %v9135_v20, 1 }
 0x1bf   : > { %v3514_v1 = vor.u32 %v3513_v21, %v3512_v44  ;;  %v3517_v18 = vor.u32 %v3516_v25, %v3515_v7  ;;  %v3520_v34 = vor.u32 %v3519_v37, %v3518_v58  ;;  %v3525_v59 = vshrl.u32 %v13344_v35, %v3510_v36 }
 0x1c0   : > { %vm6306_vm1 = vcmp.lt.s32.totalorder %v6305_v42, 0  ;;  %v3146_v55 = vshll.u32 %v9140_v60, 30  ;;  %v9153_v14 = vadd.s32 %v2009_v22, %v2005_v12  ;;  %v3523_v27 = vor.u32 %v3522_v29, %v3521_v51 }
 0x1c1   : > { %v3526_v47 = vor.u32 %v3525_v59, %v3524_v2  ;;  %vm3529_vm0 = vcmp.lt.s32.totalorder %v9135_v20, 3  ;;  %vm3530_vm8 = vcmp.lt.s32.totalorder %v9135_v20, 4  ;;  %v6315_v31 = vadd.s32 4294967169, %v2057_v38 }
 0x1c2   : > { %v3511_v3 = vshrl.u32 %v13339_v53, %v3510_v36  ;;  %vm3528_vm6 = vcmp.lt.s32.totalorder %v9135_v20, 2  ;;  %v3535_v17 = vsel %vm3527_vm15, %v3514_v1, %v3517_v18  ;;  %v9161_v16 = vshll.u32 %v3503_v33, 8 }
 0x1c3   : > { %v3536_v44 = vsel %vm3530_vm8, %v3523_v27, 920167782  ;;  %v3539_v7 = vsel %vm3527_vm15, %v3517_v18, %v3520_v34  ;;  %v3540_v58 = vsel %vm3530_vm8, %v3526_v47, 1326507024  ;;  %v555_v12 = vmul.f32 %v8610_v40, %v452_v62 }
 0x1c4   : > { %v2011_v22 = vadd.s32 536870912, %v9153_v14  ;;  %v3532_v51 = vsel %vm3530_vm8, %v3520_v34, 2102212464  ;;  %v3537_v36 = vsel %vm3529_vm0, %v3520_v34, %v3536_v44  ;;  %v13179_v21 = vand.u32 2147483647, %v9100_v50 }
 0x1c5   : > { %v9171_v25 = vsub.s32 %v9094_v23, %v3146_v55  ;;  %v3538_v37 = vsel %vm3528_vm6, %v3535_v17, %v3537_v36  ;;  %v3541_v38 = vsel %vm3529_vm0, %v3523_v27, %v3540_v58  ;;  %v2063_v33 = vadd.s32 1, %v6315_v31 }
 0x1c6   : > { %v3531_v29 = vsel %vm3527_vm15, %v3511_v3, %v3514_v1  ;;  %v3542_v2 = vsel %vm3528_vm6, %v3539_v7, %v3541_v38  ;;  %v9182_v34 = vmul.u32.u64.low %v9161_v16, %v3538_v37  ;;  %v9183_v59 = vmul.u32.u64.high %v9161_v16, %v3538_v37, %v9182_v34 }
 0x1c7   : > { %v3533_v23 = vsel %vm3529_vm0, %v3517_v18, %v3532_v51  ;;  %v9189_v55 = vmul.u32.u64.low %v9161_v16, %v3542_v2  ;;  %v9190_v62 = vmul.u32.u64.high %v9161_v16, %v3542_v2, %v9189_v55  ;;  %vm2064_vm7 = vcmp.gt.s32.totalorder %v2063_v33, 0 }
 0x1c8   : > { %v9193_v27 = vsel %vm6306_vm1, 0, %v6305_v42  ;;  %v9195_v1 = vshrl.u32 %v2011_v22, 30  ;;  %v2060_v47 = vand.u32 8388607, %v13179_v21  ;;  %v2065_v31 = vsel %vm2064_vm7, %v2063_v33, 0  ;;  %v462_v21 = vpop.permute.xlu1 %461 }
 0x1c9   : > { %v9203_v18 = vadd.s32 %v8791_v43, %v8798_v63  ;;  %v2067_v44 = vand.u32 31, %v2065_v31  ;;  %v2753_v42 = vcvt.s32.f32 %v9122_v39  ;;  %v3534_v58 = vsel %vm3528_vm6, %v3531_v29, %v3533_v23 }
 0x1ca   : > { %13421 = vst [vmem:[#allocation115_spill] sm:$0xff] %v9195_v1  ;;  %v9210_v22 = vadd.f32 %v8707_v56, %v555_v12  ;;  %v3149_v36 = vsub.s32 0, %v9171_v25  ;;  %v3553_v37 = vadd.s32 1, %v9183_v59  ;;  %v2013_v43 = vshll.u32 %v9195_v1, 30 }
 0x1cb   : > { %v2068_v38 = vsub.s32 32, %v2067_v44  ;;  %vm3552_vm15 = vc.u32 %v9190_v62, %v9182_v34  ;;  %v2061_v39 = vor.u32 8388608, %v2060_v47  ;;  %v3550_v20 = vmul.u32 %v9161_v16, %v3534_v58 }
 0x1cc   : > { %13422 = vst [vmem:[#allocation116_spill] sm:$0xff] %v9210_v22  ;;  %v2070_v12 = vshll.u32 %v13339_v53, %v2067_v44  ;;  %v2073_v2 = vshll.u32 %v13340_v11, %v2067_v44  ;;  %v2076_v23 = vshll.u32 %v13341_v4, %v2067_v44  ;;  %v2159_v15 = vand.u32 2139095040, %v9210_v22 }
 0x1cd   : > { %v2071_v33 = vshrl.u32 %v13340_v11, %v2068_v38  ;;  %v2074_v29 = vshrl.u32 %v13341_v4, %v2068_v38  ;;  %v2077_v55 = vshrl.u32 %v13342_v26, %v2068_v38  ;;  %v6356_v17 = vmin.u32 %v3149_v36, %v9171_v25 }
 0x1ce   : > { %v3554_v47 = vsel %vm3552_vm15, %v3553_v37, %v9183_v59  ;;  %v2066_v16 = vshrl.u32 %v2065_v31, 5  ;;  %v2079_v51 = vshll.u32 %v13342_v26, %v2067_v44  ;;  %v2080_v7 = vshrl.u32 %v13343_v61, %v2068_v38 }
 0x1cf   : > { %v2072_v58 = vor.u32 %v2071_v33, %v2070_v12  ;;  %v2075_v3 = vor.u32 %v2074_v29, %v2073_v2  ;;  %v2078_v63 = vor.u32 %v2077_v55, %v2076_v23  ;;  %v9232_v60 = vsub.s32 %v9153_v14, %v2013_v43 }
 0x1d0   : > { %v2082_v1 = vshll.u32 %v13343_v61, %v2067_v44  ;;  %v2083_v9 = vshrl.u32 %v13344_v35, %v2068_v38  ;;  %v557_v13 = vmul.f32 %v8610_v40, %v462_v21  ;;  %v9237_v36 = vadd.s32 %v3554_v47, %v3550_v20  ;;  %v4158_v21 = vpop.permute.xlu1 %4157 }
 0x1d1   : > { %v2081_v59 = vor.u32 %v2080_v7, %v2079_v51  ;;  %v2101_v31 = vshll.u32 %v2061_v39, 8  ;;  %v2160_v37 = vshrl.u32 %v2159_v15, 23  ;;  %v2069_v12 = vshrl.u32 %v13339_v53, %v2068_v38  ;;  %v13423_v7 = vld [vmem:[#allocation80_spill] sm:$0xff] }
 0x1d2   : > { %v2084_v33 = vor.u32 %v2083_v9, %v2082_v1  ;;  %vm2085_vm1 = vcmp.lt.s32.totalorder %v2066_v16, 1  ;;  %vm2088_vm0 = vcmp.lt.s32.totalorder %v2066_v16, 4  ;;  %vm2087_vm8 = vcmp.lt.s32.totalorder %v2066_v16, 3 }
 0x1d3   : > { %v2090_v29 = vsel %vm2088_vm0, %v2078_v63, 2102212464  ;;  %v2093_v14 = vsel %vm2085_vm1, %v2072_v58, %v2075_v3  ;;  %v2094_v43 = vsel %vm2088_vm0, %v2081_v59, 920167782  ;;  %v2016_v44 = vsub.s32 0, %v9232_v60 }
 0x1d4   : > { %vm2086_vm6 = vcmp.lt.s32.totalorder %v2066_v16, 2  ;;  %v2095_v2 = vsel %vm2087_vm8, %v2078_v63, %v2094_v43  ;;  %v2097_v40 = vsel %vm2085_vm1, %v2075_v3, %v2078_v63  ;;  %vm13214_vm7 = vcmp.lt.s32.totalorder %v8196_v0, 0 }
 0x1d5   : > { %vm13218_vm15 = vcmp.lt.s32.totalorder %v13423_v7, 0  ;;  %v3556_v15 = vadd.s32 536870912, %v9237_v36  ;;  %v2089_v9 = vsel %vm2085_vm1, %v2069_v12, %v2072_v58  ;;  %v2096_v1 = vsel %vm2086_vm6, %v2093_v14, %v2095_v2 }
 0x1d6   : > { %v2098_v51 = vsel %vm2088_vm0, %v2084_v33, 1326507024  ;;  %v2091_v38 = vsel %vm2087_vm8, %v2075_v3, %v2090_v29  ;;  %v9248_v20 = vmul.u32.u64.low %v2101_v31, %v2096_v1  ;;  %v9249_v23 = vmul.u32.u64.high %v2101_v31, %v2096_v1, %v9248_v20 }
 0x1d7   : > { %v2099_v39 = vsel %vm2087_vm8, %v2081_v59, %v2098_v51  ;;  %v3151_v63 = vclz %v6356_v17  ;;  %v6319_v47 = vadd.s32 4294967169, %v2160_v37  ;;  %vm4248_vm11 = vcmp.eq.s32.totalorder %v7836_v28, %v4158_v21 }
 0x1d8   : > { %v2100_v55 = vsel %vm2086_vm6, %v2097_v40, %v2099_v39  ;;  %v13424_v43 = vand.u32 2147483647, %v9131_v41  ;;  %v6312_v12 = vmin.u32 %v2016_v44, %v9232_v60  ;;  %v1817_v59 = vshll.u32 %v8979_v30, %v9193_v27 }
 0x1d9   : > { %v9259_v33 = vmul.u32.u64.low %v2101_v31, %v2100_v55  ;;  %v9260_v3 = vmul.u32.u64.high %v2101_v31, %v2100_v55, %v9259_v33  ;;  %v9264_v29 = vshrl.u32 %v3556_v15, 30  ;;  %v2092_v17 = vsel %vm2086_vm6, %v2089_v9, %v2091_v38  ;;  %v13429_v15 = vld [vmem:[#allocation97_spill] sm:$0xff] }
 0x1da   : > { %v9256_v58 = vmul.f32 %v2753_v42, %v13424_v43  ;;  %v2166_v14 = vadd.s32 1, %v6319_v47  ;;  %v13426_v37 = vsub.s32 32, %v9193_v27  ;;  %v2111_v41 = vadd.s32 1, %v9249_v23 }
 0x1db   : > { %13425 = vst [vmem:[#allocation117_spill] sm:$0xff] %v9264_v29  ;;  %v9272_v42 = vadd.f32 %v8707_v56, %v557_v13  ;;  %v6397_v44 = vsel %vm4248_vm11, 1.0, %v13354_v5  ;;  %v13428_v40 = vsub.s32 4294967266, %v9193_v27  ;;  %v6357_v30 = vadd.s32 4294967294, %v3151_v63 }
 0x1dc   : > { %v1818_v2 = vshrl.u32 %v9203_v18, %v13426_v37  ;;  %vm2167_vm1 = vcmp.gt.s32.totalorder %v2166_v14, 0  ;;  %v4343_v16 = vpack.c.bf16 %v13429_v15, %v6397_v44  ;;  %v2018_v9 = vclz %v6312_v12 }
 0x1dd   : > { %13427 = vst [vmem:[#allocation118_spill] sm:$0xff] %v9272_v42  ;;  %v1821_v21 = vadd.s32 127, %v13428_v40  ;;  %v2108_v1 = vmul.u32 %v2101_v31, %v2092_v17  ;;  %vm2110_vm0 = vc.u32 %v9260_v3, %v9248_v20  ;;  %v2168_v18 = vsel %vm2167_vm1, %v2166_v14, 0 }
 0x1de   : > { %v3558_v51 = vshll.u32 %v9264_v29, 30  ;;  %v2112_v56 = vsel %vm2110_vm0, %v2111_v41, %v9249_v23  ;;  %v13187_v13 = vand.u32 2147483647, %v9210_v22  ;;  %v2170_v38 = vand.u32 31, %v2168_v18  ;;  %6504 = vmatmul.mubr.msk.bf16.gmra.mrb[36].mxu1 %vm4671_vm4, %v4343_v16 }
 0x1df   : > { %v13430_v27 = vxor.u32 2147483648, %v9109_v48  ;;  %v13432_v31 = vxor.u32 2147483648, %v9120_v54  ;;  %v2113_v23 = vadd.s32 %v2112_v56, %v2108_v1  ;;  %v2365_v55 = vand.u32 2139095040, %v9272_v42  ;;  %5029 = vmatprep.mubr.bf16.mxu1 %v13382_v19 }
 0x1e0   : > { %v9301_v43 = vor.u32 %v1818_v2, %v1817_v59  ;;  %v2171_v12 = vsub.s32 32, %v2170_v38  ;;  %v1822_v33 = vshll.u32 %v1821_v21, 23  ;;  %vm6358_vm11 = vcmp.lt.s32.totalorder %v6357_v30, 0 }
 0x1e1   : > { %v9289_v39 = vsel %vm13214_vm7, %v13430_v27, %v9109_v48  ;;  %v9296_v63 = vsel %vm13218_vm15, %v13432_v31, %v9120_v54  ;;  %v9305_v48 = vadd.s32 %v8988_v52, %v8996_v45  ;;  %v6313_v17 = vadd.s32 4294967294, %v2018_v9 }
 0x1e2   : > { %13431 = vst [vmem:[#allocation97_spill] sm:$0xff] %v9289_v39  ;;  %13433 = vst [vmem:[#allocation119_spill] sm:$0xff] %v9296_v63  ;;  %v2114_v14 = vadd.s32 536870912, %v2113_v23  ;;  %v9308_v54 = vsub.s32 %v9237_v36, %v3558_v51  ;;  %v2163_v37 = vand.u32 8388607, %v13187_v13  ;;  %v2174_v41 = vshrl.u32 %v13340_v11, %v2171_v12 }
 0x1e3   : > { %v2177_v59 = vshrl.u32 %v13341_v4, %v2171_v12  ;;  %v2173_v2 = vshll.u32 %v13339_v53, %v2170_v38  ;;  %v2176_v52 = vshll.u32 %v13340_v11, %v2170_v38  ;;  %v2180_v45 = vshrl.u32 %v13342_v26, %v2171_v12 }
 0x1e4   : > { %v2366_v44 = vshrl.u32 %v2365_v55, 23  ;;  %v2169_v40 = vshrl.u32 %v2168_v18, 5  ;;  %v2179_v21 = vshll.u32 %v13341_v4, %v2170_v38  ;;  %v2182_v36 = vshll.u32 %v13342_v26, %v2170_v38 }
 0x1e5   : > { %v2183_v15 = vshrl.u32 %v13343_v61, %v2171_v12  ;;  %v9320_v16 = vsel %vm6358_vm11, 0, %v6357_v30  ;;  %v9322_v9 = vshrl.u32 %v2114_v14, 30  ;;  %v2175_v1 = vor.u32 %v2174_v41, %v2173_v2 }
 0x1e6   : > { %v2178_v51 = vor.u32 %v2177_v59, %v2176_v52  ;;  %v2181_v56 = vor.u32 %v2180_v45, %v2179_v21  ;;  %v2185_v31 = vshll.u32 %v13343_v61, %v2170_v38  ;;  %v2186_v13 = vshrl.u32 %v13344_v35, %v2171_v12 }
 0x1e7   : > { %13434 = vst [vmem:[#allocation120_spill] sm:$0xff] %v9322_v9  ;;  %v2184_v27 = vor.u32 %v2183_v15, %v2182_v36  ;;  %v9326_v55 = vor.u32 4788187, %v1822_v33  ;;  %v3155_v18 = vsub.s32 32, %v9320_v16  ;;  %vm6314_vm8 = vcmp.lt.s32.totalorder %v6313_v17, 0 }
 0x1e8   : > { %v3561_v47 = vsub.s32 0, %v9308_v54  ;;  %v2164_v29 = vor.u32 8388608, %v2163_v37  ;;  %v2187_v30 = vor.u32 %v2186_v13, %v2185_v31  ;;  %vm2188_vm6 = vcmp.lt.s32.totalorder %v2169_v40, 1 }
 0x1e9   : > { %v6327_v14 = vadd.s32 4294967169, %v2366_v44  ;;  %v2116_v41 = vshll.u32 %v9322_v9, 30  ;;  %vm2190_vm1 = vcmp.lt.s32.totalorder %v2169_v40, 3  ;;  %vm2191_vm0 = vcmp.lt.s32.totalorder %v2169_v40, 4 }
 0x1ea   : > { %v2196_v59 = vsel %vm2188_vm6, %v2175_v1, %v2178_v51  ;;  %v2193_v38 = vsel %vm2191_vm0, %v2181_v56, 2102212464  ;;  %v2197_v2 = vsel %vm2191_vm0, %v2184_v27, 920167782  ;;  %v2200_v33 = vsel %vm2188_vm6, %v2178_v51, %v2181_v56 }
 0x1eb   : > { %v2201_v52 = vsel %vm2191_vm0, %v2187_v30, 1326507024  ;;  %v2172_v45 = vshrl.u32 %v13339_v53, %v2171_v12  ;;  %vm2189_vm11 = vcmp.lt.s32.totalorder %v2169_v40, 2  ;;  %v2198_v21 = vsel %vm2190_vm1, %v2181_v56, %v2197_v2 }
 0x1ec   : > { %v13194_v13 = vand.u32 2147483647, %v9272_v42  ;;  %v2199_v37 = vsel %vm2189_vm11, %v2196_v59, %v2198_v21  ;;  %v2202_v44 = vsel %vm2190_vm1, %v2184_v27, %v2201_v52  ;;  %v2204_v36 = vshll.u32 %v2164_v29, 8 }
 0x1ed   : > { %v2372_v15 = vadd.s32 1, %v6327_v14  ;;  %v9338_v31 = vsub.s32 %v2113_v23, %v2116_v41  ;;  %v2192_v39 = vsel %vm2188_vm6, %v2172_v45, %v2175_v1  ;;  %v2194_v0 = vsel %vm2190_vm1, %v2178_v51, %v2193_v38 }
 0x1ee   : > { %v2203_v30 = vsel %vm2189_vm11, %v2200_v33, %v2202_v44  ;;  %v9346_v56 = vmul.u32.u64.low %v2204_v36, %v2199_v37  ;;  %v9347_v2 = vmul.u32.u64.high %v2204_v36, %v2199_v37, %v9346_v56  ;;  %v3159_v29 = vsub.s32 4294967266, %v9320_v16 }
 0x1ef   : > { %v9343_v12 = vmul.u32.u64.low %v2204_v36, %v2203_v30  ;;  %v9344_v9 = vmul.u32.u64.high %v2204_v36, %v2203_v30, %v9343_v12  ;;  %v9353_v23 = vsel %vm6314_vm8, 0, %v6313_v17  ;;  %vm2373_vm0 = vcmp.gt.s32.totalorder %v2372_v15, 0  ;;  %v467_v17 = vpop.permute.xlu1 %466 }
 0x1f0   : > { %v6372_v1 = vmin.u32 %v3561_v47, %v9308_v54  ;;  %v2195_v51 = vsel %vm2189_vm11, %v2192_v39, %v2194_v0  ;;  %v2369_v27 = vand.u32 8388607, %v13194_v13  ;;  %v2374_v14 = vsel %vm2373_vm0, %v2372_v15, 0 }
 0x1f1   : > { %v9362_v38 = vadd.s32 %v9066_v8, %v9075_v49  ;;  %v2119_v33 = vsub.s32 0, %v9338_v31  ;;  %v2376_v52 = vand.u32 31, %v2374_v14  ;;  %v9368_v47 = vshrl.u32 %v9305_v48, %v3155_v18  ;;  %v9380_v48 = vld [vmem:[%s13030_s2] ss:$0 sm:$0xff] }
 0x1f2   : > { %vm2213_vm8 = vc.u32 %v9344_v9, %v9346_v56  ;;  %v2214_v0 = vadd.s32 1, %v9347_v2  ;;  %v9373_v39 = vadd.s32 127, %v3159_v29  ;;  %v2211_v49 = vmul.u32 %v2204_v36, %v2195_v51 }
 0x1f3   : > { %v2377_v40 = vsub.s32 32, %v2376_v52  ;;  %v3563_v21 = vclz %v6372_v1  ;;  %v2370_v44 = vor.u32 8388608, %v2369_v27  ;;  %v558_v18 = vmul.f32 %v9380_v48, %v467_v17 }
 0x1f4   : > { %v2215_v37 = vsel %vm2213_vm8, %v2214_v0, %v9347_v2  ;;  %v6316_v15 = vmin.u32 %v2119_v33, %v9338_v31  ;;  %v2379_v12 = vshll.u32 %v13339_v53, %v2376_v52  ;;  %v2382_v29 = vshll.u32 %v13340_v11, %v2376_v52 }
 0x1f5   : > { %v2216_v30 = vadd.s32 %v2215_v37, %v2211_v49  ;;  %v2380_v36 = vshrl.u32 %v13340_v11, %v2377_v40  ;;  %v2383_v1 = vshrl.u32 %v13341_v4, %v2377_v40  ;;  %v2385_v2 = vshll.u32 %v13341_v4, %v2376_v52 }
 0x1f6   : > { %v2386_v51 = vshrl.u32 %v13342_v26, %v2377_v40  ;;  %v2375_v0 = vshrl.u32 %v2374_v14, 5  ;;  %v2388_v13 = vshll.u32 %v13342_v26, %v2376_v52  ;;  %v2389_v17 = vshrl.u32 %v13343_v61, %v2377_v40  ;;  %v9400_v14 = vld [vmem:[%s13031_s3] ss:$0 sm:$0xff] }
 0x1f7   : > { %v2217_v27 = vadd.s32 536870912, %v2216_v30  ;;  %v2026_v33 = vsub.s32 4294967266, %v9353_v23  ;;  %v2381_v49 = vor.u32 %v2380_v36, %v2379_v12  ;;  %v2384_v37 = vor.u32 %v2383_v1, %v2382_v29 }
 0x1f8   : > { %v2387_v59 = vor.u32 %v2386_v51, %v2385_v2  ;;  %v6373_v41 = vadd.s32 4294967294, %v3563_v21  ;;  %v2121_v8 = vclz %v6316_v15  ;;  %v2390_v63 = vor.u32 %v2389_v17, %v2388_v13  ;;  %v472_v21 = vpop.permute.xlu1 %471 }
 0x1f9   : > { %v9393_v45 = vshrl.u32 %v2217_v27, 30  ;;  %v2391_v7 = vshll.u32 %v13343_v61, %v2376_v52  ;;  %v2392_v10 = vshrl.u32 %v13344_v35, %v2377_v40  ;;  %v2410_v6 = vshll.u32 %v2370_v44, 8 }
 0x1fa   : > { %v9403_v32 = vadd.f32 %v9400_v14, %v558_v18  ;;  %vm2394_vm6 = vcmp.lt.s32.totalorder %v2375_v0, 1  ;;  %vm2396_vm1 = vcmp.lt.s32.totalorder %v2375_v0, 3  ;;  %vm2397_vm11 = vcmp.lt.s32.totalorder %v2375_v0, 4 }
 0x1fb   : > { %13435 = vst [vmem:[#allocation121_spill] sm:$0xff] %v9393_v45  ;;  %v2219_v12 = vshll.u32 %v9393_v45, 30  ;;  %v2393_v13 = vor.u32 %v2392_v10, %v2391_v7  ;;  %v2399_v15 = vsel %vm2397_vm11, %v2387_v59, 2102212464  ;;  %v2402_v52 = vsel %vm2394_vm6, %v2381_v49, %v2384_v37 }
 0x1fc   : > { %13436 = vst [vmem:[#allocation122_spill] sm:$0xff] %v9403_v32  ;;  %v2403_v29 = vsel %vm2397_vm11, %v2390_v63, 920167782  ;;  %v2378_v36 = vshrl.u32 %v13339_v53, %v2377_v40  ;;  %vm2395_vm0 = vcmp.lt.s32.totalorder %v2375_v0, 2  ;;  %v2406_v2 = vsel %vm2394_vm6, %v2384_v37, %v2387_v59 }
 0x1fd   : > { %v9407_v44 = vsub.s32 %v2216_v30, %v2219_v12  ;;  %v2404_v1 = vsel %vm2396_vm1, %v2387_v59, %v2403_v29  ;;  %v2407_v51 = vsel %vm2397_vm11, %v2393_v13, 1326507024  ;;  %v559_v27 = vmul.f32 %v9380_v48, %v472_v21 }
 0x1fe   : > { %v2405_v18 = vsel %vm2395_vm0, %v2402_v52, %v2404_v1  ;;  %v2398_v7 = vsel %vm2394_vm6, %v2378_v36, %v2381_v49  ;;  %v2400_v17 = vsel %vm2396_vm1, %v2384_v37, %v2399_v15  ;;  %v2408_v30 = vsel %vm2396_vm1, %v2390_v63, %v2407_v51 }
 0x1ff   : > { %v2222_v10 = vsub.s32 0, %v9407_v44  ;;  %v2027_v12 = vadd.s32 127, %v2026_v33  ;;  %v2409_v40 = vsel %vm2395_vm0, %v2406_v2, %v2408_v30  ;;  %vm6374_vm8 = vcmp.lt.s32.totalorder %v6373_v41, 0 }
 0x200   : > { %v9419_v45 = vmul.u32.u64.low %v2410_v6, %v2405_v18  ;;  %v9420_v29 = vmul.u32.u64.high %v2410_v6, %v2405_v18, %v9419_v45  ;;  %v6317_v59 = vadd.s32 4294967294, %v2121_v8  ;;  %v2401_v49 = vsel %vm2395_vm0, %v2398_v7, %v2400_v17 }
 0x201   : > { %v9423_v13 = vmul.u32.u64.low %v2410_v6, %v2409_v40  ;;  %v9424_v52 = vmul.u32.u64.high %v2410_v6, %v2409_v40, %v9423_v13  ;;  %v6320_v21 = vmin.u32 %v2222_v10, %v9407_v44  ;;  %v2468_v37 = vand.u32 2139095040, %v9403_v32 }
 0x202   : > { %v9430_v63 = vadd.f32 %v9400_v14, %v559_v27  ;;  %v13438_v33 = vshll.u32 %v9171_v25, %v9320_v16  ;;  %v3161_v8 = vshll.u32 %v9373_v39, 23  ;;  %v2023_v36 = vshll.u32 %v9232_v60, %v9353_v23 }
 0x203   : > { %v13439_v1 = vsub.s32 32, %v9353_v23  ;;  %v2028_v18 = vshll.u32 %v2027_v12, 23  ;;  %v9444_v2 = vsel %vm6374_vm8, 0, %v6373_v41  ;;  %v2420_v51 = vadd.s32 1, %v9420_v29 }
 0x204   : > { %13437 = vst [vmem:[#allocation123_spill] sm:$0xff] %v9430_v63  ;;  %v9436_v15 = vor.u32 %v9368_v47, %v13438_v33  ;;  %v2469_v27 = vshrl.u32 %v2468_v37, 23  ;;  %vm6318_vm6 = vcmp.lt.s32.totalorder %v6317_v59, 0  ;;  %v2417_v25 = vmul.u32 %v2410_v6, %v2401_v49 }
 0x205   : > { %v2024_v0 = vshrl.u32 %v9362_v38, %v13439_v1  ;;  %vm2419_vm1 = vc.u32 %v9424_v52, %v9419_v45  ;;  %v13201_v16 = vand.u32 2147483647, %v9403_v32  ;;  %v2224_v47 = vclz %v6320_v21 }
 0x206   : > { %v2421_v60 = vsel %vm2419_vm1, %v2420_v51, %v9420_v29  ;;  %v6331_v39 = vadd.s32 4294967169, %v2469_v27  ;;  %v2571_v23 = vand.u32 2139095040, %v9430_v63  ;;  %v13440_v38 = vand.u32 2147483647, %v9326_v55 }
 0x207   : > { %v13441_v41 = vcvt.s32.f32 %v9301_v43  ;;  %v9458_v7 = vor.u32 4788187, %v3161_v8  ;;  %v9460_v6 = vor.u32 %v2024_v0, %v2023_v36  ;;  %v2422_v17 = vadd.s32 %v2421_v60, %v2417_v25 }
 0x208   : > { %v9463_v12 = vor.u32 4788187, %v2028_v18  ;;  %v3551_v40 = vadd.s32 %v9182_v34, %v9190_v62  ;;  %v2475_v29 = vadd.s32 1, %v6331_v39  ;;  %v3567_v13 = vsub.s32 32, %v9444_v2 }
 0x209   : > { %v9456_v10 = vmul.f32 %v13441_v41, %v13440_v38  ;;  %v3571_v55 = vsub.s32 4294967266, %v9444_v2  ;;  %v9470_v43 = vsel %vm6318_vm6, 0, %v6317_v59  ;;  %v2423_v21 = vadd.s32 536870912, %v2422_v17 }
 0x20a   : > { %v6321_v49 = vadd.s32 4294967294, %v2224_v47  ;;  %v2472_v37 = vand.u32 8388607, %v13201_v16  ;;  %vm2476_vm11 = vcmp.gt.s32.totalorder %v2475_v29, 0  ;;  %v2572_v33 = vshrl.u32 %v2571_v23, 23 }
 0x20b   : > { %v9476_v34 = vshrl.u32 %v2423_v21, 30  ;;  %v2477_v62 = vsel %vm2476_vm11, %v2475_v29, 0  ;;  %v9483_v0 = vadd.s32 %v9248_v20, %v9260_v3  ;;  %v9485_v51 = vshrl.u32 %v3551_v40, %v3567_v13  ;;  %v482_v21 = vpop.permute.xlu1 %481 }
 0x20c   : > { %v2479_v18 = vand.u32 31, %v2477_v62  ;;  %v9487_v27 = vadd.s32 127, %v3571_v55  ;;  %v2129_v25 = vsub.s32 4294967266, %v9470_v43  ;;  %vm6322_vm0 = vcmp.lt.s32.totalorder %v6321_v49, 0 }
 0x20d   : > { %13442 = vst [vmem:[#allocation124_spill] sm:$0xff] %v9476_v34  ;;  %v2425_v47 = vshll.u32 %v9476_v34, 30  ;;  %v2473_v60 = vor.u32 8388608, %v2472_v37  ;;  %v6335_v23 = vadd.s32 4294967169, %v2572_v33  ;;  %v2478_v41 = vshrl.u32 %v2477_v62, 5 }
 0x20e   : > { %v2480_v39 = vsub.s32 32, %v2479_v18  ;;  %v2482_v29 = vshll.u32 %v13339_v53, %v2479_v18  ;;  %v2485_v20 = vshll.u32 %v13340_v11, %v2479_v18  ;;  %v2488_v13 = vshll.u32 %v13341_v4, %v2479_v18 }
 0x20f   : > { %v9491_v38 = vsub.s32 %v2422_v17, %v2425_v47  ;;  %v2491_v33 = vshll.u32 %v13342_v26, %v2479_v18  ;;  %v2494_v62 = vshll.u32 %v13343_v61, %v2479_v18  ;;  %v9504_v30 = vadd.s32 127, %v2129_v25 }
 0x210   : > { %v2483_v3 = vshrl.u32 %v13340_v11, %v2480_v39  ;;  %v2486_v40 = vshrl.u32 %v13341_v4, %v2480_v39  ;;  %v2489_v55 = vshrl.u32 %v13342_v26, %v2480_v39  ;;  %v2492_v17 = vshrl.u32 %v13343_v61, %v2480_v39 }
 0x211   : > { %v2428_v37 = vsub.s32 0, %v9491_v38  ;;  %v2495_v1 = vshrl.u32 %v13344_v35, %v2480_v39  ;;  %v561_v34 = vmul.f32 %v9380_v48, %v482_v21  ;;  %v2513_v42 = vshll.u32 %v2473_v60, 8 }
 0x212   : > { %v2484_v47 = vor.u32 %v2483_v3, %v2482_v29  ;;  %v2487_v16 = vor.u32 %v2486_v40, %v2485_v20  ;;  %v2490_v36 = vor.u32 %v2489_v55, %v2488_v13  ;;  %v2493_v59 = vor.u32 %v2492_v17, %v2491_v33 }
 0x213   : > { %v6328_v8 = vmin.u32 %v2428_v37, %v9491_v38  ;;  %v2496_v32 = vor.u32 %v2495_v1, %v2494_v62  ;;  %v13215_v22 = vand.u32 2147483647, %v9430_v63  ;;  %v2578_v50 = vadd.s32 1, %v6335_v23  ;;  %v4164_v23 = vpop.permute.xlu1 %4163 }
 0x214   : > { %v9510_v24 = vsel %vm6322_vm0, 0, %v6321_v49  ;;  %v2481_v18 = vshrl.u32 %v13339_v53, %v2480_v39  ;;  %vm2497_vm8 = vcmp.lt.s32.totalorder %v2478_v41, 1  ;;  %vm2500_vm6 = vcmp.lt.s32.totalorder %v2478_v41, 4 }
 0x215   : > { %vm2499_vm1 = vcmp.lt.s32.totalorder %v2478_v41, 3  ;;  %v2502_v25 = vsel %vm2500_vm6, %v2490_v36, 2102212464  ;;  %v2505_v29 = vsel %vm2497_vm8, %v2484_v47, %v2487_v16  ;;  %v2506_v20 = vsel %vm2500_vm6, %v2493_v59, 920167782 }
 0x216   : > { %v2430_v3 = vclz %v6328_v8  ;;  %vm2498_vm11 = vcmp.lt.s32.totalorder %v2478_v41, 2  ;;  %v2507_v40 = vsel %vm2499_vm1, %v2490_v36, %v2506_v20  ;;  %v2509_v48 = vsel %vm2497_vm8, %v2487_v16, %v2490_v36 }
 0x217   : > { %v2501_v1 = vsel %vm2497_vm8, %v2481_v18, %v2484_v47  ;;  %v2508_v60 = vsel %vm2498_vm11, %v2505_v29, %v2507_v40  ;;  %v2510_v13 = vsel %vm2500_vm6, %v2496_v32, 1326507024  ;;  %vm2579_vm7 = vcmp.gt.s32.totalorder %v2578_v50, 0 }
 0x218   : > { %v2503_v49 = vsel %vm2499_vm1, %v2487_v16, %v2502_v25  ;;  %v2511_v55 = vsel %vm2499_vm1, %v2493_v59, %v2510_v13  ;;  %v9514_v21 = vmul.u32.u64.low %v2513_v42, %v2508_v60  ;;  %v9515_v39 = vmul.u32.u64.high %v2513_v42, %v2508_v60, %v9514_v21 }
 0x219   : > { %v2512_v37 = vsel %vm2498_vm11, %v2509_v48, %v2511_v55  ;;  %v2575_v8 = vand.u32 8388607, %v13215_v22  ;;  %v2580_v33 = vsel %vm2579_vm7, %v2578_v50, 0  ;;  %v9522_v36 = vadd.f32 %v9400_v14, %v561_v34 }
 0x21a   : > { %v2232_v32 = vsub.s32 4294967266, %v9510_v24  ;;  %v6329_v62 = vadd.s32 4294967294, %v2430_v3  ;;  %vm4250_vm0 = vcmp.eq.s32.totalorder %v7836_v28, %v4164_v23  ;;  %v2504_v16 = vsel %vm2498_vm11, %v2501_v1, %v2503_v49 }
 0x21b   : > { %13443 = vst [vmem:[#allocation125_spill] sm:$0xff] %v9522_v36  ;;  %v9528_v59 = vmul.u32.u64.low %v2513_v42, %v2512_v37  ;;  %v9529_v47 = vmul.u32.u64.high %v2513_v42, %v2512_v37, %v9528_v59  ;;  %v2582_v18 = vand.u32 31, %v2580_v33  ;;  %v9535_v14 = vadd.s32 %v9346_v56, %v9344_v9 }
 0x21c   : > { %v2523_v34 = vadd.s32 1, %v9515_v39  ;;  %v2576_v29 = vor.u32 8388608, %v2575_v8  ;;  %v2777_v3 = vand.u32 2139095040, %v9522_v36  ;;  %v9540_v41 = vsel %vm4250_vm0, 1.0, %v13354_v5 }
 0x21d   : > { %v2583_v20 = vsub.s32 32, %v2582_v18  ;;  %v9542_v40 = vadd.s32 127, %v2232_v32  ;;  %vm6330_vm7 = vcmp.lt.s32.totalorder %v6329_v62, 0  ;;  %v2520_v48 = vmul.u32 %v2513_v42, %v2504_v16 }
 0x21e   : > { %v9544_v1 = vshrl.u32 %v2580_v33, 5  ;;  %vm2522_vm8 = vc.u32 %v9529_v47, %v9514_v21  ;;  %v2585_v9 = vshll.u32 %v13339_v53, %v2582_v18  ;;  %v2588_v60 = vshll.u32 %v13340_v11, %v2582_v18 }
 0x21f   : > { %v2586_v56 = vshrl.u32 %v13340_v11, %v2583_v20  ;;  %v2524_v13 = vsel %vm2522_vm8, %v2523_v34, %v9515_v39  ;;  %v2589_v23 = vshrl.u32 %v13341_v4, %v2583_v20  ;;  %v2591_v49 = vshll.u32 %v13341_v4, %v2582_v18 }
 0x220   : > { %v2594_v55 = vshll.u32 %v13342_v26, %v2582_v18  ;;  %v2525_v42 = vadd.s32 %v2524_v13, %v2520_v48  ;;  %v2592_v8 = vshrl.u32 %v13342_v26, %v2583_v20  ;;  %v2595_v33 = vshrl.u32 %v13343_v61, %v2583_v20 }
 0x221   : > { %v2587_v37 = vor.u32 %v2586_v56, %v2585_v9  ;;  %v2590_v32 = vor.u32 %v2589_v23, %v2588_v60  ;;  %v2597_v16 = vshll.u32 %v13343_v61, %v2582_v18  ;;  %v2598_v59 = vshrl.u32 %v13344_v35, %v2583_v20 }
 0x222   : > { %v2778_v22 = vshrl.u32 %v2777_v3, 23  ;;  %v2526_v50 = vadd.s32 536870912, %v2525_v42  ;;  %v2593_v39 = vor.u32 %v2592_v8, %v2591_v49  ;;  %v2596_v34 = vor.u32 %v2595_v33, %v2594_v55 }
 0x223   : > { %v9559_v25 = vshll.u32 %v2576_v29, 8  ;;  %v9562_v17 = vsel %vm6330_vm7, 0, %v6329_v62  ;;  %v2599_v48 = vor.u32 %v2598_v59, %v2597_v16  ;;  %vm2600_vm6 = vcmp.lt.s32.totalorder %v9544_v1, 1 }
 0x224   : > { %vm2603_vm1 = vcmp.lt.s32.totalorder %v9544_v1, 4  ;;  %v9566_v9 = vshrl.u32 %v2526_v50, 30  ;;  %vm2602_vm11 = vcmp.lt.s32.totalorder %v9544_v1, 3  ;;  %v2608_v18 = vsel %vm2600_vm6, %v2587_v37, %v2590_v32 }
 0x225   : > { %v2609_v3 = vsel %vm2603_vm1, %v2596_v34, 920167782  ;;  %vm2601_vm0 = vcmp.lt.s32.totalorder %v9544_v1, 2  ;;  %v2612_v29 = vsel %vm2600_vm6, %v2590_v32, %v2593_v39  ;;  %v6343_v56 = vadd.s32 4294967169, %v2778_v22 }
 0x226   : > { %13444 = vst [vmem:[#allocation126_spill] sm:$0xff] %v9566_v9  ;;  %v2610_v62 = vsel %vm2602_vm11, %v2593_v39, %v2609_v3  ;;  %v2228_v50 = vsub.s32 32, %v9510_v24  ;;  %v2438_v60 = vsub.s32 4294967266, %v9562_v17  ;;  %v2613_v23 = vsel %vm2603_vm1, %v2599_v48, 1326507024  ;;  %v13445_v3 = vld [vmem:[#allocation98_spill] sm:$0xff] }
 0x227   : > { %v2611_v13 = vsel %vm2601_vm0, %v2608_v18, %v2610_v62  ;;  %v2234_v49 = vshll.u32 %v9542_v40, 23  ;;  %v2614_v55 = vsel %vm2602_vm11, %v2596_v34, %v2613_v23  ;;  %v2528_v22 = vshll.u32 %v9566_v9, 30 }
 0x228   : > { %v9588_v8 = vmul.u32.u64.low %v9559_v25, %v2611_v13  ;;  %v9589_v33 = vmul.u32.u64.high %v9559_v25, %v2611_v13, %v9588_v8  ;;  %v2584_v16 = vshrl.u32 %v13339_v53, %v2583_v20  ;;  %v2605_v59 = vsel %vm2603_vm1, %v2593_v39, 2102212464 }
 0x229   : > { %v2615_v48 = vsel %vm2601_vm0, %v2612_v29, %v2614_v55  ;;  %v2784_v34 = vadd.s32 1, %v6343_v56  ;;  %v4344_v62 = vpack.c.bf16 %v13445_v3, %v9540_v41  ;;  %v13446_v13 = vshll.u32 %v9308_v54, %v9444_v2  ;;  %v13448_v55 = vld [vmem:[#allocation82_spill] sm:$0xff] }
 0x22a   : > { %v9599_v40 = vmul.u32.u64.low %v9559_v25, %v2615_v48  ;;  %v9600_v18 = vmul.u32.u64.high %v9559_v25, %v2615_v48, %v9599_v40  ;;  %v13447_v20 = vshll.u32 %v9487_v27, 23  ;;  %v2126_v39 = vshll.u32 %v9338_v31, %v9470_v43 }
 0x22b   : > { %v3570_v23 = vor.u32 %v9485_v51, %v13446_v13  ;;  %v2439_v29 = vadd.s32 127, %v2438_v60  ;;  %vm13224_vm7 = vcmp.lt.s32.totalorder %v13448_v55, 0  ;;  %v13449_v48 = vsub.s32 32, %v9470_v43  ;;  %6505 = vmatmul.mubr.msk.bf16.gmra.mrb[40].mxu1 %vm4671_vm4, %v4344_v62 }
 0x22c   : > { %v3574_v9 = vor.u32 4788187, %v13447_v20  ;;  %v2230_v41 = vshrl.u32 %v9535_v14, %v2228_v50  ;;  %v2604_v54 = vsel %vm2600_vm6, %v2584_v16, %v2587_v37  ;;  %v2606_v2 = vsel %vm2602_vm11, %v2590_v32, %v2605_v59  ;;  %5039 = vmatprep.mubr.bf16.mxu1 %v13382_v19  ;;  %v13453_v16 = vld [vmem:[#allocation85_spill] sm:$0xff] }
 0x22d   : > { %v2127_v56 = vshrl.u32 %v9483_v0, %v13449_v48  ;;  %v13450_v51 = vshll.u32 %v9504_v30, 23  ;;  %v2434_v27 = vsub.s32 32, %v9562_v17  ;;  %v9625_v60 = vsub.s32 %v2525_v42, %v2528_v22 }
 0x22e   : > { %v2626_v43 = vadd.s32 1, %v9589_v33  ;;  %vm13223_vm8 = vcmp.lt.s32.totalorder %v8711_v46, 0  ;;  %v2229_v0 = vshll.u32 %v9407_v44, %v9510_v24  ;;  %v2235_v14 = vor.u32 4788187, %v2234_v49 }
 0x22f   : > { %v2132_v31 = vor.u32 4788187, %v13450_v51  ;;  %vm2625_vm6 = vc.u32 %v9600_v18, %v9588_v8  ;;  %vm2785_vm1 = vcmp.gt.s32.totalorder %v2784_v34, 0  ;;  %v13451_v30 = vand.u32 2147483647, %v9458_v7 }
 0x230   : > { %v13452_v37 = vcvt.s32.f32 %v9436_v15  ;;  %v2418_v32 = vadd.s32 %v9419_v45, %v9424_v52  ;;  %v2440_v50 = vshll.u32 %v2439_v29, 23  ;;  %v2607_v22 = vsel %vm2601_vm0, %v2604_v54, %v2606_v2 }
 0x231   : > { %vm13226_vm11 = vcmp.lt.s32.totalorder %v13453_v16, 0  ;;  %v13454_v24 = vand.u32 2147483647, %v9463_v12  ;;  %v13455_v44 = vcvt.s32.f32 %v9460_v6  ;;  %v3577_v59 = vcvt.s32.f32 %v3570_v23 }
 0x232   : > { %v3166_v42 = vmul.f32 %v13452_v37, %v13451_v30  ;;  %v2128_v40 = vor.u32 %v2127_v56, %v2126_v39  ;;  %v2231_v7 = vor.u32 %v2230_v41, %v2229_v0  ;;  %vm13225_vm15 = vcmp.lt.s32.totalorder %v8845_v57, 0  ;;  %v13456_v39 = vld [vmem:[#allocation46_spill] sm:$0xff] }
 0x233   : > { %v2033_v49 = vmul.f32 %v13455_v44, %v13454_v24  ;;  %v2436_v15 = vshrl.u32 %v2418_v32, %v2434_v27  ;;  %v2531_v3 = vsub.s32 0, %v9625_v60  ;;  %v2627_v45 = vsel %vm2625_vm6, %v2626_v43, %v9589_v33  ;;  %v13459_v32 = vld [vmem:[#allocation65_spill] sm:$0xff] }
 0x234   : > { %v2786_v52 = vsel %vm2785_vm1, %v2784_v34, 0  ;;  %v3575_v1 = vand.u32 2147483647, %v3574_v9  ;;  %v2133_v62 = vand.u32 2147483647, %v2132_v31  ;;  %v2623_v20 = vmul.u32 %v9559_v25, %v2607_v22  ;;  %v13460_v22 = vld [vmem:[#allocation72_spill] sm:$0xff] }
 0x235   : > { %v2236_v13 = vand.u32 2147483647, %v2235_v14  ;;  %v2435_v6 = vshll.u32 %v9491_v38, %v9562_v17  ;;  %v2441_v12 = vor.u32 4788187, %v2440_v50  ;;  %v13219_v23 = vand.u32 2147483647, %v9522_v36 }
 0x236   : > { %v13220_v29 = vand.u32 2147483647, %v13456_v39  ;;  %v2135_v48 = vcvt.s32.f32 %v2128_v40  ;;  %v2238_v56 = vcvt.s32.f32 %v2231_v7  ;;  %v2628_v41 = vadd.s32 %v2627_v45, %v2623_v20 }
 0x237   : > { %v2788_v54 = vand.u32 31, %v2786_v52  ;;  %v1828_v33 = vxor.u32 2147483648, %v9456_v10  ;;  %v3167_v34 = vxor.u32 2147483648, %v3166_v42  ;;  %v2437_v9 = vor.u32 %v2436_v15, %v2435_v6 }
 0x238   : > { %v6332_v2 = vmin.u32 %v2531_v3, %v9625_v60  ;;  %v2034_v51 = vxor.u32 2147483648, %v2033_v49  ;;  %v9657_v25 = vmul.f32 %v3577_v59, %v3575_v1  ;;  %v9659_v31 = vmul.f32 %v2135_v48, %v2133_v62 }
 0x239   : > { %v9661_v38 = vmul.f32 %v2238_v56, %v2236_v13  ;;  %v13457_v17 = vxor.u32 2147483648, %v9256_v58  ;;  %v2442_v43 = vand.u32 2147483647, %v2441_v12  ;;  %v9672_v0 = vand.u32 8388607, %v13219_v23 }
 0x23a   : > { %v9676_v14 = vand.u32 8388607, %v13220_v29  ;;  %v2629_v30 = vadd.s32 536870912, %v2628_v41  ;;  %v9678_v37 = vsub.s32 32, %v2788_v54  ;;  %v628_v50 = vshll.u32 %v13339_v53, %v13459_v32 }
 0x23b   : > { %v9668_v27 = vsel %vm13224_vm7, %v13457_v17, %v9256_v58  ;;  %v629_v24 = vshrl.u32 %v13340_v11, %v13460_v22  ;;  %v9687_v58 = vsel %vm13226_vm11, %v1828_v33, %v9456_v10  ;;  %v9691_v44 = vsel %vm13223_vm8, %v3167_v34, %v3166_v42 }
 0x23c   : > { %13458 = vst [vmem:[#allocation98_spill] sm:$0xff] %v9668_v27  ;;  %13461 = vst [vmem:[#allocation85_spill] sm:$0xff] %v9691_v44  ;;  %v2444_v59 = vcvt.s32.f32 %v2437_v9  ;;  %v2533_v40 = vclz %v6332_v2  ;;  %v9695_v7 = vsel %vm13225_vm15, %v2034_v51, %v2033_v49  ;;  %v619_v62 = vor.u32 8388608, %v9676_v14 }
 0x23d   : > { %13462 = vst [vmem:[#allocation46_spill] sm:$0xff] %v9695_v7  ;;  %v627_v42 = vshrl.u32 %v13339_v53, %v13460_v22  ;;  %v9706_v13 = vshrl.u32 %v2629_v30, 30  ;;  %v9708_v20 = vshrl.u32 %v2786_v52, 5  ;;  %v2801_v49 = vshrl.u32 %v13343_v61, %v9678_v37 }
 0x23e   : > { %v9700_v1 = vmul.f32 %v2444_v59, %v2442_v43  ;;  %v630_v6 = vor.u32 %v629_v24, %v628_v50  ;;  %v6333_v12 = vadd.s32 4294967294, %v2533_v40  ;;  %v2791_v48 = vshll.u32 %v13339_v53, %v2788_v54 }
 0x23f   : > { %13463 = vst [vmem:[#allocation65_spill] sm:$0xff] %v9706_v13  ;;  %v2794_v56 = vshll.u32 %v13340_v11, %v2788_v54  ;;  %v631_v33 = vshll.u32 %v13340_v11, %v13459_v32  ;;  %v2792_v34 = vshrl.u32 %v13340_v11, %v9678_v37  ;;  %v2795_v9 = vshrl.u32 %v13341_v4, %v9678_v37 }
 0x240   : > { %v2800_v52 = vshll.u32 %v13342_v26, %v2788_v54  ;;  %v2804_v2 = vshrl.u32 %v13344_v35, %v9678_v37  ;;  %v2797_v51 = vshll.u32 %v13341_v4, %v2788_v54  ;;  %v2798_v17 = vshrl.u32 %v13342_v26, %v9678_v37 }
 0x241   : > { %v2803_v43 = vshll.u32 %v13343_v61, %v2788_v54  ;;  %v632_v14 = vshrl.u32 %v13341_v4, %v13460_v22  ;;  %v2631_v30 = vshll.u32 %v9706_v13, 30  ;;  %v634_v24 = vshll.u32 %v13341_v4, %v13459_v32 }
 0x242   : > { %v2802_v50 = vor.u32 %v2801_v49, %v2800_v52  ;;  %v635_v59 = vshrl.u32 %v13342_v26, %v13460_v22  ;;  %v637_v40 = vshll.u32 %v13342_v26, %v13459_v32  ;;  %v638_v23 = vshrl.u32 %v13343_v61, %v13460_v22 }
 0x243   : > { %v640_v54 = vshll.u32 %v13343_v61, %v13459_v32  ;;  %v641_v29 = vshrl.u32 %v13344_v35, %v13460_v22  ;;  %vm6334_vm0 = vcmp.lt.s32.totalorder %v6333_v12, 0  ;;  %v2793_v49 = vor.u32 %v2792_v34, %v2791_v48  ;;  %v13464_v32 = vld [vmem:[#allocation71_spill] sm:$0xff] }
 0x244   : > { %v2796_v52 = vor.u32 %v2795_v9, %v2794_v56  ;;  %v2805_v45 = vor.u32 %v2804_v2, %v2803_v43  ;;  %v2799_v3 = vor.u32 %v2798_v17, %v2797_v51  ;;  %vm2806_vm6 = vcmp.lt.s32.totalorder %v9708_v20, 1 }
 0x245   : > { %vm2809_vm1 = vcmp.lt.s32.totalorder %v9708_v20, 4  ;;  %v633_v15 = vor.u32 %v632_v14, %v631_v33  ;;  %v9744_v10 = vsub.s32 %v2628_v41, %v2631_v30  ;;  %v636_v46 = vor.u32 %v635_v59, %v634_v24 }
 0x246   : > { %v2815_v44 = vsel %vm2809_vm1, %v2802_v50, 920167782  ;;  %vm643_vm8 = vcmp.lt.s32.totalorder %v13464_v32, 1  ;;  %v639_v27 = vor.u32 %v638_v23, %v637_v40  ;;  %v642_v22 = vor.u32 %v641_v29, %v640_v54 }
 0x247   : > { %vm645_vm7 = vcmp.lt.s32.totalorder %v13464_v32, 3  ;;  %vm646_vm15 = vcmp.lt.s32.totalorder %v13464_v32, 4  ;;  %vm2807_vm11 = vcmp.lt.s32.totalorder %v9708_v20, 2  ;;  %vm2808_vm3 = vcmp.lt.s32.totalorder %v9708_v20, 3 }
 0x248   : > { %v2814_v41 = vsel %vm2806_vm6, %v2793_v49, %v2796_v52  ;;  %v2819_v48 = vsel %vm2809_vm1, %v2805_v45, 1326507024  ;;  %vm644_vm14 = vcmp.lt.s32.totalorder %v13464_v32, 2  ;;  %v648_v23 = vsel %vm646_vm15, %v636_v46, 2102212464 }
 0x249   : > { %v651_v29 = vsel %vm643_vm8, %v630_v6, %v633_v15  ;;  %v652_v56 = vsel %vm646_vm15, %v639_v27, 920167782  ;;  %v2634_v33 = vsub.s32 0, %v9744_v10  ;;  %v2816_v34 = vsel %vm2808_vm3, %v2799_v3, %v2815_v44 }
 0x24a   : > { %v2818_v9 = vsel %vm2806_vm6, %v2796_v52, %v2799_v3  ;;  %v653_v45 = vsel %vm645_vm7, %v636_v46, %v652_v56  ;;  %v2820_v2 = vsel %vm2808_vm3, %v2802_v50, %v2819_v48  ;;  %v647_v51 = vsel %vm643_vm8, %v627_v42, %v630_v6 }
 0x24b   : > { %v655_v17 = vsel %vm643_vm8, %v633_v15, %v636_v46  ;;  %v656_v43 = vsel %vm646_vm15, %v642_v22, 1326507024  ;;  %v649_v44 = vsel %vm645_vm7, %v633_v15, %v648_v23  ;;  %v654_v14 = vsel %vm644_vm14, %v651_v29, %v653_v45 }
 0x24c   : > { %v657_v30 = vsel %vm645_vm7, %v639_v27, %v656_v43  ;;  %v659_v24 = vshll.u32 %v619_v62, 8  ;;  %v9787_v50 = vadd.s32 %v9514_v21, %v9529_v47  ;;  %v2817_v46 = vsel %vm2807_vm11, %v2814_v41, %v2816_v34  ;;  %v13470_v21 = vld [vmem:[#allocation111_spill] sm:$0xff] }
 0x24d   : > { %v13465_v42 = vor.u32 8388608, %v9672_v0  ;;  %v658_v15 = vsel %vm644_vm14, %v655_v17, %v657_v30  ;;  %v9798_v59 = vsel %vm6334_vm0, 0, %v6333_v12  ;;  %v2821_v27 = vsel %vm2807_vm11, %v2818_v9, %v2820_v2 }
 0x24e   : > { %v9802_v62 = vmul.u32.u64.low %v659_v24, %v658_v15  ;;  %v9803_v40 = vmul.u32.u64.high %v659_v24, %v658_v15, %v9802_v62  ;;  %v650_v47 = vsel %vm644_vm14, %v647_v51, %v649_v44  ;;  %v6336_v22 = vmin.u32 %v2634_v33, %v9744_v10  ;;  %v13467_v51 = vld [vmem:[#allocation56_spill] sm:$0xff] }
 0x24f   : > { %v9793_v6 = vshll.u32 %v13465_v42, 8  ;;  %v9808_v0 = vmul.u32.u64.low %v659_v24, %v654_v14  ;;  %v9809_v54 = vmul.u32.u64.high %v659_v24, %v654_v14, %v9808_v0  ;;  %v2790_v12 = vshrl.u32 %v13339_v53, %v9678_v37  ;;  %v13466_v37 = vld [vmem:[#allocation40_spill] sm:$0xff]  ;;  %v13468_v14 = vld [vmem:[#allocation53_spill] sm:$0xff] }
 0x250   : > { %v2811_v32 = vsel %vm2809_vm1, %v2799_v3, 2102212464  ;;  %v2541_v34 = vsub.s32 4294967266, %v9798_v59  ;;  %v666_v33 = vmul.u32 %v659_v24, %v650_v47  ;;  %v13229_v9 = vand.u32 2147483647, %v13466_v37 }
 0x251   : > { %v9816_v41 = vmul.u32.u64.low %v9793_v6, %v2817_v46  ;;  %v9817_v48 = vmul.u32.u64.high %v9793_v6, %v2817_v46, %v9816_v41  ;;  %v9824_v29 = vmul.u32.u64.low %v9793_v6, %v2821_v27  ;;  %v9825_v56 = vmul.u32.u64.high %v9793_v6, %v2821_v27, %v9824_v29 }
 0x252   : > { %vm668_vm14 = vc.u32 %v9803_v40, %v9808_v0  ;;  %v2810_v45 = vsel %vm2806_vm6, %v2790_v12, %v2793_v49  ;;  %v669_v2 = vadd.s32 1, %v9809_v54  ;;  %v732_v3 = vshrl.u32 %v13340_v11, %v13467_v51 }
 0x253   : > { %v735_v17 = vshrl.u32 %v13341_v4, %v13467_v51  ;;  %v2636_v43 = vclz %v6336_v22  ;;  %v2812_v44 = vsel %vm2808_vm3, %v2796_v52, %v2811_v32  ;;  %v731_v30 = vshll.u32 %v13339_v53, %v13468_v14 }
 0x254   : > { %v738_v24 = vshrl.u32 %v13342_v26, %v13467_v51  ;;  %v670_v49 = vsel %vm668_vm14, %v669_v2, %v9809_v54  ;;  %v734_v46 = vshll.u32 %v13340_v11, %v13468_v14  ;;  %v740_v42 = vshll.u32 %v13342_v26, %v13468_v14  ;;  %v13469_v54 = vld [vmem:[#allocation109_spill] sm:$0xff] }
 0x255   : > { %v741_v15 = vshrl.u32 %v13343_v61, %v13467_v51  ;;  %v671_v27 = vadd.s32 %v670_v49, %v666_v33  ;;  %v721_v52 = vand.u32 8388607, %v13229_v9  ;;  %v737_v62 = vshll.u32 %v13341_v4, %v13468_v14 }
 0x256   : > { %v744_v47 = vshrl.u32 %v13344_v35, %v13467_v51  ;;  %vm13240_vm3 = vcmp.lt.s32.totalorder %v13469_v54, 0  ;;  %v733_v22 = vor.u32 %v732_v3, %v731_v30  ;;  %v736_v12 = vor.u32 %v735_v17, %v734_v46  ;;  %v13471_v3 = vld [vmem:[#allocation55_spill] sm:$0xff] }
 0x257   : > { %v742_v32 = vor.u32 %v741_v15, %v740_v42  ;;  %v743_v29 = vshll.u32 %v13343_v61, %v13468_v14  ;;  %v2813_v33 = vsel %vm2807_vm11, %v2810_v45, %v2812_v44  ;;  %v2832_v2 = vadd.s32 1, %v9817_v48  ;;  %v13472_v45 = vld [vmem:[#allocation116_spill] sm:$0xff] }
 0x258   : > { %v672_v49 = vadd.s32 536870912, %v671_v27  ;;  %v739_v9 = vor.u32 %v738_v24, %v737_v62  ;;  %vm2055_vm15 = vcmp.lt.s32.totalorder %v13470_v21, 0  ;;  %v2542_v23 = vadd.s32 127, %v2541_v34 }
 0x259   : > { %vm2831_vm7 = vc.u32 %v9825_v56, %v9816_v41  ;;  %v745_v55 = vor.u32 %v744_v47, %v743_v29  ;;  %vm749_vm8 = vcmp.lt.s32.totalorder %v13471_v3, 4  ;;  %v722_v30 = vor.u32 8388608, %v721_v52 }
 0x25a   : > { %v9867_v17 = vshrl.u32 %v672_v49, 30  ;;  %vm746_vm0 = vcmp.lt.s32.totalorder %v13471_v3, 1  ;;  %v755_v20 = vsel %vm749_vm8, %v742_v32, 920167782  ;;  %vm13245_vm11 = vcmp.lt.s32.totalorder %v13472_v45, 0 }
 0x25b   : > { %v6337_v44 = vadd.s32 4294967294, %v2636_v43  ;;  %v2829_v14 = vmul.u32 %v9793_v6, %v2813_v33  ;;  %vm748_vm6 = vcmp.lt.s32.totalorder %v13471_v3, 3  ;;  %v754_v34 = vsel %vm746_vm0, %v733_v22, %v736_v12 }
 0x25c   : > { %v2833_v24 = vsel %vm2831_vm7, %v2832_v2, %v9817_v48  ;;  %v674_v46 = vshll.u32 %v9867_v17, 30  ;;  %v756_v42 = vsel %vm748_vm6, %v739_v9, %v755_v20  ;;  %v758_v15 = vsel %vm746_vm0, %v736_v12, %v739_v9  ;;  %v13473_v20 = vld [vmem:[#allocation118_spill] sm:$0xff] }
 0x25d   : > { %v730_v43 = vshrl.u32 %v13339_v53, %v13467_v51  ;;  %vm747_vm1 = vcmp.lt.s32.totalorder %v13471_v3, 2  ;;  %v751_v6 = vsel %vm749_vm8, %v739_v9, 2102212464  ;;  %v759_v52 = vsel %vm749_vm8, %v745_v55, 1326507024 }
 0x25e   : > { %v9890_v48 = vsub.s32 %v671_v27, %v674_v46  ;;  %v757_v62 = vsel %vm747_vm1, %v754_v34, %v756_v42  ;;  %v760_v47 = vsel %vm748_vm6, %v742_v32, %v759_v52  ;;  %v762_v29 = vshll.u32 %v722_v30, 8 }
 0x25f   : > { %vm6338_vm14 = vcmp.lt.s32.totalorder %v6337_v44, 0  ;;  %v9896_v33 = vadd.s32 %v2833_v24, %v2829_v14  ;;  %v750_v51 = vsel %vm746_vm0, %v730_v43, %v733_v22  ;;  %v761_v9 = vsel %vm747_vm1, %v758_v15, %v760_v47 }
 0x260   : > { %v677_v55 = vsub.s32 0, %v9890_v48  ;;  %v752_v27 = vsel %vm748_vm6, %v736_v12, %v751_v6  ;;  %v9905_v2 = vmul.u32.u64.low %v762_v29, %v761_v9  ;;  %v9906_v49 = vmul.u32.u64.high %v762_v29, %v761_v9, %v9905_v2 }
 0x261   : > { %vm13241_vm7 = vcmp.lt.s32.totalorder %v13473_v20, 0  ;;  %v13474_v32 = vsub.s32 32, %v9798_v59  ;;  %v9912_v14 = vmul.u32.u64.low %v762_v29, %v757_v62  ;;  %v9913_v34 = vmul.u32.u64.high %v762_v29, %v757_v62, %v9912_v14 }
 0x262   : > { %v13475_v22 = vxor.u32 2147483648, %v9657_v25  ;;  %v13477_v12 = vxor.u32 2147483648, %v9659_v31  ;;  %v2543_v42 = vshll.u32 %v2542_v23, 23  ;;  %v2538_v15 = vshll.u32 %v9625_v60, %v9798_v59 }
 0x263   : > { %v2539_v30 = vshrl.u32 %v9787_v50, %v13474_v32  ;;  %v6260_v50 = vmin.u32 %v677_v55, %v9890_v48  ;;  %v9934_v43 = vsel %vm6338_vm14, 0, %v6337_v44  ;;  %v2835_v6 = vadd.s32 536870912, %v9896_v33 }
 0x264   : > { %v9921_v24 = vsel %vm13240_vm3, %v13475_v22, %v9657_v25  ;;  %v9928_v46 = vsel %vm2055_vm15, %v13477_v12, %v9659_v31  ;;  %v753_v25 = vsel %vm747_vm1, %v750_v51, %v752_v27  ;;  %v13479_v52 = vxor.u32 2147483648, %v9661_v38  ;;  %v13486_v12 = vld [vmem:[#allocation50_spill] sm:$0xff] }
 0x265   : > { %13476 = vst [vmem:[#allocation72_spill] sm:$0xff] %v9921_v24  ;;  %13478 = vst [vmem:[#allocation71_spill] sm:$0xff] %v9928_v46  ;;  %v13481_v23 = vxor.u32 2147483648, %v9700_v1  ;;  %v679_v59 = vclz %v6260_v50  ;;  %vm771_vm8 = vc.u32 %v9906_v49, %v9912_v14  ;;  %v9955_v3 = vor.u32 %v2539_v30, %v2538_v15  ;;  %v13485_v30 = vld [vmem:[#allocation52_spill] sm:$0xff] }
 0x266   : > { %v9944_v31 = vsel %vm13245_vm11, %v13479_v52, %v9661_v38  ;;  %v2624_v44 = vadd.s32 %v9588_v8, %v9600_v18  ;;  %v772_v62 = vadd.s32 1, %v9913_v34  ;;  %v13483_v38 = vld [vmem:[#allocation41_spill] sm:$0xff]  ;;  %v9961_v51 = vor.u32 4788187, %v2543_v42 }
 0x267   : > { %13480 = vst [vmem:[#allocation40_spill] sm:$0xff] %v9944_v31  ;;  %v9951_v60 = vsel %vm13241_vm7, %v13481_v23, %v9700_v1  ;;  %v13231_v47 = vand.u32 2147483647, %v13483_v38  ;;  %v2640_v9 = vsub.s32 32, %v9934_v43  ;;  %v6261_v55 = vadd.s32 4294967294, %v679_v59 }
 0x268   : > { %13482 = vst [vmem:[#allocation56_spill] sm:$0xff] %v9951_v60  ;;  %v769_v1 = vmul.u32 %v762_v29, %v753_v25  ;;  %v2644_v27 = vsub.s32 4294967266, %v9934_v43  ;;  %v9965_v2 = vshrl.u32 %v2835_v6, 30  ;;  %v773_v32 = vsel %vm771_vm8, %v772_v62, %v9913_v34 }
 0x269   : > { %v835_v22 = vshrl.u32 %v13340_v11, %v13485_v30  ;;  %v667_v8 = vadd.s32 %v9808_v0, %v9803_v40  ;;  %vm6262_vm0 = vcmp.lt.s32.totalorder %v6261_v55, 0  ;;  %v834_v42 = vshll.u32 %v13339_v53, %v13486_v12 }
 0x26a   : > { %13484 = vst [vmem:[#allocation53_spill] sm:$0xff] %v9965_v2  ;;  %v774_v18 = vadd.s32 %v773_v32, %v769_v1  ;;  %v682_v50 = vsel %vm6262_vm0, 0, %v6261_v55  ;;  %v824_v29 = vand.u32 8388607, %v13231_v47  ;;  %v837_v15 = vshll.u32 %v13340_v11, %v13486_v12 }
 0x26b   : > { %v838_v34 = vshrl.u32 %v13341_v4, %v13485_v30  ;;  %v683_v6 = vsub.s32 32, %v682_v50  ;;  %v684_v25 = vshll.u32 %v9890_v48, %v682_v50  ;;  %v687_v52 = vsub.s32 4294967266, %v682_v50 }
 0x26c   : > { %v775_v40 = vadd.s32 536870912, %v774_v18  ;;  %v836_v0 = vor.u32 %v835_v22, %v834_v42  ;;  %v840_v59 = vshll.u32 %v13341_v4, %v13486_v12  ;;  %v841_v62 = vshrl.u32 %v13342_v26, %v13485_v30  ;;  %v13487_v42 = vld [vmem:[#allocation57_spill] sm:$0xff] }
 0x26d   : > { %v839_v23 = vor.u32 %v838_v34, %v837_v15  ;;  %v2837_v55 = vshll.u32 %v9965_v2, 30  ;;  %v685_v1 = vshrl.u32 %v667_v8, %v683_v6  ;;  %v688_v32 = vadd.s32 127, %v687_v52  ;;  %v13491_v52 = vld [vmem:[#allocation67_spill] sm:$0xff] }
 0x26e   : > { %v9986_v47 = vshrl.u32 %v775_v40, 30  ;;  %vm613_vm6 = vcmp.lt.s32.totalorder %v13456_v39, 0  ;;  %v825_v24 = vor.u32 8388608, %v824_v29  ;;  %v833_v48 = vshrl.u32 %v13339_v53, %v13485_v30  ;;  %v13492_v40 = vld [vmem:[#allocation59_spill] sm:$0xff] }
 0x26f   : > { %v842_v22 = vor.u32 %v841_v62, %v840_v59  ;;  %vm849_vm1 = vcmp.lt.s32.totalorder %v13487_v42, 1  ;;  %v13488_v12 = vand.u32 2147483647, %v13456_v39  ;;  %v686_v15 = vor.u32 %v685_v1, %v684_v25  ;;  %v13493_v1 = vld [vmem:[#allocation66_spill] sm:$0xff] }
 0x270   : > { %v689_v8 = vshll.u32 %v688_v32, 23  ;;  %v777_v34 = vshll.u32 %v9986_v47, 30  ;;  %vm851_vm8 = vcmp.lt.s32.totalorder %v13487_v42, 3  ;;  %v857_v30 = vsel %vm849_vm1, %v836_v0, %v839_v23 }
 0x271   : > { %vm9994_vm14 = vcmp.le.f32.partialorder %v13488_v12, 0.7853982  ;;  %v854_v29 = vsel %vm852_vm12, %v842_v22, 2102212464  ;;  %v861_v6 = vsel %vm849_vm1, %v839_v23, %v842_v22  ;;  %v863_v59 = vsel %vm851_vm8, %v13492_v40, %v13491_v52 }
 0x272   : > { %v690_v62 = vor.u32 4788187, %v689_v8  ;;  %v693_v12 = vcvt.s32.f32 %v686_v15  ;;  %v10008_v25 = vsub.s32 %v774_v18, %v777_v34  ;;  %v859_v32 = vsel %vm851_vm8, %v842_v22, %v13493_v1  ;;  %v13494_v34 = vld [vmem:[#allocation44_spill] sm:$0xff] }
 0x273   : > { %v2642_v54 = vshrl.u32 %v2624_v44, %v2640_v9  ;;  %v10011_v2 = vadd.s32 127, %v2644_v27  ;;  %vm850_vm12 = vcmp.lt.s32.totalorder %v13487_v42, 2  ;;  %v853_v13 = vsel %vm849_vm1, %v833_v48, %v836_v0  ;;  %v13497_v44 = vld [vmem:[#allocation60_spill] sm:$0xff] }
 0x274   : > { %v691_v60 = vand.u32 2147483647, %v690_v62  ;;  %v780_v20 = vsub.s32 0, %v10008_v25  ;;  %v855_v31 = vsel %vm851_vm8, %v839_v23, %v854_v29  ;;  %v864_v45 = vsel %vm850_vm12, %v861_v6, %v863_v59  ;;  %v13496_v62 = vld [vmem:[#allocation54_spill] sm:$0xff] }
 0x275   : > { %v10018_v8 = vsub.s32 %v9896_v33, %v2837_v55  ;;  %v860_v18 = vsel %vm850_vm12, %v857_v30, %v859_v32  ;;  %v865_v15 = vshll.u32 %v825_v24, 8  ;;  %v13239_v22 = vand.u32 2147483647, %v13494_v34 }
 0x276   : > { %v694_v27 = vmul.f32 %v693_v12, %v691_v60  ;;  %v6264_v42 = vmin.u32 %v780_v20, %v10008_v25  ;;  %v2641_v0 = vshll.u32 %v9744_v10, %v9934_v43  ;;  %v856_v48 = vsel %vm850_vm12, %v853_v13, %v855_v31  ;;  %v13495_v43 = vld [vmem:[#allocation58_spill] sm:$0xff] }
 0x277   : > { %v10026_v23 = vmul.u32.u64.low %v865_v15, %v864_v45  ;;  %v10027_v29 = vmul.u32.u64.high %v865_v15, %v864_v45, %v10026_v23  ;;  %v10029_v30 = vmul.u32.u64.low %v865_v15, %v860_v18  ;;  %v10030_v24 = vmul.u32.u64.high %v865_v15, %v860_v18, %v10029_v30 }
 0x278   : > { %v695_v33 = vxor.u32 2147483648, %v694_v27  ;;  %v782_v55 = vclz %v6264_v42  ;;  %v10033_v6 = vor.u32 %v2642_v54, %v2641_v0  ;;  %v2646_v52 = vshll.u32 %v10011_v2, 23 }
 0x279   : > { %v2840_v60 = vsub.s32 0, %v10018_v8  ;;  %v927_v20 = vand.u32 8388607, %v13239_v22  ;;  %v697_v13 = vsub.s32 4, %v9867_v17  ;;  %v938_v31 = vshrl.u32 %v13340_v11, %v13495_v43 }
 0x27a   : > { %v696_v10 = vsel %vm613_vm6, %v695_v33, %v694_v27  ;;  %v6265_v45 = vadd.s32 4294967294, %v782_v55  ;;  %v770_v2 = vadd.s32 %v9912_v14, %v9906_v49  ;;  %v872_v40 = vmul.u32 %v865_v15, %v856_v48 }
 0x27b   : > { %v699_v54 = vsel %vm9994_vm14, %v13456_v39, %v696_v10  ;;  %vm874_vm0 = vc.u32 %v10027_v29, %v10029_v30  ;;  %v875_v59 = vadd.s32 1, %v10030_v24  ;;  %v937_v12 = vshll.u32 %v13339_v53, %v13496_v62 }
 0x27c   : > { %vm6266_vm1 = vcmp.lt.s32.totalorder %v6265_v45, 0  ;;  %v940_v1 = vshll.u32 %v13340_v11, %v13496_v62  ;;  %7220 = vcosq.f32 %v699_v54  ;;  %v928_v18 = vor.u32 8388608, %v927_v20 }
 0x27d   : > { %v785_v32 = vsel %vm6266_vm1, 0, %v6265_v45  ;;  %v941_v27 = vshrl.u32 %v13341_v4, %v13495_v43  ;;  %v876_v15 = vsel %vm874_vm0, %v875_v59, %v10030_v24  ;;  %v939_v42 = vor.u32 %v938_v31, %v937_v12  ;;  %v13499_v59 = vld [vmem:[#allocation64_spill] sm:$0xff] }
 0x27e   : > { %v786_v49 = vsub.s32 32, %v785_v32  ;;  %v790_v14 = vsub.s32 4294967266, %v785_v32  ;;  %v877_v0 = vadd.s32 %v876_v15, %v872_v40  ;;  %v943_v23 = vshll.u32 %v13341_v4, %v13496_v62  ;;  %v13498_v40 = vld [vmem:[#allocation70_spill] sm:$0xff] }
 0x27f   : > { %v942_v48 = vor.u32 %v941_v27, %v940_v1  ;;  %v944_v33 = vshrl.u32 %v13342_v26, %v13495_v43  ;;  %7222 = vsinq.f32 %v699_v54  ;;  %v787_v55 = vshll.u32 %v10008_v25, %v785_v32  ;;  %v13500_v1 = vld [vmem:[#allocation69_spill] sm:$0xff] }
 0x280   : > { %v788_v20 = vshrl.u32 %v770_v2, %v786_v49  ;;  %v791_v10 = vadd.s32 127, %v790_v14  ;;  %v6344_v45 = vmin.u32 %v2840_v60, %v10018_v8  ;;  %v878_v22 = vadd.s32 536870912, %v877_v0 }
 0x281   : > { %v945_v9 = vor.u32 %v944_v33, %v943_v23  ;;  %vm954_vm8 = vcmp.lt.s32.totalorder %v13497_v44, 3  ;;  %vm952_vm12 = vcmp.lt.s32.totalorder %v13497_v44, 1  ;;  %v698_v25 = vsel %vm613_vm6, %v697_v13, %v9867_v17 }
 0x282   : > { %v789_v24 = vor.u32 %v788_v20, %v787_v55  ;;  %v792_v31 = vshll.u32 %v791_v10, 23  ;;  %v966_v62 = vsel %vm954_vm8, %v13499_v59, %v13498_v40  ;;  %v10074_v54 = vshrl.u32 %v878_v22, 30 }
 0x283   : > { %vm953_vm0 = vcmp.lt.s32.totalorder %v13497_v44, 2  ;;  %v964_v60 = vsel %vm952_vm12, %v942_v48, %v945_v9  ;;  %v960_v12 = vsel %vm952_vm12, %v939_v42, %v942_v48  ;;  %v962_v32 = vsel %vm954_vm8, %v945_v9, %v13500_v1 }
 0x284   : > { %v793_v2 = vor.u32 4788187, %v792_v31  ;;  %v968_v27 = vshll.u32 %v928_v18, 8  ;;  %v2842_v49 = vclz %v6344_v45  ;;  %v880_v14 = vshll.u32 %v10074_v54, 30 }
 0x285   : > { %v957_v17 = vsel %vm955_vm13, %v945_v9, 2102212464  ;;  %v967_v22 = vsel %vm953_vm0, %v964_v60, %v966_v62  ;;  %v796_v15 = vcvt.s32.f32 %v789_v24  ;;  %v700_v20 = vsel %vm9994_vm14, 0, %v698_v25 }
 0x286   : > { %v794_v13 = vand.u32 2147483647, %v793_v2  ;;  %v10089_v23 = vmul.u32.u64.low %v968_v27, %v967_v22  ;;  %v10090_v33 = vmul.u32.u64.high %v968_v27, %v967_v22, %v10089_v23  ;;  %v7221_v55 = vpop.eup %7220  ;;  %v10094_v10 = vsub.s32 %v877_v0, %v880_v14  ;;  %v13512_v0 = vld [vmem:[#allocation42_spill] sm:$0xff] }
 0x287   : > { %v936_v18 = vshrl.u32 %v13339_v53, %v13495_v43  ;;  %v963_v9 = vsel %vm953_vm0, %v960_v12, %v962_v32  ;;  %v13501_v45 = vand.u32 2147483647, %v9961_v51  ;;  %v13502_v31 = vcvt.s32.f32 %v9955_v3 }
 0x288   : > { %v10106_v40 = vor.u32 4788187, %v2646_v52  ;;  %v797_v59 = vmul.f32 %v796_v15, %v794_v13  ;;  %v800_v50 = vsub.s32 4, %v9986_v47  ;;  %v883_v62 = vsub.s32 0, %v10094_v10 }
 0x289   : > { %v10104_v24 = vmul.f32 %v13502_v31, %v13501_v45  ;;  %v956_v43 = vsel %vm952_vm12, %v936_v18, %v939_v42  ;;  %v958_v25 = vsel %vm954_vm8, %v942_v48, %v957_v17  ;;  %v7223_v51 = vpop.eup %7222  ;;  %v704_v60 = vand.u32 3, %v700_v20 }
 0x28a   : > { %v798_v3 = vxor.u32 2147483648, %v797_v59  ;;  %v10115_v2 = vmul.u32.u64.low %v968_v27, %v963_v9  ;;  %v10116_v12 = vmul.u32.u64.high %v968_v27, %v963_v9, %v10115_v2  ;;  %v6345_v52 = vadd.s32 4294967294, %v2842_v49 }
 0x28b   : > { %v13503_v1 = vand.u32 2147483647, %v13466_v37  ;;  %vm716_vm6 = vcmp.lt.s32.totalorder %v13466_v37, 0  ;;  %v6268_v42 = vmin.u32 %v883_v62, %v10094_v10  ;;  %v710_v14 = vxor.u32 2147483648, %v7221_v55 }
 0x28c   : > { %v799_v48 = vsel %vm716_vm6, %v798_v3, %v797_v59  ;;  %v801_v17 = vsel %vm716_vm6, %v800_v50, %v9986_v47  ;;  %v959_v22 = vsel %vm953_vm0, %v956_v43, %v958_v25  ;;  %v707_v13 = vxor.u32 2147483648, %v7223_v51 }
 0x28d   : > { %vm10121_vm13 = vcmp.le.f32.partialorder %v13503_v1, 0.7853982  ;;  %v885_v15 = vclz %v6268_v42  ;;  %vm977_vm14 = vc.u32 %v10090_v33, %v10115_v2  ;;  %vm706_vm1 = vcmp.eq.s32.totalorder %v704_v60, 0 }
 0x28e   : > { %v802_v49 = vsel %vm10121_vm13, %v13466_v37, %v799_v48  ;;  %vm709_vm8 = vcmp.eq.s32.totalorder %v704_v60, 2  ;;  %v978_v23 = vadd.s32 1, %v10116_v12  ;;  %v803_v47 = vsel %vm10121_vm13, 0, %v801_v17 }
 0x28f   : > { %7224 = vcosq.f32 %v802_v49  ;;  %v6269_v44 = vadd.s32 4294967294, %v885_v15  ;;  %v975_v20 = vmul.u32 %v968_v27, %v959_v22  ;;  %vm6346_vm12 = vcmp.lt.s32.totalorder %v6345_v52, 0 }
 0x290   : > { %7226 = vsinq.f32 %v802_v49  ;;  %vm705_vm0 = vcmp.lt.s32.totalorder %v704_v60, 2  ;;  %v903_v18 = vsub.s32 4, %v10074_v54  ;;  %v979_v9 = vsel %vm977_vm14, %v978_v23, %v10116_v12  ;;  %v13506_v12 = vld [vmem:[#allocation48_spill] sm:$0xff] }
 0x291   : > { %v708_v45 = vsel %vm706_vm1, %v7221_v55, %v707_v13  ;;  %v711_v31 = vsel %vm709_vm8, %v710_v14, %v7223_v51  ;;  %vm6270_vm6 = vcmp.lt.s32.totalorder %v6269_v44, 0  ;;  %v980_v59 = vadd.s32 %v979_v9, %v975_v20  ;;  %v13510_v49 = vld [vmem:[#allocation68_spill] sm:$0xff] }
 0x292   : > { %vm703_vm3 = vweird.f32 %v13456_v39  ;;  %v807_v50 = vand.u32 3, %v803_v47  ;;  %vm819_vm7 = vcmp.lt.s32.totalorder %v13483_v38, 0  ;;  %v888_v62 = vsel %vm6270_vm6, 0, %v6269_v44  ;;  %v13511_v39 = vld [vmem:[#allocation63_spill] sm:$0xff] }
 0x293   : > { %v873_v43 = vadd.s32 %v10029_v30, %v10027_v29  ;;  %v889_v27 = vsub.s32 32, %v888_v62  ;;  %v893_v25 = vsub.s32 4294967266, %v888_v62  ;;  %v981_v3 = vadd.s32 536870912, %v980_v59 }
 0x294   : > { %v10145_v1 = vsel %vm6346_vm12, 0, %v6345_v52  ;;  %v712_v55 = vsel %vm705_vm0, %v708_v45, %v711_v31  ;;  %v904_v51 = vsel %vm819_vm7, %v903_v18, %v10074_v54  ;;  %v13242_v32 = vand.u32 2147483647, %v13506_v12 }
 0x295   : > { %vm806_vm13 = vweird.f32 %v13466_v37  ;;  %v890_v42 = vshll.u32 %v10094_v10, %v888_v62  ;;  %v891_v14 = vshrl.u32 %v873_v43, %v889_v27  ;;  %v894_v29 = vadd.s32 127, %v893_v25 }
 0x296   : > { %v10154_v30 = vshrl.u32 %v981_v3, 30  ;;  %vm808_vm14 = vcmp.lt.s32.totalorder %v807_v50, 2  ;;  %vm809_vm1 = vcmp.eq.s32.totalorder %v807_v50, 0  ;;  %vm812_vm8 = vcmp.eq.s32.totalorder %v807_v50, 2 }
 0x297   : > { %v13507_v60 = vand.u32 2147483647, %v13483_v38  ;;  %v892_v54 = vor.u32 %v891_v14, %v890_v42  ;;  %v895_v48 = vshll.u32 %v894_v29, 23  ;;  %v713_v13 = vsel %vm703_vm3, nan, %v712_v55 }
 0x298   : > { %v983_v10 = vshll.u32 %v10154_v30, 30  ;;  %v1144_v15 = vshrl.u32 %v13340_v11, %v13510_v49  ;;  %v1147_v23 = vshrl.u32 %v13341_v4, %v13510_v49  ;;  %v1150_v47 = vshrl.u32 %v13342_v26, %v13510_v49 }
 0x299   : > { %vm10158_vm12 = vcmp.le.f32.partialorder %v13507_v60, 0.7853982  ;;  %v7225_v22 = vpop.eup %7224  ;;  %v896_v18 = vor.u32 4788187, %v895_v48  ;;  %v1133_v45 = vand.u32 8388607, %v13242_v32  ;;  %v1143_v62 = vshll.u32 %v13339_v53, %v13511_v39 }
 0x29a   : > { %v906_v17 = vsel %vm10158_vm12, 0, %v904_v51  ;;  %v7227_v44 = vpop.eup %7226  ;;  %v813_v20 = vxor.u32 2147483648, %v7225_v22  ;;  %v10173_v9 = vsub.s32 %v980_v59, %v983_v10  ;;  %v1146_v43 = vshll.u32 %v13340_v11, %v13511_v39 }
 0x29b   : > { %v810_v31 = vxor.u32 2147483648, %v7227_v44  ;;  %v1149_v27 = vshll.u32 %v13341_v4, %v13511_v39  ;;  %v897_v3 = vand.u32 2147483647, %v896_v18  ;;  %v899_v55 = vcvt.s32.f32 %v892_v54  ;;  %v487_v18 = vpop.permute.xlu1 %486 }
 0x29c   : > { %v814_v25 = vsel %vm812_vm8, %v813_v20, %v7227_v44  ;;  %v986_v59 = vsub.s32 0, %v10173_v9  ;;  %v1145_v42 = vor.u32 %v1144_v15, %v1143_v62  ;;  %v1148_v14 = vor.u32 %v1147_v23, %v1146_v43  ;;  %v13517_v23 = vld [vmem:[#allocation73_spill] sm:$0xff]  ;;  %v13518_v62 = vld [vmem:[#allocation76_spill] sm:$0xff] }
 0x29d   : > { %v811_v51 = vsel %vm809_vm1, %v7225_v22, %v810_v31  ;;  %v1151_v29 = vor.u32 %v1150_v47, %v1149_v27  ;;  %v900_v48 = vmul.f32 %v899_v55, %v897_v3  ;;  %v13513_v32 = vand.u32 2147483647, %v13512_v0  ;;  %v13516_v22 = vld [vmem:[#allocation47_spill] sm:$0xff]  ;;  %v13519_v27 = vld [vmem:[#allocation86_spill] sm:$0xff] }
 0x29e   : > { %v815_v60 = vsel %vm808_vm14, %v811_v51, %v814_v25  ;;  %v6272_v10 = vmin.u32 %v986_v59, %v10173_v9  ;;  %v10196_v44 = vand.u32 3, %v906_v17  ;;  %v1109_v15 = vsub.s32 4, %v13516_v22  ;;  %v13520_v59 = vld [vmem:[#allocation81_spill] sm:$0xff]  ;;  %v13521_v51 = vld [vmem:[#allocation75_spill] sm:$0xff] }
 0x29f   : > { %vm10190_vm3 = vcmp.le.f32.partialorder %v13513_v32, 0.7853982  ;;  %v816_v54 = vsel %vm806_vm13, nan, %v815_v60  ;;  %vm1158_vm0 = vcmp.lt.s32.totalorder %v13517_v23, 1  ;;  %v901_v47 = vxor.u32 2147483648, %v900_v48 }
 0x2a0   : > { %v3907_v50 = vpack.c.bf16 %v816_v54, %v713_v13  ;;  %v988_v20 = vclz %v6272_v10  ;;  %vm1160_vm6 = vcmp.lt.s32.totalorder %v13517_v23, 3  ;;  %v976_v32 = vadd.s32 %v10115_v2, %v10090_v33 }
 0x2a1   : > { %v1134_v31 = vor.u32 8388608, %v1133_v45  ;;  %v1166_v37 = vsel %vm1158_vm0, %v1145_v42, %v1148_v14  ;;  %v1168_v17 = vsel %vm1160_vm6, %v1151_v29, %v13518_v62  ;;  %v902_v13 = vsel %vm819_vm7, %v901_v47, %v900_v48 }
 0x2a2   : > { %6744 = vmatprep.mubr.bf16.mxu0 %v3907_v50  ;;  %v6273_v43 = vadd.s32 4294967294, %v988_v20  ;;  %v10214_v25 = vsel %vm10190_vm3, %v13512_v0, %v13519_v27  ;;  %vm1159_vm13 = vcmp.lt.s32.totalorder %v13517_v23, 2  ;;  %v905_v33 = vsel %vm10158_vm12, %v13483_v38, %v902_v13  ;;  %v10255_v27 = vld [vmem:[%s13030_s2] ss:$0 sm:$0xff] }
 0x2a3   : > { %v1142_v2 = vshrl.u32 %v13339_v53, %v13510_v49  ;;  %v1163_v45 = vsel %vm1161_vm5, %v1151_v29, 2102212464  ;;  %v1169_v3 = vsel %vm1159_vm13, %v1166_v37, %v1168_v17  ;;  %7228 = vcosq.f32 %v905_v33 }
 0x2a4   : > { %vm6274_vm7 = vcmp.lt.s32.totalorder %v6273_v43, 0  ;;  %v1170_v55 = vsel %vm1158_vm0, %v1148_v14, %v1151_v29  ;;  %v1172_v52 = vsel %vm1160_vm6, %v13521_v51, %v13520_v59  ;;  %7230 = vsinq.f32 %v905_v33  ;;  %v492_v29 = vpop.permute.xlu1 %491 }
 0x2a5   : > { %v991_v60 = vsel %vm6274_vm7, 0, %v6273_v43  ;;  %v1173_v49 = vsel %vm1159_vm13, %v1170_v55, %v1172_v52  ;;  %v1174_v48 = vshll.u32 %v1134_v31, 8  ;;  %v1162_v50 = vsel %vm1158_vm0, %v1142_v2, %v1145_v42 }
 0x2a6   : > { %v992_v10 = vsub.s32 32, %v991_v60  ;;  %v996_v54 = vsub.s32 4294967266, %v991_v60  ;;  %v1164_v47 = vsel %vm1160_vm6, %v1148_v14, %v1163_v45  ;;  %vm922_vm5 = vcmp.lt.s32.totalorder %v13494_v34, 0 }
 0x2a7   : > { %v10238_v20 = vmul.u32.u64.low %v1174_v48, %v1173_v49  ;;  %v10239_v37 = vmul.u32.u64.high %v1174_v48, %v1173_v49, %v10238_v20  ;;  %v10241_v62 = vmul.u32.u64.low %v1174_v48, %v1169_v3  ;;  %v10242_v17 = vmul.u32.u64.high %v1174_v48, %v1169_v3, %v10241_v62 }
 0x2a8   : > { %v993_v31 = vshll.u32 %v10173_v9, %v991_v60  ;;  %v994_v13 = vshrl.u32 %v976_v32, %v992_v10  ;;  %v997_v43 = vadd.s32 127, %v996_v54  ;;  %v1110_v42 = vsel %vm1025_vm9, %v1109_v15, %v13516_v22 }
 0x2a9   : > { %v1165_v14 = vsel %vm1159_vm13, %v1162_v50, %v1164_v47  ;;  %v562_v33 = vmul.f32 %v10255_v27, %v487_v18  ;;  %v563_v2 = vmul.f32 %v10255_v27, %v492_v29  ;;  %v13522_v9 = vand.u32 2147483647, %v13494_v34  ;;  %v10275_v18 = vld [vmem:[%s13031_s3] ss:$0 sm:$0xff] }
 0x2aa   : > { %v995_v45 = vor.u32 %v994_v13, %v993_v31  ;;  %v998_v22 = vshll.u32 %v997_v43, 23  ;;  %v1006_v15 = vsub.s32 4, %v10154_v30  ;;  %7232 = vsinq.f32 %v10214_v25 }
 0x2ab   : > { %vm10261_vm14 = vcmp.le.f32.partialorder %v13522_v9, 0.7853982  ;;  %vm911_vm9 = vcmp.lt.s32.totalorder %v10196_v44, 2  ;;  %vm912_vm1 = vcmp.eq.s32.totalorder %v10196_v44, 0  ;;  %vm1183_vm8 = vc.u32 %v10239_v37, %v10241_v62 }
 0x2ac   : > { %v1184_v23 = vadd.s32 1, %v10242_v17  ;;  %v10278_v3 = vadd.f32 %v10275_v18, %v562_v33  ;;  %vm915_vm12 = vcmp.eq.s32.totalorder %v10196_v44, 2  ;;  %v999_v55 = vor.u32 4788187, %v998_v22 }
 0x2ad   : > { %v1181_v59 = vmul.u32 %v1174_v48, %v1165_v14  ;;  %v10282_v51 = vadd.f32 %v10275_v18, %v563_v2  ;;  %v1112_v52 = vsel %vm10190_vm3, 0, %v1110_v42  ;;  %v7229_v54 = vpop.eup %7228  ;;  %v1002_v47 = vcvt.s32.f32 %v995_v45 }
 0x2ae   : > { %13525 = vst [vmem:[#allocation55_spill] sm:$0xff] %v10278_v3  ;;  %v1185_v60 = vsel %vm1183_vm8, %v1184_v23, %v10242_v17  ;;  %v13244_v49 = vand.u32 2147483647, %v10278_v3  ;;  %v2880_v10 = vand.u32 2139095040, %v10278_v3  ;;  %v1000_v50 = vand.u32 2147483647, %v999_v55  ;;  %v7231_v20 = vpop.eup %7230 }
 0x2af   : > { %13526 = vst [vmem:[#allocation41_spill] sm:$0xff] %v10282_v51  ;;  %v1007_v29 = vsel %vm922_vm5, %v1006_v15, %v10154_v30  ;;  %v1186_v48 = vadd.s32 %v1185_v60, %v1181_v59  ;;  %vm909_vm0 = vweird.f32 %v13483_v38  ;;  %v916_v31 = vxor.u32 2147483648, %v7229_v54 }
 0x2b0   : > { %v2881_v39 = vshrl.u32 %v2880_v10, 23  ;;  %v13243_v13 = vand.u32 2147483647, %v10282_v51  ;;  %v2983_v17 = vand.u32 2139095040, %v10282_v51  ;;  %v913_v43 = vxor.u32 2147483648, %v7231_v20 }
 0x2b1   : > { %v1003_v42 = vmul.f32 %v1002_v47, %v1000_v50  ;;  %v1187_v14 = vadd.s32 536870912, %v1186_v48  ;;  %v2884_v33 = vand.u32 8388607, %v13244_v49  ;;  %v917_v2 = vsel %vm915_vm12, %v916_v31, %v7231_v20 }
 0x2b2   : > { %v10299_v30 = vand.u32 3, %v1112_v52  ;;  %v6347_v9 = vadd.s32 4294967169, %v2881_v39  ;;  %v2984_v45 = vshrl.u32 %v2983_v17, 23  ;;  %v914_v22 = vsel %vm912_vm1, %v7229_v54, %v913_v43 }
 0x2b3   : > { %v1004_v15 = vxor.u32 2147483648, %v1003_v42  ;;  %7234 = vcosq.f32 %v10214_v25  ;;  %v1188_v23 = vshrl.u32 %v1187_v14, 30  ;;  %v1009_v55 = vsel %vm10261_vm14, 0, %v1007_v29  ;;  %v502_v14 = vpop.permute.xlu1 %501 }
 0x2b4   : > { %vm1128_vm3 = vcmp.lt.s32.totalorder %v13506_v12, 0  ;;  %v2887_v59 = vadd.s32 1, %v6347_v9  ;;  %v10309_v60 = vand.u32 8388607, %v13243_v13  ;;  %v10311_v52 = vpop.eup %7232  ;;  %v918_v10 = vsel %vm911_vm9, %v914_v22, %v917_v2 }
 0x2b5   : > { %v1005_v54 = vsel %vm922_vm5, %v1004_v15, %v1003_v42  ;;  %v1189_v25 = vshll.u32 %v1188_v23, 30  ;;  %v2885_v50 = vor.u32 8388608, %v2884_v33  ;;  %v1212_v29 = vsub.s32 4, %v1188_v23 }
 0x2b6   : > { %v1008_v47 = vsel %vm10261_vm14, %v13494_v34, %v1005_v54  ;;  %vm2888_vm6 = vcmp.gt.s32.totalorder %v2887_v59, 0  ;;  %v6351_v20 = vadd.s32 4294967169, %v2984_v45  ;;  %v10320_v31 = vand.u32 3, %v1009_v55 }
 0x2b7   : > { %7236 = vcosq.f32 %v1008_v47  ;;  %v10322_v39 = vsub.s32 %v1186_v48, %v1189_v25  ;;  %v2889_v17 = vsel %vm2888_vm6, %v2887_v59, 0  ;;  %v1182_v43 = vadd.s32 %v10241_v62, %v10239_v37 }
 0x2b8   : > { %7238 = vsinq.f32 %v1008_v47  ;;  %v2891_v42 = vand.u32 31, %v2889_v17  ;;  %v10329_v32 = vsel %vm909_vm0, nan, %v918_v10  ;;  %v10332_v2 = vshll.u32 %v2885_v50, 8 }
 0x2b9   : > { %v1192_v33 = vsub.s32 0, %v10322_v39  ;;  %v10337_v9 = vsel %vm1128_vm3, %v1212_v29, %v1188_v23  ;;  %v10339_v45 = vshrl.u32 %v2889_v17, 5  ;;  %v10341_v37 = vadd.s32 1, %v6351_v20 }
 0x2ba   : > { %v2892_v22 = vsub.s32 32, %v2891_v42  ;;  %vm1018_vm13 = vcmp.eq.s32.totalorder %v10320_v31, 2  ;;  %v2894_v62 = vshll.u32 %v13339_v53, %v2891_v42  ;;  %v2897_v15 = vshll.u32 %v13340_v11, %v2891_v42 }
 0x2bb   : > { %v6280_v38 = vmin.u32 %v1192_v33, %v10322_v39  ;;  %v10348_v55 = vmul.f32 %v10255_v27, %v502_v14  ;;  %vm1015_vm7 = vcmp.eq.s32.totalorder %v10320_v31, 0  ;;  %v2900_v10 = vshll.u32 %v13341_v4, %v2891_v42 }
 0x2bc   : > { %v2895_v23 = vshrl.u32 %v13340_v11, %v2892_v22  ;;  %v2898_v59 = vshrl.u32 %v13341_v4, %v2892_v22  ;;  %v2901_v54 = vshrl.u32 %v13342_v26, %v2892_v22  ;;  %vm1014_vm5 = vcmp.lt.s32.totalorder %v10320_v31, 2 }
 0x2bd   : > { %v10355_v25 = vpop.eup %7234  ;;  %v1194_v50 = vclz %v6280_v38  ;;  %v2903_v47 = vshll.u32 %v13342_v26, %v2891_v42  ;;  %v2904_v29 = vshrl.u32 %v13343_v61, %v2892_v22  ;;  %v2906_v20 = vshll.u32 %v13343_v61, %v2891_v42 }
 0x2be   : > { %vm1012_vm14 = vweird.f32 %v13494_v34  ;;  %v2896_v17 = vor.u32 %v2895_v23, %v2894_v62  ;;  %v2899_v14 = vor.u32 %v2898_v59, %v2897_v15  ;;  %v2902_v33 = vor.u32 %v2901_v54, %v2900_v10 }
 0x2bf   : > { %v2907_v13 = vshrl.u32 %v13344_v35, %v2892_v22  ;;  %vm2991_vm9 = vcmp.gt.s32.totalorder %v10341_v37, 0  ;;  %vm1118_vm1 = vcmp.eq.s32.totalorder %v10299_v30, 0  ;;  %v6281_v49 = vadd.s32 4294967294, %v1194_v50 }
 0x2c0   : > { %v2893_v38 = vshrl.u32 %v13339_v53, %v2892_v22  ;;  %v2905_v48 = vor.u32 %v2904_v29, %v2903_v47  ;;  %vm2909_vm8 = vcmp.lt.s32.totalorder %v10339_v45, 1  ;;  %vm2910_vm12 = vcmp.lt.s32.totalorder %v10339_v45, 2 }
 0x2c1   : > { %v2908_v44 = vor.u32 %v2907_v13, %v2906_v20  ;;  %vm2911_vm0 = vcmp.lt.s32.totalorder %v10339_v45, 3  ;;  %vm2912_vm6 = vcmp.lt.s32.totalorder %v10339_v45, 4  ;;  %v7237_v42 = vpop.eup %7236  ;;  %vm6282_vm11 = vcmp.lt.s32.totalorder %v6281_v49, 0 }
 0x2c2   : > { %v2914_v62 = vsel %vm2912_vm6, %v2902_v33, 2102212464  ;;  %v2917_v15 = vsel %vm2909_vm8, %v2896_v17, %v2899_v14  ;;  %v2918_v22 = vsel %vm2912_vm6, %v2905_v48, 920167782  ;;  %v7239_v23 = vpop.eup %7238  ;;  %v1019_v59 = vxor.u32 2147483648, %v7237_v42 }
 0x2c3   : > { %v1197_v13 = vsel %vm6282_vm11, 0, %v6281_v49  ;;  %v2913_v10 = vsel %vm2909_vm8, %v2893_v38, %v2896_v17  ;;  %v2919_v54 = vsel %vm2911_vm0, %v2902_v33, %v2918_v22  ;;  %v1016_v50 = vxor.u32 2147483648, %v7239_v23 }
 0x2c4   : > { %v1198_v47 = vsub.s32 32, %v1197_v13  ;;  %v1202_v29 = vsub.s32 4294967266, %v1197_v13  ;;  %v2915_v20 = vsel %vm2911_vm0, %v2899_v14, %v2914_v62  ;;  %v1020_v46 = vsel %vm1018_vm13, %v1019_v59, %v7239_v23 }
 0x2c5   : > { %v1199_v21 = vshll.u32 %v10322_v39, %v1197_v13  ;;  %v2920_v49 = vsel %vm2910_vm12, %v2917_v15, %v2919_v54  ;;  %v2921_v17 = vsel %vm2909_vm8, %v2899_v14, %v2902_v33  ;;  %v1017_v38 = vsel %vm1015_vm7, %v7237_v42, %v1016_v50 }
 0x2c6   : > { %v1200_v22 = vshrl.u32 %v1182_v43, %v1198_v47  ;;  %v1203_v7 = vadd.s32 127, %v1202_v29  ;;  %v2922_v57 = vsel %vm2912_vm6, %v2908_v44, 1326507024  ;;  %v1021_v62 = vsel %vm1014_vm5, %v1017_v38, %v1020_v46 }
 0x2c7   : > { %v2923_v39 = vsel %vm2911_vm0, %v2905_v48, %v2922_v57  ;;  %v10398_v23 = vmul.u32.u64.low %v10332_v2, %v2920_v49  ;;  %v10399_v15 = vmul.u32.u64.high %v10332_v2, %v2920_v49, %v10398_v23  ;;  %v1022_v14 = vsel %vm1012_vm14, nan, %v1021_v62 }
 0x2c8   : > { %v1201_v33 = vor.u32 %v1200_v22, %v1199_v21  ;;  %v1204_v43 = vshll.u32 %v1203_v7, 23  ;;  %v2924_v42 = vsel %vm2910_vm12, %v2921_v17, %v2923_v39  ;;  %v3908_v44 = vpack.c.bf16 %v1022_v14, %v10329_v32 }
 0x2c9   : > { %v2916_v46 = vsel %vm2910_vm12, %v2913_v10, %v2915_v20  ;;  %v10410_v57 = vmul.u32.u64.low %v10332_v2, %v2924_v42  ;;  %v10411_v31 = vmul.u32.u64.high %v10332_v2, %v2924_v42, %v10410_v57  ;;  %v1122_v48 = vxor.u32 2147483648, %v10355_v25 }
 0x2ca   : > { %v13527_v59 = vand.u32 2147483647, %v13506_v12  ;;  %v1205_v7 = vor.u32 4788187, %v1204_v43  ;;  %v2992_v21 = vsel %vm2991_vm9, %v10341_v37, 0  ;;  %6745 = vmatmul.mubr.bf16.vlgmr.msra.gmra.mrb[0].mxu0 %v3908_v44  ;;  %v13530_v32 = vxor.u32 2147483648, %v10311_v52 }
 0x2cb   : > { %v2935_v13 = vadd.s32 1, %v10399_v15  ;;  %v2994_v10 = vand.u32 31, %v2992_v21  ;;  %v13531_v54 = vor.u32 8388608, %v10309_v60  ;;  %v1208_v29 = vcvt.s32.f32 %v1201_v33 }
 0x2cc   : > { %vm10416_vm11 = vcmp.le.f32.partialorder %v13527_v59, 0.7853982  ;;  %v10428_v45 = vsel %vm1118_vm1, %v10355_v25, %v13530_v32  ;;  %v1206_v47 = vand.u32 2147483647, %v1205_v7  ;;  %v2932_v20 = vmul.u32 %v10332_v2, %v2916_v46 }
 0x2cd   : > { %v10433_v50 = vshll.u32 %v13531_v54, 8  ;;  %v1215_v37 = vsel %vm10416_vm11, 0, %v10337_v9  ;;  %vm2934_vm13 = vc.u32 %v10411_v31, %v10398_v23  ;;  %v2993_v49 = vshrl.u32 %v2992_v21, 5 }
 0x2ce   : > { %v2995_v17 = vsub.s32 32, %v2994_v10  ;;  %v10443_v38 = vadd.f32 %v10275_v18, %v10348_v55  ;;  %v1209_v60 = vmul.f32 %v1208_v29, %v1206_v47  ;;  %v2936_v22 = vsel %vm2934_vm13, %v2935_v13, %v10399_v15 }
 0x2cf   : > { %v2997_v62 = vshll.u32 %v13339_v53, %v2994_v10  ;;  %v3000_v39 = vshll.u32 %v13340_v11, %v2994_v10  ;;  %vm1121_vm7 = vcmp.eq.s32.totalorder %v10299_v30, 2  ;;  %v2937_v9 = vadd.s32 %v2936_v22, %v2932_v20 }
 0x2d0   : > { %13532 = vst [vmem:[#allocation52_spill] sm:$0xff] %v10443_v38  ;;  %v2998_v2 = vshrl.u32 %v13340_v11, %v2995_v17  ;;  %v3001_v14 = vshrl.u32 %v13341_v4, %v2995_v17  ;;  %v3003_v33 = vshll.u32 %v13341_v4, %v2994_v10  ;;  %v1210_v43 = vxor.u32 2147483648, %v1209_v60 }
 0x2d1   : > { %v3004_v55 = vshrl.u32 %v13342_v26, %v2995_v17  ;;  %v3006_v42 = vshll.u32 %v13342_v26, %v2994_v10  ;;  %v3007_v15 = vshrl.u32 %v13343_v61, %v2995_v17  ;;  %v2938_v44 = vadd.s32 536870912, %v2937_v9 }
 0x2d2   : > { %v2999_v46 = vor.u32 %v2998_v2, %v2997_v62  ;;  %v3002_v57 = vor.u32 %v3001_v14, %v3000_v39  ;;  %v3009_v59 = vshll.u32 %v13343_v61, %v2994_v10  ;;  %vm1117_vm5 = vcmp.lt.s32.totalorder %v10299_v30, 2 }
 0x2d3   : > { %v1211_v7 = vsel %vm1128_vm3, %v1210_v43, %v1209_v60  ;;  %v3005_v21 = vor.u32 %v3004_v55, %v3003_v33  ;;  %v3008_v32 = vor.u32 %v3007_v15, %v3006_v42  ;;  %v3010_v13 = vshrl.u32 %v13344_v35, %v2995_v17 }
 0x2d4   : > { %v1214_v54 = vsel %vm10416_vm11, %v13506_v12, %v1211_v7  ;;  %v10463_v47 = vshrl.u32 %v2938_v44, 30  ;;  %v2996_v29 = vshrl.u32 %v13339_v53, %v2995_v17  ;;  %v3189_v20 = vand.u32 2139095040, %v10443_v38  ;;  %v4170_v44 = vpop.permute.xlu1 %4169 }
 0x2d5   : > { %7240 = vcosq.f32 %v1214_v54  ;;  %v3011_v10 = vor.u32 %v3010_v13, %v3009_v59  ;;  %vm3012_vm14 = vcmp.lt.s32.totalorder %v2993_v49, 1  ;;  %vm3015_vm9 = vcmp.lt.s32.totalorder %v2993_v49, 4 }
 0x2d6   : > { %13533 = vst [vmem:[#allocation50_spill] sm:$0xff] %v10463_v47  ;;  %7242 = vsinq.f32 %v1214_v54  ;;  %v2940_v60 = vshll.u32 %v10463_v47, 30  ;;  %vm3013_vm3 = vcmp.lt.s32.totalorder %v2993_v49, 2  ;;  %v3017_v22 = vsel %vm3015_vm9, %v3005_v21, 2102212464 }
 0x2d7   : > { %vm3014_vm1 = vcmp.lt.s32.totalorder %v2993_v49, 3  ;;  %v3020_v62 = vsel %vm3012_vm14, %v2999_v46, %v3002_v57  ;;  %v3021_v39 = vsel %vm3015_vm9, %v3008_v32, 920167782  ;;  %v3024_v34 = vsel %vm3012_vm14, %v3002_v57, %v3005_v21 }
 0x2d8   : > { %v10468_v2 = vsub.s32 %v2937_v9, %v2940_v60  ;;  %v3016_v14 = vsel %vm3012_vm14, %v2996_v29, %v2999_v46  ;;  %v3022_v33 = vsel %vm3014_vm1, %v3005_v21, %v3021_v39  ;;  %v3025_v17 = vsel %vm3015_vm9, %v3011_v10, 1326507024 }
 0x2d9   : > { %v3018_v43 = vsel %vm3014_vm1, %v3002_v57, %v3017_v22  ;;  %v3023_v55 = vsel %vm3013_vm3, %v3020_v62, %v3022_v33  ;;  %v3026_v42 = vsel %vm3014_vm1, %v3008_v32, %v3025_v17  ;;  %v3190_v15 = vshrl.u32 %v3189_v20, 23 }
 0x2da   : > { %v2943_v59 = vsub.s32 0, %v10468_v2  ;;  %v3027_v7 = vsel %vm3013_vm3, %v3024_v34, %v3026_v42  ;;  %v10474_v13 = vmul.u32.u64.low %v10433_v50, %v3023_v55  ;;  %v10475_v54 = vmul.u32.u64.high %v10433_v50, %v3023_v55, %v10474_v13 }
 0x2db   : > { %v1123_v9 = vsel %vm1121_vm7, %v1122_v48, %v10311_v52  ;;  %v10484_v46 = vmul.u32.u64.low %v10433_v50, %v3027_v7  ;;  %v10485_v57 = vmul.u32.u64.high %v10433_v50, %v3027_v7, %v10484_v46  ;;  %v6359_v21 = vadd.s32 4294967169, %v3190_v15  ;;  %v13534_v48 = vld [vmem:[#allocation106_spill] sm:$0xff] }
 0x2dc   : > { %v2648_v32 = vand.u32 2147483647, %v10106_v40  ;;  %v1219_v29 = vand.u32 3, %v1215_v37  ;;  %v3019_v20 = vsel %vm3013_vm3, %v3016_v14, %v3018_v43  ;;  %vm4252_vm8 = vcmp.eq.s32.totalorder %v7836_v28, %v4170_v44 }
 0x2dd   : > { %v2850_v10 = vsub.s32 4294967266, %v10145_v1  ;;  %v6348_v60 = vmin.u32 %v2943_v59, %v10468_v2  ;;  %v3196_v25 = vadd.s32 1, %v6359_v21  ;;  %v6401_v22 = vsel %vm4252_vm8, 1.0, %v13354_v5 }
 0x2de   : > { %vm1115_vm12 = vweird.f32 %v13512_v0  ;;  %v1124_v52 = vsel %vm1117_vm5, %v10428_v45, %v1123_v9  ;;  %v3038_v40 = vadd.s32 1, %v10475_v54  ;;  %v4345_v37 = vpack.c.bf16 %v13534_v48, %v6401_v22 }
 0x2df   : > { %v7241_v49 = vpop.eup %7240  ;;  %v3035_v62 = vmul.u32 %v10433_v50, %v3019_v20  ;;  %vm3037_vm0 = vc.u32 %v10485_v57, %v10474_v13  ;;  %v13249_v39 = vand.u32 2147483647, %v10443_v38  ;;  %vm3197_vm6 = vcmp.gt.s32.totalorder %v3196_v25, 0 }
 0x2e0   : > { %v7243_v34 = vpop.eup %7242  ;;  %vm1224_vm11 = vcmp.eq.s32.totalorder %v1219_v29, 2  ;;  %v1225_v14 = vxor.u32 2147483648, %v7241_v49  ;;  %v3039_v33 = vsel %vm3037_vm0, %v3038_v40, %v10475_v54  ;;  %v3198_v30 = vsel %vm3197_vm6, %v3196_v25, 0  ;;  %6506 = vmatmul.mubr.msk.bf16.gmra.mrb[44].mxu1 %vm4671_vm4, %v4345_v37 }
 0x2e1   : > { %v1222_v45 = vxor.u32 2147483648, %v7243_v34  ;;  %v2945_v17 = vclz %v6348_v60  ;;  %v3040_v43 = vadd.s32 %v3039_v33, %v3035_v62  ;;  %v3200_v55 = vand.u32 31, %v3198_v30  ;;  %5049 = vmatprep.mubr.bf16.mxu1 %v13382_v19 }
 0x2e2   : > { %v1125_v50 = vsel %vm1115_vm12, nan, %v1124_v52  ;;  %vm1220_vm13 = vcmp.lt.s32.totalorder %v1219_v29, 2  ;;  %vm1221_vm7 = vcmp.eq.s32.totalorder %v1219_v29, 0  ;;  %v1226_v42 = vsel %vm1224_vm11, %v1225_v14, %v7243_v34 }
 0x2e3   : > { %v1223_v15 = vsel %vm1221_vm7, %v7241_v49, %v1222_v45  ;;  %v3041_v44 = vadd.s32 536870912, %v3040_v43  ;;  %v3193_v59 = vand.u32 8388607, %v13249_v39  ;;  %v3201_v7 = vsub.s32 32, %v3200_v55 }
 0x2e4   : > { %v2549_v54 = vxor.u32 2147483648, %v10104_v24  ;;  %v2830_v9 = vadd.s32 %v9816_v41, %v9825_v56  ;;  %vm1218_vm5 = vweird.f32 %v13506_v12  ;;  %v1227_v46 = vsel %vm1220_vm13, %v1223_v15, %v1226_v42  ;;  %v13537_v15 = vld [vmem:[#allocation122_spill] sm:$0xff] }
 0x2e5   : > { %v13535_v0 = vcvt.s32.f32 %v10033_v6  ;;  %v1228_v29 = vsel %vm1218_vm5, nan, %v1227_v46  ;;  %v6349_v20 = vadd.s32 4294967294, %v2945_v17  ;;  %v10518_v60 = vshrl.u32 %v3041_v44, 30  ;;  %v13538_v46 = vld [vmem:[#allocation62_spill] sm:$0xff] }
 0x2e6   : > { %v2846_v25 = vsub.s32 32, %v10145_v1  ;;  %v2847_v22 = vshll.u32 %v10018_v8, %v10145_v1  ;;  %v3909_v52 = vpack.c.bf16 %v1228_v29, %v1125_v50  ;;  %v3204_v40 = vshrl.u32 %v13340_v11, %v3201_v7 }
 0x2e7   : > { %v10516_v21 = vmul.f32 %v13535_v0, %v2648_v32  ;;  %13536 = vst [vmem:[#allocation57_spill] sm:$0xff] %v10518_v60  ;;  %v2851_v41 = vadd.s32 127, %v2850_v10  ;;  %v3043_v56 = vshll.u32 %v10518_v60, 30  ;;  %v3194_v12 = vor.u32 8388608, %v3193_v59 }
 0x2e8   : > { %v3207_v6 = vshrl.u32 %v13341_v4, %v3201_v7  ;;  %6748 = vmatprep.mubr.bf16.mxu0 %v3909_v52  ;;  %v3203_v32 = vshll.u32 %v13339_v53, %v3200_v55  ;;  %v3206_v48 = vshll.u32 %v13340_v11, %v3200_v55  ;;  %v3209_v37 = vshll.u32 %v13341_v4, %v3200_v55 }
 0x2e9   : > { %v3210_v49 = vshrl.u32 %v13342_v26, %v3201_v7  ;;  %vm6350_vm14 = vcmp.lt.s32.totalorder %v6349_v20, 0  ;;  %v3199_v8 = vshrl.u32 %v3198_v30, 5  ;;  %v3212_v1 = vshll.u32 %v13342_v26, %v3200_v55 }
 0x2ea   : > { %v3213_v10 = vshrl.u32 %v13343_v61, %v3201_v7  ;;  %v2848_v62 = vshrl.u32 %v2830_v9, %v2846_v25  ;;  %v3205_v34 = vor.u32 %v3204_v40, %v3203_v32  ;;  %v3208_v14 = vor.u32 %v3207_v6, %v3206_v48 }
 0x2eb   : > { %v3211_v33 = vor.u32 %v3210_v49, %v3209_v37  ;;  %v10532_v45 = vsub.s32 %v3040_v43, %v3043_v56  ;;  %v3215_v50 = vshll.u32 %v13343_v61, %v3200_v55  ;;  %v3216_v42 = vshrl.u32 %v13344_v35, %v3201_v7 }
 0x2ec   : > { %v3214_v17 = vor.u32 %v3213_v10, %v3212_v1  ;;  %vm2467_vm9 = vcmp.lt.s32.totalorder %v13537_v15, 0  ;;  %v2852_v44 = vshll.u32 %v2851_v41, 23  ;;  %v10537_v59 = vsel %vm6350_vm14, 0, %v6349_v20 }
 0x2ed   : > { %v3234_v30 = vshll.u32 %v3194_v12, 8  ;;  %v13250_v0 = vand.u32 2147483647, %v13538_v46  ;;  %v3202_v9 = vshrl.u32 %v13339_v53, %v3201_v7  ;;  %v3217_v29 = vor.u32 %v3216_v42, %v3215_v50  ;;  %v13539_v50 = vld [vmem:[#allocation79_spill] sm:$0xff]  ;;  %v13540_v42 = vld [vmem:[#allocation77_spill] sm:$0xff] }
 0x2ee   : > { %vm3218_vm3 = vcmp.lt.s32.totalorder %v3199_v8, 1  ;;  %vm3221_vm1 = vcmp.lt.s32.totalorder %v3199_v8, 4  ;;  %vm3220_vm8 = vcmp.lt.s32.totalorder %v3199_v8, 3  ;;  %v3046_v55 = vsub.s32 0, %v10532_v45 }
 0x2ef   : > { %v3223_v43 = vsel %vm3221_vm1, %v3211_v33, 2102212464  ;;  %v3226_v25 = vsel %vm3218_vm3, %v3205_v34, %v3208_v14  ;;  %v3227_v52 = vsel %vm3221_vm1, %v3214_v17, 920167782  ;;  %vm3219_vm12 = vcmp.lt.s32.totalorder %v3199_v8, 2 }
 0x2f0   : > { %v3228_v40 = vsel %vm3220_vm8, %v3211_v33, %v3227_v52  ;;  %v3230_v56 = vsel %vm3218_vm3, %v3208_v14, %v3211_v33  ;;  %v10542_v41 = vor.u32 %v2848_v62, %v2847_v22  ;;  %v3222_v20 = vsel %vm3218_vm3, %v3202_v9, %v3205_v34 }
 0x2f1   : > { %v3229_v12 = vsel %vm3219_vm12, %v3226_v25, %v3228_v40  ;;  %v3231_v6 = vsel %vm3221_vm1, %v3217_v29, 1326507024  ;;  %v3224_v32 = vsel %vm3220_vm8, %v3208_v14, %v3223_v43  ;;  %v2853_v49 = vor.u32 4788187, %v2852_v44 }
 0x2f2   : > { %v3232_v7 = vsel %vm3220_vm8, %v3214_v17, %v3231_v6  ;;  %v10545_v48 = vmul.u32.u64.low %v3234_v30, %v3229_v12  ;;  %v10546_v37 = vmul.u32.u64.high %v3234_v30, %v3229_v12, %v10545_v48  ;;  %v2953_v1 = vsub.s32 4294967266, %v10537_v59 }
 0x2f3   : > { %v3233_v10 = vsel %vm3219_vm12, %v3230_v56, %v3232_v7  ;;  %v1236_v33 = vand.u32 8388607, %v13250_v0  ;;  %v6352_v22 = vmin.u32 %v3046_v55, %v10532_v45  ;;  %v1247_v14 = vshrl.u32 %v13340_v11, %v13539_v50 }
 0x2f4   : > { %v10554_v62 = vmul.u32.u64.low %v3234_v30, %v3233_v10  ;;  %v10555_v34 = vmul.u32.u64.high %v3234_v30, %v3233_v10, %v10554_v62  ;;  %v3225_v17 = vsel %vm3219_vm12, %v3222_v20, %v3224_v32  ;;  %v1246_v44 = vshll.u32 %v13339_v53, %v13540_v42  ;;  %v10584_v10 = vpop.permute.xlu0 %4178 }
 0x2f5   : > { %v1249_v9 = vshll.u32 %v13340_v11, %v13540_v42  ;;  %v1250_v29 = vshrl.u32 %v13341_v4, %v13539_v50  ;;  %v10571_v43 = vsel %vm2467_vm9, %v2549_v54, %v10104_v24  ;;  %v2652_v25 = vxor.u32 2147483648, %v10516_v21 }
 0x2f6   : > { %v2856_v8 = vcvt.s32.f32 %v10542_v41  ;;  %v3244_v52 = vadd.s32 1, %v10546_v37  ;;  %vm13265_vm0 = vcmp.lt.s32.totalorder %v9430_v63, 0  ;;  %v1248_v55 = vor.u32 %v1247_v14, %v1246_v44 }
 0x2f7   : > { %v1251_v40 = vor.u32 %v1250_v29, %v1249_v9  ;;  %v1252_v56 = vshll.u32 %v13341_v4, %v13540_v42  ;;  %v1253_v20 = vshrl.u32 %v13342_v26, %v13539_v50  ;;  %v2854_v12 = vand.u32 2147483647, %v2853_v49  ;;  %v13541_v42 = vld [vmem:[#allocation78_spill] sm:$0xff]  ;;  %v13543_v29 = vld [vmem:[#allocation88_spill] sm:$0xff] }
 0x2f8   : > { %v3048_v6 = vclz %v6352_v22  ;;  %v3241_v24 = vmul.u32 %v3234_v30, %v3225_v17  ;;  %vm3243_vm6 = vc.u32 %v10555_v34, %v10545_v48  ;;  %v2954_v54 = vadd.s32 127, %v2953_v1  ;;  %v13542_v22 = vld [vmem:[#allocation87_spill] sm:$0xff] }
 0x2f9   : > { %v3245_v41 = vsel %vm3243_vm6, %v3244_v52, %v10546_v37  ;;  %v1237_v32 = vor.u32 8388608, %v1236_v33  ;;  %v1254_v7 = vor.u32 %v1253_v20, %v1252_v56  ;;  %v1245_v14 = vshrl.u32 %v13339_v53, %v13539_v50  ;;  %v13544_v52 = vld [vmem:[#allocation83_spill] sm:$0xff] }
 0x2fa   : > { %v3246_v62 = vadd.s32 %v3245_v41, %v3241_v24  ;;  %vm1261_vm11 = vcmp.lt.s32.totalorder %v13541_v42, 1  ;;  %vm1263_vm13 = vcmp.lt.s32.totalorder %v13541_v42, 3  ;;  %v2949_v37 = vsub.s32 32, %v10537_v59 }
 0x2fb   : > { %v1266_v30 = vsel %vm1264_vm10, %v1254_v7, 2102212464  ;;  %v1269_v49 = vsel %vm1261_vm11, %v1248_v55, %v1251_v40  ;;  %v1271_v1 = vsel %vm1263_vm13, %v1254_v7, %v13542_v22  ;;  %v1273_v17 = vsel %vm1261_vm11, %v1251_v40, %v1254_v7 }
 0x2fc   : > { %v6353_v33 = vadd.s32 4294967294, %v3048_v6  ;;  %v3247_v44 = vadd.s32 536870912, %v3246_v62  ;;  %vm1262_vm7 = vcmp.lt.s32.totalorder %v13541_v42, 2  ;;  %v2955_v9 = vshll.u32 %v2954_v54, 23 }
 0x2fd   : > { %v1272_v50 = vsel %vm1262_vm7, %v1269_v49, %v1271_v1  ;;  %v1275_v56 = vsel %vm1263_vm13, %v13544_v52, %v13543_v29  ;;  %v1277_v20 = vshll.u32 %v1237_v32, 8  ;;  %v1265_v41 = vsel %vm1261_vm11, %v1245_v14, %v1248_v55  ;;  %v10615_v32 = vpop.permute.xlu0 %4181 }
 0x2fe   : > { %v10599_v24 = vshrl.u32 %v3247_v44, 30  ;;  %v1267_v39 = vsel %vm1263_vm13, %v1251_v40, %v1266_v30  ;;  %v1276_v7 = vsel %vm1262_vm7, %v1273_v17, %v1275_v56  ;;  %v10613_v54 = vsel %vm13265_vm0, %v2652_v25, %v10516_v21  ;;  %v13547_v40 = vld [vmem:[#allocation74_spill] sm:$0xff] }
 0x2ff   : > { %v10603_v22 = vmul.u32.u64.low %v1277_v20, %v1276_v7  ;;  %v10604_v6 = vmul.u32.u64.high %v1277_v20, %v1276_v7, %v10603_v22  ;;  %v10606_v0 = vmul.u32.u64.low %v1277_v20, %v1272_v50  ;;  %v10607_v60 = vmul.u32.u64.high %v1277_v20, %v1272_v50, %v10606_v0  ;;  %13546 = vst [vmem:[#allocation59_spill] sm:$0xff] %v10613_v54  ;;  %v13548_v25 = vld [vmem:[#allocation94_spill] sm:$0xff] }
 0x300   : > { %13545 = vst [vmem:[#allocation67_spill] sm:$0xff] %v10599_v24  ;;  %v2933_v55 = vadd.s32 %v10398_v23, %v10411_v31  ;;  %vm6354_vm10 = vcmp.lt.s32.totalorder %v6353_v33, 0  ;;  %v13253_v14 = vand.u32 2147483647, %v13547_v40  ;;  %v10620_v30 = vmul.f32 %v2856_v8, %v2854_v12  ;;  %v13549_v8 = vld [vmem:[#allocation89_spill] sm:$0xff] }
 0x301   : > { %vm4255_vm5 = vcmp.eq.s32.totalorder %v7836_v28, %v10584_v10  ;;  %v2950_v49 = vshll.u32 %v10468_v2, %v10537_v59  ;;  %v1268_v21 = vsel %vm1262_vm7, %v1265_v41, %v1267_v39  ;;  %v1350_v1 = vshrl.u32 %v13340_v11, %v13548_v25  ;;  %v10651_v56 = vpop.permute.xlu0 %4187 }
 0x302   : > { %v2951_v17 = vshrl.u32 %v2933_v55, %v2949_v37  ;;  %v3249_v23 = vshll.u32 %v10599_v24, 30  ;;  %v1339_v31 = vand.u32 8388607, %v13253_v14  ;;  %v1349_v12 = vshll.u32 %v13339_v53, %v13549_v8 }
 0x303   : > { %v10635_v44 = vor.u32 4788187, %v2955_v9  ;;  %v10637_v50 = vsel %vm6354_vm10, 0, %v6353_v33  ;;  %vm1286_vm14 = vc.u32 %v10604_v6, %v10606_v0  ;;  %v1287_v2 = vadd.s32 1, %v10607_v60 }
 0x304   : > { %v1284_v39 = vmul.u32 %v1277_v20, %v1268_v21  ;;  %v1340_v59 = vor.u32 8388608, %v1339_v31  ;;  %v1351_v42 = vor.u32 %v1350_v1, %v1349_v12  ;;  %v1352_v37 = vshll.u32 %v13340_v11, %v13549_v8  ;;  %v13550_v21 = vld [vmem:[#allocation93_spill] sm:$0xff] }
 0x305   : > { %v1288_v29 = vsel %vm1286_vm14, %v1287_v2, %v10607_v60  ;;  %v1353_v52 = vshrl.u32 %v13341_v4, %v13548_v25  ;;  %v1355_v33 = vshll.u32 %v13341_v4, %v13549_v8  ;;  %v1356_v9 = vshrl.u32 %v13342_v26, %v13548_v25  ;;  %v13551_v31 = vld [vmem:[#allocation105_spill] sm:$0xff] }
 0x306   : > { %v3056_v20 = vsub.s32 4294967266, %v10637_v50  ;;  %v10654_v41 = vsub.s32 %v3246_v62, %v3249_v23  ;;  %v1289_v7 = vadd.s32 %v1288_v29, %v1284_v39  ;;  %v1348_v22 = vshrl.u32 %v13339_v53, %v13548_v25  ;;  %v13552_v8 = vld [vmem:[#allocation101_spill] sm:$0xff]  ;;  %v13553_v39 = vld [vmem:[#allocation104_spill] sm:$0xff] }
 0x307   : > { %v1354_v60 = vor.u32 %v1353_v52, %v1352_v37  ;;  %v1357_v55 = vor.u32 %v1356_v9, %v1355_v33  ;;  %vm1364_vm3 = vcmp.lt.s32.totalorder %v13550_v21, 1  ;;  %vm1366_vm1 = vcmp.lt.s32.totalorder %v13550_v21, 3 }
 0x308   : > { %v1290_v1 = vadd.s32 536870912, %v1289_v7  ;;  %vm1365_vm8 = vcmp.lt.s32.totalorder %v13550_v21, 2  ;;  %v1378_v12 = vsel %vm1366_vm1, %v13552_v8, %v13551_v31  ;;  %v1380_v2 = vshll.u32 %v1340_v59, 8 }
 0x309   : > { %v1369_v62 = vsel %vm1367_vm2, %v1357_v55, 2102212464  ;;  %v1372_v23 = vsel %vm1364_vm3, %v1351_v42, %v1354_v60  ;;  %v1374_v29 = vsel %vm1366_vm1, %v1357_v55, %v13553_v39  ;;  %v1376_v25 = vsel %vm1364_vm3, %v1354_v60, %v1357_v55 }
 0x30a   : > { %vm13264_vm12 = vcmp.lt.s32.totalorder %v9522_v36, 0  ;;  %v3252_v37 = vsub.s32 0, %v10654_v41  ;;  %v10668_v52 = vshrl.u32 %v1290_v1, 30  ;;  %v1368_v33 = vsel %vm1364_vm3, %v1348_v22, %v1351_v42  ;;  %v4194_v22 = vpop.permute.xlu0 %4193 }
 0x30b   : > { %v1375_v9 = vsel %vm1365_vm8, %v1372_v23, %v1374_v29  ;;  %v1370_v14 = vsel %vm1366_vm1, %v1354_v60, %v1369_v62  ;;  %v1379_v59 = vsel %vm1365_vm8, %v1376_v25, %v1378_v12  ;;  %v10682_v55 = vsel %vm4255_vm5, 1.0, %v13354_v5  ;;  %v507_v29 = vpop.permute.xlu1 %506 }
 0x30c   : > { %v10674_v31 = vmul.u32.u64.low %v1380_v2, %v1375_v9  ;;  %v10675_v8 = vmul.u32.u64.high %v1380_v2, %v1375_v9, %v10674_v31  ;;  %v3052_v1 = vsub.s32 32, %v10637_v50  ;;  %v3057_v42 = vadd.s32 127, %v3056_v20 }
 0x30d   : > { %v1292_v23 = vshll.u32 %v10668_v52, 30  ;;  %v2858_v60 = vxor.u32 2147483648, %v10620_v30  ;;  %v2952_v62 = vor.u32 %v2951_v17, %v2950_v49  ;;  %v3036_v25 = vadd.s32 %v10474_v13, %v10485_v57 }
 0x30e   : > { %v10687_v12 = vmul.u32.u64.low %v1380_v2, %v1379_v59  ;;  %v10688_v39 = vmul.u32.u64.high %v1380_v2, %v1379_v59, %v10687_v12  ;;  %v6360_v10 = vmin.u32 %v3252_v37, %v10654_v41  ;;  %v1371_v20 = vsel %vm1365_vm8, %v1368_v33, %v1370_v14  ;;  %v4200_v37 = vpop.permute.xlu0 %4199 }
 0x30f   : > { %v10693_v9 = vsub.s32 %v1289_v7, %v1292_v23  ;;  %vm4256_vm2 = vcmp.eq.s32.totalorder %v7836_v28, %v10615_v32  ;;  %v2957_v24 = vand.u32 2147483647, %v10635_v44  ;;  %vm4258_vm6 = vcmp.eq.s32.totalorder %v7836_v28, %v10651_v56 }
 0x310   : > { %v1390_v49 = vadd.s32 1, %v10675_v8  ;;  %v3054_v17 = vshrl.u32 %v3036_v25, %v3052_v1  ;;  %v3058_v59 = vshll.u32 %v3057_v42, 23  ;;  %v566_v57 = vmul.f32 %v10255_v27, %v507_v29 }
 0x311   : > { %v1295_v13 = vsub.s32 0, %v10693_v9  ;;  %v2959_v7 = vcvt.s32.f32 %v2952_v62  ;;  %vm4260_vm11 = vcmp.eq.s32.totalorder %v7836_v28, %v4194_v22  ;;  %v1387_v14 = vmul.u32 %v1380_v2, %v1371_v20 }
 0x312   : > { %vm1389_vm13 = vc.u32 %v10688_v39, %v10674_v31  ;;  %v3053_v44 = vshll.u32 %v10532_v45, %v10637_v50  ;;  %v3254_v21 = vclz %v6360_v10  ;;  %v10715_v42 = vsel %vm13264_vm12, %v2858_v60, %v10620_v30  ;;  %v512_v50 = vpop.permute.xlu1 %511 }
 0x313   : > { %v6284_v33 = vmin.u32 %v1295_v13, %v10693_v9  ;;  %v1391_v1 = vsel %vm1389_vm13, %v1390_v49, %v10675_v8  ;;  %13554 = vst [vmem:[#allocation66_spill] sm:$0xff] %v10715_v42  ;;  %v10717_v23 = vmul.f32 %v2959_v7, %v2957_v24  ;;  %vm4262_vm7 = vcmp.eq.s32.totalorder %v7836_v28, %v4200_v37 }
 0x314   : > { %v1392_v2 = vadd.s32 %v1391_v1, %v1387_v14  ;;  %v3055_v62 = vor.u32 %v3054_v17, %v3053_v44  ;;  %v3059_v12 = vor.u32 4788187, %v3058_v59  ;;  %v10721_v45 = vadd.f32 %v10275_v18, %v566_v57 }
 0x315   : > { %v1297_v29 = vclz %v6284_v33  ;;  %v10727_v8 = vsel %vm4256_vm2, 1.0, %v13354_v5  ;;  %v10733_v24 = vsel %vm4258_vm6, 1.0, %v13354_v5  ;;  %v10738_v30 = vsel %vm4260_vm11, 1.0, %v13354_v5 }
 0x316   : > { %v1393_v60 = vadd.s32 536870912, %v1392_v2  ;;  %v6361_v25 = vadd.s32 4294967294, %v3254_v21  ;;  %v10741_v10 = vsel %vm4262_vm7, 1.0, %v13354_v5  ;;  %vm1231_vm10 = vcmp.lt.s32.totalorder %v13538_v46, 0 }
 0x317   : > { %v6285_v32 = vadd.s32 4294967294, %v1297_v29  ;;  %v13256_v49 = vand.u32 2147483647, %v10721_v45  ;;  %v3292_v56 = vand.u32 2139095040, %v10721_v45  ;;  %v567_v17 = vmul.f32 %v10255_v27, %v512_v50 }
 0x318   : > { %v1394_v20 = vshrl.u32 %v1393_v60, 30  ;;  %v3060_v22 = vand.u32 2147483647, %v3059_v12  ;;  %v3062_v13 = vcvt.s32.f32 %v3055_v62  ;;  %v13555_v57 = vand.u32 2147483647, %v13538_v46 }
 0x319   : > { %vm6286_vm14 = vcmp.lt.s32.totalorder %v6285_v32, 0  ;;  %v1285_v14 = vadd.s32 %v10606_v0, %v10604_v6  ;;  %v3293_v37 = vshrl.u32 %v3292_v56, 23  ;;  %vm6362_vm3 = vcmp.lt.s32.totalorder %v6361_v25, 0 }
 0x31a   : > { %vm10750_vm5 = vcmp.le.f32.partialorder %v13555_v57, 0.7853982  ;;  %v1300_v44 = vsel %vm6286_vm14, 0, %v6285_v32  ;;  %v1395_v21 = vshll.u32 %v1394_v20, 30  ;;  %v1315_v1 = vsub.s32 4, %v10668_v52 }
 0x31b   : > { %v1301_v33 = vsub.s32 32, %v1300_v44  ;;  %v1305_v27 = vsub.s32 4294967266, %v1300_v44  ;;  %v6363_v62 = vadd.s32 4294967169, %v3293_v37  ;;  %v3296_v29 = vand.u32 8388607, %v13256_v49 }
 0x31c   : > { %v10757_v12 = vsub.s32 %v1392_v2, %v1395_v21  ;;  %v10762_v50 = vadd.f32 %v10275_v18, %v567_v17  ;;  %v10764_v60 = vmul.f32 %v3062_v13, %v3060_v22  ;;  %v1302_v0 = vshll.u32 %v10693_v9, %v1300_v44 }
 0x31d   : > { %v1303_v6 = vshrl.u32 %v1285_v14, %v1301_v33  ;;  %v1306_v32 = vadd.s32 127, %v1305_v27  ;;  %v10769_v56 = vadd.s32 %v10545_v48, %v10555_v34  ;;  %v10771_v57 = vsel %vm6362_vm3, 0, %v6361_v25 }
 0x31e   : > { %v1398_v2 = vsub.s32 0, %v10757_v12  ;;  %v3299_v21 = vadd.s32 1, %v6363_v62  ;;  %v10777_v18 = vsel %vm1231_vm10, %v1315_v1, %v10668_v52  ;;  %v1418_v17 = vsub.s32 4, %v1394_v20 }
 0x31f   : > { %v1304_v37 = vor.u32 %v1303_v6, %v1302_v0  ;;  %v1307_v49 = vshll.u32 %v1306_v32, 23  ;;  %vm1334_vm1 = vcmp.lt.s32.totalorder %v13547_v40, 0  ;;  %v3297_v22 = vor.u32 8388608, %v3296_v29 }
 0x320   : > { %v6288_v9 = vmin.u32 %v1398_v2, %v10757_v12  ;;  %v13257_v48 = vand.u32 2147483647, %v10762_v50  ;;  %vm3300_vm8 = vcmp.gt.s32.totalorder %v3299_v21, 0  ;;  %v1388_v52 = vadd.s32 %v10674_v31, %v10688_v39 }
 0x321   : > { %v1308_v13 = vor.u32 4788187, %v1307_v49  ;;  %v3301_v33 = vsel %vm3300_vm8, %v3299_v21, 0  ;;  %v1311_v1 = vcvt.s32.f32 %v1304_v37  ;;  %v10791_v62 = vsel %vm1334_vm1, %v1418_v17, %v1394_v20 }
 0x322   : > { %v1400_v44 = vclz %v6288_v9  ;;  %v3303_v29 = vand.u32 31, %v3301_v33  ;;  %v10793_v6 = vshll.u32 %v3297_v22, 8  ;;  %v3395_v49 = vand.u32 2139095040, %v10762_v50 }
 0x323   : > { %v1309_v27 = vand.u32 2147483647, %v1308_v13  ;;  %v10798_v32 = vand.u32 8388607, %v13257_v48  ;;  %v3302_v31 = vshrl.u32 %v3301_v33, 5 }
 0x324   : > { %v6289_v0 = vadd.s32 4294967294, %v1400_v44  ;;  %v3304_v39 = vsub.s32 32, %v3303_v29  ;;  %v3306_v21 = vshll.u32 %v13339_v53, %v3303_v29  ;;  %v3309_v37 = vshll.u32 %v13340_v11, %v3303_v29 }
 0x325   : > { %v1312_v2 = vmul.f32 %v1311_v1, %v1309_v27  ;;  %v3312_v20 = vshll.u32 %v13341_v4, %v3303_v29  ;;  %v3315_v17 = vshll.u32 %v13342_v26, %v3303_v29  ;;  %v3318_v44 = vshll.u32 %v13343_v61, %v3303_v29 }
 0x326   : > { %vm6290_vm2 = vcmp.lt.s32.totalorder %v6289_v0, 0  ;;  %v3307_v13 = vshrl.u32 %v13340_v11, %v3304_v39  ;;  %v3310_v1 = vshrl.u32 %v13341_v4, %v3304_v39  ;;  %v3313_v14 = vshrl.u32 %v13342_v26, %v3304_v39 }
 0x327   : > { %v1313_v9 = vxor.u32 2147483648, %v1312_v2  ;;  %v1403_v22 = vsel %vm6290_vm2, 0, %v6289_v0  ;;  %v3316_v25 = vshrl.u32 %v13343_v61, %v3304_v39  ;;  %v3319_v36 = vshrl.u32 %v13344_v35, %v3304_v39 }
 0x328   : > { %v1404_v48 = vsub.s32 32, %v1403_v22  ;;  %v1405_v27 = vshll.u32 %v10757_v12, %v1403_v22  ;;  %v1408_v33 = vsub.s32 4294967266, %v1403_v22  ;;  %v3308_v59 = vor.u32 %v3307_v13, %v3306_v21 }
 0x329   : > { %v1314_v34 = vsel %vm1231_vm10, %v1313_v9, %v1312_v2  ;;  %v3311_v42 = vor.u32 %v3310_v1, %v3309_v37  ;;  %v3314_v12 = vor.u32 %v3313_v14, %v3312_v20  ;;  %v3317_v22 = vor.u32 %v3316_v25, %v3315_v17 }
 0x32a   : > { %v1317_v0 = vsel %vm10750_vm5, %v13538_v46, %v1314_v34  ;;  %v1406_v47 = vshrl.u32 %v1388_v52, %v1404_v48  ;;  %v1409_v29 = vadd.s32 127, %v1408_v33  ;;  %v3396_v21 = vshrl.u32 %v3395_v49, 23 }
 0x32b   : > { %7244 = vcosq.f32 %v1317_v0  ;;  %v3305_v9 = vshrl.u32 %v13339_v53, %v3304_v39  ;;  %v3320_v13 = vor.u32 %v3319_v36, %v3318_v44  ;;  %vm3321_vm6 = vcmp.lt.s32.totalorder %v3302_v31, 1 }
 0x32c   : > { %7246 = vsinq.f32 %v1317_v0  ;;  %v1407_v54 = vor.u32 %v1406_v47, %v1405_v27  ;;  %v1410_v2 = vshll.u32 %v1409_v29, 23  ;;  %vm3324_vm11 = vcmp.lt.s32.totalorder %v3302_v31, 4 }
 0x32d   : > { %vm3322_vm13 = vcmp.lt.s32.totalorder %v3302_v31, 2  ;;  %vm3323_vm7 = vcmp.lt.s32.totalorder %v3302_v31, 3  ;;  %v3326_v48 = vsel %vm3324_vm11, %v3314_v12, 2102212464  ;;  %v3329_v52 = vsel %vm3321_vm6, %v3308_v59, %v3311_v42 }
 0x32e   : > { %v1411_v63 = vor.u32 4788187, %v1410_v2  ;;  %v1414_v34 = vcvt.s32.f32 %v1407_v54  ;;  %v3330_v37 = vsel %vm3324_vm11, %v3317_v22, 920167782  ;;  %v3333_v14 = vsel %vm3321_vm6, %v3311_v42, %v3314_v12 }
 0x32f   : > { %v3325_v20 = vsel %vm3321_vm6, %v3305_v9, %v3308_v59  ;;  %v3331_v17 = vsel %vm3323_vm7, %v3314_v12, %v3330_v37  ;;  %v3334_v33 = vsel %vm3324_vm11, %v3320_v13, 1326507024  ;;  %v3327_v47 = vsel %vm3323_vm7, %v3311_v42, %v3326_v48 }
 0x330   : > { %v1412_v25 = vand.u32 2147483647, %v1411_v63  ;;  %v3332_v49 = vsel %vm3322_vm13, %v3329_v52, %v3331_v17  ;;  %v3335_v27 = vsel %vm3323_vm7, %v3317_v22, %v3334_v33  ;;  %v6367_v39 = vadd.s32 4294967169, %v3396_v21 }
 0x331   : > { %v3336_v44 = vsel %vm3322_vm13, %v3333_v14, %v3335_v27  ;;  %v10820_v1 = vmul.u32.u64.low %v10793_v6, %v3332_v49  ;;  %v10821_v0 = vmul.u32.u64.high %v10793_v6, %v3332_v49, %v10820_v1  ;;  %v13558_v54 = vand.u32 2147483647, %v13547_v40 }
 0x332   : > { %v1415_v36 = vmul.f32 %v1414_v34, %v1412_v25  ;;  %v10831_v42 = vmul.u32.u64.low %v10793_v6, %v3336_v44  ;;  %v10832_v59 = vmul.u32.u64.high %v10793_v6, %v3336_v44, %v10831_v42  ;;  %v3402_v29 = vadd.s32 1, %v6367_v39 }
 0x333   : > { %vm10826_vm10 = vcmp.le.f32.partialorder %v13558_v54, 0.7853982  ;;  %v3258_v12 = vsub.s32 32, %v10771_v57  ;;  %v3328_v21 = vsel %vm3322_vm13, %v3325_v20, %v3327_v47  ;;  %v13561_v13 = vsub.s32 4294967266, %v10771_v57 }
 0x334   : > { %v1416_v2 = vxor.u32 2147483648, %v1415_v36  ;;  %v13562_v34 = vsel %vm10750_vm5, 0, %v10777_v18  ;;  %v1421_v37 = vsel %vm10826_vm10, 0, %v10791_v62  ;;  %vm3403_vm14 = vcmp.gt.s32.totalorder %v3402_v29, 0 }
 0x335   : > { %v7245_v9 = vpop.eup %7244  ;;  %v10840_v48 = vadd.s32 127, %v13561_v13  ;;  %v10846_v52 = vand.u32 3, %v13562_v34  ;;  %v3347_v25 = vadd.s32 1, %v10821_v0  ;;  %v3400_v20 = vor.u32 8388608, %v10798_v32 }
 0x336   : > { %v7247_v14 = vpop.eup %7246  ;;  %v1417_v31 = vsel %vm1334_vm1, %v1416_v2, %v1415_v36  ;;  %v3404_v17 = vsel %vm3403_vm14, %v3402_v29, 0  ;;  %v1328_v33 = vxor.u32 2147483648, %v7245_v9  ;;  %v3344_v18 = vmul.u32 %v10793_v6, %v3328_v21 }
 0x337   : > { %v1420_v7 = vsel %vm10826_vm10, %v13547_v40, %v1417_v31  ;;  %vm3346_vm5 = vc.u32 %v10832_v59, %v10820_v1  ;;  %v1325_v62 = vxor.u32 2147483648, %v7247_v14  ;;  %v10861_v47 = vand.u32 3, %v1421_v37  ;;  %v13564_v37 = vld [vmem:[#allocation43_spill] sm:$0xff] }
 0x338   : > { %7248 = vcosq.f32 %v1420_v7  ;;  %v3348_v49 = vsel %vm3346_vm5, %v3347_v25, %v10821_v0  ;;  %v10865_v27 = vshrl.u32 %v10769_v56, %v3258_v12  ;;  %v3406_v39 = vand.u32 31, %v3404_v17 }
 0x339   : > { %7250 = vsinq.f32 %v1420_v7  ;;  %v3349_v32 = vadd.s32 %v3348_v49, %v3344_v18  ;;  %vm1324_vm3 = vcmp.eq.s32.totalorder %v10846_v52, 0  ;;  %vm1327_vm1 = vcmp.eq.s32.totalorder %v10846_v52, 2 }
 0x33a   : > { %v10870_v6 = vshll.u32 %v3400_v20, 8  ;;  %vm1323_vm8 = vcmp.lt.s32.totalorder %v10846_v52, 2  ;;  %v1329_v44 = vsel %vm1327_vm1, %v1328_v33, %v7247_v14  ;;  %v10873_v63 = vshrl.u32 %v3404_v17, 5  ;;  %v13583_v14 = vld [vmem:[#allocation110_spill] sm:$0xff] }
 0x33b   : > { %v3350_v54 = vadd.s32 536870912, %v3349_v32  ;;  %v3407_v0 = vsub.s32 32, %v3406_v39  ;;  %v1326_v56 = vsel %vm1324_vm3, %v7245_v9, %v1325_v62  ;;  %vm1430_vm2 = vcmp.eq.s32.totalorder %v10861_v47, 2 }
 0x33c   : > { %v3409_v42 = vshll.u32 %v13339_v53, %v3406_v39  ;;  %v3412_v29 = vshll.u32 %v13340_v11, %v3406_v39  ;;  %v3415_v12 = vshll.u32 %v13341_v4, %v3406_v39  ;;  %vm1427_vm6 = vcmp.eq.s32.totalorder %v10861_v47, 0 }
 0x33d   : > { %v10880_v2 = vshrl.u32 %v3350_v54, 30  ;;  %v3410_v21 = vshrl.u32 %v13340_v11, %v3407_v0  ;;  %v3413_v13 = vshrl.u32 %v13341_v4, %v3407_v0  ;;  %v3418_v34 = vshll.u32 %v13342_v26, %v3406_v39 }
 0x33e   : > { %v13565_v9 = vand.u32 2147483647, %v13564_v37  ;;  %vm1426_vm13 = vcmp.lt.s32.totalorder %v10861_v47, 2  ;;  %v3416_v31 = vshrl.u32 %v13342_v26, %v3407_v0  ;;  %v3419_v25 = vshrl.u32 %v13343_v61, %v3407_v0 }
 0x33f   : > { %13563 = vst [vmem:[#allocation44_spill] sm:$0xff] %v10880_v2  ;;  %v3421_v20 = vshll.u32 %v13343_v61, %v3406_v39  ;;  %v3422_v17 = vshrl.u32 %v13344_v35, %v3407_v0  ;;  %vm1321_vm7 = vweird.f32 %v13538_v46  ;;  %vm1424_vm10 = vweird.f32 %v13547_v40 }
 0x340   : > { %vm10887_vm11 = vcmp.le.f32.partialorder %v13565_v9, 0.7853982  ;;  %v3352_v33 = vshll.u32 %v10880_v2, 30  ;;  %v3411_v7 = vor.u32 %v3410_v21, %v3409_v42  ;;  %v3414_v18 = vor.u32 %v3413_v13, %v3412_v29 }
 0x341   : > { %vm3424_vm14 = vcmp.lt.s32.totalorder %v10873_v63, 1  ;;  %v3417_v62 = vor.u32 %v3416_v31, %v3415_v12  ;;  %v3420_v49 = vor.u32 %v3419_v25, %v3418_v34  ;;  %v3423_v54 = vor.u32 %v3422_v17, %v3421_v20 }
 0x342   : > { %vm3425_vm5 = vcmp.lt.s32.totalorder %v10873_v63, 2  ;;  %vm2879_vm3 = vcmp.lt.s32.totalorder %v10278_v3, 0  ;;  %vm13285_vm1 = vcmp.lt.s32.totalorder %v10282_v51, 0  ;;  %v10903_v39 = vsub.s32 %v3349_v32, %v3352_v33  ;;  %v7249_v29 = vpop.eup %7248 }
 0x343   : > { %vm3426_vm12 = vcmp.lt.s32.totalorder %v10873_v63, 3  ;;  %vm3427_vm0 = vcmp.lt.s32.totalorder %v10873_v63, 4  ;;  %v3432_v42 = vsel %vm3424_vm14, %v3411_v7, %v3414_v18  ;;  %v3408_v12 = vshrl.u32 %v13339_v53, %v3407_v0  ;;  %v7251_v9 = vpop.eup %7250 }
 0x344   : > { %v3433_v21 = vsel %vm3427_vm0, %v3420_v49, 920167782  ;;  %v3436_v13 = vsel %vm3424_vm14, %v3414_v18, %v3417_v62  ;;  %v3437_v34 = vsel %vm3427_vm0, %v3423_v54, 1326507024  ;;  %v1431_v31 = vxor.u32 2147483648, %v7249_v29 }
 0x345   : > { %v3355_v32 = vsub.s32 0, %v10903_v39  ;;  %v3429_v25 = vsel %vm3427_vm0, %v3417_v62, 2102212464  ;;  %v3434_v20 = vsel %vm3426_vm12, %v3417_v62, %v3433_v21  ;;  %v1330_v17 = vsel %vm1323_vm8, %v1326_v56, %v1329_v44 }
 0x346   : > { %v1428_v33 = vxor.u32 2147483648, %v7251_v9  ;;  %v3435_v0 = vsel %vm3425_vm5, %v3432_v42, %v3434_v20  ;;  %v3438_v36 = vsel %vm3426_vm12, %v3420_v49, %v3437_v34  ;;  %v1432_v54 = vsel %vm1430_vm2, %v1431_v31, %v7251_v9 }
 0x347   : > { %v6364_v22 = vmin.u32 %v3355_v32, %v10903_v39  ;;  %v3428_v2 = vsel %vm3424_vm14, %v3408_v12, %v3411_v7  ;;  %v3439_v62 = vsel %vm3425_vm5, %v3436_v13, %v3438_v36  ;;  %v3430_v44 = vsel %vm3426_vm12, %v3414_v18, %v3429_v25  ;;  %v13568_v18 = vld [vmem:[#allocation92_spill] sm:$0xff]  ;;  %v13570_v32 = vld [vmem:[#allocation49_spill] sm:$0xff] }
 0x348   : > { %v1429_v52 = vsel %vm1427_vm6, %v7249_v29, %v1428_v33  ;;  %v10933_v56 = vmul.u32.u64.low %v10870_v6, %v3439_v62  ;;  %v10934_v49 = vmul.u32.u64.high %v10870_v6, %v3439_v62, %v10933_v56  ;;  %v1331_v36 = vsel %vm1321_vm7, nan, %v1330_v17  ;;  %v13569_v13 = vld [vmem:[#allocation84_spill] sm:$0xff]  ;;  %v13578_v62 = vld [vmem:[#allocation103_spill] sm:$0xff] }
 0x349   : > { %v1433_v42 = vsel %vm1426_vm13, %v1429_v52, %v1432_v54  ;;  %v3357_v21 = vclz %v6364_v22  ;;  %v10939_v34 = vmul.u32.u64.low %v10870_v6, %v3435_v0  ;;  %v10940_v7 = vmul.u32.u64.high %v10870_v6, %v3435_v0, %v10939_v34 }
 0x34a   : > { %v1434_v29 = vsel %vm1424_vm10, nan, %v1433_v42  ;;  %v1523_v12 = vsel %vm10887_vm11, %v13564_v37, %v13568_v18  ;;  %v13268_v47 = vand.u32 2147483647, %v13569_v13  ;;  %v3431_v31 = vsel %vm3425_vm5, %v3428_v2, %v3430_v44 }
 0x34b   : > { %v3910_v9 = vpack.c.bf16 %v1434_v29, %v1331_v36  ;;  %v6365_v22 = vadd.s32 4294967294, %v3357_v21  ;;  %v1521_v25 = vsub.s32 4, %v13570_v32  ;;  %v13571_v46 = vxor.u32 2147483648, %v10717_v23  ;;  %v522_v29 = vpop.permute.xlu1 %521 }
 0x34c   : > { %v13573_v20 = vxor.u32 2147483648, %v10764_v60  ;;  %v13575_v63 = vshll.u32 %v10654_v41, %v10771_v57  ;;  %vm3449_vm0 = vc.u32 %v10934_v49, %v10939_v34  ;;  %v13576_v33 = vshll.u32 %v10840_v48, 23  ;;  %v13577_v57 = vld [vmem:[#allocation99_spill] sm:$0xff] }
 0x34d   : > { %v10960_v40 = vsel %vm2879_vm3, %v13571_v46, %v10717_v23  ;;  %6749 = vmatmul.mubr.bf16.gmra.mrb[4].mxu0 %v3910_v9  ;;  %v4206_v23 = vpop.permute.xlu0 %4205  ;;  %vm6366_vm12 = vcmp.lt.s32.totalorder %v6365_v22, 0  ;;  %v3450_v54 = vadd.s32 1, %v10940_v7  ;;  %7252 = vcosq.f32 %v1523_v12 }
 0x34e   : > { %13572 = vst [vmem:[#allocation58_spill] sm:$0xff] %v10960_v40  ;;  %v10967_v17 = vsel %vm13285_vm1, %v13573_v20, %v10764_v60  ;;  %v3261_v2 = vor.u32 %v10865_v27, %v13575_v63  ;;  %v3265_v0 = vor.u32 4788187, %v13576_v33  ;;  %vm4264_vm8 = vcmp.eq.s32.totalorder %v7836_v28, %v4206_v23  ;;  %v13580_v63 = vld [vmem:[#allocation107_spill] sm:$0xff] }
 0x34f   : > { %13574 = vst [vmem:[#allocation54_spill] sm:$0xff] %v10967_v17  ;;  %v3447_v60 = vmul.u32 %v10870_v6, %v3431_v31  ;;  %v1545_v41 = vand.u32 8388607, %v13268_v47  ;;  %v1555_v27 = vshll.u32 %v13339_v53, %v13577_v57  ;;  %v1556_v48 = vshrl.u32 %v13340_v11, %v13578_v62 }
 0x350   : > { %v10986_v52 = vsel %vm6366_vm12, 0, %v6365_v22  ;;  %v3451_v44 = vsel %vm3449_vm0, %v3450_v54, %v10940_v7  ;;  %vm13579_vm2 = vcmp.lt.s32.totalorder %v13564_v37, 0  ;;  %7254 = vsinq.f32 %v1523_v12  ;;  %v13582_v54 = vld [vmem:[#allocation113_spill] sm:$0xff] }
 0x351   : > { %v1522_v56 = vsel %vm13579_vm2, %v1521_v25, %v13570_v32  ;;  %v3452_v42 = vadd.s32 %v3451_v44, %v3447_v60  ;;  %v1557_v6 = vor.u32 %v1556_v48, %v1555_v27  ;;  %v1558_v21 = vshll.u32 %v13340_v11, %v13577_v57  ;;  %v13585_v27 = vld [vmem:[#allocation112_spill] sm:$0xff] }
 0x352   : > { %v1559_v36 = vshrl.u32 %v13341_v4, %v13578_v62  ;;  %v3266_v18 = vand.u32 2147483647, %v3265_v0  ;;  %v3268_v9 = vcvt.s32.f32 %v3261_v2  ;;  %v1561_v22 = vshll.u32 %v13341_v4, %v13577_v57 }
 0x353   : > { %v1562_v7 = vshrl.u32 %v13342_v26, %v13578_v62  ;;  %v3453_v31 = vadd.s32 536870912, %v3452_v42  ;;  %v1524_v12 = vsel %vm10887_vm11, 0, %v1522_v56  ;;  %v1546_v32 = vor.u32 8388608, %v1545_v41 }
 0x354   : > { %v1560_v25 = vor.u32 %v1559_v36, %v1558_v21  ;;  %v3365_v46 = vsub.s32 4294967266, %v10986_v52  ;;  %vm1570_vm6 = vcmp.lt.s32.totalorder %v13580_v63, 1  ;;  %vm1572_vm13 = vcmp.lt.s32.totalorder %v13580_v63, 3  ;;  %v4176_v36 = vpop.permute.xlu1 %4175 }
 0x355   : > { %v1563_v20 = vor.u32 %v1562_v7, %v1561_v22  ;;  %v11005_v2 = vshrl.u32 %v3453_v31, 30  ;;  %v1554_v33 = vshrl.u32 %v13339_v53, %v13578_v62  ;;  %v1584_v60 = vsel %vm1572_vm13, %v13583_v14, %v13582_v54 }
 0x356   : > { %v1578_v0 = vsel %vm1570_vm6, %v1557_v6, %v1560_v25  ;;  %v3361_v41 = vsub.s32 32, %v10986_v52  ;;  %vm1571_vm11 = vcmp.lt.s32.totalorder %v13580_v63, 2  ;;  %vm13584_vm7 = vcmp.lt.s32.totalorder %v13580_v63, 4 }
 0x357   : > { %13581 = vst [vmem:[#allocation60_spill] sm:$0xff] %v11005_v2  ;;  %v1575_v57 = vsel %vm13584_vm7, %v1563_v20, 2102212464  ;;  %v1580_v48 = vsel %vm1572_vm13, %v1563_v20, %v13585_v27  ;;  %v3455_v62 = vshll.u32 %v11005_v2, 30  ;;  %v1582_v56 = vsel %vm1570_vm6, %v1560_v25, %v1563_v20  ;;  %v11027_v22 = vpop.eup %7252  ;;  %v4212_v27 = vpop.permute.xlu0 %4211 }
 0x358   : > { %v1581_v44 = vsel %vm1571_vm11, %v1578_v0, %v1580_v48  ;;  %v1586_v21 = vshll.u32 %v1546_v32, 8  ;;  %v3345_v7 = vadd.s32 %v10820_v1, %v10832_v59  ;;  %v3366_v31 = vadd.s32 127, %v3365_v46  ;;  %v527_v63 = vpop.permute.xlu1 %526 }
 0x359   : > { %v1574_v54 = vsel %vm1570_vm6, %v1554_v33, %v1557_v6  ;;  %v1585_v14 = vsel %vm1571_vm11, %v1582_v56, %v1584_v60  ;;  %v11035_v47 = vsub.s32 %v3452_v42, %v3455_v62  ;;  %v1576_v20 = vsel %vm1572_vm13, %v1560_v25, %v1575_v57  ;;  %v11052_v42 = vpop.f32.mrb[0].mxu1  ;;  %v11058_v60 = vld [vmem:[%s13030_s2] ss:$0 sm:$0xff] }
 0x35a   : > { %v11039_v32 = vmul.u32.u64.low %v1586_v21, %v1585_v14  ;;  %v11040_v0 = vmul.u32.u64.high %v1586_v21, %v1585_v14, %v11039_v32  ;;  %v7255_v48 = vpop.eup %7254  ;;  %v11045_v1 = vsel %vm4264_vm8, 1.0, %v13354_v5  ;;  %vm4266_vm10 = vcmp.eq.s32.totalorder %v7836_v28, %v4212_v27  ;;  %13586 = vst [vmem:[#allocation70_spill] sm:$0xff] %v11052_v42  ;;  %v11061_v57 = vpop.f32.mrb[1].mxu1 }
 0x35b   : > { %v11048_v59 = vmul.u32.u64.low %v1586_v21, %v1581_v44  ;;  %v11049_v6 = vmul.u32.u64.high %v1586_v21, %v1581_v44, %v11048_v59  ;;  %v3269_v46 = vmul.f32 %v3268_v9, %v3266_v18  ;;  %v3363_v33 = vshrl.u32 %v3345_v7, %v3361_v41  ;;  %13587 = vst [vmem:[#allocation64_spill] sm:$0xff] %v11061_v57  ;;  %v11066_v18 = vpop.f32.mrb[2].mxu1 }
 0x35c   : > { %v3458_v25 = vsub.s32 0, %v11035_v47  ;;  %v569_v23 = vmul.f32 %v11058_v60, %v522_v29  ;;  %v3367_v62 = vshll.u32 %v3366_v31, 23  ;;  %v1528_v56 = vand.u32 3, %v1524_v12  ;;  %13588 = vst [vmem:[#allocation69_spill] sm:$0xff] %v11066_v18  ;;  %v11076_v29 = vld [vmem:[%s13031_s3] ss:$0 sm:$0xff] }
 0x35d   : > { %v1577_v44 = vsel %vm1571_vm11, %v1574_v54, %v1576_v20  ;;  %vm4254_vm14 = vcmp.eq.s32.totalorder %v7836_v28, %v4176_v36  ;;  %v3362_v9 = vshll.u32 %v10903_v39, %v10986_v52  ;;  %vm1595_vm5 = vc.u32 %v11040_v0, %v11048_v59  ;;  %v11081_v36 = vpop.f32.mrb[3].mxu1 }
 0x35e   : > { %v6368_v41 = vmin.u32 %v3458_v25, %v11035_v47  ;;  %v11079_v12 = vadd.f32 %v11076_v29, %v569_v23  ;;  %13589 = vst [vmem:[#allocation48_spill] sm:$0xff] %v11081_v36  ;;  %vm13283_vm0 = vcmp.lt.s32.totalorder %v10443_v38, 0  ;;  %v1531_v7 = vxor.u32 2147483648, %v7255_v48  ;;  %v11087_v54 = vpop.f32.mrb[4].mxu1 }
 0x35f   : > { %v1534_v39 = vxor.u32 2147483648, %v11027_v22  ;;  %v1596_v52 = vadd.s32 1, %v11049_v6  ;;  %v6403_v31 = vsel %vm4254_vm14, 1.0, %v13354_v5  ;;  %13590 = vst [vmem:[#allocation68_spill] sm:$0xff] %v11087_v54  ;;  %v3364_v14 = vor.u32 %v3363_v33, %v3362_v9 }
 0x360   : > { %v3460_v20 = vclz %v6368_v41  ;;  %v1593_v32 = vmul.u32 %v1586_v21, %v1577_v44  ;;  %v3601_v25 = vand.u32 2139095040, %v11079_v12  ;;  %v3368_v23 = vor.u32 4788187, %v3367_v62 }
 0x361   : > { %v1597_v36 = vsel %vm1595_vm5, %v1596_v52, %v11049_v6  ;;  %v4346_v18 = vpack.c.bf16 %v10682_v55, %v6403_v31  ;;  %v570_v57 = vmul.f32 %v11058_v60, %v527_v63  ;;  %v13272_v17 = vand.u32 2147483647, %v11079_v12 }
 0x362   : > { %v6369_v42 = vadd.s32 4294967294, %v3460_v20  ;;  %v1598_v2 = vadd.s32 %v1597_v36, %v1593_v32  ;;  %v3602_v54 = vshrl.u32 %v3601_v25, 23  ;;  %v3270_v33 = vxor.u32 2147483648, %v3269_v46 }
 0x363   : > { %v11100_v21 = vsel %vm4266_vm10, 1.0, %v13354_v5  ;;  %vm1530_vm12 = vcmp.eq.s32.totalorder %v1528_v56, 0  ;;  %v11103_v62 = vadd.f32 %v11076_v29, %v570_v57  ;;  %6507 = vmatmul.mubr.msk.bf16.gmra.mrb[48].mxu1 %vm4671_vm4, %v4346_v18  ;;  %vm1533_vm2 = vcmp.eq.s32.totalorder %v1528_v56, 2 }
 0x364   : > { %vm6370_vm8 = vcmp.lt.s32.totalorder %v6369_v42, 0  ;;  %v1599_v55 = vadd.s32 536870912, %v1598_v2  ;;  %v6375_v6 = vadd.s32 4294967169, %v3602_v54  ;;  %5059 = vmatprep.mubr.bf16.mxu1 %v13382_v19  ;;  %v3369_v44 = vand.u32 2147483647, %v3368_v23 }
 0x365   : > { %v1532_v9 = vsel %vm1530_vm12, %v11027_v22, %v1531_v7  ;;  %v1535_v41 = vsel %vm1533_vm2, %v1534_v39, %v7255_v48  ;;  %v3704_v27 = vand.u32 2139095040, %v11103_v62  ;;  %v3371_v63 = vcvt.s32.f32 %v3364_v14  ;;  %v4218_v7 = vpop.permute.xlu0 %4217 }
 0x366   : > { %vm1529_vm6 = vcmp.lt.s32.totalorder %v1528_v56, 2  ;;  %v1600_v36 = vshrl.u32 %v1599_v55, 30  ;;  %v3605_v57 = vand.u32 8388607, %v13272_v17  ;;  %v11111_v52 = vsel %vm6370_vm8, 0, %v6369_v42 }
 0x367   : > { %v3608_v18 = vadd.s32 1, %v6375_v6  ;;  %v13271_v31 = vand.u32 2147483647, %v11103_v62  ;;  %v3705_v54 = vshrl.u32 %v3704_v27, 23  ;;  %v11116_v20 = vsel %vm13283_vm0, %v3270_v33, %v3269_v46 }
 0x368   : > { %13591 = vst [vmem:[#allocation63_spill] sm:$0xff] %v11116_v20  ;;  %vm1527_vm13 = vweird.f32 %v13564_v37  ;;  %v1536_v22 = vsel %vm1529_vm6, %v1532_v9, %v1535_v41  ;;  %v1601_v48 = vshll.u32 %v1600_v36, 30  ;;  %v11119_v56 = vmul.f32 %v3371_v63, %v3369_v44  ;;  %v13593_v41 = vld [vmem:[#allocation91_spill] sm:$0xff]  ;;  %v11146_v63 = vpop.f32.mrb[5].mxu1 }
 0x369   : > { %vm4268_vm11 = vcmp.eq.s32.totalorder %v7836_v28, %v4218_v7  ;;  %vm3609_vm7 = vcmp.gt.s32.totalorder %v3608_v18, 0  ;;  %v6379_v42 = vadd.s32 4294967169, %v3705_v54  ;;  %v3464_v39 = vsub.s32 32, %v11111_v52  ;;  %13594 = vst [vmem:[#allocation47_spill] sm:$0xff] %v11146_v63 }
 0x36a   : > { %vm1540_vm10 = vcmp.lt.s32.totalorder %v13569_v13, 0  ;;  %v11124_v14 = vsub.s32 %v1598_v2, %v1601_v48  ;;  %v3606_v32 = vor.u32 8388608, %v3605_v57  ;;  %v3448_v46 = vadd.s32 %v10939_v34, %v10934_v49 }
 0x36b   : > { %v1624_v25 = vsub.s32 4, %v1600_v36  ;;  %v3610_v23 = vsel %vm3609_vm7, %v3608_v18, 0  ;;  %v11130_v33 = vand.u32 8388607, %v13271_v31  ;;  %v11134_v55 = vsel %vm1527_vm13, nan, %v1536_v22  ;;  %v11154_v22 = vpop.f32.mrb[6].mxu1 }
 0x36c   : > { %v1604_v6 = vsub.s32 0, %v11124_v14  ;;  %v11138_v44 = vsel %vm4268_vm11, 1.0, %v13354_v5  ;;  %v11140_v2 = vadd.s32 1, %v6379_v42  ;;  %v1594_v49 = vadd.s32 %v11048_v59, %v11040_v0  ;;  %13595 = vst [vmem:[#allocation73_spill] sm:$0xff] %v11154_v22  ;;  %v11161_v42 = vpop.f32.mrb[7].mxu1 }
 0x36d   : > { %13592 = vst [vmem:[#allocation42_spill] sm:$0xff] %v11138_v44  ;;  %v3612_v34 = vand.u32 31, %v3610_v23  ;;  %v11148_v37 = vshrl.u32 %v3448_v46, %v3464_v39  ;;  %v11152_v54 = vshll.u32 %v3606_v32, 8  ;;  %v11158_v48 = vsel %vm1540_vm10, %v1624_v25, %v1600_v36  ;;  %13596 = vst [vmem:[#allocation76_spill] sm:$0xff] %v11161_v42  ;;  %v13597_v32 = vld [vmem:[#allocation80_spill] sm:$0xff]  ;;  %v11187_v40 = vpop.f32.mrb[8].mxu1 }
 0x36e   : > { %v6296_v18 = vmin.u32 %v1604_v6, %v11124_v14  ;;  %v3611_v0 = vshrl.u32 %v3610_v23, 5  ;;  %vm3712_vm14 = vcmp.gt.s32.totalorder %v11140_v2, 0  ;;  %v13598_v6 = vand.u32 2147483647, %v13597_v32  ;;  %13604 = vst [vmem:[#allocation86_spill] sm:$0xff] %v11187_v40 }
 0x36f   : > { %v3613_v59 = vsub.s32 32, %v3612_v34  ;;  %v3615_v46 = vshll.u32 %v13339_v53, %v3612_v34  ;;  %v3618_v31 = vshll.u32 %v13340_v11, %v3612_v34  ;;  %v3621_v23 = vshll.u32 %v13341_v4, %v3612_v34 }
 0x370   : > { %v1606_v39 = vclz %v6296_v18  ;;  %vm11168_vm5 = vcmp.le.f32.partialorder %v13598_v6, 0.7853982  ;;  %v3624_v27 = vshll.u32 %v13342_v26, %v3612_v34  ;;  %v3627_v57 = vshll.u32 %v13343_v61, %v3612_v34 }
 0x371   : > { %v3616_v36 = vshrl.u32 %v13340_v11, %v3613_v59  ;;  %v3619_v25 = vshrl.u32 %v13341_v4, %v3613_v59  ;;  %v3622_v18 = vshrl.u32 %v13342_v26, %v3613_v59  ;;  %v3625_v7 = vshrl.u32 %v13343_v61, %v3613_v59 }
 0x372   : > { %v6297_v9 = vadd.s32 4294967294, %v1606_v39  ;;  %v3628_v63 = vshrl.u32 %v13344_v35, %v3613_v59  ;;  %v13601_v20 = vand.u32 2147483647, %v13569_v13  ;;  %v3614_v39 = vshrl.u32 %v13339_v53, %v3613_v59 }
 0x373   : > { %v3617_v42 = vor.u32 %v3616_v36, %v3615_v46  ;;  %v3620_v6 = vor.u32 %v3619_v25, %v3618_v31  ;;  %v3623_v22 = vor.u32 %v3622_v18, %v3621_v23  ;;  %v3626_v51 = vor.u32 %v3625_v7, %v3624_v27  ;;  %v11189_v31 = vpop.f32.mrb[9].mxu1 }
 0x374   : > { %vm11182_vm12 = vcmp.le.f32.partialorder %v13601_v20, 0.7853982  ;;  %vm6298_vm8 = vcmp.lt.s32.totalorder %v6297_v9, 0  ;;  %vm3630_vm2 = vcmp.lt.s32.totalorder %v3611_v0, 1  ;;  %v3629_v34 = vor.u32 %v3628_v63, %v3627_v57  ;;  %13605 = vst [vmem:[#allocation81_spill] sm:$0xff] %v11189_v31  ;;  %v11192_v25 = vpop.f32.mrb[10].mxu1 }
 0x375   : > { %v1609_v3 = vsel %vm6298_vm8, 0, %v6297_v9  ;;  %vm3631_vm6 = vcmp.lt.s32.totalorder %v3611_v0, 2  ;;  %vm3632_vm13 = vcmp.lt.s32.totalorder %v3611_v0, 3  ;;  %vm3633_vm11 = vcmp.lt.s32.totalorder %v3611_v0, 4  ;;  %13606 = vst [vmem:[#allocation75_spill] sm:$0xff] %v11192_v25  ;;  %v11196_v18 = vpop.f32.mrb[11].mxu1 }
 0x376   : > { %v1610_v46 = vsub.s32 32, %v1609_v3  ;;  %v1611_v36 = vshll.u32 %v11124_v14, %v1609_v3  ;;  %v1614_v20 = vsub.s32 4294967266, %v1609_v3  ;;  %v3634_v23 = vsel %vm3630_vm2, %v3614_v39, %v3617_v42  ;;  %13607 = vst [vmem:[#allocation106_spill] sm:$0xff] %v11196_v18  ;;  %v11200_v31 = vpop.f32.mrb[12].mxu1  ;;  %v13609_v39 = vld [vmem:[#allocation119_spill] sm:$0xff] }
 0x377   : > { %v3635_v59 = vsel %vm3633_vm11, %v3623_v22, 2102212464  ;;  %v3638_v27 = vsel %vm3630_vm2, %v3617_v42, %v3620_v6  ;;  %v3639_v7 = vsel %vm3633_vm11, %v3626_v51, 920167782  ;;  %13608 = vst [vmem:[#allocation122_spill] sm:$0xff] %v11200_v31  ;;  %v3642_v14 = vsel %vm3630_vm2, %v3620_v6, %v3623_v22  ;;  %v11208_v44 = vpop.f32.mrb[13].mxu1 }
 0x378   : > { %v1612_v9 = vshrl.u32 %v1594_v49, %v1610_v46  ;;  %v1615_v63 = vadd.s32 127, %v1614_v20  ;;  %v3636_v57 = vsel %vm3632_vm13, %v3620_v6, %v3635_v59  ;;  %v3640_v40 = vsel %vm3632_vm13, %v3623_v22, %v3639_v7  ;;  %13610 = vst [vmem:[#allocation62_spill] sm:$0xff] %v11208_v44  ;;  %v11212_v7 = vpop.f32.mrb[14].mxu1 }
 0x379   : > { %v3641_v3 = vsel %vm3631_vm6, %v3638_v27, %v3640_v40  ;;  %v3643_v25 = vsel %vm3633_vm11, %v3629_v34, 1326507024  ;;  %v1729_v42 = vsel %vm11168_vm5, %v13597_v32, %v13609_v39  ;;  %v3637_v20 = vsel %vm3631_vm6, %v3634_v23, %v3636_v57  ;;  %13611 = vst [vmem:[#allocation79_spill] sm:$0xff] %v11212_v7 }
 0x37a   : > { %v1613_v49 = vor.u32 %v1612_v9, %v1611_v36  ;;  %v1616_v46 = vshll.u32 %v1615_v63, 23  ;;  %v3644_v59 = vsel %vm3632_vm13, %v3626_v51, %v3643_v25  ;;  %v3713_v34 = vsel %vm3712_vm14, %v11140_v2, 0 }
 0x37b   : > { %v3645_v40 = vsel %vm3631_vm6, %v3642_v14, %v3644_v59  ;;  %v11216_v22 = vmul.u32.u64.low %v11152_v54, %v3641_v3  ;;  %v11217_v6 = vmul.u32.u64.high %v11152_v54, %v3641_v3, %v11216_v22  ;;  %v13612_v36 = vsub.s32 4294967266, %v11111_v52 }
 0x37c   : > { %v1617_v23 = vor.u32 4788187, %v1616_v46  ;;  %v11228_v51 = vmul.u32.u64.low %v11152_v54, %v3645_v40  ;;  %v11229_v25 = vmul.u32.u64.high %v11152_v54, %v3645_v40, %v11228_v51  ;;  %v1627_v0 = vsel %vm11182_vm12, 0, %v11158_v48 }
 0x37d   : > { %v11225_v27 = vadd.s32 127, %v13612_v36  ;;  %v3715_v9 = vand.u32 31, %v3713_v34  ;;  %v13613_v63 = vor.u32 8388608, %v11130_v33  ;;  %v13614_v2 = vsub.s32 4, %v13593_v41  ;;  %v11257_v51 = vpop.f32.mrb[15].mxu1 }
 0x37e   : > { %vm13615_vm7 = vcmp.lt.s32.totalorder %v13597_v32, 0  ;;  %v1618_v14 = vand.u32 2147483647, %v1617_v23  ;;  %v1620_v39 = vcvt.s32.f32 %v1613_v49  ;;  %v3653_v46 = vmul.u32 %v11152_v54, %v3637_v20  ;;  %v4224_v49 = vpop.permute.xlu0 %4223  ;;  %13616 = vst [vmem:[#allocation77_spill] sm:$0xff] %v11257_v51 }
 0x37f   : > { %v11236_v57 = vshll.u32 %v13613_v63, 8  ;;  %v11243_v3 = vsel %vm13615_vm7, %v13614_v2, %v13593_v41  ;;  %7256 = vcosq.f32 %v1729_v42  ;;  %v3656_v59 = vadd.s32 1, %v11217_v6 }
 0x380   : > { %v11247_v48 = vshrl.u32 %v3713_v34, 5  ;;  %v3716_v40 = vsub.s32 32, %v3715_v9  ;;  %7258 = vsinq.f32 %v1729_v42  ;;  %v1621_v33 = vmul.f32 %v1620_v39, %v1618_v14 }
 0x381   : > { %vm3655_vm14 = vc.u32 %v11229_v25, %v11216_v22  ;;  %v3718_v36 = vshll.u32 %v13339_v53, %v3715_v9  ;;  %v3721_v41 = vshll.u32 %v13340_v11, %v3715_v9  ;;  %v3724_v34 = vshll.u32 %v13341_v4, %v3715_v9 }
 0x382   : > { %v3657_v23 = vsel %vm3655_vm14, %v3656_v59, %v11217_v6  ;;  %v3719_v54 = vshrl.u32 %v13340_v11, %v3716_v40  ;;  %v3722_v20 = vshrl.u32 %v13341_v4, %v3716_v40  ;;  %v1622_v42 = vxor.u32 2147483648, %v1621_v33 }
 0x383   : > { %v3658_v63 = vadd.s32 %v3657_v23, %v3653_v46  ;;  %vm4270_vm8 = vcmp.eq.s32.totalorder %v7836_v28, %v4224_v49  ;;  %v3725_v2 = vshrl.u32 %v13342_v26, %v3716_v40  ;;  %v3727_v14 = vshll.u32 %v13342_v26, %v3715_v9 }
 0x384   : > { %v3720_v39 = vor.u32 %v3719_v54, %v3718_v36  ;;  %v3723_v7 = vor.u32 %v3722_v20, %v3721_v41  ;;  %v3728_v6 = vshrl.u32 %v13343_v61, %v3716_v40  ;;  %v3730_v59 = vshll.u32 %v13343_v61, %v3715_v9 }
 0x385   : > { %v1623_v44 = vsel %vm1540_vm10, %v1622_v42, %v1621_v33  ;;  %v3659_v31 = vadd.s32 536870912, %v3658_v63  ;;  %v3726_v18 = vor.u32 %v3725_v2, %v3724_v34  ;;  %v3731_v51 = vshrl.u32 %v13344_v35, %v3716_v40  ;;  %v11281_v34 = vpop.f32.mrb[16].mxu1 }
 0x386   : > { %v1626_v46 = vsel %vm11182_vm12, %v13569_v13, %v1623_v44  ;;  %v11270_v23 = vand.u32 3, %v1627_v0  ;;  %v3717_v36 = vshrl.u32 %v13339_v53, %v3716_v40  ;;  %v3729_v41 = vor.u32 %v3728_v6, %v3727_v14  ;;  %13618 = vst [vmem:[#allocation87_spill] sm:$0xff] %v11281_v34  ;;  %v11286_v14 = vpop.f32.mrb[17].mxu1 }
 0x387   : > { %7260 = vcosq.f32 %v1626_v46  ;;  %v11273_v54 = vshrl.u32 %v3659_v31, 30  ;;  %v3732_v9 = vor.u32 %v3731_v51, %v3730_v59  ;;  %vm3733_vm2 = vcmp.lt.s32.totalorder %v11247_v48, 1  ;;  %13619 = vst [vmem:[#allocation88_spill] sm:$0xff] %v11286_v14 }
 0x388   : > { %7262 = vsinq.f32 %v1626_v46  ;;  %vm3735_vm10 = vcmp.lt.s32.totalorder %v11247_v48, 3  ;;  %vm3736_vm6 = vcmp.lt.s32.totalorder %v11247_v48, 4  ;;  %v3741_v33 = vsel %vm3733_vm2, %v3720_v39, %v3723_v7 }
 0x389   : > { %13617 = vst [vmem:[#allocation78_spill] sm:$0xff] %v11273_v54  ;;  %v11278_v20 = vpop.eup %7256  ;;  %v3661_v38 = vshll.u32 %v11273_v54, 30  ;;  %v3738_v44 = vsel %vm3736_vm6, %v3726_v18, 2102212464  ;;  %v3742_v0 = vsel %vm3736_vm6, %v3729_v41, 920167782  ;;  %v3745_v40 = vsel %vm3733_vm2, %v3723_v7, %v3726_v18 }
 0x38a   : > { %v7259_v31 = vpop.eup %7258  ;;  %vm3734_vm12 = vcmp.lt.s32.totalorder %v11247_v48, 2  ;;  %v3737_v51 = vsel %vm3733_vm2, %v3717_v36, %v3720_v39  ;;  %v3743_v42 = vsel %vm3735_vm10, %v3726_v18, %v3742_v0  ;;  %v3746_v2 = vsel %vm3736_vm6, %v3732_v9, 1326507024  ;;  %v11296_v54 = vpop.f32.mrb[18].mxu1 }
 0x38b   : > { %v11288_v6 = vsub.s32 %v3658_v63, %v3661_v38  ;;  %v3739_v59 = vsel %vm3735_vm10, %v3723_v7, %v3738_v44  ;;  %v3744_v46 = vsel %vm3734_vm12, %v3741_v33, %v3743_v42  ;;  %v3747_v34 = vsel %vm3735_vm10, %v3729_v41, %v3746_v2  ;;  %13620 = vst [vmem:[#allocation83_spill] sm:$0xff] %v11296_v54  ;;  %v11307_v7 = vpop.f32.mrb[19].mxu1 }
 0x38c   : > { %v3465_v39 = vshll.u32 %v11035_v47, %v11111_v52  ;;  %v3748_v18 = vsel %vm3734_vm12, %v3745_v40, %v3747_v34  ;;  %v11303_v63 = vmul.u32.u64.low %v11236_v57, %v3744_v46  ;;  %v11304_v36 = vmul.u32.u64.high %v11236_v57, %v3744_v46, %v11303_v63  ;;  %13621 = vst [vmem:[#allocation74_spill] sm:$0xff] %v11307_v7  ;;  %v13625_v34 = vld [vmem:[#allocation108_spill] sm:$0xff] }
 0x38d   : > { %v3664_v9 = vsub.s32 0, %v11288_v6  ;;  %v11311_v33 = vmul.u32.u64.low %v11236_v57, %v3748_v18  ;;  %v11312_v41 = vmul.u32.u64.high %v11236_v57, %v3748_v18, %v11311_v33  ;;  %v1730_v47 = vsel %vm11168_vm5, 0, %v11243_v3 }
 0x38e   : > { %v11318_v52 = vor.u32 %v11148_v37, %v3465_v39  ;;  %vm1630_vm13 = vweird.f32 %v13569_v13  ;;  %v11324_v38 = vsel %vm4270_vm8, 1.0, %v13354_v5  ;;  %v3740_v44 = vsel %vm3734_vm12, %v3737_v51, %v3739_v59 }
 0x38f   : > { %v13622_v0 = vand.u32 2147483647, %v13453_v16  ;;  %v3470_v17 = vshll.u32 %v11225_v27, 23  ;;  %vm1632_vm5 = vcmp.lt.s32.totalorder %v11270_v23, 2  ;;  %v6376_v37 = vmin.u32 %v3664_v9, %v11288_v6 }
 0x390   : > { %v3759_v48 = vadd.s32 1, %v11304_v36  ;;  %v1734_v49 = vand.u32 3, %v1730_v47  ;;  %v1830_v51 = vsub.s32 4, %v13625_v34  ;;  %vm1633_vm7 = vcmp.eq.s32.totalorder %v11270_v23, 0 }
 0x391   : > { %vm11330_vm11 = vcmp.le.f32.partialorder %v13622_v0, 0.7853982  ;;  %v7261_v42 = vpop.eup %7260  ;;  %v3666_v2 = vclz %v6376_v37  ;;  %v3756_v27 = vmul.u32 %v11236_v57, %v3740_v44  ;;  %vm3758_vm14 = vc.u32 %v11312_v41, %v11303_v63  ;;  %v11353_v44 = vpop.f32.mrb[20].mxu1 }
 0x392   : > { %v1832_v3 = vsel %vm11330_vm11, %v13453_v16, %v9687_v58  ;;  %v7263_v59 = vpop.eup %7262  ;;  %v1637_v46 = vxor.u32 2147483648, %v7261_v42  ;;  %v3760_v39 = vsel %vm3758_vm14, %v3759_v48, %v11304_v36  ;;  %v1737_v58 = vxor.u32 2147483648, %v7259_v31  ;;  %13627 = vst [vmem:[#allocation94_spill] sm:$0xff] %v11353_v44  ;;  %v532_v48 = vpop.permute.xlu1 %531 }
 0x393   : > { %7264 = vcosq.f32 %v1832_v3  ;;  %v1740_v18 = vxor.u32 2147483648, %v11278_v20  ;;  %v1634_v9 = vxor.u32 2147483648, %v7263_v59  ;;  %vm1636_vm8 = vcmp.eq.s32.totalorder %v11270_v23, 2  ;;  %v11357_v7 = vpop.f32.mrb[21].mxu1 }
 0x394   : > { %v6377_v33 = vadd.s32 4294967294, %v3666_v2  ;;  %v3761_v47 = vadd.s32 %v3760_v39, %v3756_v27  ;;  %v1638_v0 = vsel %vm1636_vm8, %v1637_v46, %v7263_v59  ;;  %vm1736_vm2 = vcmp.eq.s32.totalorder %v1734_v49, 0  ;;  %13628 = vst [vmem:[#allocation89_spill] sm:$0xff] %v11357_v7 }
 0x395   : > { %vm13626_vm10 = vcmp.lt.s32.totalorder %v13453_v16, 0  ;;  %7266 = vsinq.f32 %v1832_v3  ;;  %v1635_v36 = vsel %vm1633_vm7, %v7261_v42, %v1634_v9  ;;  %vm1739_vm12 = vcmp.eq.s32.totalorder %v1734_v49, 2 }
 0x396   : > { %v1831_v57 = vsel %vm13626_vm10, %v1830_v51, %v13625_v34  ;;  %vm6378_vm6 = vcmp.lt.s32.totalorder %v6377_v33, 0  ;;  %v3762_v37 = vadd.s32 536870912, %v3761_v47  ;;  %v1639_v2 = vsel %vm1632_vm5, %v1635_v36, %v1638_v0  ;;  %v11362_v34 = vpop.f32.mrb[22].mxu1  ;;  %v13631_v36 = vld [vmem:[#allocation61_spill] sm:$0xff] }
 0x397   : > { %v3669_v27 = vsel %vm6378_vm6, 0, %v6377_v33  ;;  %v1738_v59 = vsel %vm1736_vm2, %v11278_v20, %v1737_v58  ;;  %v1741_v46 = vsel %vm1739_vm12, %v1740_v18, %v7259_v31  ;;  %13629 = vst [vmem:[#allocation93_spill] sm:$0xff] %v11362_v34  ;;  %v11364_v3 = vor.u32 4788187, %v3470_v17  ;;  %v11370_v9 = vpop.f32.mrb[23].mxu1  ;;  %v13637_v31 = vld [vmem:[#allocation100_spill] sm:$0xff] }
 0x398   : > { %v1640_v51 = vsel %vm1630_vm13, nan, %v1639_v2  ;;  %v3674_v42 = vsub.s32 4294967266, %v3669_v27  ;;  %v1833_v39 = vsel %vm11330_vm11, 0, %v1831_v57  ;;  %13630 = vst [vmem:[#allocation105_spill] sm:$0xff] %v11370_v9  ;;  %v11373_v0 = vshrl.u32 %v3762_v37, 30 }
 0x399   : > { %v3911_v23 = vpack.c.bf16 %v1640_v51, %v11134_v55  ;;  %vm1735_vm5 = vcmp.lt.s32.totalorder %v1734_v49, 2  ;;  %v571_v20 = vmul.f32 %v11058_v60, %v532_v48  ;;  %v3670_v17 = vsub.s32 32, %v3669_v27 }
 0x39a   : > { %v3675_v58 = vadd.s32 127, %v3674_v42  ;;  %v1742_v18 = vsel %vm1735_vm5, %v1738_v59, %v1741_v46  ;;  %v3764_v33 = vshll.u32 %v11373_v0, 30  ;;  %v1837_v40 = vand.u32 3, %v1833_v39  ;;  %v13632_v59 = vld [vmem:[#allocation45_spill] sm:$0xff] }
 0x39b   : > { %6752 = vmatprep.mubr.bf16.mxu0 %v3911_v23  ;;  %v11379_v57 = vadd.f32 %v11076_v29, %v571_v20  ;;  %v1933_v55 = vsub.s32 4, %v13631_v36  ;;  %v3654_v49 = vadd.s32 %v11216_v22, %v11229_v25  ;;  %vm1733_vm13 = vweird.f32 %v13597_v32  ;;  %v13643_v29 = vld [vmem:[#allocation46_spill] sm:$0xff] }
 0x39c   : > { %vm1836_vm11 = vweird.f32 %v13453_v16  ;;  %v11386_v37 = vsub.s32 %v3761_v47, %v3764_v33  ;;  %v13633_v46 = vand.u32 2147483647, %v13632_v59  ;;  %v3671_v51 = vshll.u32 %v11288_v6, %v3669_v27 }
 0x39d   : > { %v7265_v13 = vpop.eup %7264  ;;  %v13282_v48 = vand.u32 2147483647, %v11379_v57  ;;  %v3807_v2 = vand.u32 2139095040, %v11379_v57  ;;  %v3672_v22 = vshrl.u32 %v3654_v49, %v3670_v17  ;;  %v3676_v25 = vshll.u32 %v3675_v58, 23  ;;  %v11471_v16 = vpop.f32.mrb[0].mxu0 }
 0x39e   : > { %v1843_v60 = vxor.u32 2147483648, %v7265_v13  ;;  %vm11392_vm7 = vcmp.le.f32.partialorder %v13633_v46, 0.7853982  ;;  %v1743_v32 = vsel %vm1733_vm13, nan, %v1742_v18  ;;  %v3767_v39 = vsub.s32 0, %v11386_v37 }
 0x39f   : > { %v7267_v42 = vpop.eup %7266  ;;  %vm1842_vm14 = vcmp.eq.s32.totalorder %v1837_v40, 2  ;;  %v3808_v47 = vshrl.u32 %v3807_v2, 23  ;;  %vm13636_vm8 = vcmp.lt.s32.totalorder %v13632_v59, 0  ;;  %v3811_v46 = vand.u32 8388607, %v13282_v48 }
 0x3a0   : > { %v1934_v23 = vsel %vm13636_vm8, %v1933_v55, %v13631_v36  ;;  %v1840_v20 = vxor.u32 2147483648, %v7267_v42  ;;  %v1844_v33 = vsel %vm1842_vm14, %v1843_v60, %v7267_v42  ;;  %v1935_v6 = vsel %vm11392_vm7, %v13632_v59, %v13637_v31 }
 0x3a1   : > { %v6380_v27 = vmin.u32 %v3767_v39, %v11386_v37  ;;  %vm1838_vm2 = vcmp.lt.s32.totalorder %v1837_v40, 2  ;;  %vm1839_vm10 = vcmp.eq.s32.totalorder %v1837_v40, 0  ;;  %v6383_v17 = vadd.s32 4294967169, %v3808_v47  ;;  %v13638_v39 = vld [vmem:[#allocation102_spill] sm:$0xff] }
 0x3a2   : > { %v11408_v58 = vor.u32 %v3672_v22, %v3671_v51  ;;  %v11410_v18 = vor.u32 4788187, %v3676_v25  ;;  %v1841_v36 = vsel %vm1839_vm10, %v7265_v13, %v1840_v20  ;;  %v1936_v55 = vsel %vm11392_vm7, 0, %v1934_v23  ;;  %v13642_v51 = vld [vmem:[#allocation115_spill] sm:$0xff] }
 0x3a3   : > { %v3769_v49 = vclz %v6380_v27  ;;  %v1845_v60 = vsel %vm1838_vm2, %v1841_v36, %v1844_v33  ;;  %v3814_v2 = vadd.s32 1, %v6383_v17  ;;  %7268 = vsinq.f32 %v1935_v6 }
 0x3a4   : > { %v1846_v31 = vsel %vm1836_vm11, nan, %v1845_v60  ;;  %v3812_v42 = vor.u32 8388608, %v3811_v46  ;;  %v13639_v48 = vand.u32 2147483647, %v13638_v39  ;;  %v2036_v22 = vsub.s32 4, %v13642_v51  ;;  %v11434_v46 = vpop.f32.mrb[24].mxu1 }
 0x3a5   : > { %v6381_v13 = vadd.s32 4294967294, %v3769_v49  ;;  %v3912_v25 = vpack.c.bf16 %v1846_v31, %v1743_v32  ;;  %vm3815_vm12 = vcmp.gt.s32.totalorder %v3814_v2, 0  ;;  %7270 = vcosq.f32 %v1935_v6  ;;  %13645 = vst [vmem:[#allocation101_spill] sm:$0xff] %v11434_v46  ;;  %v11441_v49 = vpop.f32.mrb[25].mxu1 }
 0x3a6   : > { %vm11418_vm6 = vcmp.le.f32.partialorder %v13639_v48, 0.7853982  ;;  %v3757_v48 = vadd.s32 %v11303_v63, %v11312_v41  ;;  %v3816_v20 = vsel %vm3815_vm12, %v3814_v2, 0  ;;  %vm13644_vm13 = vcmp.lt.s32.totalorder %v13638_v39, 0  ;;  %13646 = vst [vmem:[#allocation104_spill] sm:$0xff] %v11441_v49  ;;  %v11446_v6 = vpop.f32.mrb[26].mxu1 }
 0x3a7   : > { %v2038_v47 = vsel %vm11418_vm6, %v13638_v39, %v13643_v29  ;;  %vm6382_vm5 = vcmp.lt.s32.totalorder %v6381_v13, 0  ;;  %6753 = vmatmul.mubr.bf16.gmra.mrb[8].mxu0 %v3912_v25  ;;  %v3818_v33 = vand.u32 31, %v3816_v20  ;;  %v2037_v32 = vsel %vm13644_vm13, %v2036_v22, %v13642_v51  ;;  %13647 = vst [vmem:[#allocation43_spill] sm:$0xff] %v11446_v6  ;;  %v11454_v22 = vpop.f32.mrb[27].mxu1 }
 0x3a8   : > { %v11437_v17 = vsel %vm6382_vm5, 0, %v6381_v13  ;;  %v11439_v36 = vand.u32 3, %v1936_v55  ;;  %7272 = vcosq.f32 %v2038_v47  ;;  %v11444_v60 = vshll.u32 %v3812_v42, 8  ;;  %13648 = vst [vmem:[#allocation92_spill] sm:$0xff] %v11454_v22  ;;  %v11463_v23 = vpop.f32.mrb[28].mxu1 }
 0x3a9   : > { %v3777_v63 = vsub.s32 4294967266, %v11437_v17  ;;  %v3819_v41 = vsub.s32 32, %v3818_v33  ;;  %7274 = vsinq.f32 %v2038_v47  ;;  %v3773_v2 = vsub.s32 32, %v11437_v17  ;;  %v11461_v47 = vpop.permute.xlu1 %4184  ;;  %13649 = vst [vmem:[#allocation84_spill] sm:$0xff] %v11463_v23 }
 0x3aa   : > { %v11449_v31 = vshrl.u32 %v3816_v20, 5  ;;  %v3821_v51 = vshll.u32 %v13339_v53, %v3818_v33  ;;  %v2039_v55 = vsel %vm11418_vm6, 0, %v2037_v32  ;;  %v3824_v42 = vshll.u32 %v13340_v11, %v3818_v33 }
 0x3ab   : > { %v11456_v13 = vadd.s32 127, %v3777_v63  ;;  %v3822_v25 = vshrl.u32 %v13340_v11, %v3819_v41  ;;  %v3827_v29 = vshll.u32 %v13341_v4, %v3818_v33  ;;  %v3825_v20 = vshrl.u32 %v13341_v4, %v3819_v41  ;;  %v11469_v63 = vpop.f32.mrb[29].mxu1 }
 0x3ac   : > { %v3828_v27 = vshrl.u32 %v13342_v26, %v3819_v41  ;;  %v3830_v40 = vshll.u32 %v13342_v26, %v3818_v33  ;;  %v3831_v32 = vshrl.u32 %v13343_v61, %v3819_v41  ;;  %13650 = vst [vmem:[#allocation49_spill] sm:$0xff] %v11469_v63  ;;  %v3833_v6 = vshll.u32 %v13343_v61, %v3818_v33  ;;  %v11480_v23 = vpop.f32.mrb[30].mxu1  ;;  %v11482_v26 = vpop.f32.mrb[1].mxu0 }
 0x3ad   : > { %v11473_v22 = vpop.eup %7268  ;;  %v3823_v11 = vor.u32 %v3822_v25, %v3821_v51  ;;  %v3834_v49 = vshrl.u32 %v13344_v35, %v3819_v41  ;;  %vm1942_vm11 = vcmp.eq.s32.totalorder %v11439_v36, 0  ;;  %v11478_v4 = vand.u32 3, %v2039_v55  ;;  %13651 = vst [vmem:[#allocation99_spill] sm:$0xff] %v11480_v23  ;;  %v11485_v7 = vpop.f32.mrb[31].mxu1 }
 0x3ae   : > { %v3820_v46 = vshrl.u32 %v13339_v53, %v3819_v41  ;;  %v3826_v63 = vor.u32 %v3825_v20, %v3824_v42  ;;  %v3829_v9 = vor.u32 %v3828_v27, %v3827_v29  ;;  %v3832_v34 = vor.u32 %v3831_v32, %v3830_v40  ;;  %13652 = vst [vmem:[#allocation103_spill] sm:$0xff] %v11485_v7  ;;  %v11487_v51 = vpop.permute.xlu0 %4229  ;;  %v11491_v55 = vpop.f32.mrb[32].mxu1 }
 0x3af   : > { %v3775_v61 = vshrl.u32 %v3757_v48, %v3773_v2  ;;  %v3779_v35 = vshll.u32 %v11456_v13, 23  ;;  %v3835_v33 = vor.u32 %v3834_v49, %v3833_v6  ;;  %vm3836_vm7 = vcmp.lt.s32.totalorder %v11449_v31, 1  ;;  %v11496_v27 = vpop.f32.mrb[33].mxu1  ;;  %v11498_v25 = vpop.f32.mrb[2].mxu0 }
 0x3b0   : > { %vm3837_vm14 = vcmp.lt.s32.totalorder %v11449_v31, 2  ;;  %vm3839_vm8 = vcmp.lt.s32.totalorder %v11449_v31, 4  ;;  %v3840_v53 = vsel %vm3836_vm7, %v3820_v46, %v3823_v11  ;;  %v3844_v41 = vsel %vm3836_vm7, %v3823_v11, %v3826_v63  ;;  %v7271_v48 = vpop.eup %7270  ;;  %v11501_v13 = vpop.permute.xlu1 %4190 }
 0x3b1   : > { %vm1941_vm2 = vcmp.lt.s32.totalorder %v11439_v36, 2  ;;  %vm3838_vm10 = vcmp.lt.s32.totalorder %v11449_v31, 3  ;;  %v3841_v49 = vsel %vm3839_vm8, %v3829_v9, 2102212464  ;;  %v3845_v6 = vsel %vm3839_vm8, %v3832_v34, 920167782 }
 0x3b2   : > { %v3848_v2 = vsel %vm3836_vm7, %v3826_v63, %v3829_v9  ;;  %v7273_v42 = vpop.eup %7272  ;;  %v3842_v29 = vsel %vm3838_vm10, %v3826_v63, %v3841_v49  ;;  %v3846_v46 = vsel %vm3838_vm10, %v3829_v9, %v3845_v6  ;;  %v3849_v20 = vsel %vm3839_vm8, %v3835_v33, 1326507024  ;;  %v11509_v32 = vpop.f32.mrb[34].mxu1 }
 0x3b3   : > { %vm1939_vm6 = vweird.f32 %v13632_v59  ;;  %v1943_v40 = vxor.u32 2147483648, %v11473_v22  ;;  %v11511_v11 = vpop.f32.mrb[3].mxu0  ;;  %v7275_v7 = vpop.eup %7274  ;;  %v3774_v23 = vshll.u32 %v11386_v37, %v11437_v17  ;;  %v3843_v44 = vsel %vm3837_vm14, %v3840_v53, %v3842_v29 }
 0x3b4   : > { %v3847_v63 = vsel %vm3837_vm14, %v3844_v41, %v3846_v46  ;;  %v3850_v9 = vsel %vm3838_vm10, %v3832_v34, %v3849_v20  ;;  %v11521_v33 = vpop.f32.mrb[35].mxu1  ;;  %vm1945_vm12 = vcmp.eq.s32.totalorder %v11439_v36, 2  ;;  %v11535_v53 = vor.u32 4788187, %v3779_v35  ;;  %v11545_v31 = vpop.permute.xlu0 %4235 }
 0x3b5   : > { %13653 = vst [vmem:[#allocation107_spill] sm:$0xff] %v11521_v33  ;;  %v3851_v49 = vsel %vm3837_vm14, %v3848_v2, %v3850_v9  ;;  %v11526_v6 = vmul.u32.u64.low %v11444_v60, %v3847_v63  ;;  %v11527_v54 = vmul.u32.u64.high %v11444_v60, %v3847_v63, %v11526_v6  ;;  %v11531_v37 = vpop.f32.mrb[36].mxu1  ;;  %v11533_v17 = vor.u32 %v3775_v61, %v3774_v23  ;;  %v4197_v9 = vpop.permute.xlu1 %4196 }
 0x3b6   : > { %v11538_v34 = vmul.u32.u64.low %v11444_v60, %v3851_v49  ;;  %v11539_v41 = vmul.u32.u64.high %v11444_v60, %v3851_v49, %v11538_v34  ;;  %v11541_v29 = vpop.f32.mrb[37].mxu1  ;;  %vm4272_vm5 = vcmp.eq.s32.totalorder %v7836_v28, %v11487_v51  ;;  %v3859_v2 = vmul.u32 %v11444_v60, %v3843_v44 }
 0x3b7   : > { %v1944_v46 = vsel %vm1942_vm11, %v7271_v48, %v1943_v40  ;;  %v1946_v23 = vxor.u32 2147483648, %v7271_v48  ;;  %v2046_v61 = vxor.u32 2147483648, %v7275_v7  ;;  %v11550_v35 = vpop.f32.mrb[38].mxu1  ;;  %vm13284_vm13 = vcmp.lt.s32.totalorder %v10721_v45, 0 }
 0x3b8   : > { %vm4274_vm7 = vcmp.eq.s32.totalorder %v7836_v28, %v11545_v31  ;;  %vm2045_vm14 = vcmp.eq.s32.totalorder %v11478_v4, 0  ;;  %vm2048_vm8 = vcmp.eq.s32.totalorder %v11478_v4, 2  ;;  %v2049_v20 = vxor.u32 2147483648, %v7273_v42  ;;  %v11559_v44 = vpop.f32.mrb[39].mxu1 }
 0x3b9   : > { %vm4257_vm10 = vcmp.eq.s32.totalorder %v7836_v28, %v11461_v47  ;;  %v3862_v60 = vadd.s32 1, %v11527_v54  ;;  %v1947_v48 = vsel %vm1945_vm12, %v1946_v23, %v11473_v22  ;;  %v2047_v40 = vsel %vm2045_vm14, %v7273_v42, %v2046_v61  ;;  %v11566_v49 = vpop.f32.mrb[40].mxu1 }
 0x3ba   : > { %v6406_v63 = vsel %vm4257_vm10, 1.0, %v13354_v5  ;;  %13654 = vst [vmem:[#allocation113_spill] sm:$0xff] %v11566_v49  ;;  %vm3861_vm11 = vc.u32 %v11539_v41, %v11526_v6  ;;  %v1948_v47 = vsel %vm1941_vm2, %v1944_v46, %v1947_v48  ;;  %vm2044_vm0 = vcmp.lt.s32.totalorder %v11478_v4, 2  ;;  %v11573_v14 = vpop.f32.mrb[41].mxu1  ;;  %v13680_v48 = vld [vmem:[#allocation51_spill] sm:$0xff] }
 0x3bb   : > { %v2050_v34 = vsel %vm2048_vm8, %v2049_v20, %v7275_v7  ;;  %13655 = vst [vmem:[#allocation110_spill] sm:$0xff] %v11573_v14  ;;  %v3863_v33 = vsel %vm3861_vm11, %v3862_v60, %v11527_v54  ;;  %vm2042_vm12 = vweird.f32 %v13638_v39  ;;  %v4347_v42 = vpack.c.bf16 %v6406_v63, %v10727_v8  ;;  %v11578_v23 = vpop.f32.mrb[42].mxu1  ;;  %v13663_v60 = vld [vmem:[#allocation111_spill] sm:$0xff] }
 0x3bc   : > { %v2051_v22 = vsel %vm2044_vm0, %v2047_v40, %v2050_v34  ;;  %13656 = vst [vmem:[#allocation112_spill] sm:$0xff] %v11578_v23  ;;  %v3864_v61 = vadd.s32 %v3863_v33, %v3859_v2  ;;  %v1949_v49 = vsel %vm1939_vm6, nan, %v1948_v47  ;;  %vm4259_vm2 = vcmp.eq.s32.totalorder %v7836_v28, %v11501_v13  ;;  %v11584_v7 = vpop.f32.mrb[43].mxu1  ;;  %v13669_v63 = vld [vmem:[#allocation71_spill] sm:$0xff] }
 0x3bd   : > { %v2052_v36 = vsel %vm2042_vm12, nan, %v2051_v22  ;;  %13657 = vst [vmem:[#allocation91_spill] sm:$0xff] %v11584_v7  ;;  %v13658_v4 = vand.u32 2147483647, %v11364_v3  ;;  %v13659_v54 = vcvt.s32.f32 %v11318_v52  ;;  %v13660_v8 = vand.u32 2147483647, %v11410_v18  ;;  %6508 = vmatmul.mubr.msk.bf16.gmra.mrb[52].mxu1 %vm4671_vm4, %v4347_v42 }
 0x3be   : > { %v13661_v46 = vcvt.s32.f32 %v11408_v58  ;;  %v3781_v59 = vand.u32 2147483647, %v11535_v53  ;;  %v3913_v2 = vpack.c.bf16 %v2052_v36, %v1949_v49  ;;  %v11600_v13 = vpop.f32.mrb[44].mxu1  ;;  %v3783_v20 = vcvt.s32.f32 %v11533_v17  ;;  %v13667_v18 = vld [vmem:[#allocation120_spill] sm:$0xff]  ;;  %5069 = vmatprep.mubr.bf16.mxu1 %v13382_v19  ;;  %v13674_v22 = vld [vmem:[#allocation121_spill] sm:$0xff]  ;;  %v11625_v36 = vpop.permute.xlu1 %4202 }
 0x3bf   : > { %v11590_v39 = vmul.f32 %v13659_v54, %v13658_v4  ;;  %13662 = vst [vmem:[#allocation80_spill] sm:$0xff] %v11600_v13  ;;  %v3865_v3 = vadd.s32 536870912, %v3864_v61  ;;  %v13664_v52 = vand.u32 2147483647, %v13663_v60  ;;  %v2139_v58 = vsub.s32 4, %v13667_v18  ;;  %v11611_v40 = vpop.f32.mrb[45].mxu1 }
 0x3c0   : > { %v11596_v33 = vmul.f32 %v13661_v46, %v13660_v8  ;;  %13668 = vst [vmem:[#allocation119_spill] sm:$0xff] %v11611_v40  ;;  %6756 = vmatprep.mubr.bf16.mxu0 %v3913_v2  ;;  %v6408_v53 = vsel %vm4259_vm2, 1.0, %v13354_v5  ;;  %v13670_v49 = vld [vmem:[#allocation116_spill] sm:$0xff]  ;;  %v2242_v42 = vsub.s32 4, %v13674_v22  ;;  %v11627_v4 = vpop.f32.mrb[46].mxu1  ;;  %vm4261_vm14 = vcmp.eq.s32.totalorder %v7836_v28, %v4197_v9 }
 0x3c1   : > { %vm11605_vm0 = vcmp.le.f32.partialorder %v13664_v52, 0.7853982  ;;  %v13671_v47 = vand.u32 2147483647, %v13670_v49  ;;  %13675 = vst [vmem:[#allocation108_spill] sm:$0xff] %v11627_v4  ;;  %v11629_v54 = vshrl.u32 %v3865_v3, 30  ;;  %v2140_v8 = vsel %vm2055_vm15, %v2139_v58, %v13667_v18 }
 0x3c2   : > { %v2141_v17 = vsel %vm11605_vm0, %v13663_v60, %v13669_v63  ;;  %v13676_v46 = vld [vmem:[#allocation40_spill] sm:$0xff]  ;;  %v11638_v52 = vpop.f32.mrb[47].mxu1  ;;  %v13678_v63 = vxor.u32 2147483648, %v11119_v56  ;;  %v11647_v3 = vmul.f32 %v3783_v20, %v3781_v59  ;;  %vm13679_vm15 = vcmp.lt.s32.totalorder %v13670_v49, 0 }
 0x3c3   : > { %vm11620_vm6 = vcmp.le.f32.partialorder %v13671_v47, 0.7853982  ;;  %7276 = vcosq.f32 %v2141_v17  ;;  %13677 = vst [vmem:[#allocation61_spill] sm:$0xff] %v11638_v52  ;;  %v2243_v18 = vsel %vm13679_vm15, %v2242_v42, %v13674_v22  ;;  %v11656_v58 = vsel %vm4272_vm5, 1.0, %v13354_v5 }
 0x3c4   : > { %v2244_v2 = vsel %vm11620_vm6, %v13670_v49, %v13676_v46  ;;  %v11645_v47 = vsel %vm13284_vm13, %v13678_v63, %v11119_v56  ;;  %7278 = vsinq.f32 %v2141_v17  ;;  %v3867_v46 = vshll.u32 %v11629_v54, 30  ;;  %v13684_v63 = vld [vmem:[#allocation90_spill] sm:$0xff]  ;;  %v13690_v17 = vld [vmem:[#allocation124_spill] sm:$0xff] }
 0x3c5   : > { %7280 = vcosq.f32 %v2244_v2  ;;  %v11664_v56 = vsel %vm4274_vm7, 1.0, %v13354_v5  ;;  %v4348_v59 = vpack.c.bf16 %v6408_v53, %v10733_v24  ;;  %v2142_v20 = vsel %vm11605_vm0, 0, %v2140_v8 }
 0x3c6   : > { %7282 = vsinq.f32 %v2244_v2  ;;  %v11671_v22 = vsub.s32 %v3864_v61, %v3867_v46  ;;  %v2245_v9 = vsel %vm11620_vm6, 0, %v2243_v18  ;;  %v11678_v31 = vadd.s32 %v11526_v6, %v11539_v41  ;;  %v11688_v61 = vpop.permute.xlu1 %4208  ;;  %v13685_v46 = vld [vmem:[#allocation97_spill] sm:$0xff] }
 0x3c7   : > { %v6410_v24 = vsel %vm4261_vm14, 1.0, %v13354_v5  ;;  %6509 = vmatmul.mubr.msk.bf16.gmra.mrb[56].mxu1 %vm4671_vm4, %v4348_v59  ;;  %v13681_v53 = vand.u32 2147483647, %v13680_v48  ;;  %v2146_v2 = vand.u32 3, %v2142_v20  ;;  %v2345_v18 = vsub.s32 4, %v13684_v63  ;;  %v13686_v59 = vld [vmem:[#allocation118_spill] sm:$0xff] }
 0x3c8   : > { %v3870_v34 = vsub.s32 0, %v11671_v22  ;;  %5079 = vmatprep.mubr.bf16.mxu1 %v13382_v19  ;;  %v11697_v41 = vand.u32 3, %v2245_v9  ;;  %v2448_v20 = vsub.s32 4, %v13690_v17  ;;  %vm13691_vm8 = vcmp.lt.s32.totalorder %v13680_v48, 0 }
 0x3c9   : > { %vm11684_vm5 = vcmp.le.f32.partialorder %v13681_v53, 0.7853982  ;;  %v13687_v53 = vand.u32 2147483647, %v13686_v59  ;;  %v2346_v7 = vsel %vm13691_vm8, %v2345_v18, %v13684_v63  ;;  %v4349_v23 = vpack.c.bf16 %v6410_v24, %v10738_v30 }
 0x3ca   : > { %v2347_v6 = vsel %vm11684_vm5, %v13680_v48, %v13685_v46  ;;  %v6384_v51 = vmin.u32 %v3870_v34, %v11671_v22  ;;  %v13692_v46 = vld [vmem:[#allocation56_spill] sm:$0xff]  ;;  %vm4263_vm10 = vcmp.eq.s32.totalorder %v7836_v28, %v11625_v36  ;;  %vm13693_vm11 = vcmp.lt.s32.totalorder %v13686_v59, 0  ;;  %v11725_v18 = vpop.permute.xlu1 %4214  ;;  %v11738_v36 = vpop.permute.xlu0 %4241 }
 0x3cb   : > { %7284 = vcosq.f32 %v2347_v6  ;;  %vm11701_vm7 = vcmp.le.f32.partialorder %v13687_v53, 0.7853982  ;;  %v2449_v53 = vsel %vm13693_vm11, %v2448_v20, %v13690_v17  ;;  %vm2145_vm12 = vweird.f32 %v13663_v60 }
 0x3cc   : > { %7286 = vsinq.f32 %v2347_v6  ;;  %v2450_v9 = vsel %vm11701_vm7, %v13686_v59, %v13692_v46  ;;  %v3872_v52 = vclz %v6384_v51  ;;  %vm2147_vm2 = vcmp.lt.s32.totalorder %v2146_v2, 2 }
 0x3cd   : > { %7288 = vcosq.f32 %v2450_v9  ;;  %v7277_v34 = vpop.eup %7276  ;;  %vm2248_vm0 = vweird.f32 %v13670_v49  ;;  %v2348_v63 = vsel %vm11684_vm5, 0, %v2346_v7  ;;  %vm2148_vm6 = vcmp.eq.s32.totalorder %v2146_v2, 0 }
 0x3ce   : > { %7290 = vsinq.f32 %v2450_v9  ;;  %v7279_v30 = vpop.eup %7278  ;;  %vm2151_vm15 = vcmp.eq.s32.totalorder %v2146_v2, 2  ;;  %v2152_v24 = vxor.u32 2147483648, %v7277_v34  ;;  %vm2250_vm14 = vcmp.lt.s32.totalorder %v11697_v41, 2 }
 0x3cf   : > { %v7281_v17 = vpop.eup %7280  ;;  %v6385_v6 = vadd.s32 4294967294, %v3872_v52  ;;  %v2149_v51 = vxor.u32 2147483648, %v7279_v30  ;;  %v6412_v20 = vsel %vm4263_vm10, 1.0, %v13354_v5  ;;  %v2451_v7 = vsel %vm11701_vm7, 0, %v2449_v53  ;;  %6510 = vmatmul.mubr.msk.bf16.gmra.mrb[60].mxu1 %vm4671_vm4, %v4349_v23 }
 0x3d0   : > { %v7283_v8 = vpop.eup %7282  ;;  %v2153_v46 = vsel %vm2151_vm15, %v2152_v24, %v7279_v30  ;;  %vm2251_vm5 = vcmp.eq.s32.totalorder %v11697_v41, 0  ;;  %v2255_v9 = vxor.u32 2147483648, %v7281_v17  ;;  %v2352_v4 = vand.u32 3, %v2348_v63  ;;  %5089 = vmatprep.mubr.bf16.mxu1 %v13382_v19 }
 0x3d1   : > { %vm6386_vm8 = vcmp.lt.s32.totalorder %v6385_v6, 0  ;;  %v2150_v52 = vsel %vm2148_vm6, %v7277_v34, %v2149_v51  ;;  %v2252_v14 = vxor.u32 2147483648, %v7283_v8  ;;  %vm2254_vm11 = vcmp.eq.s32.totalorder %v11697_v41, 2 }
 0x3d2   : > { %v3875_v42 = vsel %vm6386_vm8, 0, %v6385_v6  ;;  %v2256_v53 = vsel %vm2254_vm11, %v2255_v9, %v7283_v8  ;;  %v4350_v30 = vpack.c.bf16 %v6412_v20, %v10741_v10  ;;  %v2455_v24 = vand.u32 3, %v2451_v7  ;;  %v4221_v10 = vpop.permute.xlu1 %4220 }
 0x3d3   : > { %v3876_v40 = vsub.s32 32, %v3875_v42  ;;  %v3880_v13 = vsub.s32 4294967266, %v3875_v42  ;;  %v2154_v63 = vsel %vm2147_vm2, %v2150_v52, %v2153_v46  ;;  %vm2351_vm7 = vweird.f32 %v13680_v48 }
 0x3d4   : > { %vm2454_vm10 = vweird.f32 %v13686_v59  ;;  %vm4265_vm6 = vcmp.eq.s32.totalorder %v7836_v28, %v11688_v61  ;;  %v2253_v34 = vsel %vm2251_vm5, %v7281_v17, %v2252_v14  ;;  %vm2353_vm15 = vcmp.lt.s32.totalorder %v2352_v4, 2 }
 0x3d5   : > { %v7285_v23 = vpop.eup %7284  ;;  %vm2354_vm8 = vcmp.eq.s32.totalorder %v2352_v4, 0  ;;  %vm2357_vm11 = vcmp.eq.s32.totalorder %v2352_v4, 2  ;;  %vm4267_vm13 = vcmp.eq.s32.totalorder %v7836_v28, %v11725_v18  ;;  %vm4276_vm2 = vcmp.eq.s32.totalorder %v7836_v28, %v11738_v36 }
 0x3d6   : > { %v7287_v2 = vpop.eup %7286  ;;  %v3878_v6 = vshrl.u32 %v11678_v31, %v3876_v40  ;;  %v3881_v51 = vadd.s32 127, %v3880_v13  ;;  %v2257_v20 = vsel %vm2250_vm14, %v2253_v34, %v2256_v53  ;;  %v2358_v7 = vxor.u32 2147483648, %v7285_v23  ;;  %v4227_v61 = vpop.permute.xlu1 %4226 }
 0x3d7   : > { %v7289_v8 = vpop.eup %7288  ;;  %v2155_v14 = vsel %vm2145_vm12, nan, %v2154_v63  ;;  %v2258_v17 = vsel %vm2248_vm0, nan, %v2257_v20  ;;  %v2355_v46 = vxor.u32 2147483648, %v7287_v2  ;;  %vm2457_vm5 = vcmp.eq.s32.totalorder %v2455_v24, 0  ;;  %6511 = vmatmul.mubr.msk.bf16.gmra.mrb[64].mxu1 %vm4671_vm4, %v4350_v30  ;;  %v13709_v20 = vld [vmem:[#allocation82_spill] sm:$0xff] }
 0x3d8   : > { %v7291_v9 = vpop.eup %7290  ;;  %vm3394_vm1 = vcmp.lt.s32.totalorder %v10762_v50, 0  ;;  %v3877_v52 = vshll.u32 %v11671_v22, %v3875_v42  ;;  %v3882_v40 = vshll.u32 %v3881_v51, 23  ;;  %v3914_v13 = vpack.c.bf16 %v2258_v17, %v2155_v14  ;;  %5099 = vmatprep.mubr.bf16.mxu1 %v13382_v19 }
 0x3d9   : > { %v2359_v31 = vsel %vm2357_vm11, %v2358_v7, %v7287_v2  ;;  %v2356_v41 = vsel %vm2354_vm8, %v7285_v23, %v2355_v46  ;;  %v2458_v53 = vxor.u32 2147483648, %v7291_v9  ;;  %v2461_v34 = vxor.u32 2147483648, %v7289_v8  ;;  %v13697_v7 = vld [vmem:[#allocation126_spill] sm:$0xff]  ;;  %v13698_v46 = vld [vmem:[#allocation123_spill] sm:$0xff] }
 0x3da   : > { %v6414_v60 = vsel %vm4265_vm6, 1.0, %v13354_v5  ;;  %vm13288_vm12 = vcmp.lt.s32.totalorder %v11079_v12, 0  ;;  %vm13287_vm0 = vcmp.lt.s32.totalorder %v11103_v62, 0  ;;  %v3879_v49 = vor.u32 %v3878_v6, %v3877_v52  ;;  %6757 = vmatmul.mubr.bf16.gmra.mrb[12].mxu0 %v3914_v13  ;;  %v13702_v52 = vld [vmem:[#allocation65_spill] sm:$0xff] }
 0x3db   : > { %v3883_v22 = vor.u32 4788187, %v3882_v40  ;;  %v2360_v42 = vsel %vm2353_vm15, %v2356_v41, %v2359_v31  ;;  %vm2460_vm14 = vcmp.eq.s32.totalorder %v2455_v24, 2  ;;  %vm2456_vm8 = vcmp.lt.s32.totalorder %v2455_v24, 2  ;;  %v13703_v41 = vld [vmem:[#allocation59_spill] sm:$0xff] }
 0x3dc   : > { %v2459_v63 = vsel %vm2457_vm5, %v7289_v8, %v2458_v53  ;;  %v2462_v23 = vsel %vm2460_vm14, %v2461_v34, %v7291_v9  ;;  %vm4269_vm6 = vcmp.eq.s32.totalorder %v7836_v28, %v4221_v10  ;;  %v4351_v51 = vpack.c.bf16 %v6414_v60, %v11045_v1  ;;  %v13720_v9 = vld [vmem:[#allocation53_spill] sm:$0xff] }
 0x3dd   : > { %v3884_v30 = vand.u32 2147483647, %v3883_v22  ;;  %v2463_v2 = vsel %vm2456_vm8, %v2459_v63, %v2462_v23  ;;  %v13694_v6 = vand.u32 2147483647, %v13537_v15  ;;  %v2361_v4 = vsel %vm2351_vm7, nan, %v2360_v42 }
 0x3de   : > { %v2464_v24 = vsel %vm2454_vm10, nan, %v2463_v2  ;;  %v2551_v8 = vsub.s32 4, %v13697_v7  ;;  %v3886_v1 = vcvt.s32.f32 %v3879_v49  ;;  %vm4271_vm15 = vcmp.eq.s32.totalorder %v7836_v28, %v4227_v61  ;;  %v4233_v49 = vpop.permute.xlu1 %4232 }
 0x3df   : > { %vm11777_vm11 = vcmp.le.f32.partialorder %v13694_v6, 0.7853982  ;;  %v3915_v17 = vpack.c.bf16 %v2464_v24, %v2361_v4  ;;  %v13699_v59 = vand.u32 2147483647, %v13698_v46  ;;  %v2654_v40 = vsub.s32 4, %v13702_v52  ;;  %6512 = vmatmul.mubr.msk.bf16.gmra.mrb[68].mxu1 %vm4671_vm4, %v4351_v51  ;;  %v13713_v24 = vld [vmem:[#allocation96_spill] sm:$0xff] }
 0x3e0   : > { %v2553_v14 = vsel %vm11777_vm11, %v13537_v15, %v10571_v43  ;;  %v2552_v48 = vsel %vm2467_vm9, %v2551_v8, %v13697_v7  ;;  %v3887_v13 = vmul.f32 %v3886_v1, %v3884_v30  ;;  %v6416_v43 = vsel %vm4267_vm13, 1.0, %v13354_v5  ;;  %5109 = vmatprep.mubr.bf16.mxu1 %v13382_v19  ;;  %v13708_v30 = vld [vmem:[#allocation42_spill] sm:$0xff] }
 0x3e1   : > { %7292 = vcosq.f32 %v2553_v14  ;;  %vm11796_vm7 = vcmp.le.f32.partialorder %v13699_v59, 0.7853982  ;;  %6760 = vmatprep.mubr.bf16.mxu0 %v3915_v17  ;;  %v11808_v31 = vsel %vm4269_vm6, 1.0, %v13354_v5  ;;  %v13704_v34 = vxor.u32 2147483648, %v11590_v39  ;;  %v13716_v17 = vld [vmem:[#allocation125_spill] sm:$0xff]  ;;  %v13727_v59 = vld [vmem:[#allocation50_spill] sm:$0xff] }
 0x3e2   : > { %7294 = vsinq.f32 %v2553_v14  ;;  %v2656_v53 = vsel %vm11796_vm7, %v13698_v46, %v13703_v41  ;;  %v11825_v18 = vsel %vm4276_vm2, 1.0, %v13354_v5  ;;  %vm13705_vm9 = vcmp.lt.s32.totalorder %v13698_v46, 0  ;;  %v13721_v41 = vld [vmem:[#allocation66_spill] sm:$0xff] }
 0x3e3   : > { %v11819_v60 = vsel %vm3394_vm1, %v13704_v34, %v11590_v39  ;;  %v2655_v10 = vsel %vm13705_vm9, %v2654_v40, %v13702_v52  ;;  %7296 = vcosq.f32 %v2656_v53  ;;  %vm13286_vm13 = vcmp.lt.s32.totalorder %v11379_v57, 0  ;;  %v4239_v34 = vpop.permute.xlu1 %4238 }
 0x3e4   : > { %v11835_v39 = vsel %vm4271_vm15, 1.0, %v13354_v5  ;;  %v2554_v36 = vsel %vm11777_vm11, 0, %v2552_v48  ;;  %7298 = vsinq.f32 %v2656_v53  ;;  %v13706_v22 = vxor.u32 2147483648, %v11596_v33 }
 0x3e5   : > { %v13707_v63 = vxor.u32 2147483648, %v11647_v3  ;;  %v4352_v61 = vpack.c.bf16 %v6416_v43, %v11100_v21  ;;  %v4353_v2 = vpack.c.bf16 %v11808_v31, %v13708_v30  ;;  %v3888_v51 = vxor.u32 2147483648, %v3887_v13  ;;  %v13714_v21 = vld [vmem:[#allocation98_spill] sm:$0xff] }
 0x3e6   : > { %v11845_v42 = vsel %vm13288_vm12, %v13706_v22, %v11596_v33  ;;  %v2657_v6 = vsel %vm11796_vm7, 0, %v2655_v10  ;;  %v13710_v4 = vand.u32 2147483647, %v13709_v20  ;;  %v2757_v7 = vsub.s32 4, %v13713_v24  ;;  %v13734_v30 = vld [vmem:[#allocation54_spill] sm:$0xff] }
 0x3e7   : > { %v11852_v23 = vsel %vm13287_vm0, %v13707_v63, %v11647_v3  ;;  %v4354_v3 = vpack.c.bf16 %v11835_v39, %v11324_v38  ;;  %v2558_v8 = vand.u32 3, %v2554_v36  ;;  %vm4273_vm2 = vcmp.eq.s32.totalorder %v7836_v28, %v4233_v49  ;;  %6513 = vmatmul.mubr.msk.bf16.gmra.mrb[72].mxu1 %vm4671_vm4, %v4352_v61 }
 0x3e8   : > { %vm11861_vm10 = vcmp.le.f32.partialorder %v13710_v4, 0.7853982  ;;  %vm13715_vm5 = vcmp.lt.s32.totalorder %v13709_v20, 0  ;;  %v13717_v48 = vand.u32 2147483647, %v13716_v17  ;;  %v2860_v52 = vsub.s32 4, %v13720_v9  ;;  %5119 = vmatprep.mubr.bf16.mxu1 %v13382_v19 }
 0x3e9   : > { %v2759_v14 = vsel %vm11861_vm10, %v13709_v20, %v13714_v21  ;;  %v2758_v1 = vsel %vm13715_vm5, %v2757_v7, %v13713_v24  ;;  %v2661_v40 = vand.u32 3, %v2657_v6  ;;  %v11891_v49 = vsel %vm13286_vm13, %v3888_v51, %v3887_v13 }
 0x3ea   : > { %7300 = vcosq.f32 %v2759_v14  ;;  %vm11878_vm14 = vcmp.le.f32.partialorder %v13717_v48, 0.7853982  ;;  %v2760_v43 = vsel %vm11861_vm10, 0, %v2758_v1  ;;  %vm2557_vm8 = vweird.f32 %v13537_v15  ;;  %v13733_v15 = vld [vmem:[#allocation57_spill] sm:$0xff] }
 0x3eb   : > { %7302 = vsinq.f32 %v2759_v14  ;;  %v2862_v53 = vsel %vm11878_vm14, %v13716_v17, %v13721_v41  ;;  %v7293_v10 = vpop.eup %7292  ;;  %vm2660_vm6 = vweird.f32 %v13698_v46  ;;  %v11896_v36 = vsel %vm4273_vm2, 1.0, %v13354_v5  ;;  %v13723_v41 = vld [vmem:[#allocation55_spill] sm:$0xff] }
 0x3ec   : > { %7304 = vcosq.f32 %v2862_v53  ;;  %v7295_v22 = vpop.eup %7294  ;;  %vm2559_vm11 = vcmp.lt.s32.totalorder %v2558_v8, 2  ;;  %v2564_v63 = vxor.u32 2147483648, %v7293_v10  ;;  %v2764_v6 = vand.u32 3, %v2760_v43 }
 0x3ed   : > { %7306 = vsinq.f32 %v2862_v53  ;;  %v2561_v4 = vxor.u32 2147483648, %v7295_v22  ;;  %vm2563_vm15 = vcmp.eq.s32.totalorder %v2558_v8, 2  ;;  %vm13722_vm7 = vcmp.lt.s32.totalorder %v13716_v17, 0  ;;  %v7297_v51 = vpop.eup %7296 }
 0x3ee   : > { %v2861_v13 = vsel %vm13722_vm7, %v2860_v52, %v13720_v9  ;;  %vm4275_vm9 = vcmp.eq.s32.totalorder %v7836_v28, %v4239_v34  ;;  %vm2560_vm10 = vcmp.eq.s32.totalorder %v2558_v8, 0  ;;  %v2565_v33 = vsel %vm2563_vm15, %v2564_v63, %v7295_v22  ;;  %v7299_v7 = vpop.eup %7298  ;;  %v4245_v9 = vpop.permute.xlu1 %4244 }
 0x3ef   : > { %vm2662_vm2 = vcmp.lt.s32.totalorder %v2661_v40, 2  ;;  %v4355_v24 = vpack.c.bf16 %v11896_v36, %v11656_v58  ;;  %v2562_v21 = vsel %vm2560_vm10, %v7293_v10, %v2561_v4  ;;  %vm2663_vm5 = vcmp.eq.s32.totalorder %v2661_v40, 0  ;;  %v13728_v4 = vld [vmem:[#allocation58_spill] sm:$0xff]  ;;  %6514 = vmatmul.mubr.msk.bf16.gmra.mrb[76].mxu1 %vm4671_vm4, %v4353_v2 }
 0x3f0   : > { %vm2666_vm13 = vcmp.eq.s32.totalorder %v2661_v40, 2  ;;  %v2667_v61 = vxor.u32 2147483648, %v7297_v51  ;;  %v2664_v14 = vxor.u32 2147483648, %v7299_v7  ;;  %vm2763_vm0 = vweird.f32 %v13709_v20  ;;  %5129 = vmatprep.mubr.bf16.mxu1 %v13382_v19 }
 0x3f1   : > { %vm2765_vm7 = vcmp.lt.s32.totalorder %v2764_v6, 2  ;;  %v2863_v1 = vsel %vm11878_vm14, 0, %v2861_v13  ;;  %v11912_v48 = vsel %vm4275_vm9, 1.0, %v13354_v5  ;;  %v2566_v52 = vsel %vm2559_vm11, %v2562_v21, %v2565_v33 }
 0x3f2   : > { %v2668_v43 = vsel %vm2666_vm13, %v2667_v61, %v7299_v7  ;;  %vm2766_vm15 = vcmp.eq.s32.totalorder %v2764_v6, 0  ;;  %v13724_v53 = vand.u32 2147483647, %v13723_v41  ;;  %v2665_v22 = vsel %vm2663_vm5, %v7297_v51, %v2664_v14 }
 0x3f3   : > { %vm2769_vm12 = vcmp.eq.s32.totalorder %v2764_v6, 2  ;;  %v2963_v63 = vsub.s32 4, %v13727_v59  ;;  %v2669_v8 = vsel %vm2662_vm2, %v2665_v22, %v2668_v43  ;;  %v2867_v33 = vand.u32 3, %v2863_v1  ;;  %v13729_v43 = vld [vmem:[#allocation41_spill] sm:$0xff]  ;;  %v13736_v6 = vld [vmem:[#allocation95_spill] sm:$0xff] }
 0x3f4   : > { %vm11917_vm10 = vcmp.le.f32.partialorder %v13724_v53, 0.7853982  ;;  %v7301_v13 = vpop.eup %7300  ;;  %vm4277_vm13 = vcmp.eq.s32.totalorder %v7836_v28, %v4245_v9  ;;  %v2567_v21 = vsel %vm2557_vm8, nan, %v2566_v52  ;;  %v2670_v51 = vsel %vm2660_vm6, nan, %v2669_v8 }
 0x3f5   : > { %v2965_v34 = vsel %vm11917_vm10, %v13723_v41, %v13728_v4  ;;  %v7303_v7 = vpop.eup %7302  ;;  %v2770_v61 = vxor.u32 2147483648, %v7301_v13  ;;  %v3916_v14 = vpack.c.bf16 %v2670_v51, %v2567_v21  ;;  %v13730_v53 = vand.u32 2147483647, %v13729_v43 }
 0x3f6   : > { %7308 = vcosq.f32 %v2965_v34  ;;  %v7305_v40 = vpop.eup %7304  ;;  %v2767_v1 = vxor.u32 2147483648, %v7303_v7  ;;  %v3066_v52 = vsub.s32 4, %v13733_v15  ;;  %v2964_v31 = vsel %vm2879_vm3, %v2963_v63, %v13727_v59 }
 0x3f7   : > { %7310 = vsinq.f32 %v2965_v34  ;;  %vm11938_vm14 = vcmp.le.f32.partialorder %v13730_v53, 0.7853982  ;;  %v7307_v46 = vpop.eup %7306  ;;  %v2771_v4 = vsel %vm2769_vm12, %v2770_v61, %v7303_v7  ;;  %v2873_v34 = vxor.u32 2147483648, %v7305_v40  ;;  %6761 = vmatmul.mubr.bf16.gmra.mrb[16].mxu0 %v3916_v14  ;;  %v13740_v53 = vld [vmem:[#allocation114_spill] sm:$0xff]  ;;  %6515 = vmatmul.mubr.msk.bf16.gmra.mrb[80].mxu1 %vm4671_vm4, %v4354_v3  ;;  %v13748_v3 = vld [vmem:[#allocation63_spill] sm:$0xff] }
 0x3f8   : > { %v3068_v2 = vsel %vm11938_vm14, %v13729_v43, %v13734_v30  ;;  %v2768_v8 = vsel %vm2766_vm15, %v7301_v13, %v2767_v1  ;;  %v2870_v21 = vxor.u32 2147483648, %v7307_v46  ;;  %vm2872_vm8 = vcmp.eq.s32.totalorder %v2867_v33, 2  ;;  %5139 = vmatprep.mubr.bf16.mxu1 %v13382_v19 }
 0x3f9   : > { %7312 = vcosq.f32 %v3068_v2  ;;  %v2772_v51 = vsel %vm2765_vm7, %v2768_v8, %v2771_v4  ;;  %vm2868_vm6 = vcmp.lt.s32.totalorder %v2867_v33, 2  ;;  %vm2869_vm12 = vcmp.eq.s32.totalorder %v2867_v33, 0 }
 0x3fa   : > { %v2874_v7 = vsel %vm2872_vm8, %v2873_v34, %v7307_v46  ;;  %v2871_v61 = vsel %vm2869_vm12, %v7305_v40, %v2870_v21  ;;  %v2966_v59 = vsel %vm11917_vm10, 0, %v2964_v31  ;;  %vm13735_vm3 = vcmp.lt.s32.totalorder %v13729_v43, 0 }
 0x3fb   : > { %v3067_v63 = vsel %vm13735_vm3, %v3066_v52, %v13733_v15  ;;  %7314 = vsinq.f32 %v3068_v2  ;;  %vm2866_vm11 = vweird.f32 %v13716_v17  ;;  %v2875_v13 = vsel %vm2868_vm6, %v2871_v61, %v2874_v7  ;;  %v13741_v15 = vld [vmem:[#allocation85_spill] sm:$0xff]  ;;  %v13743_v2 = vld [vmem:[#allocation52_spill] sm:$0xff] }
 0x3fc   : > { %v4356_v14 = vpack.c.bf16 %v11912_v48, %v11664_v56  ;;  %v13737_v1 = vand.u32 2147483647, %v13736_v6  ;;  %v2773_v10 = vsel %vm2763_vm0, nan, %v2772_v51  ;;  %v2876_v40 = vsel %vm2866_vm11, nan, %v2875_v13 }
 0x3fd   : > { %v3169_v46 = vsub.s32 4, %v13740_v53  ;;  %v3917_v52 = vpack.c.bf16 %v2876_v40, %v2773_v10  ;;  %v11978_v4 = vsel %vm4277_vm13, 1.0, %v13354_v5  ;;  %v2970_v34 = vand.u32 3, %v2966_v59  ;;  %v13747_v5 = vld [vmem:[#allocation67_spill] sm:$0xff] }
 0x3fe   : > { %vm11964_vm9 = vcmp.le.f32.partialorder %v13737_v1, 0.7853982  ;;  %v3069_v31 = vsel %vm11938_vm14, 0, %v3067_v63  ;;  %vm13742_vm0 = vcmp.lt.s32.totalorder %v13736_v6, 0  ;;  %v13744_v8 = vand.u32 2147483647, %v13743_v2 }
 0x3ff   : > { %v3171_v17 = vsel %vm11964_vm9, %v13736_v6, %v13741_v15  ;;  %v3170_v30 = vsel %vm13742_vm0, %v3169_v46, %v13740_v53  ;;  %v3272_v9 = vsub.s32 4, %v13747_v5  ;;  %6764 = vmatprep.mubr.bf16.mxu0 %v3917_v52  ;;  %v3073_v7 = vand.u32 3, %v3069_v31  ;;  %6516 = vmatmul.mubr.msk.bf16.gmra.mrb[84].mxu1 %vm4671_vm4, %v4355_v24 }
 0x400   : > { %v7309_v20 = vpop.eup %7308  ;;  %7316 = vcosq.f32 %v3171_v17  ;;  %vm11991_vm2 = vcmp.le.f32.partialorder %v13744_v8, 0.7853982  ;;  %v3172_v39 = vsel %vm11964_vm9, 0, %v3170_v30  ;;  %vm13749_vm5 = vcmp.lt.s32.totalorder %v13743_v2, 0  ;;  %5149 = vmatprep.mubr.bf16.mxu1 %v13382_v19 }
 0x401   : > { %v7311_v22 = vpop.eup %7310  ;;  %v2976_v38 = vxor.u32 2147483648, %v7309_v20  ;;  %7318 = vsinq.f32 %v3171_v17  ;;  %v3274_v21 = vsel %vm11991_vm2, %v13743_v2, %v13748_v3  ;;  %v3273_v61 = vsel %vm13749_vm5, %v3272_v9, %v13747_v5  ;;  %v13753_v17 = vld [vmem:[#allocation44_spill] sm:$0xff] }
 0x402   : > { %v2973_v51 = vxor.u32 2147483648, %v7311_v22  ;;  %7320 = vcosq.f32 %v3274_v21  ;;  %v4357_v59 = vpack.c.bf16 %v11978_v4, %v11825_v18  ;;  %vm2969_vm7 = vweird.f32 %v13723_v41 }
 0x403   : > { %vm2975_vm15 = vcmp.eq.s32.totalorder %v2970_v34, 2  ;;  %7322 = vsinq.f32 %v3274_v21  ;;  %v7313_v63 = vpop.eup %7312  ;;  %vm2971_vm10 = vcmp.lt.s32.totalorder %v2970_v34, 2  ;;  %vm2972_vm13 = vcmp.eq.s32.totalorder %v2970_v34, 0 }
 0x404   : > { %v2977_v13 = vsel %vm2975_vm15, %v2976_v38, %v7311_v22  ;;  %v3176_v1 = vand.u32 3, %v3172_v39  ;;  %v2974_v33 = vsel %vm2972_vm13, %v7309_v20, %v2973_v51  ;;  %v3079_v10 = vxor.u32 2147483648, %v7313_v63  ;;  %v13757_v22 = vld [vmem:[#allocation60_spill] sm:$0xff] }
 0x405   : > { %v3275_v40 = vsel %vm11991_vm2, 0, %v3273_v61  ;;  %v13750_v53 = vand.u32 2147483647, %v10721_v45  ;;  %v7315_v15 = vpop.eup %7314  ;;  %vm3072_vm8 = vweird.f32 %v13729_v43  ;;  %vm3078_vm6 = vcmp.eq.s32.totalorder %v3073_v7, 2 }
 0x406   : > { %v3375_v52 = vsub.s32 4, %v13753_v17  ;;  %vm3074_vm12 = vcmp.lt.s32.totalorder %v3073_v7, 2  ;;  %vm3075_vm3 = vcmp.eq.s32.totalorder %v3073_v7, 0  ;;  %v3076_v20 = vxor.u32 2147483648, %v7315_v15 }
 0x407   : > { %vm12013_vm14 = vcmp.le.f32.partialorder %v13750_v53, 0.7853982  ;;  %v3080_v30 = vsel %vm3078_vm6, %v3079_v10, %v7315_v15  ;;  %v2978_v8 = vsel %vm2971_vm10, %v2974_v33, %v2977_v13  ;;  %vm3178_vm11 = vcmp.eq.s32.totalorder %v3176_v1, 0  ;;  %6517 = vmatmul.mubr.msk.bf16.gmra.mrb[88].mxu1 %vm4671_vm4, %v4356_v14 }
 0x408   : > { %v3377_v31 = vsel %vm12013_vm14, %v10721_v45, %v11645_v47  ;;  %v3279_v28 = vand.u32 3, %v3275_v40  ;;  %v3077_v5 = vsel %vm3075_vm3, %v7313_v63, %v3076_v20  ;;  %v13754_v47 = vand.u32 2147483647, %v10762_v50  ;;  %5159 = vmatprep.mubr.bf16.mxu1 %v13382_v19 }
 0x409   : > { %7324 = vcosq.f32 %v3377_v31  ;;  %v3478_v38 = vsub.s32 4, %v13757_v22  ;;  %v3081_v36 = vsel %vm3074_vm12, %v3077_v5, %v3080_v30  ;;  %vm3181_vm0 = vcmp.eq.s32.totalorder %v3176_v1, 2  ;;  %v13763_v30 = vld [vmem:[#allocation117_spill] sm:$0xff] }
 0x40a   : > { %7326 = vsinq.f32 %v3377_v31  ;;  %vm12031_vm9 = vcmp.le.f32.partialorder %v13754_v47, 0.7853982  ;;  %v7317_v58 = vpop.eup %7316  ;;  %vm13758_vm2 = vcmp.lt.s32.totalorder %v10721_v45, 0  ;;  %v2979_v3 = vsel %vm2969_vm7, nan, %v2978_v8  ;;  %v13764_v47 = vld [vmem:[#allocation72_spill] sm:$0xff] }
 0x40b   : > { %v3376_v24 = vsel %vm13758_vm2, %v3375_v52, %v13753_v17  ;;  %v3480_v34 = vsel %vm12031_vm9, %v10762_v50, %v11819_v60  ;;  %v7319_v39 = vpop.eup %7318  ;;  %v3082_v21 = vsel %vm3072_vm8, nan, %v3081_v36  ;;  %v3182_v51 = vxor.u32 2147483648, %v7317_v58  ;;  %v13759_v17 = vld [vmem:[#allocation109_spill] sm:$0xff] }
 0x40c   : > { %7328 = vcosq.f32 %v3480_v34  ;;  %v7321_v7 = vpop.eup %7320  ;;  %v3918_v61 = vpack.c.bf16 %v3082_v21, %v2979_v3  ;;  %vm3177_vm5 = vcmp.lt.s32.totalorder %v3176_v1, 2  ;;  %v3179_v63 = vxor.u32 2147483648, %v7319_v39 }
 0x40d   : > { %vm3280_vm15 = vcmp.lt.s32.totalorder %v3279_v28, 2  ;;  %v7323_v13 = vpop.eup %7322  ;;  %v3183_v33 = vsel %vm3181_vm0, %v3182_v51, %v7319_v39  ;;  %v3285_v10 = vxor.u32 2147483648, %v7321_v7  ;;  %v3378_v60 = vsel %vm12013_vm14, 0, %v3376_v24 }
 0x40e   : > { %v3479_v41 = vsel %vm3394_vm1, %v3478_v38, %v13757_v22  ;;  %6765 = vmatmul.mubr.bf16.gmra.mrb[20].mxu0 %v3918_v61  ;;  %v3180_v43 = vsel %vm3178_vm11, %v7317_v58, %v3179_v63  ;;  %v3282_v40 = vxor.u32 2147483648, %v7323_v13  ;;  %vm3284_vm7 = vcmp.eq.s32.totalorder %v3279_v28, 2 }
 0x40f   : > { %7330 = vsinq.f32 %v3480_v34  ;;  %v3184_v53 = vsel %vm3177_vm5, %v3180_v43, %v3183_v33  ;;  %vm3281_vm10 = vcmp.eq.s32.totalorder %v3279_v28, 0  ;;  %v3286_v15 = vsel %vm3284_vm7, %v3285_v10, %v7323_v13  ;;  %v13766_v28 = vld [vmem:[#allocation78_spill] sm:$0xff]  ;;  %6518 = vmatmul.mubr.msk.bf16.gmra.mrb[92].mxu1 %vm4671_vm4, %v4357_v59 }
 0x410   : > { %v13760_v52 = vand.u32 2147483647, %v13759_v17  ;;  %v3283_v46 = vsel %vm3281_vm10, %v7321_v7, %v3282_v40  ;;  %v3382_v1 = vand.u32 3, %v3378_v60  ;;  %v3481_v20 = vsel %vm12031_vm9, 0, %v3479_v41 }
 0x411   : > { %v3581_v8 = vsub.s32 4, %v13763_v30  ;;  %vm3175_vm1 = vweird.f32 %v13736_v6  ;;  %vm3278_vm14 = vweird.f32 %v13743_v2  ;;  %v3287_v5 = vsel %vm3280_vm15, %v3283_v46, %v3286_v15 }
 0x412   : > { %vm12055_vm13 = vcmp.le.f32.partialorder %v13760_v52, 0.7853982  ;;  %v3185_v14 = vsel %vm3175_vm1, nan, %v3184_v53  ;;  %v3288_v22 = vsel %vm3278_vm14, nan, %v3287_v5  ;;  %vm3381_vm8 = vweird.f32 %v10721_v45 }
 0x413   : > { %v3583_v56 = vsel %vm12055_vm13, %v13759_v17, %v13764_v47  ;;  %v7325_v48 = vpop.eup %7324  ;;  %v3919_v38 = vpack.c.bf16 %v3288_v22, %v3185_v14  ;;  %v3485_v36 = vand.u32 3, %v3481_v20  ;;  %vm3387_vm6 = vcmp.eq.s32.totalorder %v3382_v1, 2 }
 0x414   : > { %7332 = vcosq.f32 %v3583_v56  ;;  %v7327_v9 = vpop.eup %7326  ;;  %v3388_v58 = vxor.u32 2147483648, %v7325_v48  ;;  %vm13765_vm12 = vcmp.lt.s32.totalorder %v13759_v17, 0  ;;  %v3684_v24 = vsub.s32 4, %v13766_v28 }
 0x415   : > { %7334 = vsinq.f32 %v3583_v56  ;;  %v3385_v6 = vxor.u32 2147483648, %v7327_v9  ;;  %v3582_v2 = vsel %vm13765_vm12, %v3581_v8, %v13763_v30  ;;  %6768 = vmatprep.mubr.bf16.mxu0 %v3919_v38  ;;  %vm3384_vm3 = vcmp.eq.s32.totalorder %v3382_v1, 0  ;;  %v5266_v56 = vld [vmem:[%s13033_s5] sm:$0xff] }
 0x416   : > { %v7329_v34 = vpop.eup %7328  ;;  %v3389_v39 = vsel %vm3387_vm6, %v3388_v58, %v7327_v9  ;;  %vm3484_vm11 = vweird.f32 %v10762_v50  ;;  %v13767_v3 = vand.u32 2147483647, %v11079_v12  ;;  %vm3383_vm0 = vcmp.lt.s32.totalorder %v3382_v1, 2  ;;  %v5268_v50 = vld [vmem:[%s13033_s5 + $0x10] sm:$0xff] }
 0x417   : > { %v3386_v51 = vsel %vm3384_vm3, %v7325_v48, %v3385_v6  ;;  %v3491_v7 = vxor.u32 2147483648, %v7329_v34  ;;  %vm3490_vm2 = vcmp.eq.s32.totalorder %v3485_v36, 2  ;;  %v3584_v63 = vsel %vm12055_vm13, 0, %v3582_v2  ;;  %v5267_v48 = vld [vmem:[%s13033_s5 + $0x8] sm:$0xff] }
 0x418   : > { %vm12082_vm9 = vcmp.le.f32.partialorder %v13767_v3, 0.7853982  ;;  %vm13770_vm5 = vcmp.lt.s32.totalorder %v11079_v12, 0  ;;  %v3390_v10 = vsel %vm3383_vm0, %v3386_v51, %v3389_v39  ;;  %v13771_v60 = vand.u32 2147483647, %v11103_v62 }
 0x419   : > { %v3686_v61 = vsel %vm12082_vm9, %v11079_v12, %v11845_v42  ;;  %v3685_v13 = vsel %vm13770_vm5, %v3684_v24, %v13766_v28  ;;  %v7331_v33 = vpop.eup %7330  ;;  %v3787_v41 = vsub.s32 4, %v11373_v0  ;;  %vm3486_vm7 = vcmp.lt.s32.totalorder %v3485_v36, 2 }
 0x41a   : > { %7336 = vcosq.f32 %v3686_v61  ;;  %vm12101_vm15 = vcmp.le.f32.partialorder %v13771_v60, 0.7853982  ;;  %v3488_v43 = vxor.u32 2147483648, %v7331_v33  ;;  %v3492_v40 = vsel %vm3490_vm2, %v3491_v7, %v7331_v33 }
 0x41b   : > { %7338 = vsinq.f32 %v3686_v61  ;;  %v3789_v18 = vsel %vm12101_vm15, %v11103_v62, %v11852_v23  ;;  %vm3487_vm4 = vcmp.eq.s32.totalorder %v3485_v36, 0  ;;  %v3588_v4 = vand.u32 3, %v3584_v63 }
 0x41c   : > { %v3687_v59 = vsel %vm12082_vm9, 0, %v3685_v13  ;;  %vm13774_vm10 = vcmp.lt.s32.totalorder %v11103_v62, 0  ;;  %v3391_v15 = vsel %vm3381_vm8, nan, %v3390_v10  ;;  %v3489_v52 = vsel %vm3487_vm4, %v7329_v34, %v3488_v43  ;;  %v5270_v34 = vld [vmem:[%s13033_s5 + $0x20] sm:$0xff]  ;;  %v5273_v43 = vld [vmem:[%s13033_s5 + $0x38] sm:$0xff] }
 0x41d   : > { %v3788_v53 = vsel %vm13774_vm10, %v3787_v41, %v11373_v0  ;;  %7340 = vcosq.f32 %v3789_v18  ;;  %v3493_v1 = vsel %vm3486_vm7, %v3489_v52, %v3492_v40  ;;  %vm3587_vm13 = vweird.f32 %v13759_v17  ;;  %v5272_v41 = vld [vmem:[%s13033_s5 + $0x30] sm:$0xff] }
 0x41e   : > { %v3790_v31 = vsel %vm12101_vm15, 0, %v3788_v53  ;;  %v7333_v46 = vpop.eup %7332  ;;  %7342 = vsinq.f32 %v3789_v18  ;;  %v13775_v23 = vand.u32 2147483647, %v11379_v57  ;;  %v3890_v0 = vsub.s32 4, %v11629_v54  ;;  %v13779_v18 = vld [vmem:[#allocation70_spill] sm:$0xff] }
 0x41f   : > { %v7335_v45 = vpop.eup %7334  ;;  %v3494_v30 = vsel %vm3484_vm11, nan, %v3493_v1  ;;  %v3594_v8 = vxor.u32 2147483648, %v7333_v46  ;;  %v3691_v5 = vand.u32 3, %v3687_v59  ;;  %vm3590_vm14 = vcmp.eq.s32.totalorder %v3588_v4, 0 }
 0x420   : > { %vm12122_vm1 = vcmp.le.f32.partialorder %v13775_v23, 0.7853982  ;;  %v3920_v14 = vpack.c.bf16 %v3494_v30, %v3391_v15  ;;  %v3591_v22 = vxor.u32 2147483648, %v7335_v45  ;;  %vm3593_vm8 = vcmp.eq.s32.totalorder %v3588_v4, 2 }
 0x421   : > { %v3892_v47 = vsel %vm12122_vm1, %v11379_v57, %v11891_v49  ;;  %v5269_v49 = vld [vmem:[%s13033_s5 + $0x18] sm:$0xff]  ;;  %v3595_v9 = vsel %vm3593_vm8, %v3594_v8, %v7335_v45  ;;  %v12145_v38 = vand.u32 3, %v3790_v31  ;;  %vm13778_vm6 = vcmp.lt.s32.totalorder %v11379_v57, 0  ;;  %v13783_v8 = vld [vmem:[#allocation48_spill] sm:$0xff] }
 0x422   : > { %v3891_v58 = vsel %vm13778_vm6, %v3890_v0, %v11629_v54  ;;  %7344 = vcosq.f32 %v3892_v47  ;;  %6769 = vmatmul.mubr.bf16.gmra.mrb[24].mxu0 %v3920_v14  ;;  %v3592_v36 = vsel %vm3590_vm14, %v7333_v46, %v3591_v22  ;;  %v6896_v2 = vpack.c.bf16 %v5267_v48, %v5266_v56  ;;  %v5271_v54 = vld [vmem:[%s13033_s5 + $0x28] sm:$0xff]  ;;  %v13782_v0 = vld [vmem:[#allocation107_spill] sm:$0xff] }
 0x423   : > { %v3893_v6 = vsel %vm12122_vm1, 0, %v3891_v58  ;;  %7346 = vsinq.f32 %v3892_v47  ;;  %vm3589_vm12 = vcmp.lt.s32.totalorder %v3588_v4, 2  ;;  %vm3690_vm3 = vweird.f32 %v11079_v12  ;;  %v13781_v46 = vld [vmem:[#allocation69_spill] sm:$0xff]  ;;  %v5277_v22 = vld [vmem:[%s13033_s5 + $0x58] sm:$0xff] }
 0x424   : > { %v7337_v28 = vpop.eup %7336  ;;  %vm3692_vm11 = vcmp.lt.s32.totalorder %v3691_v5, 2  ;;  %v6900_v24 = vpack.c.bf16 %v5269_v49, %v5268_v50  ;;  %v3596_v3 = vsel %vm3589_vm12, %v3592_v36, %v3595_v9  ;;  %vm3693_vm9 = vcmp.eq.s32.totalorder %v3691_v5, 0  ;;  %6897 = vmatprep.subr.bf16.mxu0 %v6896_v2  ;;  %6928 = vmatprep.subr.bf16.mxu1 %v6896_v2  ;;  %v6750_v36 = vpop.f32.mrb[4].mxu0 }
 0x425   : > { %v7339_v39 = vpop.eup %7338  ;;  %vm3696_vm0 = vcmp.eq.s32.totalorder %v3691_v5, 2  ;;  %v3697_v21 = vxor.u32 2147483648, %v7337_v28  ;;  %vm3796_vm2 = vcmp.eq.s32.totalorder %v12145_v38, 0  ;;  %vm3799_vm5 = vcmp.eq.s32.totalorder %v12145_v38, 2  ;;  %6899 = vmatpush3.bf16.msra.mxu0 %v6896_v2  ;;  %6936 = vmatpush3.bf16.msra.mxu1 %v6896_v2  ;;  %v4037_v2 = vpop.f32.mrb[5].mxu0 }
 0x426   : > { %v3694_v51 = vxor.u32 2147483648, %v7339_v39  ;;  %v3897_v7 = vand.u32 3, %v3893_v6  ;;  %6901 = vmatprep.subr.bf16.mxu0 %v6900_v24  ;;  %v6904_v63 = vpack.c.bf16 %v5271_v54, %v5270_v34  ;;  %v5172_v13 = vadd.f32 %v11471_v16, %v11531_v37  ;;  %6929 = vmatprep.subr.bf16.mxu1 %v6900_v24  ;;  %v13785_v34 = vld [vmem:[#allocation119_spill] sm:$0xff] }
 0x427   : > { %v3698_v61 = vsel %vm3696_vm0, %v3697_v21, %v7339_v39  ;;  %v12165_v33 = vadd.f32 %v11471_v16, %v11541_v29  ;;  %v7341_v10 = vpop.eup %7340  ;;  %v3597_v60 = vsel %vm3587_vm13, nan, %v3596_v3  ;;  %v5170_v37 = vadd.f32 %v11491_v55, %v11482_v26  ;;  %v13780_v55 = vld [vmem:[#allocation64_spill] sm:$0xff]  ;;  %v13786_v39 = vld [vmem:[#allocation113_spill] sm:$0xff]  ;;  %v13787_v21 = vld [vmem:[#allocation110_spill] sm:$0xff] }
 0x428   : > { %v3695_v42 = vsel %vm3693_vm9, %v7337_v28, %v3694_v51  ;;  %v12180_v16 = vadd.f32 %v11496_v27, %v11482_v26  ;;  %v7343_v29 = vpop.eup %7342  ;;  %v3800_v40 = vxor.u32 2147483648, %v7341_v10  ;;  %v12184_v4 = vmul.f32 %v13779_v18, %v5172_v13  ;;  %v13784_v28 = vld [vmem:[#allocation80_spill] sm:$0xff] }
 0x429   : > { %v3699_v17 = vsel %vm3692_vm11, %v3695_v42, %v3698_v61  ;;  %v5173_v59 = vadd.f32 %v11498_v25, %v11550_v35  ;;  %v3797_v15 = vxor.u32 2147483648, %v7343_v29  ;;  %6903 = vmatpush3.bf16.msra.mxu0 %v6900_v24  ;;  %v5234_v52 = vmul.f32 %v5170_v37, %v13780_v55  ;;  %6937 = vmatpush3.bf16.msra.mxu1 %v6900_v24  ;;  %v13790_v42 = vld [vmem:[#allocation61_spill] sm:$0xff] }
 0x42a   : > { %v3700_v53 = vsel %vm3690_vm3, nan, %v3699_v17  ;;  %v12193_v26 = vadd.f32 %v11498_v25, %v11559_v44  ;;  %6905 = vmatprep.subr.bf16.mxu0 %v6904_v63  ;;  %v6908_v31 = vpack.c.bf16 %v5273_v43, %v5272_v41  ;;  %v5171_v35 = vadd.f32 %v11509_v32, %v11511_v11  ;;  %v5274_v25 = vld [vmem:[%s13033_s5 + $0x40] sm:$0xff]  ;;  %v5275_v44 = vld [vmem:[%s13033_s5 + $0x48] sm:$0xff]  ;;  %6930 = vmatprep.subr.bf16.mxu1 %v6904_v63  ;;  %v5280_v55 = vld [vmem:[%s13033_s5 + $0x70] sm:$0xff] }
 0x42b   : > { %v3921_v27 = vpack.c.bf16 %v3700_v53, %v3597_v60  ;;  %v12196_v1 = vmul.f32 %v13781_v46, %v5173_v59  ;;  %v3798_v23 = vsel %vm3796_vm2, %v7341_v10, %v3797_v15  ;;  %v3801_v20 = vsel %vm3799_vm5, %v3800_v40, %v7343_v29  ;;  %v13789_v10 = vld [vmem:[#allocation108_spill] sm:$0xff]  ;;  %v13791_v43 = vld [vmem:[#allocation47_spill] sm:$0xff]  ;;  %v13794_v53 = vld [vmem:[#allocation73_spill] sm:$0xff] }
 0x42c   : > { %v7345_v12 = vpop.eup %7344  ;;  %v12212_v45 = vadd.f32 %v13782_v0, %v11511_v11  ;;  %v12215_v5 = vmul.f32 %v5171_v35, %v13783_v8  ;;  %vm3795_vm15 = vcmp.lt.s32.totalorder %v12145_v38, 2  ;;  %vm3902_vm7 = vcmp.eq.s32.totalorder %v3897_v7, 2  ;;  %v5276_v11 = vld [vmem:[%s13033_s5 + $0x50] sm:$0xff]  ;;  %v13792_v29 = vld [vmem:[#allocation112_spill] sm:$0xff]  ;;  %v13793_v40 = vld [vmem:[#allocation91_spill] sm:$0xff] }
 0x42d   : > { %v7347_v32 = vpop.eup %7346  ;;  %6772 = vmatprep.mubr.bf16.mxu0 %v3921_v27  ;;  %v3903_v30 = vxor.u32 2147483648, %v7345_v12  ;;  %6907 = vmatpush3.bf16.msra.mxu0 %v6904_v63  ;;  %v3802_v56 = vsel %vm3795_vm15, %v3798_v23, %v3801_v20  ;;  %vm3899_vm4 = vcmp.eq.s32.totalorder %v3897_v7, 0  ;;  %v6912_v14 = vpack.c.bf16 %v5275_v44, %v5274_v25  ;;  %v13795_v27 = vld [vmem:[#allocation76_spill] sm:$0xff]  ;;  %v13796_v25 = vld [vmem:[#allocation11_spill] sm:$0xff]  ;;  %v13797_v0 = vld [vmem:[#allocation9_spill] sm:$0xff] }
 0x42e   : > { %v3900_v47 = vxor.u32 2147483648, %v7347_v32  ;;  %6938 = vmatpush3.bf16.msra.mxu1 %v6904_v63  ;;  %6909 = vmatprep.subr.bf16.mxu0 %v6908_v31  ;;  %vm3898_vm10 = vcmp.lt.s32.totalorder %v3897_v7, 2  ;;  %vm3793_vm13 = vweird.f32 %v11103_v62  ;;  %vm3896_vm1 = vweird.f32 %v11379_v57  ;;  %v5278_v62 = vld [vmem:[%s13033_s5 + $0x60] sm:$0xff]  ;;  %v5279_v57 = vld [vmem:[%s13033_s5 + $0x68] sm:$0xff]  ;;  %v6751_v7 = vpop.f32.mrb[6].mxu0 }
 0x42f   : > { %v3904_v48 = vsel %vm3902_vm7, %v3903_v30, %v7347_v32  ;;  %6931 = vmatprep.subr.bf16.mxu1 %v6908_v31  ;;  %v3803_v9 = vsel %vm3793_vm13, nan, %v3802_v56  ;;  %v6916_v58 = vpack.c.bf16 %v5277_v22, %v5276_v11  ;;  %v5176_v24 = vadd.f32 %v6750_v36, %v13784_v28  ;;  %v4040_v61 = vpop.f32.mrb[7].mxu0  ;;  %v13788_v63 = vld [vmem:[#allocation68_spill] sm:$0xff]  ;;  %v13803_v11 = vld [vmem:[#allocation15_spill] sm:$0xff] }
 0x430   : > { %v3901_v50 = vsel %vm3899_vm4, %v7345_v12, %v3900_v47  ;;  %v12228_v54 = vadd.f32 %v6750_v36, %v13785_v34  ;;  %v5174_v3 = vadd.f32 %v13786_v39, %v4037_v2  ;;  %v12238_v51 = vadd.f32 %v13787_v21, %v4037_v2  ;;  %v13799_v30 = vld [vmem:[#allocation8_spill] sm:$0xff]  ;;  %v13801_v47 = vld [vmem:[#allocation13_spill] sm:$0xff]  ;;  %v13806_v36 = vld [vmem:[#allocation19_spill] sm:$0xff] }
 0x431   : > { %v3905_v49 = vsel %vm3898_vm10, %v3901_v50, %v3904_v48  ;;  %6911 = vmatpush3.bf16.msra.mxu0 %v6908_v31  ;;  %v5240_v13 = vmul.f32 %v13788_v63, %v5176_v24  ;;  %v5177_v60 = vadd.f32 %v6751_v7, %v13789_v10  ;;  %v12243_v41 = vadd.f32 %v6751_v7, %v13790_v42  ;;  %v13808_v2 = vld [vmem:[#allocation21_spill] sm:$0xff] }
 0x432   : > { %v3906_v38 = vsel %vm3896_vm1, nan, %v3905_v49  ;;  %6939 = vmatpush3.bf16.msra.mxu1 %v6908_v31  ;;  %6913 = vmatprep.subr.bf16.mxu0 %v6912_v14  ;;  %v5238_v37 = vmul.f32 %v5174_v3, %v13791_v43  ;;  %v5175_v17 = vadd.f32 %v13792_v29, %v4040_v61  ;;  %v12248_v18 = vadd.f32 %v13793_v40, %v4040_v61  ;;  %v13804_v49 = vld [vmem:[#allocation17_spill] sm:$0xff]  ;;  %v13811_v43 = vld [vmem:[#allocation106_spill] sm:$0xff]  ;;  %v13812_v29 = vld [vmem:[#allocation23_spill] sm:$0xff] }
 0x433   : > { %v3922_v6 = vpack.c.bf16 %v3906_v38, %v3803_v9  ;;  %6932 = vmatprep.subr.bf16.mxu1 %v6912_v14  ;;  %v6920_v59 = vpack.c.bf16 %v5279_v57, %v5278_v62  ;;  %v5241_v15 = vmul.f32 %v13794_v53, %v5177_v60  ;;  %vm5508_vm14 = vcmp.ge.s32.totalorder %v13796_v25, 0  ;;  %v13805_v38 = vld [vmem:[#allocation16_spill] sm:$0xff]  ;;  %v13814_v40 = vld [vmem:[#allocation25_spill] sm:$0xff] }
 0x434   : > { %v5239_v31 = vmul.f32 %v5175_v17, %v13795_v27  ;;  %v5540_v44 = vsel %vm5508_vm14, 1, %v13382_v19  ;;  %vm5507_vm8 = vcmp.ge.s32.totalorder %v13797_v0, 0  ;;  %vm5509_vm12 = vcmp.ge.s32.totalorder %v13799_v30, 0  ;;  %v13809_v57 = vld [vmem:[#allocation20_spill] sm:$0xff]  ;;  %v13813_v17 = vld [vmem:[#allocation22_spill] sm:$0xff]  ;;  %v13816_v27 = vld [vmem:[#allocation27_spill] sm:$0xff] }
 0x435   : > { %6773 = vmatmul.mubr.bf16.gmra.mrb[28].mxu0 %v3922_v6  ;;  %5575 = vperm.xlu1 %7195, %v5540_v44   ;;  %v5539_v32 = vsel %vm5507_vm8, 1, %v13382_v19  ;;  %v5541_v8 = vsel %vm5509_vm12, 1, %v13382_v19  ;;  %vm5511_vm11 = vcmp.ge.s32.totalorder %v13801_v47, 0  ;;  %vm5513_vm0 = vcmp.ge.s32.totalorder %v13803_v11, 0  ;;  %v13807_v6 = vld [vmem:[#allocation18_spill] sm:$0xff]  ;;  %v13820_v44 = vld [vmem:[#allocation32_spill] sm:$0xff] }
 0x436   : > { %6915 = vmatpush3.bf16.msra.mxu0 %v6912_v14  ;;  %6848 = vmatprep.mubr.f32.mxu0 %v5234_v52  ;;  %v5281_v52 = vld [vmem:[%s13033_s5 + $0x78] sm:$0xff]  ;;  %v5051_v35 = vpop.f32.mrb[48].mxu1  ;;  %v5543_v48 = vsel %vm5511_vm11, 1, %v13382_v19  ;;  %v5545_v50 = vsel %vm5513_vm0, 1, %v13382_v19  ;;  %vm5515_vm2 = vcmp.ge.s32.totalorder %v13804_v49, 0  ;;  %vm5516_vm5 = vcmp.ge.s32.totalorder %v13805_v38, 0 }
 0x437   : > { %6917 = vmatprep.subr.bf16.mxu0 %v6916_v58  ;;  %6940 = vmatpush3.bf16.msra.mxu1 %v6912_v14  ;;  %v6924_v46 = vpack.c.bf16 %v5281_v52, %v5280_v55  ;;  %v5053_v12 = vpop.f32.mrb[49].mxu1  ;;  %v13802_v14 = vld [vmem:[#allocation14_spill] sm:$0xff]  ;;  %v5547_v9 = vsel %vm5515_vm2, 1, %v13382_v19  ;;  %vm5517_vm15 = vcmp.ge.s32.totalorder %v13806_v36, 0  ;;  %vm5518_vm7 = vcmp.ge.s32.totalorder %v13807_v6, 0  ;;  %v13827_v38 = vld [vmem:[#allocation75_spill] sm:$0xff] }
 0x438   : > { %6933 = vmatprep.subr.bf16.mxu1 %v6916_v58  ;;  %v5055_v23 = vpop.f32.mrb[50].mxu1  ;;  %5572 = vperm.xlu0 %7194, %v5539_v32   ;;  %vm5514_vm9 = vcmp.ge.s32.totalorder %v13802_v14, 0  ;;  %vm5519_vm4 = vcmp.ge.s32.totalorder %v13808_v2, 0  ;;  %v5549_v28 = vsel %vm5517_vm15, 1, %v13382_v19  ;;  %v5550_v24 = vsel %vm5518_vm7, 1, %v13382_v19  ;;  %v13821_v0 = vld [vmem:[#allocation30_spill] sm:$0xff] }
 0x439   : > { %v5057_v20 = vpop.f32.mrb[51].mxu1  ;;  %5578 = vperm.xlu1 %7195, %v5541_v8   ;;  %v5546_v22 = vsel %vm5514_vm9, 1, %v13382_v19  ;;  %v5551_v34 = vsel %vm5519_vm4, 1, %v13382_v19  ;;  %vm5520_vm10 = vcmp.ge.s32.totalorder %v13809_v57, 0  ;;  %vm5521_vm13 = vcmp.ge.s32.totalorder %v13812_v29, 0  ;;  %v13825_v14 = vld [vmem:[#allocation86_spill] sm:$0xff] }
 0x43a   : > { %6919 = vmatpush3.bf16.msra.mxu0 %v6916_v58  ;;  %v5552_v3 = vsel %vm5520_vm10, 1, %v13382_v19  ;;  %vm5522_vm1 = vcmp.ge.s32.totalorder %v13813_v17, 0  ;;  %vm5523_vm14 = vcmp.ge.s32.totalorder %v13814_v40, 0  ;;  %vm5529_vm9 = vcmp.ge.s32.totalorder %v13820_v44, 0  ;;  %v13828_v6 = vld [vmem:[#allocation37_spill] sm:$0xff]  ;;  %v13830_v57 = vld [vmem:[#allocation34_spill] sm:$0xff] }
 0x43b   : > { %6921 = vmatprep.subr.bf16.mxu0 %v6920_v59  ;;  %6941 = vmatpush3.bf16.msra.mxu1 %v6916_v58  ;;  %v5548_v58 = vsel %vm5516_vm5, 1, %v13382_v19  ;;  %v5554_v53 = vsel %vm5522_vm1, 1, %v13382_v19  ;;  %v5555_v55 = vsel %vm5523_vm14, 1, %v13382_v19  ;;  %vm5530_vm0 = vcmp.ge.s32.totalorder %v13821_v0, 0  ;;  %v13829_v2 = vld [vmem:[#allocation33_spill] sm:$0xff] }
 0x43c   : > { %6934 = vmatprep.subr.bf16.mxu1 %v6920_v59  ;;  %v5562_v8 = vsel %vm5530_vm0, 1, %v13382_v19  ;;  %vm5533_vm15 = vcmp.ge.s32.totalorder %v13828_v6, 0  ;;  %vm5534_vm7 = vcmp.ge.s32.totalorder %v13829_v2, 0  ;;  %vm5535_vm4 = vcmp.ge.s32.totalorder %v13830_v57, 0 }
 0x43d   : > { %5584 = vperm.xlu1 %7195, %v5543_v48   ;;  %v13824_v48 = vld [vmem:[#allocation36_spill] sm:$0xff] }
 0x43e   : > { %6923 = vmatpush3.bf16.msra.mxu0 %v6920_v59  ;;  %vm5532_vm5 = vcmp.ge.s32.totalorder %v13824_v48, 0 }
 0x43f   : > { %6925 = vmatprep.subr.bf16.mxu0 %v6924_v46  ;;  %6942 = vmatpush3.bf16.msra.mxu1 %v6920_v59  ;;  %v5553_v59 = vsel %vm5521_vm13, 1, %v13382_v19  ;;  %v5564_v36 = vsel %vm5532_vm5, 1, %v13382_v19 }
 0x440   : > { %6935 = vmatprep.subr.bf16.mxu1 %v6924_v46 }
 0x441   : > { %5590 = vperm.xlu1 %7195, %v5545_v50  }
 0x442   : > { %6927 = vmatpush3.bf16.msra.mxu0 %v6924_v46 }
 0x443   : > { %6943 = vmatpush3.bf16.msra.mxu1 %v6924_v46 }
 0x445   : > { %6849 = vmatmul.mubr.f32.vlgmr.msra.gmra.mrb[32].mxu0 %v12215_v5  ;;  %v13800_v5 = vld [vmem:[#allocation12_spill] sm:$0xff]  ;;  %5596 = vperm.xlu1 %7195, %v5547_v9  }
 0x446   : > { %6851 = vmatprep.mubr.f32.mxu0 %v12184_v4  ;;  %v13798_v4 = vld [vmem:[#allocation10_spill] sm:$0xff]  ;;  %vm5512_vm3 = vcmp.ge.s32.totalorder %v13800_v5, 0  ;;  %v13822_v5 = vld [vmem:[#allocation31_spill] sm:$0xff] }
 0x447   : > { %vm5510_vm6 = vcmp.ge.s32.totalorder %v13798_v4, 0  ;;  %v5544_v56 = vsel %vm5512_vm3, 1, %v13382_v19  ;;  %v5561_v4 = vsel %vm5529_vm9, 1, %v13382_v19  ;;  %vm5531_vm2 = vcmp.ge.s32.totalorder %v13822_v5, 0 }
 0x448   : > { %v5563_v9 = vsel %vm5531_vm2, 1, %v13382_v19 }
 0x449   : > { %6852 = vmatmul.mubr.f32.gmra.mrb[34].mxu0 %v12196_v1  ;;  %v5542_v1 = vsel %vm5510_vm6, 1, %v13382_v19  ;;  %5602 = vperm.xlu1 %7195, %v5549_v28   ;;  %vm5525_vm6 = vcmp.ge.s32.totalorder %v13816_v27, 0 }
 0x44a   : > { %6854 = vmatprep.mubr.f32.mxu0 %v5238_v37  ;;  %5581 = vperm.xlu0 %7194, %v5542_v1   ;;  %v5557_v46 = vsel %vm5525_vm6, 1, %v13382_v19 }
 0x44d   : > { %6855 = vmatmul.mubr.f32.gmra.mrb[36].mxu0 %v5239_v31  ;;  %5608 = vperm.xlu1 %7195, %v5551_v34   ;;  %v13817_v31 = vld [vmem:[#allocation26_spill] sm:$0xff] }
 0x44e   : > { %6857 = vmatprep.mubr.f32.mxu0 %v5240_v13  ;;  %5587 = vperm.xlu0 %7194, %v5544_v56   ;;  %v13810_v13 = vld [vmem:[#allocation81_spill] sm:$0xff]  ;;  %vm5526_vm12 = vcmp.ge.s32.totalorder %v13817_v31, 0 }
 0x451   : > { %6858 = vmatmul.mubr.f32.gmra.mrb[38].mxu0 %v5241_v15  ;;  %5614 = vperm.xlu1 %7195, %v5553_v59   ;;  %v13815_v15 = vld [vmem:[#allocation24_spill] sm:$0xff] }
 0x452   : > { %5593 = vperm.xlu0 %7194, %v5546_v22   ;;  %vm5524_vm8 = vcmp.ge.s32.totalorder %v13815_v15, 0 }
 0x453   : > { %v5556_v52 = vsel %vm5524_vm8, 1, %v13382_v19 }
 0x455   : > { %5620 = vperm.xlu1 %7195, %v5555_v55  }
 0x456   : > { %5599 = vperm.xlu0 %7194, %v5548_v58  }
 0x459   : > { %5626 = vperm.xlu1 %7195, %v5557_v46  }
 0x45a   : > { %5605 = vperm.xlu0 %7194, %v5550_v24   ;;  %v5565_v24 = vsel %vm5533_vm15, 1, %v13382_v19 }
 0x45e   : > { %5611 = vperm.xlu0 %7194, %v5552_v3   ;;  %v13831_v3 = vld [vmem:[#allocation38_spill] sm:$0xff] }
 0x45f   : > { %vm5536_vm10 = vcmp.ge.s32.totalorder %v13831_v3, 0 }
 0x462   : > { %5617 = vperm.xlu0 %7194, %v5554_v53  }
 0x466   : > { %5623 = vperm.xlu0 %7194, %v5556_v52  }
 0x47a   : > { %v6754_v62 = vpop.f32.mrb[8].mxu0 }
 0x47b   : > { %v4053_v39 = vpop.f32.mrb[9].mxu0 }
 0x47c   : > { %v5178_v21 = vadd.f32 %v5051_v35, %v4053_v39  ;;  %v12289_v7 = vadd.f32 %v5053_v12, %v4053_v39  ;;  %v6755_v61 = vpop.f32.mrb[10].mxu0  ;;  %v5558_v35 = vsel %vm5526_vm12, 1, %v13382_v19  ;;  %v13818_v12 = vld [vmem:[#allocation29_spill] sm:$0xff] }
 0x47d   : > { %v4056_v63 = vpop.f32.mrb[11].mxu0  ;;  %vm5527_vm3 = vcmp.ge.s32.totalorder %v13818_v12, 0  ;;  %5629 = vperm.xlu0 %7194, %v5558_v35  }
 0x47e   : > { %v5242_v10 = vmul.f32 %v5178_v21, %v13810_v13  ;;  %v5179_v60 = vadd.f32 %v5055_v23, %v4056_v63  ;;  %v12292_v42 = vadd.f32 %v5057_v20, %v4056_v63  ;;  %v13819_v23 = vld [vmem:[#allocation28_spill] sm:$0xff]  ;;  %v5559_v20 = vsel %vm5527_vm3, 1, %v13382_v19  ;;  %v13832_v13 = vld [vmem:[#allocation39_spill] sm:$0xff] }
 0x47f   : > { %vm5528_vm11 = vcmp.ge.s32.totalorder %v13819_v23, 0  ;;  %5632 = vperm.xlu1 %7195, %v5559_v20   ;;  %v5568_v63 = vsel %vm5536_vm10, 1, %v13382_v19  ;;  %vm5537_vm13 = vcmp.ge.s32.totalorder %v13832_v13, 0  ;;  %v13844_v13 = vld [vmem:[#allocation87_spill] sm:$0xff] }
 0x480   : > { %v5243_v37 = vmul.f32 %v5179_v60, %v13811_v43  ;;  %6860 = vmatprep.mubr.f32.mxu0 %v5242_v10  ;;  %v5560_v25 = vsel %vm5528_vm11, 1, %v13382_v19  ;;  %v13833_v10 = vld [vmem:[#allocation35_spill] sm:$0xff]  ;;  %v5569_v43 = vsel %vm5537_vm13, 1, %v13382_v19 }
 0x481   : > { %5635 = vperm.xlu0 %7194, %v5560_v25   ;;  %vm5538_vm1 = vcmp.ge.s32.totalorder %v13833_v10, 0  ;;  %v13836_v25 = vld [vmem:[#allocation122_spill] sm:$0xff] }
 0x482   : > { %6861 = vmatmul.mubr.f32.gmra.mrb[40].mxu0 %v5243_v37  ;;  %v5570_v29 = vsel %vm5538_vm1, 1, %v13382_v19 }
 0x483   : > { %5638 = vperm.xlu1 %7195, %v5561_v4  }
 0x485   : > { %5641 = vperm.xlu0 %7194, %v5562_v8   ;;  %v13840_v8 = vld [vmem:[#allocation79_spill] sm:$0xff] }
 0x487   : > { %5644 = vperm.xlu1 %7195, %v5563_v9  }
 0x489   : > { %5647 = vperm.xlu0 %7194, %v5564_v36  }
 0x48b   : > { %5650 = vperm.xlu1 %7195, %v5565_v24  }
 0x490   : > { %v5061_v32 = vpop.f32.mrb[52].mxu1 }
 0x491   : > { %v5180_v30 = vadd.f32 %v6754_v62, %v5061_v32  ;;  %v5063_v1 = vpop.f32.mrb[53].mxu1  ;;  %v13838_v32 = vld [vmem:[#allocation62_spill] sm:$0xff] }
 0x492   : > { %v12316_v47 = vadd.f32 %v6754_v62, %v5063_v1  ;;  %v5065_v56 = vpop.f32.mrb[54].mxu1  ;;  %v5566_v62 = vsel %vm5534_vm7, 1, %v13382_v19 }
 0x493   : > { %v5244_v11 = vmul.f32 %v13825_v14, %v5180_v30  ;;  %v5181_v22 = vadd.f32 %v6755_v61, %v5065_v56  ;;  %v5067_v50 = vpop.f32.mrb[55].mxu1  ;;  %5653 = vperm.xlu0 %7194, %v5566_v62   ;;  %v13841_v56 = vld [vmem:[#allocation77_spill] sm:$0xff] }
 0x494   : > { %13823 = vst [vmem:[#allocation45_spill] sm:$0xff] %v12316_v47  ;;  %v12320_v49 = vadd.f32 %v6755_v61, %v5067_v50  ;;  %v5567_v61 = vsel %vm5535_vm4, 1, %v13382_v19  ;;  %v12536_v47 = vld [vmem:[#allocation4] sm:$0x1] }
 0x495   : > { %v5245_v58 = vmul.f32 %v13827_v38, %v5181_v22  ;;  %6863 = vmatprep.mubr.f32.mxu0 %v5244_v11  ;;  %5656 = vperm.xlu1 %7195, %v5567_v61  }
 0x496   : > { %13826 = vst [vmem:[#allocation100_spill] sm:$0xff] %v12320_v49 }
 0x497   : > { %6864 = vmatmul.mubr.f32.gmra.mrb[42].mxu0 %v5245_v58  ;;  %5659 = vperm.xlu0 %7194, %v5568_v63  }
 0x499   : > { %5662 = vperm.xlu1 %7195, %v5569_v43  }
 0x49a   : > { %v5071_v28 = vpop.f32.mrb[56].mxu1 }
 0x49b   : > { %v5073_v34 = vpop.f32.mrb[57].mxu1  ;;  %5665 = vperm.xlu0 %7194, %v5570_v29  }
 0x49c   : > { %v5075_v39 = vpop.f32.mrb[58].mxu1 }
 0x49d   : > { %v5077_v21 = vpop.f32.mrb[59].mxu1 }
 0x4a2   : > { %v5081_v60 = vpop.f32.mrb[60].mxu1 }
 0x4a3   : > { %v5083_v37 = vpop.f32.mrb[61].mxu1 }
 0x4a4   : > { %v5085_v17 = vpop.f32.mrb[62].mxu1 }
 0x4a5   : > { %v5087_v40 = vpop.f32.mrb[63].mxu1 }
 0x4aa   : > { %v5091_v59 = vpop.f32.mrb[64].mxu1 }
 0x4ab   : > { %v5093_v15 = vpop.f32.mrb[65].mxu1 }
 0x4ac   : > { %v5095_v31 = vpop.f32.mrb[66].mxu1 }
 0x4ad   : > { %v6758_v53 = vpop.f32.mrb[12].mxu0  ;;  %v5097_v23 = vpop.f32.mrb[67].mxu1 }
 0x4ae   : > { %v4069_v55 = vpop.f32.mrb[13].mxu0  ;;  %v5184_v52 = vadd.f32 %v6758_v53, %v5081_v60  ;;  %v12337_v27 = vadd.f32 %v6758_v53, %v5083_v37  ;;  %v13846_v37 = vld [vmem:[#allocation88_spill] sm:$0xff]  ;;  %v13848_v53 = vld [vmem:[#allocation83_spill] sm:$0xff] }
 0x4af   : > { %v6759_v46 = vpop.f32.mrb[14].mxu0  ;;  %v5182_v35 = vadd.f32 %v5071_v28, %v4069_v55  ;;  %v12339_v12 = vadd.f32 %v5073_v34, %v4069_v55 }
 0x4b0   : > { %13834 = vst [vmem:[#allocation102_spill] sm:$0xff] %v12337_v27  ;;  %v4072_v20 = vpop.f32.mrb[15].mxu0  ;;  %v5248_v19 = vmul.f32 %v13836_v25, %v5184_v52  ;;  %v5185_v44 = vadd.f32 %v6759_v46, %v5085_v17  ;;  %v12342_v0 = vadd.f32 %v6759_v46, %v5087_v40  ;;  %v13849_v46 = vld [vmem:[#allocation74_spill] sm:$0xff] }
 0x4b1   : > { %13835 = vst [vmem:[#allocation115_spill] sm:$0xff] %v12339_v12  ;;  %v5246_v4 = vmul.f32 %v5182_v35, %v13838_v32  ;;  %v5183_v30 = vadd.f32 %v5075_v39, %v4072_v20  ;;  %v12345_v1 = vadd.f32 %v5077_v21, %v4072_v20 }
 0x4b2   : > { %13837 = vst [vmem:[#allocation46_spill] sm:$0xff] %v12342_v0  ;;  %v5249_v5 = vmul.f32 %v13840_v8, %v5185_v44  ;;  %v5101_v14 = vpop.f32.mrb[68].mxu1 }
 0x4b3   : > { %13839 = vst [vmem:[#allocation111_spill] sm:$0xff] %v12345_v1  ;;  %v5247_v48 = vmul.f32 %v5183_v30, %v13841_v56  ;;  %6866 = vmatprep.mubr.f32.mxu0 %v5246_v4  ;;  %v5103_v11 = vpop.f32.mrb[69].mxu1 }
 0x4b4   : > { %v5105_v22 = vpop.f32.mrb[70].mxu1 }
 0x4b5   : > { %6867 = vmatmul.mubr.f32.gmra.mrb[44].mxu0 %v5247_v48  ;;  %v5107_v50 = vpop.f32.mrb[71].mxu1 }
 0x4b6   : > { %6869 = vmatprep.mubr.f32.mxu0 %v5248_v19 }
 0x4b9   : > { %6870 = vmatmul.mubr.f32.gmra.mrb[46].mxu0 %v5249_v5 }
 0x4ba   : > { %v5111_v9 = vpop.f32.mrb[72].mxu1 }
 0x4bb   : > { %v5113_v38 = vpop.f32.mrb[73].mxu1 }
 0x4bc   : > { %v5115_v58 = vpop.f32.mrb[74].mxu1 }
 0x4bd   : > { %v5117_v36 = vpop.f32.mrb[75].mxu1 }
 0x4c2   : > { %v5121_v6 = vpop.f32.mrb[76].mxu1 }
 0x4c3   : > { %v5123_v2 = vpop.f32.mrb[77].mxu1 }
 0x4c4   : > { %v5125_v28 = vpop.f32.mrb[78].mxu1 }
 0x4c5   : > { %v5127_v34 = vpop.f32.mrb[79].mxu1 }
 0x4ca   : > { %v6762_v24 = vpop.f32.mrb[16].mxu0  ;;  %v5131_v52 = vpop.f32.mrb[80].mxu1 }
 0x4cb   : > { %v4085_v62 = vpop.f32.mrb[17].mxu0  ;;  %v5188_v57 = vadd.f32 %v6762_v24, %v5101_v14  ;;  %v12349_v39 = vadd.f32 %v6762_v24, %v5103_v11 }
 0x4cc   : > { %v5186_v3 = vadd.f32 %v5091_v59, %v4085_v62  ;;  %v6763_v21 = vpop.f32.mrb[18].mxu0  ;;  %v12351_v61 = vadd.f32 %v5093_v15, %v4085_v62  ;;  %v5133_v59 = vpop.f32.mrb[81].mxu1 }
 0x4cd   : > { %13842 = vst [vmem:[#allocation120_spill] sm:$0xff] %v12349_v39  ;;  %v4088_v63 = vpop.f32.mrb[19].mxu0  ;;  %v5252_v10 = vmul.f32 %v13844_v13, %v5188_v57  ;;  %v5189_v60 = vadd.f32 %v6763_v21, %v5105_v22  ;;  %v12354_v43 = vadd.f32 %v6763_v21, %v5107_v50  ;;  %v5135_v15 = vpop.f32.mrb[82].mxu1  ;;  %v13852_v22 = vld [vmem:[#allocation94_spill] sm:$0xff] }
 0x4ce   : > { %13843 = vst [vmem:[#allocation71_spill] sm:$0xff] %v12351_v61  ;;  %v5250_v29 = vmul.f32 %v5186_v3, %v13846_v37  ;;  %v5187_v17 = vadd.f32 %v5095_v31, %v4088_v63  ;;  %v12357_v40 = vadd.f32 %v5097_v23, %v4088_v63  ;;  %v5137_v20 = vpop.f32.mrb[83].mxu1  ;;  %v13854_v3 = vld [vmem:[#allocation89_spill] sm:$0xff] }
 0x4cf   : > { %13845 = vst [vmem:[#allocation116_spill] sm:$0xff] %v12354_v43  ;;  %v5253_v55 = vmul.f32 %v13848_v53, %v5189_v60 }
 0x4d0   : > { %13847 = vst [vmem:[#allocation121_spill] sm:$0xff] %v12357_v40  ;;  %v5251_v35 = vmul.f32 %v5187_v17, %v13849_v46  ;;  %6872 = vmatprep.mubr.f32.mxu0 %v5250_v29 }
 0x4d2   : > { %6873 = vmatmul.mubr.f32.gmra.mrb[48].mxu0 %v5251_v35  ;;  %v5141_v25 = vpop.f32.mrb[84].mxu1 }
 0x4d3   : > { %6875 = vmatprep.mubr.f32.mxu0 %v5252_v10  ;;  %v5143_v19 = vpop.f32.mrb[85].mxu1 }
 0x4d4   : > { %v5145_v44 = vpop.f32.mrb[86].mxu1 }
 0x4d5   : > { %v5147_v32 = vpop.f32.mrb[87].mxu1 }
 0x4d6   : > { %6876 = vmatmul.mubr.f32.gmra.mrb[50].mxu0 %v5253_v55 }
 0x4da   : > { %v5151_v8 = vpop.f32.mrb[88].mxu1 }
 0x4db   : > { %v5153_v14 = vpop.f32.mrb[89].mxu1 }
 0x4dc   : > { %v5155_v57 = vpop.f32.mrb[90].mxu1 }
 0x4e1   : > { %v6766_v4 = vpop.f32.mrb[20].mxu0 }
 0x4e2   : > { %v4101_v31 = vpop.f32.mrb[21].mxu0  ;;  %v5192_v23 = vadd.f32 %v6766_v4, %v5121_v6  ;;  %v12361_v30 = vadd.f32 %v6766_v4, %v5123_v2  ;;  %v5157_v6 = vpop.f32.mrb[91].mxu1  ;;  %v13856_v2 = vld [vmem:[#allocation93_spill] sm:$0xff] }
 0x4e3   : > { %v5190_v5 = vadd.f32 %v5111_v9, %v4101_v31  ;;  %v12363_v56 = vadd.f32 %v5113_v38, %v4101_v31  ;;  %v6767_v48 = vpop.f32.mrb[22].mxu0  ;;  %v13857_v9 = vld [vmem:[#allocation105_spill] sm:$0xff]  ;;  %v5161_v60 = vpop.f32.mrb[92].mxu1 }
 0x4e4   : > { %13850 = vst [vmem:[#allocation40_spill] sm:$0xff] %v12361_v30  ;;  %v4104_v11 = vpop.f32.mrb[23].mxu0  ;;  %v5256_v50 = vmul.f32 %v13852_v22, %v5192_v23  ;;  %v5193_v24 = vadd.f32 %v6767_v48, %v5125_v28  ;;  %v12366_v62 = vadd.f32 %v6767_v48, %v5127_v34  ;;  %v5163_v37 = vpop.f32.mrb[93].mxu1  ;;  %v13860_v4 = vld [vmem:[#allocation101_spill] sm:$0xff]  ;;  %v13862_v48 = vld [vmem:[#allocation104_spill] sm:$0xff] }
 0x4e5   : > { %13851 = vst [vmem:[#allocation51_spill] sm:$0xff] %v12363_v56  ;;  %v5254_v21 = vmul.f32 %v5190_v5, %v13854_v3  ;;  %v5191_v63 = vadd.f32 %v5115_v58, %v4104_v11  ;;  %v12369_v13 = vadd.f32 %v5117_v36, %v4104_v11  ;;  %v5165_v29 = vpop.f32.mrb[94].mxu1 }
 0x4e6   : > { %13853 = vst [vmem:[#allocation90_spill] sm:$0xff] %v12366_v62  ;;  %v5257_v10 = vmul.f32 %v13856_v2, %v5193_v24  ;;  %v5167_v28 = vpop.f32.mrb[95].mxu1  ;;  %v13864_v24 = vld [vmem:[#allocation43_spill] sm:$0xff] }
 0x4e7   : > { %13855 = vst [vmem:[#allocation97_spill] sm:$0xff] %v12369_v13  ;;  %v5255_v38 = vmul.f32 %v5191_v63, %v13857_v9  ;;  %6878 = vmatprep.mubr.f32.mxu0 %v5254_v21 }
 0x4e9   : > { %6879 = vmatmul.mubr.f32.gmra.mrb[52].mxu0 %v5255_v38 }
 0x4ea   : > { %6881 = vmatprep.mubr.f32.mxu0 %v5256_v50 }
 0x4ed   : > { %6882 = vmatmul.mubr.f32.gmra.mrb[54].mxu0 %v5257_v10 }
 0x4f5   : > { %v6770_v34 = vpop.f32.mrb[24].mxu0 }
 0x4f6   : > { %v4117_v17 = vpop.f32.mrb[25].mxu0  ;;  %v5196_v53 = vadd.f32 %v6770_v34, %v5141_v25  ;;  %v12373_v55 = vadd.f32 %v6770_v34, %v5143_v19  ;;  %v13865_v25 = vld [vmem:[#allocation92_spill] sm:$0xff]  ;;  %v13869_v34 = vld [vmem:[#allocation49_spill] sm:$0xff] }
 0x4f7   : > { %v5194_v58 = vadd.f32 %v5131_v52, %v4117_v17  ;;  %v12375_v36 = vadd.f32 %v5133_v59, %v4117_v17  ;;  %v6771_v46 = vpop.f32.mrb[26].mxu0 }
 0x4f8   : > { %13858 = vst [vmem:[#allocation118_spill] sm:$0xff] %v12373_v55  ;;  %v4120_v35 = vpop.f32.mrb[27].mxu0  ;;  %v5260_v31 = vmul.f32 %v13860_v4, %v5196_v53  ;;  %v5197_v23 = vadd.f32 %v6771_v46, %v5145_v44  ;;  %v12378_v5 = vadd.f32 %v6771_v46, %v5147_v32  ;;  %v13871_v46 = vld [vmem:[#allocation99_spill] sm:$0xff]  ;;  %v13873_v55 = vlaneseq }
 0x4f9   : > { %13859 = vst [vmem:[#allocation124_spill] sm:$0xff] %v12375_v36  ;;  %v5258_v11 = vmul.f32 %v5194_v58, %v13862_v48  ;;  %v5195_v22 = vadd.f32 %v5135_v15, %v4120_v35  ;;  %v12381_v50 = vadd.f32 %v5137_v20, %v4120_v35  ;;  %v13867_v20 = vld [vmem:[#allocation84_spill] sm:$0xff] }
 0x4fa   : > { %13861 = vst [vmem:[#allocation56_spill] sm:$0xff] %v12378_v5  ;;  %v5261_v3 = vmul.f32 %v13864_v24, %v5197_v23  ;;  %v5573_v24 = vpop.permute.xlu0 %5572 }
 0x4fb   : > { %13863 = vst [vmem:[#allocation126_spill] sm:$0xff] %v12381_v50  ;;  %v5259_v19 = vmul.f32 %v5195_v22, %v13865_v25  ;;  %6884 = vmatprep.mubr.f32.mxu0 %v5258_v11  ;;  %vm5667_vm12 = vcmp.eq.s32.totalorder %v5573_v24, 1 }
 0x4fd   : > { %6885 = vmatmul.mubr.f32.gmra.mrb[56].mxu0 %v5259_v19 }
 0x4fe   : > { %6887 = vmatprep.mubr.f32.mxu0 %v5260_v31  ;;  %v5582_v25 = vpop.permute.xlu0 %5581 }
 0x4ff   : > { %vm5670_vm3 = vcmp.eq.s32.totalorder %v5582_v25, 1 }
 0x501   : > { %6888 = vmatmul.mubr.f32.gmra.mrb[58].mxu0 %v5261_v3  ;;  %v5576_v3 = vpop.permute.xlu1 %5575 }
 0x502   : > { %vm5668_vm6 = vcmp.eq.s32.totalorder %v5576_v3, 1 }
 0x505   : > { %v5579_v19 = vpop.permute.xlu1 %5578 }
 0x506   : > { %vm5669_vm9 = vcmp.eq.s32.totalorder %v5579_v19, 1 }
 0x508   : > { %v6774_v52 = vpop.f32.mrb[28].mxu0 }
 0x509   : > { %v4133_v59 = vpop.f32.mrb[29].mxu0  ;;  %v5200_v21 = vadd.f32 %v6774_v52, %v5161_v60  ;;  %v12385_v63 = vadd.f32 %v6774_v52, %v5163_v37  ;;  %v13872_v60 = vld [vmem:[#allocation103_spill] sm:$0xff]  ;;  %v5588_v52 = vpop.permute.xlu0 %5587 }
 0x50a   : > { %v5198_v44 = vadd.f32 %v5151_v8, %v4133_v59  ;;  %v12387_v32 = vadd.f32 %v5153_v14, %v4133_v59  ;;  %v6775_v2 = vpop.f32.mrb[30].mxu0  ;;  %v5585_v59 = vpop.permute.xlu1 %5584  ;;  %vm5672_vm14 = vcmp.eq.s32.totalorder %v5588_v52, 1 }
 0x50b   : > { %v4136_v15 = vpop.f32.mrb[31].mxu0  ;;  %v5264_v10 = vmul.f32 %v13867_v20, %v5200_v21  ;;  %v5201_v9 = vadd.f32 %v6775_v2, %v5165_v29  ;;  %v12390_v38 = vadd.f32 %v6775_v2, %v5167_v28  ;;  %vm5671_vm8 = vcmp.eq.s32.totalorder %v5585_v59, 1 }
 0x50c   : > { %13866 = vst [vmem:[#allocation123_spill] sm:$0xff] %v12387_v32  ;;  %v5262_v17 = vmul.f32 %v5198_v44, %v13869_v34  ;;  %v5199_v53 = vadd.f32 %v5155_v57, %v4136_v15  ;;  %v12393_v58 = vadd.f32 %v5157_v6, %v4136_v15 }
 0x50d   : > { %13868 = vst [vmem:[#allocation65_spill] sm:$0xff] %v12390_v38  ;;  %v5265_v35 = vmul.f32 %v13871_v46, %v5201_v9  ;;  %v5594_v21 = vpop.permute.xlu0 %5593 }
 0x50e   : > { %13870 = vst [vmem:[#allocation59_spill] sm:$0xff] %v12393_v58  ;;  %v5263_v37 = vmul.f32 %v5199_v53, %v13872_v60  ;;  %6890 = vmatprep.mubr.f32.mxu1 %v5262_v17  ;;  %v5591_v44 = vpop.permute.xlu1 %5590  ;;  %vm5674_vm0 = vcmp.eq.s32.totalorder %v5594_v21, 1 }
 0x50f   : > { %vm5673_vm5 = vcmp.eq.s32.totalorder %v5591_v44, 1 }
 0x510   : > { %6891 = vmatmul.mubr.f32.vlgmr.msra.gmra.mrb[96].mxu1 %v5263_v37 }
 0x511   : > { %6893 = vmatprep.mubr.f32.mxu1 %v5264_v10  ;;  %v5600_v2 = vpop.permute.xlu0 %5599 }
 0x512   : > { %v5597_v15 = vpop.permute.xlu1 %5596  ;;  %vm5676_vm11 = vcmp.eq.s32.totalorder %v5600_v2, 1 }
 0x513   : > { %vm5675_vm2 = vcmp.eq.s32.totalorder %v5597_v15, 1 }
 0x514   : > { %6894 = vmatmul.mubr.f32.gmra.mrb[98].mxu1 %v5265_v35 }
 0x515   : > { %v5606_v34 = vpop.permute.xlu0 %5605 }
 0x516   : > { %v5603_v53 = vpop.permute.xlu1 %5602  ;;  %vm5678_vm4 = vcmp.eq.s32.totalorder %v5606_v34, 1 }
 0x517   : > { %vm5677_vm15 = vcmp.eq.s32.totalorder %v5603_v53, 1 }
 0x518   : > { %v6850_v8 = vpop.f32.mrb[32].mxu0 }
 0x519   : > { %v5348_v14 = vpop.f32.mrb[33].mxu0  ;;  %v5612_v46 = vpop.permute.xlu0 %5611  ;;  %v12403_v32 = vsel %vm5668_vm6, %v6850_v8, -1e+30 }
 0x51a   : > { %v5609_v35 = vpop.permute.xlu1 %5608  ;;  %vm5680_vm7 = vcmp.eq.s32.totalorder %v5612_v46, 1  ;;  %v12408_v3 = vsel %vm5667_vm12, %v5348_v14, -1e+30 }
 0x51b   : > { %vm5679_vm10 = vcmp.eq.s32.totalorder %v5609_v35, 1 }
 0x51c   : > { %v6853_v4 = vpop.f32.mrb[34].mxu0 }
 0x51d   : > { %v12397_v31 = vpop.f32.mrb[35].mxu0  ;;  %v5618_v60 = vpop.permute.xlu0 %5617 }
 0x51e   : > { %v5615_v37 = vpop.permute.xlu1 %5614  ;;  %vm5682_vm1 = vcmp.eq.s32.totalorder %v5618_v60, 1  ;;  %v12435_v44 = vsel %vm5669_vm9, %v12397_v31, -1e+30 }
 0x51f   : > { %vm5681_vm13 = vcmp.eq.s32.totalorder %v5615_v37, 1 }
 0x520   : > { %v6856_v29 = vpop.f32.mrb[36].mxu0 }
 0x521   : > { %v5368_v28 = vpop.f32.mrb[37].mxu0  ;;  %v12399_v38 = vsel %vm5672_vm14, %v6856_v29, -1e+30  ;;  %v5624_v8 = vpop.permute.xlu0 %5623 }
 0x522   : > { %v12401_v58 = vsel %vm5671_vm8, %v5368_v28, -1e+30  ;;  %v5733_v29 = vmax.f32 %v12403_v32, %v12399_v38  ;;  %v5621_v24 = vpop.permute.xlu1 %5620  ;;  %vm5684_vm14 = vcmp.eq.s32.totalorder %v5624_v8, 1 }
 0x523   : > { %v5732_v28 = vmax.f32 %v12408_v3, %v12401_v58  ;;  %vm5683_vm8 = vcmp.eq.s32.totalorder %v5621_v24, 1 }
 0x524   : > { %v6859_v23 = vpop.f32.mrb[38].mxu0 }
 0x525   : > { %v5378_v48 = vpop.f32.mrb[39].mxu0  ;;  %v12416_v21 = vsel %vm5674_vm0, %v6859_v23, -1e+30 }
 0x526   : > { %v5627_v60 = vpop.permute.xlu1 %5626 }
 0x527   : > { %vm5685_vm12 = vcmp.eq.s32.totalorder %v5627_v60, 1 }
 0x555   : > { %v6862_v57 = vpop.f32.mrb[40].mxu0 }
 0x556   : > { %v5388_v6 = vpop.f32.mrb[41].mxu0  ;;  %v12405_v52 = vsel %vm5676_vm11, %v6862_v57, -1e+30  ;;  %v12421_v57 = vsel %vm5673_vm5, %v5378_v48, -1e+30 }
 0x557   : > { %v12412_v59 = vsel %vm5675_vm2, %v5388_v6, -1e+30  ;;  %v5737_v14 = vmax.f32 %v5733_v29, %v12405_v52  ;;  %v12427_v6 = vsel %vm5670_vm3, %v6853_v4, -1e+30 }
 0x558   : > { %v5736_v46 = vmax.f32 %v5732_v28, %v12412_v59  ;;  %v5735_v48 = vmax.f32 %v12427_v6, %v12416_v21  ;;  %v5630_v28 = vpop.permute.xlu0 %5629 }
 0x559   : > { %vm5686_vm6 = vcmp.eq.s32.totalorder %v5630_v28, 1 }
 0x56a   : > { %v6865_v11 = vpop.f32.mrb[42].mxu0 }
 0x56b   : > { %v5398_v22 = vpop.f32.mrb[43].mxu0  ;;  %v12431_v23 = vsel %vm5678_vm4, %v6865_v11, -1e+30 }
 0x56c   : > { %v5739_v35 = vmax.f32 %v5735_v48, %v12431_v23 }
 0x588   : > { %v6868_v20 = vpop.f32.mrb[44].mxu0 }
 0x589   : > { %v5408_v10 = vpop.f32.mrb[45].mxu0  ;;  %v12418_v2 = vsel %vm5680_vm7, %v6868_v20, -1e+30  ;;  %v12440_v20 = vsel %vm5677_vm15, %v5398_v22, -1e+30 }
 0x58a   : > { %v12424_v15 = vsel %vm5679_vm10, %v5408_v10, -1e+30  ;;  %v5741_v25 = vmax.f32 %v5737_v14, %v12418_v2  ;;  %v5734_v10 = vmax.f32 %v12435_v44, %v12421_v57 }
 0x58b   : > { %v5740_v34 = vmax.f32 %v5736_v46, %v12424_v15 }
 0x58c   : > { %v6871_v9 = vpop.f32.mrb[46].mxu0  ;;  %v5738_v8 = vmax.f32 %v5734_v10, %v12440_v20  ;;  %v5636_v10 = vpop.permute.xlu0 %5635 }
 0x58d   : > { %v5418_v17 = vpop.f32.mrb[47].mxu0  ;;  %v12447_v11 = vsel %vm5682_vm1, %v6871_v9, -1e+30  ;;  %vm5688_vm3 = vcmp.eq.s32.totalorder %v5636_v10, 1 }
 0x58e   : > { %v12453_v53 = vsel %vm5681_vm13, %v5418_v17, -1e+30  ;;  %v5743_v9 = vmax.f32 %v5739_v35, %v12447_v11 }
 0x58f   : > { %v5742_v46 = vmax.f32 %v5738_v8, %v12453_v53 }
 0x5a5   : > { %v6874_v4 = vpop.f32.mrb[48].mxu0 }
 0x5a6   : > { %v12449_v19 = vsel %vm5684_vm14, %v6874_v4, -1e+30  ;;  %v5428_v31 = vpop.f32.mrb[49].mxu0 }
 0x5a7   : > { %v5745_v22 = vmax.f32 %v5741_v25, %v12449_v19  ;;  %v12456_v29 = vsel %vm5683_vm8, %v5428_v31, -1e+30  ;;  %v5633_v31 = vpop.permute.xlu1 %5632 }
 0x5a8   : > { %v5744_v14 = vmax.f32 %v5740_v34, %v12456_v29  ;;  %vm5687_vm11 = vcmp.eq.s32.totalorder %v5633_v31, 1  ;;  %v12477_v31 = vshrl.u32 %v13873_v55, 7 }
 0x5a9   : > { %v6877_v24 = vpop.f32.mrb[50].mxu0 }
 0x5aa   : > { %v12462_v37 = vsel %vm5686_vm6, %v6877_v24, -1e+30  ;;  %v5438_v17 = vpop.f32.mrb[51].mxu0  ;;  %v5642_v24 = vpop.permute.xlu0 %5641  ;;  %13874 = vst [vmem:[#allocation42_spill] sm:$0xff] %v12477_v31 }
 0x5ab   : > { %v5747_v48 = vmax.f32 %v5743_v9, %v12462_v37  ;;  %v12465_v25 = vsel %vm5685_vm12, %v5438_v17, -1e+30  ;;  %v5639_v17 = vpop.permute.xlu1 %5638  ;;  %vm5690_vm9 = vcmp.eq.s32.totalorder %v5642_v24, 1  ;;  %v4581_v24 = vsub.s32 1, %v12477_v31 }
 0x5ac   : > { %v5746_v4 = vmax.f32 %v5742_v46, %v12465_v25  ;;  %vm5689_vm0 = vcmp.eq.s32.totalorder %v5639_v17, 1 }
 0x5ae   : > { %v5648_v17 = vpop.permute.xlu0 %5647 }
 0x5af   : > { %vm5692_vm13 = vcmp.eq.s32.totalorder %v5648_v17, 1 }
 0x5b2   : > { %v5654_v36 = vpop.permute.xlu0 %5653 }
 0x5b3   : > { %vm5694_vm14 = vcmp.eq.s32.totalorder %v5654_v36, 1 }
 0x5bc   : > { %v6880_v34 = vpop.f32.mrb[52].mxu0 }
 0x5bd   : > { %v12468_v28 = vsel %vm5688_vm3, %v6880_v34, -1e+30  ;;  %v5448_v35 = vpop.f32.mrb[53].mxu0 }
 0x5be   : > { %v5749_v8 = vmax.f32 %v5745_v22, %v12468_v28  ;;  %v12471_v60 = vsel %vm5687_vm11, %v5448_v35, -1e+30  ;;  %v12484_v35 = vsub.s32 0, %v12477_v31 }
 0x5bf   : > { %v5748_v9 = vmax.f32 %v5744_v14, %v12471_v60  ;;  %v372_v14 = vld [vmem:[%s284_s11] sm:$0x3] }
 0x5c0   : > { %v6883_v5 = vpop.f32.mrb[54].mxu0  ;;  %v12494_v55 = vrot.slane %v372_v14, %v12484_v35 }
 0x5c1   : > { %v12474_v46 = vsel %vm5690_vm9, %v6883_v5, -1e+30  ;;  %v5458_v10 = vpop.f32.mrb[55].mxu0  ;;  %v4568_v5 = vadd.s32 8, %v12477_v31 }
 0x5c2   : > { %v5751_v34 = vmax.f32 %v5747_v48, %v12474_v46  ;;  %v12480_v50 = vsel %vm5689_vm0, %v5458_v10, -1e+30  ;;  %13875 = vst [vmem:[#allocation82_spill] sm:$0xff] %v12494_v55  ;;  %v12496_v48 = vrot.slane %v372_v14, %v4581_v24  ;;  %vm4583_vm5 = vcmp.eq.s32.totalorder %v12477_v31, %v12494_v55  ;;  %v5645_v14 = vpop.permute.xlu1 %5644 }
 0x5c3   : > { %v5750_v22 = vmax.f32 %v5746_v4, %v12480_v50  ;;  %vm4585_vm2 = vcmp.eq.s32.totalorder %v4568_v5, %v12494_v55  ;;  %v13877_v4 = vmov 0  ;;  %v13880_v10 = vmov 0 }
 0x5c4   : > { %13876 = vst [vmem:[#allocation96_spill] sm:$0xff] %v12496_v48  ;;  %vm4584_vm15 = vcmp.eq.s32.totalorder %v12477_v31, %v12496_v48  ;;  %vm4586_vm7 = vcmp.eq.s32.totalorder %v4568_v5, %v12496_v48  ;;  %vm12504_vm4 = vmpackc.low %vm4585_vm2, %vm4583_vm5  ;;  %v13297_v24 = vmov 1.0|1.0   ;;  %vm5691_vm1 = vcmp.eq.s32.totalorder %v5645_v14, 1 }
 0x5c5   : > { %v13878_v4 = vsel %vm12504_vm4, 4294967295, %v13877_v4  ;;  %vm12508_vm10 = vmpackc.low %vm4586_vm7, %vm4584_vm15 }
 0x5c6   : > { %13879 = vst [vmem:[#allocation98_spill] sm:$0xff] %v13878_v4  ;;  %v13881_v10 = vsel %vm12508_vm10, 4294967295, %v13880_v10  ;;  %6520 = vmatprep.mubr.msk.bf16.mxu0 %vm12508_vm10, %v13297_v24  ;;  %v5651_v30 = vpop.permute.xlu1 %5650 }
 0x5c7   : > { %13882 = vst [vmem:[#allocation125_spill] sm:$0xff] %v13881_v10  ;;  %vm5693_vm8 = vcmp.eq.s32.totalorder %v5651_v30, 1  ;;  %v5660_v10 = vpop.permute.xlu0 %5659 }
 0x5c8   : > { %vm5696_vm6 = vcmp.eq.s32.totalorder %v5660_v10, 1 }
 0x5cb   : > { %v5666_v43 = vpop.permute.xlu0 %5665 }
 0x5cc   : > { %vm5698_vm3 = vcmp.eq.s32.totalorder %v5666_v43, 1 }
 0x5d0   : > { %v6886_v55 = vpop.f32.mrb[56].mxu0 }
 0x5d1   : > { %v12515_v31 = vsel %vm5692_vm13, %v6886_v55, -1e+30  ;;  %v5468_v5 = vpop.f32.mrb[57].mxu0 }
 0x5d2   : > { %v5753_v48 = vmax.f32 %v5749_v8, %v12515_v31  ;;  %v12518_v4 = vsel %vm5691_vm1, %v5468_v5, -1e+30  ;;  %v5657_v8 = vpop.permute.xlu1 %5656 }
 0x5d3   : > { %v5752_v62 = vmax.f32 %v5748_v9, %v12518_v4  ;;  %vm5695_vm12 = vcmp.eq.s32.totalorder %v5657_v8, 1 }
 0x5d4   : > { %v6889_v13 = vpop.f32.mrb[58].mxu0 }
 0x5d5   : > { %v12521_v56 = vsel %vm5694_vm14, %v6889_v13, -1e+30  ;;  %v5478_v24 = vpop.f32.mrb[59].mxu0 }
 0x5d6   : > { %v5755_v17 = vmax.f32 %v5751_v34, %v12521_v56  ;;  %v12524_v14 = vsel %vm5693_vm8, %v5478_v24, -1e+30  ;;  %v5663_v39 = vpop.permute.xlu1 %5662 }
 0x5d7   : > { %v5754_v55 = vmax.f32 %v5750_v22, %v12524_v14  ;;  %vm5697_vm11 = vcmp.eq.s32.totalorder %v5663_v39, 1 }
 0x5e3   : > { %v6892_v5 = vpop.f32.mrb[96].mxu1 }
 0x5e4   : > { %v12527_v9 = vsel %vm5696_vm6, %v6892_v5, -1e+30  ;;  %v5488_v36 = vpop.f32.mrb[97].mxu1 }
 0x5e5   : > { %v5757_v30 = vmax.f32 %v5753_v48, %v12527_v9  ;;  %v12530_v13 = vsel %vm5695_vm12, %v5488_v36, -1e+30 }
 0x5e6   : > { %v5756_v34 = vmax.f32 %v5752_v62, %v12530_v13 }
 0x5e7   : > { %v6895_v24 = vpop.f32.mrb[98].mxu1 }
 0x5e8   : > { %v5760_v22 = vmax.f32 %v5756_v34, %v5757_v30  ;;  %v12533_v40 = vsel %vm5698_vm3, %v6895_v24, -1e+30  ;;  %v5498_v10 = vpop.f32.mrb[99].mxu1 }
 0x5e9   : > { %v5759_v8 = vmax.f32 %v5755_v17, %v12533_v40  ;;  %v5729_v61 = vsel %vm5697_vm11, %v5498_v10, -1e+30 }
 0x5ea   : > { %v5758_v5 = vmax.f32 %v5754_v55, %v5729_v61 }
 0x5ec   : > { %v5761_v0 = vmax.f32 %v5758_v5, %v5759_v8 }
 0x5ee   : > { %v5762_v27 = vmax.f32 %v5760_v22, %v5761_v0 }
 0x5f0   : > { %v5763_v1 = vrot.slane %v5762_v27, 4 }
 0x5f2   : > { %v5764_v12 = vmax.f32 %v5762_v27, %v5763_v1 }
 0x5f4   : > { %v5765_v48 = vrot.slane %v5764_v12, 2 }
 0x5f6   : > { %v5766_v36 = vmax.f32 %v5764_v12, %v5765_v48 }
 0x5f8   : > { %v5767_v49 = vrot.slane %v5766_v36, 1 }
 0x5fa   : > { %v5768_v43 = vmax.f32 %v5766_v36, %v5767_v49 }
 0x5fc   : > { %v12539_v39 = vmax.f32 %v12536_v47, %v5768_v43 }
 0x5fe   : > { %v12545_v17 = vrot.slane %v12539_v39, %v12484_v35  ;;  %6139 = vst [vmem:[#allocation4] sm:$0x1] %v12539_v39 }
 0x600   : > { %v5809_v27 = vsub.f32 %v5729_v61, %v12545_v17  ;;  %v5779_v12 = vsub.f32 %v12408_v3, %v12545_v17  ;;  %v5780_v49 = vsub.f32 %v12403_v32, %v12545_v17  ;;  %v5781_v0 = vsub.f32 %v12435_v44, %v12545_v17 }
 0x601   : > { %v5782_v1 = vsub.f32 %v12427_v6, %v12545_v17  ;;  %v5783_v30 = vsub.f32 %v12401_v58, %v12545_v17  ;;  %v5784_v34 = vsub.f32 %v12399_v38, %v12545_v17  ;;  %v5795_v61 = vsub.f32 %v12456_v29, %v12545_v17 }
 0x602   : > { %v5871_v55 = vmul.f32 1.442695, %v5809_v27  ;;  %v5796_v32 = vsub.f32 %v12449_v19, %v12545_v17  ;;  %v5797_v3 = vsub.f32 %v12465_v25, %v12545_v17  ;;  %v5798_v6 = vsub.f32 %v12462_v37, %v12545_v17  ;;  %v13899_v19 = vld [vmem:[#allocation51_spill] sm:$0xff] }
 0x603   : > { %v5799_v44 = vsub.f32 %v12471_v60, %v12545_v17  ;;  %v5800_v58 = vsub.f32 %v12468_v28, %v12545_v17  ;;  %v5801_v38 = vsub.f32 %v12480_v50, %v12545_v17  ;;  %v5802_v29 = vsub.f32 %v12474_v46, %v12545_v17 }
 0x604   : > { %7348 = vpow2.f32 %v5871_v55  ;;  %v5803_v24 = vsub.f32 %v12518_v4, %v12545_v17  ;;  %v5785_v43 = vsub.f32 %v12421_v57, %v12545_v17  ;;  %v5811_v27 = vmul.f32 1.442695, %v5779_v12 }
 0x605   : > { %v5813_v55 = vmul.f32 1.442695, %v5780_v49  ;;  %v5815_v62 = vmul.f32 1.442695, %v5781_v0  ;;  %v5786_v10 = vsub.f32 %v12416_v21, %v12545_v17  ;;  %v5817_v22 = vmul.f32 1.442695, %v5782_v1 }
 0x606   : > { %v5787_v8 = vsub.f32 %v12412_v59, %v12545_v17  ;;  %7350 = vpow2.f32 %v5811_v27  ;;  %v5819_v5 = vmul.f32 1.442695, %v5783_v30  ;;  %v5788_v48 = vsub.f32 %v12405_v52, %v12545_v17 }
 0x607   : > { %7352 = vpow2.f32 %v5813_v55  ;;  %v5821_v36 = vmul.f32 1.442695, %v5784_v34  ;;  %v5789_v57 = vsub.f32 %v12440_v20, %v12545_v17  ;;  %v5823_v12 = vmul.f32 1.442695, %v5785_v43 }
 0x608   : > { %7354 = vpow2.f32 %v5815_v62  ;;  %v5790_v49 = vsub.f32 %v12431_v23, %v12545_v17  ;;  %v5825_v21 = vmul.f32 1.442695, %v5786_v10  ;;  %v5791_v59 = vsub.f32 %v12424_v15, %v12545_v17 }
 0x609   : > { %7356 = vpow2.f32 %v5817_v22  ;;  %v5827_v1 = vmul.f32 1.442695, %v5787_v8  ;;  %v5792_v52 = vsub.f32 %v12418_v2, %v12545_v17  ;;  %v5829_v30 = vmul.f32 1.442695, %v5788_v48 }
 0x60a   : > { %7358 = vpow2.f32 %v5819_v5  ;;  %v5793_v20 = vsub.f32 %v12453_v53, %v12545_v17  ;;  %v5831_v62 = vmul.f32 1.442695, %v5789_v57  ;;  %v5794_v23 = vsub.f32 %v12447_v11, %v12545_v17 }
 0x60b   : > { %7360 = vpow2.f32 %v5821_v36  ;;  %v5833_v34 = vmul.f32 1.442695, %v5790_v49  ;;  %v5835_v22 = vmul.f32 1.442695, %v5791_v59  ;;  %v5837_v2 = vmul.f32 1.442695, %v5792_v52 }
 0x60c   : > { %7362 = vpow2.f32 %v5823_v12  ;;  %v5839_v8 = vmul.f32 1.442695, %v5793_v20  ;;  %v5841_v5 = vmul.f32 1.442695, %v5794_v23  ;;  %v5843_v36 = vmul.f32 1.442695, %v5795_v61 }
 0x60d   : > { %7364 = vpow2.f32 %v5825_v21  ;;  %v5845_v55 = vmul.f32 1.442695, %v5796_v32  ;;  %v13884_v52 = vld [vmem:[#allocation45_spill] sm:$0xff] }
 0x60e   : > { %v12603_v0 = vpop.eup %7348  ;;  %7366 = vpow2.f32 %v5827_v1 }
 0x60f   : > { %v12615_v15 = vmul.f32 %v12603_v0, %v12385_v63  ;;  %7368 = vpow2.f32 %v5829_v30 }
 0x610   : > { %v12617_v10 = vpop.eup %7350  ;;  %7370 = vpow2.f32 %v5831_v62  ;;  %v13886_v62 = vld [vmem:[#allocation100_spill] sm:$0xff] }
 0x611   : > { %v12619_v53 = vpop.eup %7352  ;;  %7372 = vpow2.f32 %v5833_v34  ;;  %v12623_v11 = vmul.f32 %v12617_v10, %v12180_v16  ;;  %v5847_v16 = vmul.f32 1.442695, %v5797_v3  ;;  %v13887_v34 = vsub.f32 %v12521_v56, %v12545_v17 }
 0x612   : > { %v12625_v48 = vpop.eup %7354  ;;  %7374 = vpow2.f32 %v5835_v22  ;;  %v12629_v63 = vmul.f32 %v12619_v53, %v12212_v45 }
 0x613   : > { %v12633_v27 = vpop.eup %7356  ;;  %7376 = vpow2.f32 %v5837_v2  ;;  %v12643_v61 = vmul.f32 %v12625_v48, %v12165_v33  ;;  %v5849_v33 = vmul.f32 1.442695, %v5798_v6  ;;  %v5865_v22 = vmul.f32 1.442695, %v13887_v34  ;;  %v13888_v2 = vld [vmem:[#allocation115_spill] sm:$0xff] }
 0x614   : > { %v12645_v45 = vpop.eup %7358  ;;  %7378 = vpow2.f32 %v5839_v8  ;;  %v5929_v57 = vpack.c.bf16 %v12629_v63, %v12623_v11  ;;  %v12651_v12 = vmul.f32 %v12633_v27, %v12193_v26  ;;  %v5851_v26 = vmul.f32 1.442695, %v5799_v44 }
 0x615   : > { %v12655_v32 = vpop.eup %7360  ;;  %7380 = vpow2.f32 %v5841_v5  ;;  %v12662_v25 = vmul.f32 %v12645_v45, %v12238_v51  ;;  %v5853_v51 = vmul.f32 1.442695, %v5800_v58  ;;  %v5855_v44 = vmul.f32 1.442695, %v5801_v38 }
 0x616   : > { %v12664_v3 = vpop.eup %7362  ;;  %7382 = vpow2.f32 %v5843_v36  ;;  %v5930_v49 = vpack.c.bf16 %v12651_v12, %v12643_v61  ;;  %v12673_v21 = vmul.f32 %v12655_v32, %v12248_v18  ;;  %v5859_v38 = vmul.f32 1.442695, %v5803_v24 }
 0x617   : > { %v12675_v37 = vpop.eup %7364  ;;  %7384 = vpow2.f32 %v5845_v55  ;;  %v12682_v6 = vmul.f32 %v12664_v3, %v12228_v54  ;;  %v5857_v54 = vmul.f32 1.442695, %v5802_v29  ;;  %v13885_v24 = vsub.f32 %v12524_v14, %v12545_v17 }
 0x618   : > { %v12684_v60 = vpop.eup %7366  ;;  %7386 = vpow2.f32 %v5847_v16  ;;  %v5931_v18 = vpack.c.bf16 %v12673_v21, %v12662_v25  ;;  %v12693_v59 = vmul.f32 %v12675_v37, %v12243_v41  ;;  %v13889_v5 = vsub.f32 %v12530_v13, %v12545_v17  ;;  %v13890_v16 = vld [vmem:[#allocation111_spill] sm:$0xff]  ;;  %v13910_v25 = vld [vmem:[#allocation42_spill] sm:$0xff] }
 0x619   : > { %v12695_v28 = vpop.eup %7368  ;;  %7388 = vpow2.f32 %v5849_v33  ;;  %v12702_v58 = vmul.f32 %v12684_v60, %v12289_v7  ;;  %v13883_v7 = vsub.f32 %v12515_v31, %v12545_v17  ;;  %v5863_v20 = vmul.f32 1.442695, %v13885_v24  ;;  %v13894_v24 = vld [vmem:[#allocation46_spill] sm:$0xff] }
 0x61a   : > { %v12704_v50 = vpop.eup %7370  ;;  %7390 = vpow2.f32 %v5851_v26  ;;  %v5932_v41 = vpack.c.bf16 %v12693_v59, %v12682_v6  ;;  %v12713_v1 = vmul.f32 %v12695_v28, %v12292_v42  ;;  %v5867_v36 = vmul.f32 1.442695, %v13889_v5 }
 0x61b   : > { %v12715_v46 = vpop.eup %7372  ;;  %7392 = vpow2.f32 %v5853_v51  ;;  %v5861_v29 = vmul.f32 1.442695, %v13883_v7  ;;  %v12722_v30 = vmul.f32 %v12704_v50, %v13884_v52  ;;  %v13891_v26 = vsub.f32 %v12527_v9, %v12545_v17 }
 0x61c   : > { %v12724_v4 = vpop.eup %7374  ;;  %7394 = vpow2.f32 %v5855_v44  ;;  %v5933_v42 = vpack.c.bf16 %v12713_v1, %v12702_v58  ;;  %v12733_v23 = vmul.f32 %v12715_v46, %v13886_v62  ;;  %v13892_v44 = vld [vmem:[#allocation102_spill] sm:$0xff]  ;;  %v13895_v62 = vld [vmem:[#allocation71_spill] sm:$0xff]  ;;  %v4569_v21 = vadd.s32 16, %v13910_v25 }
 0x61d   : > { %v12735_v31 = vpop.eup %7376  ;;  %7396 = vpow2.f32 %v5857_v54  ;;  %v12742_v8 = vmul.f32 %v12724_v4, %v13888_v2  ;;  %v5869_v51 = vmul.f32 1.442695, %v13891_v26  ;;  %v13897_v26 = vld [vmem:[#allocation120_spill] sm:$0xff]  ;;  %v4571_v59 = vadd.s32 32, %v13910_v25 }
 0x61e   : > { %v12744_v14 = vpop.eup %7378  ;;  %7398 = vpow2.f32 %v5859_v38  ;;  %v5934_v55 = vpack.c.bf16 %v12733_v23, %v12722_v30  ;;  %v12753_v33 = vmul.f32 %v12735_v31, %v13890_v16  ;;  %v13893_v38 = vsub.f32 %v12533_v40, %v12545_v17 }
 0x61f   : > { %v12755_v56 = vpop.eup %7380  ;;  %7400 = vpow2.f32 %v5861_v29  ;;  %v12762_v54 = vmul.f32 %v12744_v14, %v13892_v44  ;;  %v4572_v58 = vadd.s32 40, %v13910_v25  ;;  %v13916_v30 = vpack.c.bf16 %v12619_v53, %v12617_v10 }
 0x620   : > { %v12764_v13 = vpop.eup %7382  ;;  %7402 = vpow2.f32 %v5863_v20  ;;  %v5873_v7 = vmul.f32 1.442695, %v13893_v38  ;;  %v5935_v52 = vpack.c.bf16 %v12753_v33, %v12742_v8  ;;  %v12773_v29 = vmul.f32 %v12755_v56, %v13894_v24  ;;  %v13896_v20 = vld [vmem:[#allocation121_spill] sm:$0xff] }
 0x621   : > { %v12775_v9 = vpop.eup %7384  ;;  %7404 = vpow2.f32 %v5865_v22  ;;  %v5913_v34 = vmul.f32 %v12764_v13, %v13895_v62  ;;  %v13918_v23 = vpack.c.bf16 %v12633_v27, %v12625_v48  ;;  %v6044_v8 = vpack.c.bf16 %v12655_v32, %v12645_v45 }
 0x622   : > { %v12779_v2 = vpop.eup %7386  ;;  %7406 = vpow2.f32 %v5867_v36  ;;  %v5914_v40 = vmul.f32 %v12775_v9, %v13896_v20  ;;  %v5936_v17 = vpack.c.bf16 %v12773_v29, %v12762_v54  ;;  %v6050_v5 = vpack.c.bf16 %v12775_v9, %v12764_v13  ;;  %v13898_v36 = vld [vmem:[#allocation116_spill] sm:$0xff] }
 0x623   : > { %v12787_v16 = vpop.eup %7388  ;;  %7408 = vpow2.f32 %v5869_v51  ;;  %v5915_v22 = vmul.f32 %v12779_v2, %v13897_v26  ;;  %v13900_v26 = vld [vmem:[#allocation97_spill] sm:$0xff]  ;;  %v4574_v33 = vadd.s32 56, %v13910_v25  ;;  %v6045_v48 = vpack.c.bf16 %v12675_v37, %v12664_v3 }
 0x624   : > { %v12791_v44 = vpop.eup %7390  ;;  %7410 = vpow2.f32 %v5873_v7  ;;  %v5937_v38 = vpack.c.bf16 %v5914_v40, %v5913_v34  ;;  %v5916_v24 = vmul.f32 %v12787_v16, %v13898_v36  ;;  %v6051_v62 = vpack.c.bf16 %v12787_v16, %v12779_v2  ;;  %v13901_v2 = vld [vmem:[#allocation40_spill] sm:$0xff] }
 0x625   : > { %v12797_v20 = vpop.eup %7392  ;;  %v5917_v13 = vmul.f32 %v12791_v44, %v13899_v19  ;;  %v6046_v3 = vpack.c.bf16 %v12695_v28, %v12684_v60  ;;  %v6047_v37 = vpack.c.bf16 %v12715_v46, %v12704_v50  ;;  %v6048_v60 = vpack.c.bf16 %v12735_v31, %v12724_v4 }
 0x626   : > { %v12801_v9 = vpop.eup %7394  ;;  %6648 = vmatprep.subr.bf16.mxu0 %v5937_v38  ;;  %v5938_v51 = vpack.c.bf16 %v5916_v24, %v5915_v22  ;;  %v5918_v43 = vmul.f32 %v12797_v20, %v13900_v26  ;;  %v6052_v7 = vpack.c.bf16 %v12797_v20, %v12791_v44  ;;  %v13902_v22 = vld [vmem:[#allocation90_spill] sm:$0xff]  ;;  %v13903_v24 = vld [vmem:[#allocation124_spill] sm:$0xff]  ;;  %v6049_v50 = vpack.c.bf16 %v12755_v56, %v12744_v14 }
 0x627   : > { %v12807_v34 = vpop.eup %7396  ;;  %6649 = vmatpush3.bf16.msra.mxu0 %v5929_v57  ;;  %v5919_v40 = vmul.f32 %v12801_v9, %v13901_v2  ;;  %v13904_v57 = vld [vmem:[#allocation126_spill] sm:$0xff]  ;;  %v5875_v14 = vld [vmem:[#allocation2] sm:$0xff] }
 0x628   : > { %v12814_v19 = vpop.eup %7398  ;;  %6650 = vmatprep.subr.bf16.mxu0 %v5938_v51  ;;  %v5939_v16 = vpack.c.bf16 %v5918_v43, %v5917_v13  ;;  %v5920_v38 = vmul.f32 %v12807_v34, %v13902_v22  ;;  %v6053_v36 = vpack.c.bf16 %v12807_v34, %v12801_v9  ;;  %v13905_v9 = vld [vmem:[#allocation118_spill] sm:$0xff] }
 0x629   : > { %v12820_v44 = vpop.eup %7400  ;;  %v5921_v20 = vmul.f32 %v12814_v19, %v13903_v24 }
 0x62a   : > { %v12824_v11 = vpop.eup %7402  ;;  %v5940_v63 = vpack.c.bf16 %v5920_v38, %v5919_v40  ;;  %v5922_v26 = vmul.f32 %v12820_v44, %v13904_v57  ;;  %v13906_v40 = vld [vmem:[#allocation56_spill] sm:$0xff]  ;;  %v13907_v57 = vld [vmem:[#allocation123_spill] sm:$0xff]  ;;  %v13925_v45 = vpack.c.bf16 %v12820_v44, %v12814_v19 }
 0x62b   : > { %v12830_v13 = vpop.eup %7404  ;;  %6651 = vmatpush3.bf16.msra.mxu0 %v5930_v49  ;;  %v5923_v51 = vmul.f32 %v12824_v11, %v13905_v9  ;;  %v13908_v49 = vld [vmem:[#allocation59_spill] sm:$0xff] }
 0x62c   : > { %v12837_v34 = vpop.eup %7406  ;;  %6652 = vmatprep.subr.bf16.mxu0 %v5939_v16  ;;  %v5941_v2 = vpack.c.bf16 %v5922_v26, %v5921_v20  ;;  %v5924_v22 = vmul.f32 %v12830_v13, %v13906_v40  ;;  %v6055_v38 = vpack.c.bf16 %v12830_v13, %v12824_v11  ;;  %v13909_v20 = vld [vmem:[#allocation65_spill] sm:$0xff] }
 0x62d   : > { %v12843_v24 = vpop.eup %7408  ;;  %v5925_v43 = vmul.f32 %v12837_v34, %v13907_v57 }
 0x62e   : > { %v12847_v61 = vpop.eup %7410  ;;  %v5942_v12 = vpack.c.bf16 %v5924_v22, %v5923_v51  ;;  %v5926_v9 = vmul.f32 %v12843_v24, %v13908_v49  ;;  %v6056_v16 = vpack.c.bf16 %v12843_v24, %v12837_v34 }
 0x62f   : > { %6653 = vmatpush3.bf16.msra.mxu0 %v5931_v18  ;;  %v5928_v11 = vmul.f32 %v12847_v61, %v13909_v20  ;;  %v6057_v26 = vpack.c.bf16 %v12847_v61, %v12603_v0  ;;  %v4570_v18 = vadd.s32 24, %v13910_v25  ;;  %v13929_v0 = vsub.f32 %v12536_v47, %v12539_v39  ;;  %v5877_v39 = vld [vmem:[#allocation2 + $0x10] sm:$0xff]  ;;  %v5879_v61 = vld [vmem:[#allocation2 + $0x20] sm:$0xff] }
 0x630   : > { %6654 = vmatprep.subr.bf16.mxu0 %v5940_v63  ;;  %v5943_v13 = vpack.c.bf16 %v5926_v9, %v5925_v43  ;;  %v5878_v63 = vld [vmem:[#allocation2 + $0x18] sm:$0xff]  ;;  %v5880_v9 = vld [vmem:[#allocation2 + $0x28] sm:$0xff] }
 0x631   : > { %v5944_v51 = vpack.c.bf16 %v5928_v11, %v12615_v15  ;;  %v13911_v15 = vld [vmem:[#allocation96_spill] sm:$0xff]  ;;  %v5771_v46 = vmul.f32 1.442695, %v13929_v0  ;;  %v6028_v0 = vld [vmem:[#allocation3 + $0x10] sm:$0xff] }
 0x632   : > { %vm4588_vm9 = vcmp.eq.s32.totalorder %v4569_v21, %v13911_v15  ;;  %vm4590_vm0 = vcmp.eq.s32.totalorder %v4570_v18, %v13911_v15  ;;  %vm4592_vm7 = vcmp.eq.s32.totalorder %v4571_v59, %v13911_v15  ;;  %vm4594_vm13 = vcmp.eq.s32.totalorder %v4572_v58, %v13911_v15 }
 0x633   : > { %6655 = vmatpush3.bf16.msra.mxu0 %v5932_v41  ;;  %vm12880_vm2 = vmpackc.low %vm4590_vm0, %vm4588_vm9  ;;  %v13914_v41 = vmov 1.0|1.0   ;;  %vm4598_vm3 = vcmp.eq.s32.totalorder %v4574_v33, %v13911_v15  ;;  %7412 = vpow2.f32 %v5771_v46 }
 0x634   : > { %6656 = vmatprep.subr.bf16.mxu0 %v5941_v2  ;;  %vm12906_vm14 = vmpackc.low %vm4594_vm13, %vm4592_vm7 }
 0x637   : > { %6657 = vmatpush3.bf16.msra.mxu0 %v5933_v42  ;;  %v13917_v42 = vld [vmem:[#allocation82_spill] sm:$0xff] }
 0x638   : > { %6658 = vmatprep.subr.bf16.mxu0 %v5942_v12  ;;  %vm4587_vm5 = vcmp.eq.s32.totalorder %v4569_v21, %v13917_v42  ;;  %vm4589_vm15 = vcmp.eq.s32.totalorder %v4570_v18, %v13917_v42  ;;  %vm4591_vm8 = vcmp.eq.s32.totalorder %v4571_v59, %v13917_v42  ;;  %vm4593_vm6 = vcmp.eq.s32.totalorder %v4572_v58, %v13917_v42  ;;  %v5881_v18 = vld [vmem:[#allocation2 + $0x30] sm:$0xff]  ;;  %v5882_v59 = vld [vmem:[#allocation2 + $0x38] sm:$0xff] }
 0x639   : > { %vm12902_vm1 = vmpackc.low %vm4589_vm15, %vm4587_vm5  ;;  %vm4597_vm5 = vcmp.eq.s32.totalorder %v4574_v33, %v13917_v42 }
 0x63a   : > { %vm12926_vm11 = vmpackc.low %vm4593_vm6, %vm4591_vm8 }
 0x63b   : > { %6659 = vmatpush3.bf16.msra.mxu0 %v5934_v55  ;;  %v4573_v55 = vadd.s32 48, %v13910_v25 }
 0x63c   : > { %6660 = vmatprep.subr.bf16.mxu0 %v5943_v13 }
 0x63d   : > { %vm4596_vm12 = vcmp.eq.s32.totalorder %v4573_v55, %v13911_v15  ;;  %vm4595_vm0 = vcmp.eq.s32.totalorder %v4573_v55, %v13917_v42  ;;  %v7413_v4 = vpop.eup %7412 }
 0x63e   : > { %vm12933_vm9 = vmpackc.low %vm4598_vm3, %vm4596_vm12  ;;  %v12983_v31 = vrot.slane %v7413_v4, %v12484_v35 }
 0x63f   : > { %6661 = vmatpush3.bf16.msra.mxu0 %v5935_v52  ;;  %vm6533_vm15 = vmpackc.low %vm4597_vm5, %vm4595_vm0  ;;  %v5876_v52 = vld [vmem:[#allocation2 + $0x8] sm:$0xff] }
 0x640   : > { %6662 = vmatprep.subr.bf16.mxu0 %v5944_v51  ;;  %v5889_v29 = vmul.f32 %v12983_v31, %v5875_v14  ;;  %v5890_v19 = vmul.f32 %v12983_v31, %v5876_v52  ;;  %v5891_v43 = vmul.f32 %v12983_v31, %v5877_v39  ;;  %v5894_v51 = vmul.f32 %v12983_v31, %v5880_v9  ;;  %v6029_v14 = vld [vmem:[#allocation3 + $0x18] sm:$0xff]  ;;  %v6031_v39 = vld [vmem:[#allocation3 + $0x28] sm:$0xff] }
 0x641   : > { %v5895_v58 = vmul.f32 %v12983_v31, %v5881_v18 }
 0x643   : > { %6663 = vmatpush3.bf16.msra.mxu0 %v5936_v17 }
 0x644   : > { %6688 = vmatprep.subr.bf16.mxu0 %v6050_v5 }
 0x646   : > { %6522 = vmatmul.mubr.msk.bf16.vlgmr.msra.gmra.mrb[60].mxu0 %vm12504_vm4, %v13914_v41 }
 0x647   : > { %6689 = vmatpush3.bf16.msra.mxu0 %v13916_v30  ;;  %6524 = vmatprep.mubr.msk.bf16.mxu0 %vm12880_vm2, %v13914_v41 }
 0x648   : > { %6690 = vmatprep.subr.bf16.mxu0 %v6051_v62 }
 0x64b   : > { %6691 = vmatpush3.bf16.msra.mxu0 %v13918_v23  ;;  %v5896_v23 = vmul.f32 %v12983_v31, %v5882_v59 }
 0x64c   : > { %6692 = vmatprep.subr.bf16.mxu0 %v6052_v7 }
 0x64e   : > { %6526 = vmatmul.mubr.msk.bf16.gmra.mrb[64].mxu0 %vm12902_vm1, %v13914_v41 }
 0x64f   : > { %6693 = vmatpush3.bf16.msra.mxu0 %v6044_v8  ;;  %6528 = vmatprep.mubr.msk.bf16.mxu0 %vm12906_vm14, %v13914_v41  ;;  %v6026_v8 = vld [vmem:[#allocation3] sm:$0xff] }
 0x650   : > { %6694 = vmatprep.subr.bf16.mxu0 %v6053_v36  ;;  %v6034_v27 = vmul.f32 %v6026_v8, %v12983_v31 }
 0x653   : > { %6695 = vmatpush3.bf16.msra.mxu0 %v6045_v48  ;;  %v6027_v48 = vld [vmem:[#allocation3 + $0x8] sm:$0xff] }
 0x654   : > { %6696 = vmatprep.subr.bf16.mxu0 %v13925_v45 }
 0x656   : > { %6530 = vmatmul.mubr.msk.bf16.gmra.mrb[68].mxu0 %vm12926_vm11, %v13914_v41 }
 0x657   : > { %6697 = vmatpush3.bf16.msra.mxu0 %v6046_v3  ;;  %6532 = vmatprep.mubr.msk.bf16.mxu0 %vm12933_vm9, %v13914_v41 }
 0x658   : > { %6698 = vmatprep.subr.bf16.mxu0 %v6055_v38  ;;  %v5892_v38 = vmul.f32 %v12983_v31, %v5878_v63 }
 0x65b   : > { %6699 = vmatpush3.bf16.msra.mxu0 %v6047_v37 }
 0x65c   : > { %6700 = vmatprep.subr.bf16.mxu0 %v6056_v16  ;;  %v5893_v16 = vmul.f32 %v12983_v31, %v5879_v61  ;;  %v6033_v61 = vld [vmem:[#allocation3 + $0x38] sm:$0xff] }
 0x65e   : > { %6534 = vmatmul.mubr.msk.bf16.gmra.mrb[72].mxu0 %vm6533_vm15, %v13914_v41 }
 0x65f   : > { %6701 = vmatpush3.bf16.msra.mxu0 %v6048_v60  ;;  %6536 = vmatprep.mubr.msk.bf16.mxu0 %vm12508_vm10, %v13914_v41  ;;  %v6035_v60 = vmul.f32 %v6027_v48, %v12983_v31 }
 0x660   : > { %6702 = vmatprep.subr.bf16.mxu0 %v6057_v26 }
 0x663   : > { %6703 = vmatpush3.bf16.msra.mxu0 %v6049_v50 }
 0x666   : > { %6538 = vmatmul.mubr.msk.bf16.vlgmr.msra.gmra.mrb[76].mxu0 %vm12504_vm4, %v13914_v41 }
 0x667   : > { %6540 = vmatprep.mubr.msk.bf16.mxu0 %vm12880_vm2, %v13914_v41 }
 0x66e   : > { %6542 = vmatmul.mubr.msk.bf16.gmra.mrb[80].mxu0 %vm12902_vm1, %v13914_v41 }
 0x66f   : > { %6544 = vmatprep.mubr.msk.bf16.mxu0 %vm12906_vm14, %v13914_v41 }
 0x676   : > { %6546 = vmatmul.mubr.msk.bf16.gmra.mrb[84].mxu0 %vm12926_vm11, %v13914_v41 }
 0x677   : > { %6548 = vmatprep.mubr.msk.bf16.mxu0 %vm12933_vm9, %v13914_v41 }
 0x67e   : > { %6550 = vmatmul.mubr.msk.bf16.gmra.mrb[88].mxu0 %vm6533_vm15, %v13914_v41 }
 0x719   : > { %v6664_v56 = vpop.f32.mrb[60].mxu0 }
 0x71a   : > { %v6665_v54 = vpop.f32.mrb[61].mxu0 }
 0x71b   : > { %v6666_v17 = vadd.f32 %v6665_v54, %v6664_v56  ;;  %v6667_v5 = vpop.f32.mrb[62].mxu0  ;;  %v6036_v56 = vmul.f32 %v6028_v0, %v12983_v31 }
 0x71c   : > { %v6668_v62 = vpop.f32.mrb[63].mxu0 }
 0x71d   : > { %v6010_v7 = vadd.f32 %v6666_v17, %v5889_v29  ;;  %v6669_v36 = vadd.f32 %v6668_v62, %v6667_v5  ;;  %v6037_v5 = vmul.f32 %v6029_v14, %v12983_v31 }
 0x71f   : > { %6018 = vst [vmem:[#allocation2] sm:$0xff] %v6010_v7  ;;  %v6011_v47 = vadd.f32 %v6669_v36, %v5890_v19  ;;  %v6030_v19 = vld [vmem:[#allocation3 + $0x20] sm:$0xff] }
 0x721   : > { %6019 = vst [vmem:[#allocation2 + $0x8] sm:$0xff] %v6011_v47  ;;  %v6670_v44 = vpop.f32.mrb[64].mxu0 }
 0x722   : > { %v6671_v35 = vpop.f32.mrb[65].mxu0 }
 0x723   : > { %v6672_v34 = vadd.f32 %v6671_v35, %v6670_v44  ;;  %v6673_v2 = vpop.f32.mrb[66].mxu0  ;;  %v6038_v44 = vmul.f32 %v6030_v19, %v12983_v31 }
 0x724   : > { %v6674_v40 = vpop.f32.mrb[67].mxu0 }
 0x725   : > { %v6012_v22 = vadd.f32 %v6672_v34, %v5891_v43  ;;  %v6675_v24 = vadd.f32 %v6674_v40, %v6673_v2  ;;  %v6039_v2 = vmul.f32 %v6031_v39, %v12983_v31 }
 0x726   : > { %v6168_v8 = vld [vmem:[#allocation2] sm:$0xff] (!%p6551_p6) }
 0x727   : > { %6020 = vst [vmem:[#allocation2 + $0x10] sm:$0xff] %v6012_v22  ;;  %v6013_v57 = vadd.f32 %v6675_v24, %v5892_v38  ;;  %v6032_v38 = vld [vmem:[#allocation3 + $0x30] sm:$0xff] }
 0x729   : > { %6021 = vst [vmem:[#allocation2 + $0x18] sm:$0xff] %v6013_v57  ;;  %v6676_v12 = vpop.f32.mrb[68].mxu0 }
 0x72a   : > { %v6677_v49 = vpop.f32.mrb[69].mxu0 }
 0x72b   : > { %v6678_v20 = vadd.f32 %v6677_v49, %v6676_v12  ;;  %v6679_v11 = vpop.f32.mrb[70].mxu0  ;;  %v6040_v12 = vmul.f32 %v6032_v38, %v12983_v31 }
 0x72c   : > { %v6680_v26 = vpop.f32.mrb[71].mxu0 }
 0x72d   : > { %v6014_v13 = vadd.f32 %v6678_v20, %v5893_v16  ;;  %v6681_v25 = vadd.f32 %v6680_v26, %v6679_v11  ;;  %v6041_v11 = vmul.f32 %v6033_v61, %v12983_v31 }
 0x72e   : > { %v6170_v48 = vld [vmem:[#allocation2 + $0x10] sm:$0xff] (!%p6551_p6) }
 0x72f   : > { %6022 = vst [vmem:[#allocation2 + $0x20] sm:$0xff] %v6014_v13  ;;  %v6015_v21 = vadd.f32 %v6681_v25, %v5894_v51 }
 0x731   : > { %6023 = vst [vmem:[#allocation2 + $0x28] sm:$0xff] %v6015_v21  ;;  %v6682_v15 = vpop.f32.mrb[72].mxu0 }
 0x732   : > { %v6683_v6 = vpop.f32.mrb[73].mxu0 }
 0x733   : > { %v6684_v41 = vadd.f32 %v6683_v6, %v6682_v15  ;;  %v6685_v1 = vpop.f32.mrb[74].mxu0 }
 0x734   : > { %v6686_v30 = vpop.f32.mrb[75].mxu0 }
 0x735   : > { %v6016_v42 = vadd.f32 %v6684_v41, %v5895_v58  ;;  %v6687_v10 = vadd.f32 %v6686_v30, %v6685_v1 }
 0x737   : > { %6024 = vst [vmem:[#allocation2 + $0x30] sm:$0xff] %v6016_v42  ;;  %v6017_v53 = vadd.f32 %v6687_v10, %v5896_v23 }
 0x738   : > { %v6173_v0 = vld [vmem:[#allocation2 + $0x28] sm:$0xff] (!%p6551_p6) }
 0x739   : > { %6025 = vst [vmem:[#allocation2 + $0x38] sm:$0xff] %v6017_v53  ;;  %v6704_v55 = vpop.f32.mrb[76].mxu0 }
 0x73a   : > { %v6705_v33 = vpop.f32.mrb[77].mxu0 }
 0x73b   : > { %v6706_v45 = vadd.f32 %v6705_v33, %v6704_v55  ;;  %v6707_v32 = vpop.f32.mrb[78].mxu0  ;;  %v6169_v55 = vld [vmem:[#allocation2 + $0x8] sm:$0xff] (!%p6551_p6) }
 0x73c   : > { %v6708_v3 = vpop.f32.mrb[79].mxu0 }
 0x73d   : > { %v6123_v37 = vadd.f32 %v6706_v45, %v6034_v27  ;;  %v6709_v28 = vadd.f32 %v6708_v3, %v6707_v32  ;;  %v6171_v32 = vld [vmem:[#allocation2 + $0x18] sm:$0xff] (!%p6551_p6) }
 0x73e   : > { %v6174_v14 = vld [vmem:[#allocation2 + $0x30] sm:$0xff] (!%p6551_p6) }
 0x73f   : > { %6131 = vst [vmem:[#allocation3] sm:$0xff] %v6123_v37  ;;  %v6124_v50 = vadd.f32 %v6709_v28, %v6035_v60  ;;  %v6172_v60 = vld [vmem:[#allocation2 + $0x20] sm:$0xff] (!%p6551_p6) }
 0x741   : > { %6132 = vst [vmem:[#allocation3 + $0x8] sm:$0xff] %v6124_v50  ;;  %v6710_v46 = vpop.f32.mrb[80].mxu0 }
 0x742   : > { %v6711_v4 = vpop.f32.mrb[81].mxu0 }
 0x743   : > { %v6712_v54 = vadd.f32 %v6711_v4, %v6710_v46  ;;  %v6713_v52 = vpop.f32.mrb[82].mxu0 }
 0x744   : > { %v6714_v29 = vpop.f32.mrb[83].mxu0 }
 0x745   : > { %v6125_v17 = vadd.f32 %v6712_v54, %v6036_v56  ;;  %v6715_v62 = vadd.f32 %v6714_v29, %v6713_v52  ;;  %v6175_v52 = vld [vmem:[#allocation2 + $0x38] sm:$0xff] (!%p6551_p6) }
 0x746   : > { %v6144_v51 = vld [vmem:[#allocation3] sm:$0xff] (!%p6551_p6) }
 0x747   : > { %6133 = vst [vmem:[#allocation3 + $0x10] sm:$0xff] %v6125_v17  ;;  %v6126_v7 = vadd.f32 %v6715_v62, %v6037_v5  ;;  %v6152_v21 = vadd.f32 (!%p6551_p6), 1e-16, %v6144_v51 }
 0x748   : > { %v6145_v25 = vld [vmem:[#allocation3 + $0x8] sm:$0xff] (!%p6551_p6) }
 0x749   : > { %6134 = vst [vmem:[#allocation3 + $0x18] sm:$0xff] %v6126_v7  ;;  %v6716_v36 = vpop.f32.mrb[84].mxu0  ;;  %v6153_v18 = vadd.f32 (!%p6551_p6), 1e-16, %v6145_v25  ;;  %7422 = vrcp.f32 (!%p6551_p6), %v6152_v21 }
 0x74a   : > { %v6717_v47 = vpop.f32.mrb[85].mxu0 }
 0x74b   : > { %v6718_v35 = vadd.f32 %v6717_v47, %v6716_v36  ;;  %v6719_v63 = vpop.f32.mrb[86].mxu0  ;;  %7424 = vrcp.f32 (!%p6551_p6), %v6153_v18 }
 0x74c   : > { %v6720_v43 = vpop.f32.mrb[87].mxu0 }
 0x74d   : > { %v6127_v34 = vadd.f32 %v6718_v35, %v6038_v44  ;;  %v6721_v40 = vadd.f32 %v6720_v43, %v6719_v63 }
 0x74e   : > { %v6146_v15 = vld [vmem:[#allocation3 + $0x10] sm:$0xff] (!%p6551_p6) }
 0x74f   : > { %6135 = vst [vmem:[#allocation3 + $0x20] sm:$0xff] %v6127_v34  ;;  %v6128_v22 = vadd.f32 %v6721_v40, %v6039_v2  ;;  %v6154_v6 = vadd.f32 (!%p6551_p6), 1e-16, %v6146_v15 }
 0x750   : > { %v6147_v59 = vld [vmem:[#allocation3 + $0x18] sm:$0xff] (!%p6551_p6) }
 0x751   : > { %6136 = vst [vmem:[#allocation3 + $0x28] sm:$0xff] %v6128_v22  ;;  %v6722_v24 = vpop.f32.mrb[88].mxu0  ;;  %v6155_v58 = vadd.f32 (!%p6551_p6), 1e-16, %v6147_v59  ;;  %7426 = vrcp.f32 (!%p6551_p6), %v6154_v6 }
 0x752   : > { %v6723_v57 = vpop.f32.mrb[89].mxu0 }
 0x753   : > { %v6724_v49 = vadd.f32 %v6723_v57, %v6722_v24  ;;  %v6725_v9 = vpop.f32.mrb[90].mxu0  ;;  %6143 = sbr.rel (%p6551_p6) target bundleno = 1905 (0x771), region = 56  ;;  %7428 = vrcp.f32 (!%p6551_p6), %v6155_v58  ;;  %v7423_v33 = vpop.eup (!%p6551_p6), %7422 }
 0x754   : > { %v6726_v16 = vpop.f32.mrb[91].mxu0  ;;  %v6176_v45 = vmul.f32 (!%p6551_p6), %v7423_v33, %v6168_v8 }
 0x755   : > { %v6129_v20 = vadd.f32 %v6724_v49, %v6040_v12  ;;  %v6727_v26 = vadd.f32 %v6726_v16, %v6725_v9  ;;  %v7425_v27 = vpop.eup (!%p6551_p6), %7424 }
 0x756   : > { %v6148_v41 = vld [vmem:[#allocation3 + $0x20] sm:$0xff] (!%p6551_p6)  ;;  %v6177_v37 = vmul.f32 (!%p6551_p6), %v7425_v27, %v6169_v55  ;;  %6184 = vst [vmem:[#allocation5] sm:$0xff] (!%p6551_p6), %v6176_v45 }
 0x757   : > { %6137 = vst [vmem:[#allocation3 + $0x30] sm:$0xff] %v6129_v20  ;;  %v6130_v13 = vadd.f32 %v6727_v26, %v6041_v11  ;;  %v6156_v31 = vadd.f32 (!%p6551_p6), 1e-16, %v6148_v41 }
 0x758   : > { %v6149_v1 = vld [vmem:[#allocation3 + $0x28] sm:$0xff] (!%p6551_p6)  ;;  %6185 = vst [vmem:[#allocation5 + $0x8] sm:$0xff] (!%p6551_p6), %v6177_v37 }
 0x759   : > { %6138 = vst [vmem:[#allocation3 + $0x38] sm:$0xff] %v6130_v13  ;;  %v6157_v30 = vadd.f32 (!%p6551_p6), 1e-16, %v6149_v1  ;;  %7430 = vrcp.f32 (!%p6551_p6), %v6156_v31 }
 0x75b   : > { %7432 = vrcp.f32 %v6157_v30  ;;  %v7427_v3 = vpop.eup %7426 }
 0x75c   : > { %v6178_v50 = vmul.f32 %v7427_v3, %v6170_v48 }
 0x75d   : > { %v7429_v28 = vpop.eup %7428 }
 0x75e   : > { %v6150_v42 = vld [vmem:[#allocation3 + $0x30] sm:$0xff]  ;;  %v6179_v4 = vmul.f32 %v7429_v28, %v6171_v32  ;;  %6186 = vst [vmem:[#allocation5 + $0x10] sm:$0xff] %v6178_v50 }
 0x75f   : > { %v6158_v23 = vadd.f32 1e-16, %v6150_v42 }
 0x760   : > { %v6151_v10 = vld [vmem:[#allocation3 + $0x38] sm:$0xff]  ;;  %6187 = vst [vmem:[#allocation5 + $0x18] sm:$0xff] %v6179_v4 }
 0x761   : > { %v6159_v53 = vadd.f32 1e-16, %v6151_v10  ;;  %7434 = vrcp.f32 %v6158_v23 }
 0x763   : > { %7436 = vrcp.f32 %v6159_v53  ;;  %v7431_v46 = vpop.eup %7430 }
 0x764   : > { %v6180_v54 = vmul.f32 %v7431_v46, %v6172_v60 }
 0x765   : > { %v7433_v56 = vpop.eup %7432 }
 0x766   : > { %v6181_v17 = vmul.f32 %v7433_v56, %v6173_v0  ;;  %6188 = vst [vmem:[#allocation5 + $0x20] sm:$0xff] %v6180_v54 }
 0x768   : > { %6189 = vst [vmem:[#allocation5 + $0x28] sm:$0xff] %v6181_v17 }
 0x76b   : > { %v7435_v29 = vpop.eup %7434 }
 0x76c   : > { %v6182_v62 = vmul.f32 %v7435_v29, %v6174_v14 }
 0x76d   : > { %v7437_v5 = vpop.eup %7436 }
 0x76e   : > { %v6183_v7 = vmul.f32 %v7437_v5, %v6175_v52  ;;  %6190 = vst [vmem:[#allocation5 + $0x30] sm:$0xff] %v6182_v62 }
 0x770   : > { %6191 = vst [vmem:[#allocation5 + $0x38] sm:$0xff] %v6183_v7 }
 0x771 PF: > { %p7140_p7 = scmp.eq.s32.totalorder %s7538_s25, 2  ;;  %s7489_s27 = smov [#allocation5]  }
 0x772   : > { %s6198_s11 = sshll.u32 %s7489_s27, 4  ;;  %s6199_s11 = int_to_ptr.vmem [resolvable:$true] %s6198_s11 }
 0x773   : > { %s7438_s10 = scalar_lea.vmem %s6199_s11, 1024  ;;  %p7445_p11 = scmp.lt.s32.totalorder %s6199_s11, %s6199_s11 }
 0x774   : > { %p7439_p8 = scmp.ne.s32.totalorder %s6199_s11, %s7438_s10  ;;  %p7446_p12 = scmp.lt.s32.totalorder %s7438_s10, %s7438_s10 }
 0x776   : > { %p7440_p9 = pnand %p7439_p8, %p7140_p7  ;;  %p7447_p13 = por %p7446_p12, %p7445_p11 }
 0x778   : > { %p7441_p10 = pneg %p7440_p9 }
 0x77a   : > { %p7448_p0 = pnand %p7447_p13, %p7441_p10 }
 0x77c   : > { %7451 = shalt.err (!%p7448_p0)
}
 0x77d   : > { %s7452_s14 = scalar_lea.hbm %s13035_s7, 1024 }
 0x77e   : > { %p7453_p1 = scmp.ne.s32.totalorder %s13035_s7, %s7452_s14  ;;  %p7458_p4 = scmp.lt.u32.totalorder %s7452_s14, %s13035_s7 }
 0x780   : > { %p7454_p2 = pnand %p7453_p1, %p7140_p7 }
 0x782   : > { %p7455_p3 = pneg %p7454_p2 }
 0x784   : > { %p7460_p5 = pnand %p7458_p4, %p7455_p3 }
 0x786   : > { %7463 = shalt.err (!%p7460_p5)
}
 0x787   : > { %s7490_s19 = smov 128   ;;  %s7491_s20 = smov 8  }
 0x788   : > { %7137 = dma.vmem_to_hbm [thread:$0]  (%p7140_p7), %s6199_s11, 1024, %s13035_s7, [#allocation6], %s7490_s19, %s7490_s19, %s7491_s20  }
 0x789   : > { %7469 = dma.done.wait (%p7140_p7), [#allocation6], 1024  }
 0x78a   : > { %7471 = vsyncadd (%p7140_p7), [#allocation6], 4294966272 }
 0x78b PF: > { %s18_s24 = sadd.s32 1, %s7474_s24  }
 0x78c   : > { %p15_p6 = scmp.ge.s32.totalorder %s18_s24, 5  }
 0x78e   :  { %17 = sbr.rel (!%p15_p6) target bundleno = 1 (0x1), region = 86 }
 0x795   :  { %6214 = vsyncpa [#allocation6], 1 }
 0x796   :  { %6216 = vsyncpa [#allocation6 + $0x1], 1 }

</bundles_post_ra>
